<compile_context>
chip_gen: v7x
topology: tpu7x:2x2x1
jax: 0.10.0
libtpu: 0.0.40
codegen_flags: <defaults>
</compile_context>

<pallas_src>
import functools
import math

import jax
import jax.numpy as jnp
from jax.experimental import pallas as pl
from jax.experimental.pallas import tpu as pltpu

NEG_SLOPE = 0.01   # nn.LeakyReLU default
BN_EPS = 1e-5      # nn.BatchNorm2d default
TM_TARGET = 1024   # row-tile target (memory-bound kernels want big tiles)


def _round_up(x, m):
    return ((x + m - 1) // m) * m


def _cdiv(a, b):
    return (a + b - 1) // b


# ----------------------------------------------------------------------------
# Pallas kernels
# ----------------------------------------------------------------------------
def _fused_matmul_kernel(x_ref, scale_ref, shift_ref, w_ref, bias_ref,
                         o_ref, stats_ref, *, apply_leaky, rows_valid,
                         block_rows):
    """o = act(x*scale + shift) @ w + bias; also emits per-channel partial
    (sum, sumsq) of the valid output rows for downstream BatchNorm."""
    a = x_ref[...].astype(jnp.float32) * scale_ref[...] + shift_ref[...]
    if apply_leaky:
        a = jnp.where(a >= 0, a, NEG_SLOPE * a)
    y = jnp.dot(a.astype(jnp.bfloat16), w_ref[...],
                preferred_element_type=jnp.float32)
    y = y + bias_ref[...]
    o_ref[...] = y.astype(o_ref.dtype)
    # Mask rows that were added only to pad M up to the tile grid.
    row0 = pl.program_id(0) * block_rows
    rid = row0 + jax.lax.broadcasted_iota(jnp.int32, (block_rows, 1), 0)
    valid = (rid < rows_valid).astype(jnp.float32)
    yv = y * valid
    s = jnp.sum(yv, axis=0, keepdims=True)        # (1, Npad)
    ss = jnp.sum(yv * yv, axis=0, keepdims=True)  # (1, Npad)
    rix = jax.lax.broadcasted_iota(jnp.int32, (8, y.shape[-1]), 0)
    stats_ref[...] = jnp.where(rix < 4, s, ss)    # rows 0-3: sum, rows 4-7: sumsq


def _affine_leaky_kernel(x_ref, scale_ref, shift_ref, o_ref):
    """o = leaky_relu(x * scale + shift)  (per-channel affine, channels last)."""
    a = x_ref[...].astype(jnp.float32) * scale_ref[...] + shift_ref[...]
    o_ref[...] = jnp.where(a >= 0, a, NEG_SLOPE * a)


def _conv3x3_kernel(x_ref, mask_ref, scale_ref, shift_ref, w_ref, o_ref, a_scr,
                    *, H, W):
    """Fused BN affine + LeakyReLU + zero-pad mask + 3x3 conv (pad 1, stride 1).

    x_ref holds one batch element's spatially padded activation, flattened to
    (Lf, Cmid) with Lf = (H+3)*(W+2).  The 9 conv taps are contiguous row-offset
    slices of that flattened buffer; outputs are produced on an (H, W+2) grid
    and the 2 wrap-around columns are sliced off outside the kernel.
    """
    a = x_ref[0].astype(jnp.float32) * scale_ref[...] + shift_ref[...]
    a = jnp.where(a >= 0, a, NEG_SLOPE * a)
    a = a * mask_ref[...]                 # zero the spatial padding border
    a_scr[...] = a.astype(jnp.bfloat16)
    wl = W + 2
    L = H * wl
    acc = None
    for dy in range(3):
        for dx in range(3):
            off = dy * wl + dx
            d = jnp.dot(a_scr[pl.ds(off, L), :], w_ref[dy * 3 + dx],
                        preferred_element_type=jnp.float32)
            acc = d if acc is None else acc + d
    o_ref[0] = acc


def _maxpool_kernel(e00_ref, e01_ref, e10_ref, e11_ref, o_ref, *, Ho, Wo):
    """3x3/s2/p1 max pool from the 4 stride-2 phase decompositions of the
    (-inf padded) input; all in-kernel slices are unit-stride."""
    a = e00_ref[0]        # even rows, even cols : 4 taps
    b = e01_ref[0]        # even rows, odd  cols : 2 taps
    c = e10_ref[0]        # odd  rows, even cols : 2 taps
    d = e11_ref[0]        # odd  rows, odd  cols : 1 tap
    m = a[0:Ho, 0:Wo]
    m = jnp.maximum(m, a[0:Ho, 1:Wo + 1])
    m = jnp.maximum(m, a[1:Ho + 1, 0:Wo])
    m = jnp.maximum(m, a[1:Ho + 1, 1:Wo + 1])
    m = jnp.maximum(m, b[0:Ho, 0:Wo])
    m = jnp.maximum(m, b[1:Ho + 1, 0:Wo])
    m = jnp.maximum(m, c[0:Ho, 0:Wo])
    m = jnp.maximum(m, c[0:Ho, 1:Wo + 1])
    m = jnp.maximum(m, d[0:Ho, 0:Wo])
    o_ref[0] = m


def _bn_relu_gap_kernel(x_ref, scale_ref, shift_ref, o_ref):
    """Fused final BatchNorm affine + ReLU + global average pool (one batch
    element per grid step).  Result is broadcast over 8 sublanes."""
    a = x_ref[0].astype(jnp.float32) * scale_ref[...] + shift_ref[...]
    a = jnp.maximum(a, 0.0)
    m = jnp.mean(a, axis=0, keepdims=True)            # (1, C)
    o_ref[0] = jnp.broadcast_to(m, (8, a.shape[-1]))


# ----------------------------------------------------------------------------
# Pallas wrappers
# ----------------------------------------------------------------------------
def _row_plan(M):
    tm = min(_round_up(M, 8), TM_TARGET)
    grid_m = _cdiv(M, tm)
    return tm, grid_m, grid_m * tm


def fused_matmul(x, scale, shift, w, bias, *, apply_leaky):
    """x: (M, K), scale/shift: (K,), w: (K, N), bias: (N,).
    Returns (y (M, N) float32, per-channel sum (N,), per-channel sumsq (N,))."""
    M, K = x.shape
    N = w.shape[1]
    Npad = _round_up(N, 128)
    if Npad != N:
        w = jnp.pad(w, ((0, 0), (0, Npad - N)))
        bias = jnp.pad(bias, (0, Npad - N))
    TM, grid_m, Mp = _row_plan(M)
    if Mp != M:
        x = jnp.pad(x, ((0, Mp - M), (0, 0)))
    out, stats = pl.pallas_call(
        functools.partial(_fused_matmul_kernel, apply_leaky=apply_leaky,
                          rows_valid=M, block_rows=TM),
        out_shape=(jax.ShapeDtypeStruct((Mp, Npad), jnp.float32),
                   jax.ShapeDtypeStruct((grid_m * 8, Npad), jnp.float32)),
        grid=(grid_m,),
        in_specs=[
            pl.BlockSpec((TM, K), lambda i: (i, 0)),
            pl.BlockSpec((1, K), lambda i: (0, 0)),
            pl.BlockSpec((1, K), lambda i: (0, 0)),
            pl.BlockSpec((K, Npad), lambda i: (0, 0)),
            pl.BlockSpec((1, Npad), lambda i: (0, 0)),
        ],
        out_specs=(pl.BlockSpec((TM, Npad), lambda i: (i, 0)),
                   pl.BlockSpec((8, Npad), lambda i: (i, 0))),
        compiler_params=pltpu.CompilerParams(dimension_semantics=("parallel",)),
    )(x,
      scale.reshape(1, K).astype(jnp.float32),
      shift.reshape(1, K).astype(jnp.float32),
      w.astype(jnp.bfloat16),
      bias.reshape(1, Npad).astype(jnp.float32))
    y = out[:M, :N]
    st = stats.reshape(grid_m, 8, Npad)
    ch_sum = jnp.sum(st[:, 0, :N], axis=0)
    ch_sumsq = jnp.sum(st[:, 4, :N], axis=0)
    return y, ch_sum, ch_sumsq


def affine_leaky(x2d, scale, shift):
    """x2d: (M, C) -> leaky_relu(x2d * scale + shift)."""
    M, C = x2d.shape
    TM, grid_m, Mp = _row_plan(M)
    if Mp != M:
        x2d = jnp.pad(x2d, ((0, Mp - M), (0, 0)))
    out = pl.pallas_call(
        _affine_leaky_kernel,
        out_shape=jax.ShapeDtypeStruct((Mp, C), jnp.float32),
        grid=(grid_m,),
        in_specs=[
            pl.BlockSpec((TM, C), lambda i: (i, 0)),
            pl.BlockSpec((1, C), lambda i: (0, 0)),
            pl.BlockSpec((1, C), lambda i: (0, 0)),
        ],
        out_specs=pl.BlockSpec((TM, C), lambda i: (i, 0)),
        compiler_params=pltpu.CompilerParams(dimension_semantics=("parallel",)),
    )(x2d, scale.reshape(1, C).astype(jnp.float32),
      shift.reshape(1, C).astype(jnp.float32))
    return out[:M]


def conv3x3_fused(y1, scale, shift, w):
    """Fused BN2 + LeakyReLU + 3x3/pad-1 conv.  y1: (N, H, W, Cmid) NHWC,
    w: (Cout, Cmid, 3, 3) torch layout.  Returns (N, H, W, Cout) float32."""
    N, H, W, Cmid = y1.shape
    Cout = w.shape[0]
    Cpad = _round_up(Cout, 128)
    wl = W + 2
    Lf = (H + 3) * wl     # 1 top pad row, 2 bottom pad rows (slice slack)
    L = H * wl
    # Spatial zero pad (raw values; the activation zero-border is re-imposed
    # inside the kernel by the mask, matching "activate then zero-pad").
    xp = jnp.pad(y1, ((0, 0), (1, 2), (1, 1), (0, 0)))
    xf = xp.reshape(N, Lf, Cmid)
    # Interior mask in flattened padded coordinates.
    r = jnp.arange(H + 3)
    c = jnp.arange(wl)
    mask = ((r[:, None] >= 1) & (r[:, None] <= H) &
            (c[None, :] >= 1) & (c[None, :] <= W))
    mask = mask.astype(jnp.float32).reshape(Lf, 1)
    # Weights -> (9, Cmid, Cpad) with tap order (dy, dx).
    wt = jnp.transpose(w, (2, 3, 1, 0)).reshape(9, Cmid, Cout)
    if Cpad != Cout:
        wt = jnp.pad(wt, ((0, 0), (0, 0), (0, Cpad - Cout)))
    wt = wt.astype(jnp.bfloat16)
    out_flat = pl.pallas_call(
        functools.partial(_conv3x3_kernel, H=H, W=W),
        out_shape=jax.ShapeDtypeStruct((N, L, Cpad), jnp.float32),
        grid=(N,),
        in_specs=[
            pl.BlockSpec((1, Lf, Cmid), lambda i: (i, 0, 0)),
            pl.BlockSpec((Lf, 1), lambda i: (0, 0)),
            pl.BlockSpec((1, Cmid), lambda i: (0, 0)),
            pl.BlockSpec((1, Cmid), lambda i: (0, 0)),
            pl.BlockSpec((9, Cmid, Cpad), lambda i: (0, 0, 0)),
        ],
        out_specs=pl.BlockSpec((1, L, Cpad), lambda i: (i, 0, 0)),
        scratch_shapes=[pltpu.VMEM((Lf, Cmid), jnp.bfloat16)],
        compiler_params=pltpu.CompilerParams(dimension_semantics=("parallel",)),
    )(xf, mask, scale.reshape(1, Cmid).astype(jnp.float32),
      shift.reshape(1, Cmid).astype(jnp.float32), wt)
    # Drop the 2 wrap-around columns and the channel padding.
    return out_flat.reshape(N, H, wl, Cpad)[:, :, :W, :Cout]


def maxpool_3x3_s2_p1(x):
    """MaxPool2d(kernel=3, stride=2, padding=1) on NHWC (even H, W)."""
    N, H, W, C = x.shape
    assert H % 2 == 0 and W % 2 == 0, "maxpool kernel assumes even spatial dims"
    Ho, Wo = H // 2, W // 2
    xp = jnp.pad(x, ((0, 0), (1, 1), (1, 1), (0, 0)), constant_values=-1e30)
    e00 = xp[:, 0::2, 0::2, :]
    e01 = xp[:, 0::2, 1::2, :]
    e10 = xp[:, 1::2, 0::2, :]
    e11 = xp[:, 1::2, 1::2, :]
    in_spec = pl.BlockSpec((1, Ho + 1, Wo + 1, C), lambda i: (i, 0, 0, 0))
    return pl.pallas_call(
        functools.partial(_maxpool_kernel, Ho=Ho, Wo=Wo),
        out_shape=jax.ShapeDtypeStruct((N, Ho, Wo, C), jnp.float32),
        grid=(N,),
        in_specs=[in_spec, in_spec, in_spec, in_spec],
        out_specs=pl.BlockSpec((1, Ho, Wo, C), lambda i: (i, 0, 0, 0)),
        compiler_params=pltpu.CompilerParams(dimension_semantics=("parallel",)),
    )(e00, e01, e10, e11)


def bn_relu_gap(x_nhwc, scale, shift):
    """Final normfin + relu + adaptive_avg_pool2d((1,1)) -> (N, C)."""
    N, H, W, C = x_nhwc.shape
    x3 = x_nhwc.reshape(N, H * W, C)
    out = pl.pallas_call(
        _bn_relu_gap_kernel,
        out_shape=jax.ShapeDtypeStruct((N, 8, C), jnp.float32),
        grid=(N,),
        in_specs=[
            pl.BlockSpec((1, H * W, C), lambda i: (i, 0, 0)),
            pl.BlockSpec((1, C), lambda i: (0, 0)),
            pl.BlockSpec((1, C), lambda i: (0, 0)),
        ],
        out_specs=pl.BlockSpec((1, 8, C), lambda i: (i, 0, 0)),
        compiler_params=pltpu.CompilerParams(dimension_semantics=("parallel",)),
    )(x3, scale.reshape(1, C).astype(jnp.float32),
      shift.reshape(1, C).astype(jnp.float32))
    return out[:, 0, :]


# ----------------------------------------------------------------------------
# JAX glue (layout plumbing, BN scale/shift from carried stats, im2col for 7x7)
# ----------------------------------------------------------------------------
def _bn_from_stats(ch_sum, ch_sumsq, count, gamma, beta):
    mean = ch_sum / count
    var = jnp.maximum(ch_sumsq / count - mean * mean, 0.0)   # biased, as PyTorch
    scale = gamma / jnp.sqrt(var + BN_EPS)
    shift = beta - mean * scale
    return scale, shift


def im2col(x, kh, kw, stride, pad):
    """NHWC -> ((N*Ho*Wo, kh*kw*C), (N, Ho, Wo)).  Tap ordering: (dy, dx, c)."""
    N, H, W, C = x.shape
    xp = jnp.pad(x, ((0, 0), (pad, pad), (pad, pad), (0, 0)))
    Ho = (H + 2 * pad - kh) // stride + 1
    Wo = (W + 2 * pad - kw) // stride + 1
    cols = []
    for dy in range(kh):
        for dx in range(kw):
            cols.append(xp[:, dy:dy + stride * (Ho - 1) + 1:stride,
                           dx:dx + stride * (Wo - 1) + 1:stride, :])
    patches = jnp.concatenate(cols, axis=-1)
    return patches.reshape(N * Ho * Wo, kh * kw * C), (N, Ho, Wo)


def torch_conv_weight_to_mat(w):
    """(Cout, Cin, kh, kw) -> (kh*kw*Cin, Cout), matching im2col tap ordering."""
    Cout, Cin, kh, kw = w.shape
    return jnp.transpose(w, (2, 3, 1, 0)).reshape(kh * kw * Cin, Cout)


# ----------------------------------------------------------------------------
# DenseNet forward
# ----------------------------------------------------------------------------
def dense_layer(x, run_sum, run_sumsq, count, p):
    """norm1 -> lrelu -> conv1(1x1) -> norm2 -> lrelu -> conv2(3x3,p1) -> concat."""
    N, H, W, Cin = x.shape
    # bn1 from carried per-channel statistics (no extra pass over x).
    s1, t1 = _bn_from_stats(run_sum, run_sumsq, count, p["bn1_g"], p["bn1_b"])
    w1 = p["conv1_w"]                              # (exp*g, Cin, 1, 1)
    Cmid = w1.shape[0]
    y1_2d, y1_sum, y1_sumsq = fused_matmul(
        x.reshape(-1, Cin), s1, t1, torch_conv_weight_to_mat(w1),
        jnp.zeros((Cmid,), jnp.float32), apply_leaky=True)
    y1 = y1_2d.reshape(N, H, W, Cmid)
    # bn2 from the stats emitted by the conv1 kernel.
    s2, t2 = _bn_from_stats(y1_sum, y1_sumsq, count, p["bn2_g"], p["bn2_b"])
    # bn2 + lrelu + conv2 (3x3, pad 1) fused in one Pallas kernel.
    out = conv3x3_fused(y1, s2, t2, p["conv2_w"])
    # drop_rate == 0 -> F.dropout is identity.
    # Extend carried stats with the new channels (small tensor, cheap reduce).
    run_sum = jnp.concatenate([run_sum, jnp.sum(out, axis=(0, 1, 2))])
    run_sumsq = jnp.concatenate([run_sumsq, jnp.sum(out * out, axis=(0, 1, 2))])
    x = jnp.concatenate([x, out], axis=-1)
    return x, run_sum, run_sumsq


def densenet_forward(params, x_nchw, *, layer_config):
    x = jnp.transpose(x_nchw, (0, 2, 3, 1)).astype(jnp.float32)   # NCHW -> NHWC
    # init_conv (7x7, stride 2, pad 3, no bias): im2col (3 input channels only)
    # + fused matmul; the kernel also emits the stats needed for init_bn.
    cols, (N, H0, W0) = im2col(x, 7, 7, 2, 3)
    K0 = cols.shape[1]
    C0 = params["init_conv_w"].shape[0]
    y0_2d, s0, ss0 = fused_matmul(
        cols, jnp.ones((K0,), jnp.float32), jnp.zeros((K0,), jnp.float32),
        torch_conv_weight_to_mat(params["init_conv_w"]),
        jnp.zeros((C0,), jnp.float32), apply_leaky=False)
    cnt0 = float(N * H0 * W0)
    sc0, sh0 = _bn_from_stats(s0, ss0, cnt0, params["init_bn_g"],
                              params["init_bn_b"])
    a0 = affine_leaky(y0_2d, sc0, sh0).reshape(N, H0, W0, C0)
    # init_pool (MaxPool2d 3x3, stride 2, pad 1)
    x = maxpool_3x3_s2_p1(a0)
    N, H, W, C = x.shape
    count = float(N * H * W)
    run_sum = jnp.sum(x, axis=(0, 1, 2))
    run_sumsq = jnp.sum(x * x, axis=(0, 1, 2))
    # dense blocks (reduce=False -> no transitions)
    for bi, nlayers in enumerate(layer_config):
        for li in range(nlayers):
            x, run_sum, run_sumsq = dense_layer(
                x, run_sum, run_sumsq, count, params[f"block{bi}_layer{li}"])
    # normfin + F.relu + adaptive_avg_pool2d((1,1))
    scf, shf = _bn_from_stats(run_sum, run_sumsq, count,
                              params["normfin_g"], params["normfin_b"])
    pooled = bn_relu_gap(x, scf, shf)                      # (N, channels)
    # classifier: Linear(channels, num_classes)
    Cf = pooled.shape[1]
    logits, _, _ = fused_matmul(
        pooled, jnp.ones((Cf,), jnp.float32), jnp.zeros((Cf,), jnp.float32),
        params["cls_w"].T, params["cls_b"], apply_leaky=False)
    return logits


# ----------------------------------------------------------------------------
# Deterministic parameter initialization (mirrors the PyTorch __init__)
# ----------------------------------------------------------------------------
def _kaiming_conv(key, cout, cin, kh, kw):
    fan_in = cin * kh * kw
    std = math.sqrt(2.0 / fan_in)
    return std * jax.random.normal(key, (cout, cin, kh, kw), jnp.float32)


def _kaiming_linear(key, cout, cin):
    std = math.sqrt(2.0 / cin)
    return std * jax.random.normal(key, (cout, cin), jnp.float32)


def init_params(key, *, num_classes, growth_rate, layer_config, init_layer,
                expansion):
    params = {}
    key, k = jax.random.split(key)
    params["init_conv_w"] = _kaiming_conv(k, init_layer, 3, 7, 7)
    params["init_bn_g"] = jnp.ones((init_layer,), jnp.float32)
    params["init_bn_b"] = jnp.zeros((init_layer,), jnp.float32)

    channels = init_layer
    for bi, nlayers in enumerate(layer_config):
        for li in range(nlayers):
            cin = channels + li * growth_rate
            cmid = expansion * growth_rate
            key, k1, k2 = jax.random.split(key, 3)
            params[f"block{bi}_layer{li}"] = {
                "bn1_g": jnp.ones((cin,), jnp.float32),
                "bn1_b": jnp.zeros((cin,), jnp.float32),
                "conv1_w": _kaiming_conv(k1, cmid, cin, 1, 1),
                "bn2_g": jnp.ones((cmid,), jnp.float32),
                "bn2_b": jnp.zeros((cmid,), jnp.float32),
                "conv2_w": _kaiming_conv(k2, growth_rate, cmid, 3, 3),
            }
        channels = channels + nlayers * growth_rate

    params["normfin_g"] = jnp.ones((channels,), jnp.float32)
    params["normfin_b"] = jnp.zeros((channels,), jnp.float32)
    key, k = jax.random.split(key)
    params["cls_w"] = _kaiming_linear(k, num_classes, channels)
    params["cls_b"] = jnp.zeros((num_classes,), jnp.float32)
    return params, channels


# ----------------------------------------------------------------------------
if __name__ == "__main__":
    # Small DenseNet configuration (scaled-down defaults).
    num_classes = 10
    growth_rate = 8
    layer_config = (2, 2)
    init_layer = 16
    expansion = 2

    key = jax.random.PRNGKey(0)
    key, kx, kp = jax.random.split(key, 3)
    # Input is NCHW per PyTorch: (batch=2, channels=3, 32, 32).
    x = jax.random.normal(kx, (2, 3, 32, 32), jnp.float32)

    params, final_channels = init_params(
        kp, num_classes=num_classes, growth_rate=growth_rate,
        layer_config=layer_config, init_layer=init_layer, expansion=expansion)

    fwd = jax.jit(functools.partial(densenet_forward, layer_config=layer_config))
    logits = fwd(params, x)
    logits = jax.block_until_ready(logits)

    assert logits.shape == (2, num_classes), logits.shape
    assert bool(jnp.all(jnp.isfinite(logits)))
    print("KERNEL_OK")
</pallas_src>

<mosaic_0001>
module attributes {stable_mosaic.version = 11 : i64} {
  func.func @_affine_leaky_kernel(%arg0: i32, %arg1: memref<512x16xf32, #tpu.memory_space<vmem>>, %arg2: memref<1x16xf32, #tpu.memory_space<vmem>>, %arg3: memref<1x16xf32, #tpu.memory_space<vmem>>, %arg4: memref<512x16xf32, #tpu.memory_space<vmem>>) attributes {dimension_semantics = [#tpu.dimension_semantics<parallel>], iteration_bounds = array<i64: 1>, scalar_prefetch = 0 : i64, scratch_operands = 0 : i64, tpu.core_type = #tpu.core_type<tc>, window_params = [{transform_indices = @transform_0, window_bounds = array<i64: 512, 16>}, {pipeline_mode = #tpu.pipeline_mode<synchronous>, transform_indices = @transform_1, window_bounds = array<i64: 1, 16>}, {pipeline_mode = #tpu.pipeline_mode<synchronous>, transform_indices = @transform_2, window_bounds = array<i64: 1, 16>}, {transform_indices = @transform_3, window_bounds = array<i64: 512, 16>}]} {
    %c0 = arith.constant 0 : index
    %c0_0 = arith.constant 0 : index
    %0 = vector.load %arg1[%c0, %c0_0] : memref<512x16xf32, #tpu.memory_space<vmem>>, vector<512x16xf32>
    %c0_1 = arith.constant 0 : index
    %c0_2 = arith.constant 0 : index
    %1 = vector.load %arg2[%c0_1, %c0_2] : memref<1x16xf32, #tpu.memory_space<vmem>>, vector<1x16xf32>
    %2 = vector.broadcast %1 : vector<1x16xf32> to vector<512x16xf32>
    %3 = arith.mulf %0, %2 : vector<512x16xf32>
    %c0_3 = arith.constant 0 : index
    %c0_4 = arith.constant 0 : index
    %4 = vector.load %arg3[%c0_3, %c0_4] : memref<1x16xf32, #tpu.memory_space<vmem>>, vector<1x16xf32>
    %5 = vector.broadcast %4 : vector<1x16xf32> to vector<512x16xf32>
    %6 = arith.addf %3, %5 : vector<512x16xf32>
    %cst = arith.constant 0.000000e+00 : f32
    %7 = vector.broadcast %cst : f32 to vector<512x16xf32>
    %8 = arith.cmpf oge, %6, %7 : vector<512x16xf32>
    %cst_5 = arith.constant 0.00999999977 : f32
    %9 = vector.broadcast %cst_5 : f32 to vector<512x16xf32>
    %10 = arith.mulf %9, %6 : vector<512x16xf32>
    %11 = arith.select %8, %6, %10 : vector<512x16xi1>, vector<512x16xf32>
    %c0_6 = arith.constant 0 : index
    %c0_7 = arith.constant 0 : index
    %12 = vector.load %arg4[%c0_6, %c0_7] : memref<512x16xf32, #tpu.memory_space<vmem>>, vector<512x16xf32>
    tpu.vector_store %arg4[%c0_6, %c0_7], %11 {strides = array<i32>} : memref<512x16xf32, #tpu.memory_space<vmem>>, vector<512x16xf32>,
    return
  }
  func.func @transform_0(%arg0: i32) -> (i32, i32) {
    %c0_i32 = arith.constant 0 : i32
    %c0_i32_0 = arith.constant 0 : i32
    return %arg0, %c0_i32 : i32, i32
  }
  func.func @transform_1(%arg0: i32) -> (i32, i32) {
    %c0_i32 = arith.constant 0 : i32
    %c0_i32_0 = arith.constant 0 : i32
    %c0_i32_1 = arith.constant 0 : i32
    return %c0_i32, %c0_i32_0 : i32, i32
  }
  func.func @transform_2(%arg0: i32) -> (i32, i32) {
    %c0_i32 = arith.constant 0 : i32
    %c0_i32_0 = arith.constant 0 : i32
    %c0_i32_1 = arith.constant 0 : i32
    return %c0_i32, %c0_i32_0 : i32, i32
  }
  func.func @transform_3(%arg0: i32) -> (i32, i32) {
    %c0_i32 = arith.constant 0 : i32
    %c0_i32_0 = arith.constant 0 : i32
    return %arg0, %c0_i32 : i32, i32
  }
}

module attributes {stable_mosaic.version = 11 : i64} {
  func.func @_fused_matmul_kernel(%arg0: i32, %arg1: memref<512x147xf32, #tpu.memory_space<vmem>>, %arg2: memref<1x147xf32, #tpu.memory_space<vmem>>, %arg3: memref<1x147xf32, #tpu.memory_space<vmem>>, %arg4: memref<147x128xbf16, #tpu.memory_space<vmem>>, %arg5: memref<1x128xf32, #tpu.memory_space<vmem>>, %arg6: memref<512x128xf32, #tpu.memory_space<vmem>>, %arg7: memref<8x128xf32, #tpu.memory_space<vmem>>) attributes {dimension_semantics = [#tpu.dimension_semantics<parallel>], iteration_bounds = array<i64: 1>, scalar_prefetch = 0 : i64, scratch_operands = 0 : i64, tpu.core_type = #tpu.core_type<tc>, window_params = [{transform_indices = @transform_0, window_bounds = array<i64: 512, 147>}, {pipeline_mode = #tpu.pipeline_mode<synchronous>, transform_indices = @transform_1, window_bounds = array<i64: 1, 147>}, {pipeline_mode = #tpu.pipeline_mode<synchronous>, transform_indices = @transform_2, window_bounds = array<i64: 1, 147>}, {pipeline_mode = #tpu.pipeline_mode<synchronous>, transform_indices = @transform_3, window_bounds = array<i64: 147, 128>}, {pipeline_mode = #tpu.pipeline_mode<synchronous>, transform_indices = @transform_4, window_bounds = array<i64: 1, 128>}, {transform_indices = @transform_5, window_bounds = array<i64: 512, 128>}, {transform_indices = @transform_6, window_bounds = array<i64: 8, 128>}]} {
    %c0 = arith.constant 0 : index
    %c0_0 = arith.constant 0 : index
    %0 = vector.load %arg1[%c0, %c0_0] : memref<512x147xf32, #tpu.memory_space<vmem>>, vector<512x147xf32>
    %c0_1 = arith.constant 0 : index
    %c0_2 = arith.constant 0 : index
    %1 = vector.load %arg2[%c0_1, %c0_2] : memref<1x147xf32, #tpu.memory_space<vmem>>, vector<1x147xf32>
    %2 = vector.broadcast %1 : vector<1x147xf32> to vector<512x147xf32>
    %3 = arith.mulf %0, %2 : vector<512x147xf32>
    %c0_3 = arith.constant 0 : index
    %c0_4 = arith.constant 0 : index
    %4 = vector.load %arg3[%c0_3, %c0_4] : memref<1x147xf32, #tpu.memory_space<vmem>>, vector<1x147xf32>
    %5 = vector.broadcast %4 : vector<1x147xf32> to vector<512x147xf32>
    %6 = arith.addf %3, %5 : vector<512x147xf32>
    %7 = arith.truncf %6 : vector<512x147xf32> to vector<512x147xbf16>
    %c0_5 = arith.constant 0 : index
    %c0_6 = arith.constant 0 : index
    %8 = vector.load %arg4[%c0_5, %c0_6] : memref<147x128xbf16, #tpu.memory_space<vmem>>, vector<147x128xbf16>
    %cst = arith.constant dense<0.000000e+00> : vector<512x128xf32>
    %9 = tpu.matmul %7, %8, %cst {dimension_numbers = #tpu.dot_dimension_numbers<[1], [0], [0], [1], [0, 0, 1, 1], [], []>} : vector<512x147xbf16>, vector<147x128xbf16>, vector<512x128xf32> -> vector<512x128xf32>
    %c0_7 = arith.constant 0 : index
    %c0_8 = arith.constant 0 : index
    %10 = vector.load %arg5[%c0_7, %c0_8] : memref<1x128xf32, #tpu.memory_space<vmem>>, vector<1x128xf32>
    %11 = vector.broadcast %10 : vector<1x128xf32> to vector<512x128xf32>
    %12 = arith.addf %9, %11 : vector<512x128xf32>
    %c0_9 = arith.constant 0 : index
    %c0_10 = arith.constant 0 : index
    %13 = vector.load %arg6[%c0_9, %c0_10] : memref<512x128xf32, #tpu.memory_space<vmem>>, vector<512x128xf32>
    tpu.vector_store %arg6[%c0_9, %c0_10], %12 {strides = array<i32>} : memref<512x128xf32, #tpu.memory_space<vmem>>, vector<512x128xf32>,
    %c512_i32 = arith.constant 512 : i32
    %14 = arith.muli %arg0, %c512_i32 : i32
    %15 = tpu.iota {dimensions = array<i32: 0>} : vector<512x1xi32>
    %16 = vector.broadcast %14 : i32 to vector<512x1xi32>
    %17 = arith.addi %16, %15 : vector<512x1xi32>
    %c512_i32_11 = arith.constant 512 : i32
    %18 = vector.broadcast %c512_i32_11 : i32 to vector<512x1xi32>
    %19 = arith.cmpi slt, %17, %18 : vector<512x1xi32>
    %20 = arith.extui %19 : vector<512x1xi1> to vector<512x1xi32>
    %21 = arith.sitofp %20 : vector<512x1xi32> to vector<512x1xf32>
    %22 = vector.broadcast %21 : vector<512x1xf32> to vector<512x128xf32>
    %23 = arith.mulf %12, %22 : vector<512x128xf32>
    %cst_12 = arith.constant dense<0.000000e+00> : vector<128xf32>
    %24 = vector.multi_reduction <add>, %23, %cst_12 [0] : vector<512x128xf32> to vector<128xf32>
    %25 = vector.shape_cast %24 : vector<128xf32> to vector<1x128xf32>
    %26 = arith.mulf %23, %23 : vector<512x128xf32>
    %cst_13 = arith.constant dense<0.000000e+00> : vector<128xf32>
    %27 = vector.multi_reduction <add>, %26, %cst_13 [0] : vector<512x128xf32> to vector<128xf32>
    %28 = vector.shape_cast %27 : vector<128xf32> to vector<1x128xf32>
    %29 = tpu.iota {dimensions = array<i32: 0>} : vector<8x128xi32>
    %c4_i32 = arith.constant 4 : i32
    %30 = vector.broadcast %c4_i32 : i32 to vector<8x128xi32>
    %31 = arith.cmpi slt, %29, %30 : vector<8x128xi32>
    %32 = vector.shape_cast %25 : vector<1x128xf32> to vector<1x128xf32>
    %33 = vector.broadcast %32 : vector<1x128xf32> to vector<8x128xf32>
    %34 = vector.shape_cast %28 : vector<1x128xf32> to vector<1x128xf32>
    %35 = vector.broadcast %34 : vector<1x128xf32> to vector<8x128xf32>
    %36 = arith.select %31, %33, %35 : vector<8x128xi1>, vector<8x128xf32>
    %c0_14 = arith.constant 0 : index
    %c0_15 = arith.constant 0 : index
    %37 = vector.load %arg7[%c0_14, %c0_15] : memref<8x128xf32, #tpu.memory_space<vmem>>, vector<8x128xf32>
    tpu.vector_store %arg7[%c0_14, %c0_15], %36 {strides = array<i32>} : memref<8x128xf32, #tpu.memory_space<vmem>>, vector<8x128xf32>,
    return
  }
  func.func @transform_0(%arg0: i32) -> (i32, i32) {
    %c0_i32 = arith.constant 0 : i32
    %c0_i32_0 = arith.constant 0 : i32
    return %arg0, %c0_i32 : i32, i32
  }
  func.func @transform_1(%arg0: i32) -> (i32, i32) {
    %c0_i32 = arith.constant 0 : i32
    %c0_i32_0 = arith.constant 0 : i32
    %c0_i32_1 = arith.constant 0 : i32
    return %c0_i32, %c0_i32_0 : i32, i32
  }
  func.func @transform_2(%arg0: i32) -> (i32, i32) {
    %c0_i32 = arith.constant 0 : i32
    %c0_i32_0 = arith.constant 0 : i32
    %c0_i32_1 = arith.constant 0 : i32
    return %c0_i32, %c0_i32_0 : i32, i32
  }
  func.func @transform_3(%arg0: i32) -> (i32, i32) {
    %c0_i32 = arith.constant 0 : i32
    %c0_i32_0 = arith.constant 0 : i32
    %c0_i32_1 = arith.constant 0 : i32
    return %c0_i32, %c0_i32_0 : i32, i32
  }
  func.func @transform_4(%arg0: i32) -> (i32, i32) {
    %c0_i32 = arith.constant 0 : i32
    %c0_i32_0 = arith.constant 0 : i32
    %c0_i32_1 = arith.constant 0 : i32
    return %c0_i32, %c0_i32_0 : i32, i32
  }
  func.func @transform_5(%arg0: i32) -> (i32, i32) {
    %c0_i32 = arith.constant 0 : i32
    %c0_i32_0 = arith.constant 0 : i32
    return %arg0, %c0_i32 : i32, i32
  }
  func.func @transform_6(%arg0: i32) -> (i32, i32) {
    %c0_i32 = arith.constant 0 : i32
    %c0_i32_0 = arith.constant 0 : i32
    return %arg0, %c0_i32 : i32, i32
  }
}

module attributes {stable_mosaic.version = 11 : i64} {
  func.func @_maxpool_kernel(%arg0: i32, %arg1: memref<1x9x9x16xf32, #tpu.memory_space<vmem>>, %arg2: memref<1x9x9x16xf32, #tpu.memory_space<vmem>>, %arg3: memref<1x9x9x16xf32, #tpu.memory_space<vmem>>, %arg4: memref<1x9x9x16xf32, #tpu.memory_space<vmem>>, %arg5: memref<1x8x8x16xf32, #tpu.memory_space<vmem>>) attributes {dimension_semantics = [#tpu.dimension_semantics<parallel>], iteration_bounds = array<i64: 2>, scalar_prefetch = 0 : i64, scratch_operands = 0 : i64, tpu.core_type = #tpu.core_type<tc>, window_params = [{transform_indices = @transform_0, window_bounds = array<i64: 1, 9, 9, 16>}, {transform_indices = @transform_1, window_bounds = array<i64: 1, 9, 9, 16>}, {transform_indices = @transform_2, window_bounds = array<i64: 1, 9, 9, 16>}, {transform_indices = @transform_3, window_bounds = array<i64: 1, 9, 9, 16>}, {transform_indices = @transform_4, window_bounds = array<i64: 1, 8, 8, 16>}]} {
    %c0 = arith.constant 0 : index
    %c0_0 = arith.constant 0 : index
    %c0_1 = arith.constant 0 : index
    %c0_2 = arith.constant 0 : index
    %0 = vector.load %arg1[%c0, %c0_0, %c0_1, %c0_2] : memref<1x9x9x16xf32, #tpu.memory_space<vmem>>, vector<1x9x9x16xf32>
    %1 = vector.shape_cast %0 : vector<1x9x9x16xf32> to vector<9x9x16xf32>
    %c0_3 = arith.constant 0 : index
    %c0_4 = arith.constant 0 : index
    %c0_5 = arith.constant 0 : index
    %c0_6 = arith.constant 0 : index
    %2 = vector.load %arg2[%c0_3, %c0_4, %c0_5, %c0_6] : memref<1x9x9x16xf32, #tpu.memory_space<vmem>>, vector<1x9x9x16xf32>
    %3 = vector.shape_cast %2 : vector<1x9x9x16xf32> to vector<9x9x16xf32>
    %c0_7 = arith.constant 0 : index
    %c0_8 = arith.constant 0 : index
    %c0_9 = arith.constant 0 : index
    %c0_10 = arith.constant 0 : index
    %4 = vector.load %arg3[%c0_7, %c0_8, %c0_9, %c0_10] : memref<1x9x9x16xf32, #tpu.memory_space<vmem>>, vector<1x9x9x16xf32>
    %5 = vector.shape_cast %4 : vector<1x9x9x16xf32> to vector<9x9x16xf32>
    %c0_11 = arith.constant 0 : index
    %c0_12 = arith.constant 0 : index
    %c0_13 = arith.constant 0 : index
    %c0_14 = arith.constant 0 : index
    %6 = vector.load %arg4[%c0_11, %c0_12, %c0_13, %c0_14] : memref<1x9x9x16xf32, #tpu.memory_space<vmem>>, vector<1x9x9x16xf32>
    %7 = vector.shape_cast %6 : vector<1x9x9x16xf32> to vector<9x9x16xf32>
    %8 = vector.extract_strided_slice %1 {offsets = [0, 0, 0], sizes = [8, 8, 16], strides = [1, 1, 1]} : vector<9x9x16xf32> to vector<8x8x16xf32>
    %9 = vector.extract_strided_slice %1 {offsets = [0, 1, 0], sizes = [8, 8, 16], strides = [1, 1, 1]} : vector<9x9x16xf32> to vector<8x8x16xf32>
    %10 = arith.maximumf %8, %9 : vector<8x8x16xf32>
    %11 = vector.extract_strided_slice %1 {offsets = [1, 0, 0], sizes = [8, 8, 16], strides = [1, 1, 1]} : vector<9x9x16xf32> to vector<8x8x16xf32>
    %12 = arith.maximumf %10, %11 : vector<8x8x16xf32>
    %13 = vector.extract_strided_slice %1 {offsets = [1, 1, 0], sizes = [8, 8, 16], strides = [1, 1, 1]} : vector<9x9x16xf32> to vector<8x8x16xf32>
    %14 = arith.maximumf %12, %13 : vector<8x8x16xf32>
    %15 = vector.extract_strided_slice %3 {offsets = [0, 0, 0], sizes = [8, 8, 16], strides = [1, 1, 1]} : vector<9x9x16xf32> to vector<8x8x16xf32>
    %16 = arith.maximumf %14, %15 : vector<8x8x16xf32>
    %17 = vector.extract_strided_slice %3 {offsets = [1, 0, 0], sizes = [8, 8, 16], strides = [1, 1, 1]} : vector<9x9x16xf32> to vector<8x8x16xf32>
    %18 = arith.maximumf %16, %17 : vector<8x8x16xf32>
    %19 = vector.extract_strided_slice %5 {offsets = [0, 0, 0], sizes = [8, 8, 16], strides = [1, 1, 1]} : vector<9x9x16xf32> to vector<8x8x16xf32>
    %20 = arith.maximumf %18, %19 : vector<8x8x16xf32>
    %21 = vector.extract_strided_slice %5 {offsets = [0, 1, 0], sizes = [8, 8, 16], strides = [1, 1, 1]} : vector<9x9x16xf32> to vector<8x8x16xf32>
    %22 = arith.maximumf %20, %21 : vector<8x8x16xf32>
    %23 = vector.extract_strided_slice %7 {offsets = [0, 0, 0], sizes = [8, 8, 16], strides = [1, 1, 1]} : vector<9x9x16xf32> to vector<8x8x16xf32>
    %24 = arith.maximumf %22, %23 : vector<8x8x16xf32>
    %c0_15 = arith.constant 0 : index
    %c0_16 = arith.constant 0 : index
    %c0_17 = arith.constant 0 : index
    %c0_18 = arith.constant 0 : index
    %25 = vector.load %arg5[%c0_15, %c0_16, %c0_17, %c0_18] : memref<1x8x8x16xf32, #tpu.memory_space<vmem>>, vector<1x8x8x16xf32>
    %26 = vector.shape_cast %25 : vector<1x8x8x16xf32> to vector<8x8x16xf32>
    %27 = vector.shape_cast %24 : vector<8x8x16xf32> to vector<1x8x8x16xf32>
    tpu.vector_store %arg5[%c0_15, %c0_16, %c0_17, %c0_18], %27 {strides = array<i32>} : memref<1x8x8x16xf32, #tpu.memory_space<vmem>>, vector<1x8x8x16xf32>,
    return
  }
  func.func @transform_0(%arg0: i32) -> (i32, i32, i32, i32) {
    %c0_i32 = arith.constant 0 : i32
    %c0_i32_0 = arith.constant 0 : i32
    %c0_i32_1 = arith.constant 0 : i32
    %c0_i32_2 = arith.constant 0 : i32
    return %arg0, %c0_i32, %c0_i32_0, %c0_i32_1 : i32, i32, i32, i32
  }
  func.func @transform_1(%arg0: i32) -> (i32, i32, i32, i32) {
    %c0_i32 = arith.constant 0 : i32
    %c0_i32_0 = arith.constant 0 : i32
    %c0_i32_1 = arith.constant 0 : i32
    %c0_i32_2 = arith.constant 0 : i32
    return %arg0, %c0_i32, %c0_i32_0, %c0_i32_1 : i32, i32, i32, i32
  }
  func.func @transform_2(%arg0: i32) -> (i32, i32, i32, i32) {
    %c0_i32 = arith.constant 0 : i32
    %c0_i32_0 = arith.constant 0 : i32
    %c0_i32_1 = arith.constant 0 : i32
    %c0_i32_2 = arith.constant 0 : i32
    return %arg0, %c0_i32, %c0_i32_0, %c0_i32_1 : i32, i32, i32, i32
  }
  func.func @transform_3(%arg0: i32) -> (i32, i32, i32, i32) {
    %c0_i32 = arith.constant 0 : i32
    %c0_i32_0 = arith.constant 0 : i32
    %c0_i32_1 = arith.constant 0 : i32
    %c0_i32_2 = arith.constant 0 : i32
    return %arg0, %c0_i32, %c0_i32_0, %c0_i32_1 : i32, i32, i32, i32
  }
  func.func @transform_4(%arg0: i32) -> (i32, i32, i32, i32) {
    %c0_i32 = arith.constant 0 : i32
    %c0_i32_0 = arith.constant 0 : i32
    %c0_i32_1 = arith.constant 0 : i32
    %c0_i32_2 = arith.constant 0 : i32
    return %arg0, %c0_i32, %c0_i32_0, %c0_i32_1 : i32, i32, i32, i32
  }
}

module attributes {stable_mosaic.version = 11 : i64} {
  func.func @_fused_matmul_kernel(%arg0: i32, %arg1: memref<128x16xf32, #tpu.memory_space<vmem>>, %arg2: memref<1x16xf32, #tpu.memory_space<vmem>>, %arg3: memref<1x16xf32, #tpu.memory_space<vmem>>, %arg4: memref<16x128xbf16, #tpu.memory_space<vmem>>, %arg5: memref<1x128xf32, #tpu.memory_space<vmem>>, %arg6: memref<128x128xf32, #tpu.memory_space<vmem>>, %arg7: memref<8x128xf32, #tpu.memory_space<vmem>>) attributes {dimension_semantics = [#tpu.dimension_semantics<parallel>], iteration_bounds = array<i64: 1>, scalar_prefetch = 0 : i64, scratch_operands = 0 : i64, tpu.core_type = #tpu.core_type<tc>, window_params = [{transform_indices = @transform_0, window_bounds = array<i64: 128, 16>}, {pipeline_mode = #tpu.pipeline_mode<synchronous>, transform_indices = @transform_1, window_bounds = array<i64: 1, 16>}, {pipeline_mode = #tpu.pipeline_mode<synchronous>, transform_indices = @transform_2, window_bounds = array<i64: 1, 16>}, {pipeline_mode = #tpu.pipeline_mode<synchronous>, transform_indices = @transform_3, window_bounds = array<i64: 16, 128>}, {pipeline_mode = #tpu.pipeline_mode<synchronous>, transform_indices = @transform_4, window_bounds = array<i64: 1, 128>}, {transform_indices = @transform_5, window_bounds = array<i64: 128, 128>}, {transform_indices = @transform_6, window_bounds = array<i64: 8, 128>}]} {
    %c0 = arith.constant 0 : index
    %c0_0 = arith.constant 0 : index
    %0 = vector.load %arg1[%c0, %c0_0] : memref<128x16xf32, #tpu.memory_space<vmem>>, vector<128x16xf32>
    %c0_1 = arith.constant 0 : index
    %c0_2 = arith.constant 0 : index
    %1 = vector.load %arg2[%c0_1, %c0_2] : memref<1x16xf32, #tpu.memory_space<vmem>>, vector<1x16xf32>
    %2 = vector.broadcast %1 : vector<1x16xf32> to vector<128x16xf32>
    %3 = arith.mulf %0, %2 : vector<128x16xf32>
    %c0_3 = arith.constant 0 : index
    %c0_4 = arith.constant 0 : index
    %4 = vector.load %arg3[%c0_3, %c0_4] : memref<1x16xf32, #tpu.memory_space<vmem>>, vector<1x16xf32>
    %5 = vector.broadcast %4 : vector<1x16xf32> to vector<128x16xf32>
    %6 = arith.addf %3, %5 : vector<128x16xf32>
    %cst = arith.constant 0.000000e+00 : f32
    %7 = vector.broadcast %cst : f32 to vector<128x16xf32>
    %8 = arith.cmpf oge, %6, %7 : vector<128x16xf32>
    %cst_5 = arith.constant 0.00999999977 : f32
    %9 = vector.broadcast %cst_5 : f32 to vector<128x16xf32>
    %10 = arith.mulf %9, %6 : vector<128x16xf32>
    %11 = arith.select %8, %6, %10 : vector<128x16xi1>, vector<128x16xf32>
    %12 = arith.truncf %11 : vector<128x16xf32> to vector<128x16xbf16>
    %c0_6 = arith.constant 0 : index
    %c0_7 = arith.constant 0 : index
    %13 = vector.load %arg4[%c0_6, %c0_7] : memref<16x128xbf16, #tpu.memory_space<vmem>>, vector<16x128xbf16>
    %cst_8 = arith.constant dense<0.000000e+00> : vector<128x128xf32>
    %14 = tpu.matmul %12, %13, %cst_8 {dimension_numbers = #tpu.dot_dimension_numbers<[1], [0], [0], [1], [0, 0, 1, 1], [], []>} : vector<128x16xbf16>, vector<16x128xbf16>, vector<128x128xf32> -> vector<128x128xf32>
    %c0_9 = arith.constant 0 : index
    %c0_10 = arith.constant 0 : index
    %15 = vector.load %arg5[%c0_9, %c0_10] : memref<1x128xf32, #tpu.memory_space<vmem>>, vector<1x128xf32>
    %16 = vector.broadcast %15 : vector<1x128xf32> to vector<128x128xf32>
    %17 = arith.addf %14, %16 : vector<128x128xf32>
    %c0_11 = arith.constant 0 : index
    %c0_12 = arith.constant 0 : index
    %18 = vector.load %arg6[%c0_11, %c0_12] : memref<128x128xf32, #tpu.memory_space<vmem>>, vector<128x128xf32>
    tpu.vector_store %arg6[%c0_11, %c0_12], %17 {strides = array<i32>} : memref<128x128xf32, #tpu.memory_space<vmem>>, vector<128x128xf32>,
    %c128_i32 = arith.constant 128 : i32
    %19 = arith.muli %arg0, %c128_i32 : i32
    %20 = tpu.iota {dimensions = array<i32: 0>} : vector<128x1xi32>
    %21 = vector.broadcast %19 : i32 to vector<128x1xi32>
    %22 = arith.addi %21, %20 : vector<128x1xi32>
    %c128_i32_13 = arith.constant 128 : i32
    %23 = vector.broadcast %c128_i32_13 : i32 to vector<128x1xi32>
    %24 = arith.cmpi slt, %22, %23 : vector<128x1xi32>
    %25 = arith.extui %24 : vector<128x1xi1> to vector<128x1xi32>
    %26 = arith.sitofp %25 : vector<128x1xi32> to vector<128x1xf32>
    %27 = vector.broadcast %26 : vector<128x1xf32> to vector<128x128xf32>
    %28 = arith.mulf %17, %27 : vector<128x128xf32>
    %cst_14 = arith.constant dense<0.000000e+00> : vector<128xf32>
    %29 = vector.multi_reduction <add>, %28, %cst_14 [0] : vector<128x128xf32> to vector<128xf32>
    %30 = vector.shape_cast %29 : vector<128xf32> to vector<1x128xf32>
    %31 = arith.mulf %28, %28 : vector<128x128xf32>
    %cst_15 = arith.constant dense<0.000000e+00> : vector<128xf32>
    %32 = vector.multi_reduction <add>, %31, %cst_15 [0] : vector<128x128xf32> to vector<128xf32>
    %33 = vector.shape_cast %32 : vector<128xf32> to vector<1x128xf32>
    %34 = tpu.iota {dimensions = array<i32: 0>} : vector<8x128xi32>
    %c4_i32 = arith.constant 4 : i32
    %35 = vector.broadcast %c4_i32 : i32 to vector<8x128xi32>
    %36 = arith.cmpi slt, %34, %35 : vector<8x128xi32>
    %37 = vector.shape_cast %30 : vector<1x128xf32> to vector<1x128xf32>
    %38 = vector.broadcast %37 : vector<1x128xf32> to vector<8x128xf32>
    %39 = vector.shape_cast %33 : vector<1x128xf32> to vector<1x128xf32>
    %40 = vector.broadcast %39 : vector<1x128xf32> to vector<8x128xf32>
    %41 = arith.select %36, %38, %40 : vector<8x128xi1>, vector<8x128xf32>
    %c0_16 = arith.constant 0 : index
    %c0_17 = arith.constant 0 : index
    %42 = vector.load %arg7[%c0_16, %c0_17] : memref<8x128xf32, #tpu.memory_space<vmem>>, vector<8x128xf32>
    tpu.vector_store %arg7[%c0_16, %c0_17], %41 {strides = array<i32>} : memref<8x128xf32, #tpu.memory_space<vmem>>, vector<8x128xf32>,
    return
  }
  func.func @transform_0(%arg0: i32) -> (i32, i32) {
    %c0_i32 = arith.constant 0 : i32
    %c0_i32_0 = arith.constant 0 : i32
    return %arg0, %c0_i32 : i32, i32
  }
  func.func @transform_1(%arg0: i32) -> (i32, i32) {
    %c0_i32 = arith.constant 0 : i32
    %c0_i32_0 = arith.constant 0 : i32
    %c0_i32_1 = arith.constant 0 : i32
    return %c0_i32, %c0_i32_0 : i32, i32
  }
  func.func @transform_2(%arg0: i32) -> (i32, i32) {
    %c0_i32 = arith.constant 0 : i32
    %c0_i32_0 = arith.constant 0 : i32
    %c0_i32_1 = arith.constant 0 : i32
    return %c0_i32, %c0_i32_0 : i32, i32
  }
  func.func @transform_3(%arg0: i32) -> (i32, i32) {
    %c0_i32 = arith.constant 0 : i32
    %c0_i32_0 = arith.constant 0 : i32
    %c0_i32_1 = arith.constant 0 : i32
    return %c0_i32, %c0_i32_0 : i32, i32
  }
  func.func @transform_4(%arg0: i32) -> (i32, i32) {
    %c0_i32 = arith.constant 0 : i32
    %c0_i32_0 = arith.constant 0 : i32
    %c0_i32_1 = arith.constant 0 : i32
    return %c0_i32, %c0_i32_0 : i32, i32
  }
  func.func @transform_5(%arg0: i32) -> (i32, i32) {
    %c0_i32 = arith.constant 0 : i32
    %c0_i32_0 = arith.constant 0 : i32
    return %arg0, %c0_i32 : i32, i32
  }
  func.func @transform_6(%arg0: i32) -> (i32, i32) {
    %c0_i32 = arith.constant 0 : i32
    %c0_i32_0 = arith.constant 0 : i32
    return %arg0, %c0_i32 : i32, i32
  }
}

module attributes {stable_mosaic.version = 11 : i64} {
  func.func @_conv3x3_kernel(%arg0: i32, %arg1: memref<1x110x16xf32, #tpu.memory_space<vmem>>, %arg2: memref<110x1xf32, #tpu.memory_space<vmem>>, %arg3: memref<1x16xf32, #tpu.memory_space<vmem>>, %arg4: memref<1x16xf32, #tpu.memory_space<vmem>>, %arg5: memref<9x16x128xbf16, #tpu.memory_space<vmem>>, %arg6: memref<1x80x128xf32, #tpu.memory_space<vmem>>, %arg7: memref<110x16xbf16, #tpu.memory_space<vmem>>) attributes {dimension_semantics = [#tpu.dimension_semantics<parallel>], iteration_bounds = array<i64: 2>, scalar_prefetch = 0 : i64, scratch_operands = 1 : i64, tpu.core_type = #tpu.core_type<tc>, window_params = [{transform_indices = @transform_0, window_bounds = array<i64: 1, 110, 16>}, {pipeline_mode = #tpu.pipeline_mode<synchronous>, transform_indices = @transform_1, window_bounds = array<i64: 110, 1>}, {pipeline_mode = #tpu.pipeline_mode<synchronous>, transform_indices = @transform_2, window_bounds = array<i64: 1, 16>}, {pipeline_mode = #tpu.pipeline_mode<synchronous>, transform_indices = @transform_3, window_bounds = array<i64: 1, 16>}, {pipeline_mode = #tpu.pipeline_mode<synchronous>, transform_indices = @transform_4, window_bounds = array<i64: 9, 16, 128>}, {transform_indices = @transform_5, window_bounds = array<i64: 1, 80, 128>}]} {
    %c0 = arith.constant 0 : index
    %c0_0 = arith.constant 0 : index
    %c0_1 = arith.constant 0 : index
    %0 = vector.load %arg1[%c0, %c0_0, %c0_1] : memref<1x110x16xf32, #tpu.memory_space<vmem>>, vector<1x110x16xf32>
    %1 = vector.shape_cast %0 : vector<1x110x16xf32> to vector<110x16xf32>
    %c0_2 = arith.constant 0 : index
    %c0_3 = arith.constant 0 : index
    %2 = vector.load %arg3[%c0_2, %c0_3] : memref<1x16xf32, #tpu.memory_space<vmem>>, vector<1x16xf32>
    %3 = vector.broadcast %2 : vector<1x16xf32> to vector<110x16xf32>
    %4 = arith.mulf %1, %3 : vector<110x16xf32>
    %c0_4 = arith.constant 0 : index
    %c0_5 = arith.constant 0 : index
    %5 = vector.load %arg4[%c0_4, %c0_5] : memref<1x16xf32, #tpu.memory_space<vmem>>, vector<1x16xf32>
    %6 = vector.broadcast %5 : vector<1x16xf32> to vector<110x16xf32>
    %7 = arith.addf %4, %6 : vector<110x16xf32>
    %cst = arith.constant 0.000000e+00 : f32
    %8 = vector.broadcast %cst : f32 to vector<110x16xf32>
    %9 = arith.cmpf oge, %7, %8 : vector<110x16xf32>
    %cst_6 = arith.constant 0.00999999977 : f32
    %10 = vector.broadcast %cst_6 : f32 to vector<110x16xf32>
    %11 = arith.mulf %10, %7 : vector<110x16xf32>
    %12 = arith.select %9, %7, %11 : vector<110x16xi1>, vector<110x16xf32>
    %c0_7 = arith.constant 0 : index
    %c0_8 = arith.constant 0 : index
    %13 = vector.load %arg2[%c0_7, %c0_8] : memref<110x1xf32, #tpu.memory_space<vmem>>, vector<110x1xf32>
    %14 = vector.broadcast %13 : vector<110x1xf32> to vector<110x16xf32>
    %15 = arith.mulf %12, %14 : vector<110x16xf32>
    %16 = arith.truncf %15 : vector<110x16xf32> to vector<110x16xbf16>
    %c0_9 = arith.constant 0 : index
    %c0_10 = arith.constant 0 : index
    %17 = vector.load %arg7[%c0_9, %c0_10] : memref<110x16xbf16, #tpu.memory_space<vmem>>, vector<110x16xbf16>
    tpu.vector_store %arg7[%c0_9, %c0_10], %16 {strides = array<i32>} : memref<110x16xbf16, #tpu.memory_space<vmem>>, vector<110x16xbf16>,
    %c0_11 = arith.constant 0 : index
    %c0_12 = arith.constant 0 : index
    %18 = vector.load %arg7[%c0_11, %c0_12] : memref<110x16xbf16, #tpu.memory_space<vmem>>, vector<80x16xbf16>
    %c0_13 = arith.constant 0 : index
    %c0_14 = arith.constant 0 : index
    %c0_15 = arith.constant 0 : index
    %19 = vector.load %arg5[%c0_13, %c0_14, %c0_15] : memref<9x16x128xbf16, #tpu.memory_space<vmem>>, vector<1x16x128xbf16>
    %20 = vector.shape_cast %19 : vector<1x16x128xbf16> to vector<16x128xbf16>
    %cst_16 = arith.constant dense<0.000000e+00> : vector<80x128xf32>
    %21 = tpu.matmul %18, %20, %cst_16 {dimension_numbers = #tpu.dot_dimension_numbers<[1], [0], [0], [1], [0, 0, 1, 1], [], []>} : vector<80x16xbf16>, vector<16x128xbf16>, vector<80x128xf32> -> vector<80x128xf32>
    %c1 = arith.constant 1 : index
    %c0_17 = arith.constant 0 : index
    %22 = vector.load %arg7[%c1, %c0_17] : memref<110x16xbf16, #tpu.memory_space<vmem>>, vector<80x16xbf16>
    %c1_18 = arith.constant 1 : index
    %c0_19 = arith.constant 0 : index
    %c0_20 = arith.constant 0 : index
    %23 = vector.load %arg5[%c1_18, %c0_19, %c0_20] : memref<9x16x128xbf16, #tpu.memory_space<vmem>>, vector<1x16x128xbf16>
    %24 = vector.shape_cast %23 : vector<1x16x128xbf16> to vector<16x128xbf16>
    %cst_21 = arith.constant dense<0.000000e+00> : vector<80x128xf32>
    %25 = tpu.matmul %22, %24, %cst_21 {dimension_numbers = #tpu.dot_dimension_numbers<[1], [0], [0], [1], [0, 0, 1, 1], [], []>} : vector<80x16xbf16>, vector<16x128xbf16>, vector<80x128xf32> -> vector<80x128xf32>
    %26 = arith.addf %21, %25 : vector<80x128xf32>
    %c2 = arith.constant 2 : index
    %c0_22 = arith.constant 0 : index
    %27 = vector.load %arg7[%c2, %c0_22] : memref<110x16xbf16, #tpu.memory_space<vmem>>, vector<80x16xbf16>
    %c2_23 = arith.constant 2 : index
    %c0_24 = arith.constant 0 : index
    %c0_25 = arith.constant 0 : index
    %28 = vector.load %arg5[%c2_23, %c0_24, %c0_25] : memref<9x16x128xbf16, #tpu.memory_space<vmem>>, vector<1x16x128xbf16>
    %29 = vector.shape_cast %28 : vector<1x16x128xbf16> to vector<16x128xbf16>
    %cst_26 = arith.constant dense<0.000000e+00> : vector<80x128xf32>
    %30 = tpu.matmul %27, %29, %cst_26 {dimension_numbers = #tpu.dot_dimension_numbers<[1], [0], [0], [1], [0, 0, 1, 1], [], []>} : vector<80x16xbf16>, vector<16x128xbf16>, vector<80x128xf32> -> vector<80x128xf32>
    %31 = arith.addf %26, %30 : vector<80x128xf32>
    %c10 = arith.constant 10 : index
    %c0_27 = arith.constant 0 : index
    %32 = vector.load %arg7[%c10, %c0_27] : memref<110x16xbf16, #tpu.memory_space<vmem>>, vector<80x16xbf16>
    %c3 = arith.constant 3 : index
    %c0_28 = arith.constant 0 : index
    %c0_29 = arith.constant 0 : index
    %33 = vector.load %arg5[%c3, %c0_28, %c0_29] : memref<9x16x128xbf16, #tpu.memory_space<vmem>>, vector<1x16x128xbf16>
    %34 = vector.shape_cast %33 : vector<1x16x128xbf16> to vector<16x128xbf16>
    %cst_30 = arith.constant dense<0.000000e+00> : vector<80x128xf32>
    %35 = tpu.matmul %32, %34, %cst_30 {dimension_numbers = #tpu.dot_dimension_numbers<[1], [0], [0], [1], [0, 0, 1, 1], [], []>} : vector<80x16xbf16>, vector<16x128xbf16>, vector<80x128xf32> -> vector<80x128xf32>
    %36 = arith.addf %31, %35 : vector<80x128xf32>
    %c11 = arith.constant 11 : index
    %c0_31 = arith.constant 0 : index
    %37 = vector.load %arg7[%c11, %c0_31] : memref<110x16xbf16, #tpu.memory_space<vmem>>, vector<80x16xbf16>
    %c4 = arith.constant 4 : index
    %c0_32 = arith.constant 0 : index
    %c0_33 = arith.constant 0 : index
    %38 = vector.load %arg5[%c4, %c0_32, %c0_33] : memref<9x16x128xbf16, #tpu.memory_space<vmem>>, vector<1x16x128xbf16>
    %39 = vector.shape_cast %38 : vector<1x16x128xbf16> to vector<16x128xbf16>
    %cst_34 = arith.constant dense<0.000000e+00> : vector<80x128xf32>
    %40 = tpu.matmul %37, %39, %cst_34 {dimension_numbers = #tpu.dot_dimension_numbers<[1], [0], [0], [1], [0, 0, 1, 1], [], []>} : vector<80x16xbf16>, vector<16x128xbf16>, vector<80x128xf32> -> vector<80x128xf32>
    %41 = arith.addf %36, %40 : vector<80x128xf32>
    %c12 = arith.constant 12 : index
    %c0_35 = arith.constant 0 : index
    %42 = vector.load %arg7[%c12, %c0_35] : memref<110x16xbf16, #tpu.memory_space<vmem>>, vector<80x16xbf16>
    %c5 = arith.constant 5 : index
    %c0_36 = arith.constant 0 : index
    %c0_37 = arith.constant 0 : index
    %43 = vector.load %arg5[%c5, %c0_36, %c0_37] : memref<9x16x128xbf16, #tpu.memory_space<vmem>>, vector<1x16x128xbf16>
    %44 = vector.shape_cast %43 : vector<1x16x128xbf16> to vector<16x128xbf16>
    %cst_38 = arith.constant dense<0.000000e+00> : vector<80x128xf32>
    %45 = tpu.matmul %42, %44, %cst_38 {dimension_numbers = #tpu.dot_dimension_numbers<[1], [0], [0], [1], [0, 0, 1, 1], [], []>} : vector<80x16xbf16>, vector<16x128xbf16>, vector<80x128xf32> -> vector<80x128xf32>
    %46 = arith.addf %41, %45 : vector<80x128xf32>
    %c20 = arith.constant 20 : index
    %c0_39 = arith.constant 0 : index
    %47 = vector.load %arg7[%c20, %c0_39] : memref<110x16xbf16, #tpu.memory_space<vmem>>, vector<80x16xbf16>
    %c6 = arith.constant 6 : index
    %c0_40 = arith.constant 0 : index
    %c0_41 = arith.constant 0 : index
    %48 = vector.load %arg5[%c6, %c0_40, %c0_41] : memref<9x16x128xbf16, #tpu.memory_space<vmem>>, vector<1x16x128xbf16>
    %49 = vector.shape_cast %48 : vector<1x16x128xbf16> to vector<16x128xbf16>
    %cst_42 = arith.constant dense<0.000000e+00> : vector<80x128xf32>
    %50 = tpu.matmul %47, %49, %cst_42 {dimension_numbers = #tpu.dot_dimension_numbers<[1], [0], [0], [1], [0, 0, 1, 1], [], []>} : vector<80x16xbf16>, vector<16x128xbf16>, vector<80x128xf32> -> vector<80x128xf32>
    %51 = arith.addf %46, %50 : vector<80x128xf32>
    %c21 = arith.constant 21 : index
    %c0_43 = arith.constant 0 : index
    %52 = vector.load %arg7[%c21, %c0_43] : memref<110x16xbf16, #tpu.memory_space<vmem>>, vector<80x16xbf16>
    %c7 = arith.constant 7 : index
    %c0_44 = arith.constant 0 : index
    %c0_45 = arith.constant 0 : index
    %53 = vector.load %arg5[%c7, %c0_44, %c0_45] : memref<9x16x128xbf16, #tpu.memory_space<vmem>>, vector<1x16x128xbf16>
    %54 = vector.shape_cast %53 : vector<1x16x128xbf16> to vector<16x128xbf16>
    %cst_46 = arith.constant dense<0.000000e+00> : vector<80x128xf32>
    %55 = tpu.matmul %52, %54, %cst_46 {dimension_numbers = #tpu.dot_dimension_numbers<[1], [0], [0], [1], [0, 0, 1, 1], [], []>} : vector<80x16xbf16>, vector<16x128xbf16>, vector<80x128xf32> -> vector<80x128xf32>
    %56 = arith.addf %51, %55 : vector<80x128xf32>
    %c22 = arith.constant 22 : index
    %c0_47 = arith.constant 0 : index
    %57 = vector.load %arg7[%c22, %c0_47] : memref<110x16xbf16, #tpu.memory_space<vmem>>, vector<80x16xbf16>
    %c8 = arith.constant 8 : index
    %c0_48 = arith.constant 0 : index
    %c0_49 = arith.constant 0 : index
    %58 = vector.load %arg5[%c8, %c0_48, %c0_49] : memref<9x16x128xbf16, #tpu.memory_space<vmem>>, vector<1x16x128xbf16>
    %59 = vector.shape_cast %58 : vector<1x16x128xbf16> to vector<16x128xbf16>
    %cst_50 = arith.constant dense<0.000000e+00> : vector<80x128xf32>
    %60 = tpu.matmul %57, %59, %cst_50 {dimension_numbers = #tpu.dot_dimension_numbers<[1], [0], [0], [1], [0, 0, 1, 1], [], []>} : vector<80x16xbf16>, vector<16x128xbf16>, vector<80x128xf32> -> vector<80x128xf32>
    %61 = arith.addf %56, %60 : vector<80x128xf32>
    %c0_51 = arith.constant 0 : index
    %c0_52 = arith.constant 0 : index
    %c0_53 = arith.constant 0 : index
    %62 = vector.load %arg6[%c0_51, %c0_52, %c0_53] : memref<1x80x128xf32, #tpu.memory_space<vmem>>, vector<1x80x128xf32>
    %63 = vector.shape_cast %62 : vector<1x80x128xf32> to vector<80x128xf32>
    %64 = vector.shape_cast %61 : vector<80x128xf32> to vector<1x80x128xf32>
    tpu.vector_store %arg6[%c0_51, %c0_52, %c0_53], %64 {strides = array<i32>} : memref<1x80x128xf32, #tpu.memory_space<vmem>>, vector<1x80x128xf32>,
    return
  }
  func.func @transform_0(%arg0: i32) -> (i32, i32, i32) {
    %c0_i32 = arith.constant 0 : i32
    %c0_i32_0 = arith.constant 0 : i32
    %c0_i32_1 = arith.constant 0 : i32
    return %arg0, %c0_i32, %c0_i32_0 : i32, i32, i32
  }
  func.func @transform_1(%arg0: i32) -> (i32, i32) {
    %c0_i32 = arith.constant 0 : i32
    %c0_i32_0 = arith.constant 0 : i32
    %c0_i32_1 = arith.constant 0 : i32
    return %c0_i32, %c0_i32_0 : i32, i32
  }
  func.func @transform_2(%arg0: i32) -> (i32, i32) {
    %c0_i32 = arith.constant 0 : i32
    %c0_i32_0 = arith.constant 0 : i32
    %c0_i32_1 = arith.constant 0 : i32
    return %c0_i32, %c0_i32_0 : i32, i32
  }
  func.func @transform_3(%arg0: i32) -> (i32, i32) {
    %c0_i32 = arith.constant 0 : i32
    %c0_i32_0 = arith.constant 0 : i32
    %c0_i32_1 = arith.constant 0 : i32
    return %c0_i32, %c0_i32_0 : i32, i32
  }
  func.func @transform_4(%arg0: i32) -> (i32, i32, i32) {
    %c0_i32 = arith.constant 0 : i32
    %c0_i32_0 = arith.constant 0 : i32
    %c0_i32_1 = arith.constant 0 : i32
    %c0_i32_2 = arith.constant 0 : i32
    return %c0_i32, %c0_i32_0, %c0_i32_1 : i32, i32, i32
  }
  func.func @transform_5(%arg0: i32) -> (i32, i32, i32) {
    %c0_i32 = arith.constant 0 : i32
    %c0_i32_0 = arith.constant 0 : i32
    %c0_i32_1 = arith.constant 0 : i32
    return %arg0, %c0_i32, %c0_i32_0 : i32, i32, i32
  }
}

module attributes {stable_mosaic.version = 11 : i64} {
  func.func @_fused_matmul_kernel(%arg0: i32, %arg1: memref<128x24xf32, #tpu.memory_space<vmem>>, %arg2: memref<1x24xf32, #tpu.memory_space<vmem>>, %arg3: memref<1x24xf32, #tpu.memory_space<vmem>>, %arg4: memref<24x128xbf16, #tpu.memory_space<vmem>>, %arg5: memref<1x128xf32, #tpu.memory_space<vmem>>, %arg6: memref<128x128xf32, #tpu.memory_space<vmem>>, %arg7: memref<8x128xf32, #tpu.memory_space<vmem>>) attributes {dimension_semantics = [#tpu.dimension_semantics<parallel>], iteration_bounds = array<i64: 1>, scalar_prefetch = 0 : i64, scratch_operands = 0 : i64, tpu.core_type = #tpu.core_type<tc>, window_params = [{transform_indices = @transform_0, window_bounds = array<i64: 128, 24>}, {pipeline_mode = #tpu.pipeline_mode<synchronous>, transform_indices = @transform_1, window_bounds = array<i64: 1, 24>}, {pipeline_mode = #tpu.pipeline_mode<synchronous>, transform_indices = @transform_2, window_bounds = array<i64: 1, 24>}, {pipeline_mode = #tpu.pipeline_mode<synchronous>, transform_indices = @transform_3, window_bounds = array<i64: 24, 128>}, {pipeline_mode = #tpu.pipeline_mode<synchronous>, transform_indices = @transform_4, window_bounds = array<i64: 1, 128>}, {transform_indices = @transform_5, window_bounds = array<i64: 128, 128>}, {transform_indices = @transform_6, window_bounds = array<i64: 8, 128>}]} {
    %c0 = arith.constant 0 : index
    %c0_0 = arith.constant 0 : index
    %0 = vector.load %arg1[%c0, %c0_0] : memref<128x24xf32, #tpu.memory_space<vmem>>, vector<128x24xf32>
    %c0_1 = arith.constant 0 : index
    %c0_2 = arith.constant 0 : index
    %1 = vector.load %arg2[%c0_1, %c0_2] : memref<1x24xf32, #tpu.memory_space<vmem>>, vector<1x24xf32>
    %2 = vector.broadcast %1 : vector<1x24xf32> to vector<128x24xf32>
    %3 = arith.mulf %0, %2 : vector<128x24xf32>
    %c0_3 = arith.constant 0 : index
    %c0_4 = arith.constant 0 : index
    %4 = vector.load %arg3[%c0_3, %c0_4] : memref<1x24xf32, #tpu.memory_space<vmem>>, vector<1x24xf32>
    %5 = vector.broadcast %4 : vector<1x24xf32> to vector<128x24xf32>
    %6 = arith.addf %3, %5 : vector<128x24xf32>
    %cst = arith.constant 0.000000e+00 : f32
    %7 = vector.broadcast %cst : f32 to vector<128x24xf32>
    %8 = arith.cmpf oge, %6, %7 : vector<128x24xf32>
    %cst_5 = arith.constant 0.00999999977 : f32
    %9 = vector.broadcast %cst_5 : f32 to vector<128x24xf32>
    %10 = arith.mulf %9, %6 : vector<128x24xf32>
    %11 = arith.select %8, %6, %10 : vector<128x24xi1>, vector<128x24xf32>
    %12 = arith.truncf %11 : vector<128x24xf32> to vector<128x24xbf16>
    %c0_6 = arith.constant 0 : index
    %c0_7 = arith.constant 0 : index
    %13 = vector.load %arg4[%c0_6, %c0_7] : memref<24x128xbf16, #tpu.memory_space<vmem>>, vector<24x128xbf16>
    %cst_8 = arith.constant dense<0.000000e+00> : vector<128x128xf32>
    %14 = tpu.matmul %12, %13, %cst_8 {dimension_numbers = #tpu.dot_dimension_numbers<[1], [0], [0], [1], [0, 0, 1, 1], [], []>} : vector<128x24xbf16>, vector<24x128xbf16>, vector<128x128xf32> -> vector<128x128xf32>
    %c0_9 = arith.constant 0 : index
    %c0_10 = arith.constant 0 : index
    %15 = vector.load %arg5[%c0_9, %c0_10] : memref<1x128xf32, #tpu.memory_space<vmem>>, vector<1x128xf32>
    %16 = vector.broadcast %15 : vector<1x128xf32> to vector<128x128xf32>
    %17 = arith.addf %14, %16 : vector<128x128xf32>
    %c0_11 = arith.constant 0 : index
    %c0_12 = arith.constant 0 : index
    %18 = vector.load %arg6[%c0_11, %c0_12] : memref<128x128xf32, #tpu.memory_space<vmem>>, vector<128x128xf32>
    tpu.vector_store %arg6[%c0_11, %c0_12], %17 {strides = array<i32>} : memref<128x128xf32, #tpu.memory_space<vmem>>, vector<128x128xf32>,
    %c128_i32 = arith.constant 128 : i32
    %19 = arith.muli %arg0, %c128_i32 : i32
    %20 = tpu.iota {dimensions = array<i32: 0>} : vector<128x1xi32>
    %21 = vector.broadcast %19 : i32 to vector<128x1xi32>
    %22 = arith.addi %21, %20 : vector<128x1xi32>
    %c128_i32_13 = arith.constant 128 : i32
    %23 = vector.broadcast %c128_i32_13 : i32 to vector<128x1xi32>
    %24 = arith.cmpi slt, %22, %23 : vector<128x1xi32>
    %25 = arith.extui %24 : vector<128x1xi1> to vector<128x1xi32>
    %26 = arith.sitofp %25 : vector<128x1xi32> to vector<128x1xf32>
    %27 = vector.broadcast %26 : vector<128x1xf32> to vector<128x128xf32>
    %28 = arith.mulf %17, %27 : vector<128x128xf32>
    %cst_14 = arith.constant dense<0.000000e+00> : vector<128xf32>
    %29 = vector.multi_reduction <add>, %28, %cst_14 [0] : vector<128x128xf32> to vector<128xf32>
    %30 = vector.shape_cast %29 : vector<128xf32> to vector<1x128xf32>
    %31 = arith.mulf %28, %28 : vector<128x128xf32>
    %cst_15 = arith.constant dense<0.000000e+00> : vector<128xf32>
    %32 = vector.multi_reduction <add>, %31, %cst_15 [0] : vector<128x128xf32> to vector<128xf32>
    %33 = vector.shape_cast %32 : vector<128xf32> to vector<1x128xf32>
    %34 = tpu.iota {dimensions = array<i32: 0>} : vector<8x128xi32>
    %c4_i32 = arith.constant 4 : i32
    %35 = vector.broadcast %c4_i32 : i32 to vector<8x128xi32>
    %36 = arith.cmpi slt, %34, %35 : vector<8x128xi32>
    %37 = vector.shape_cast %30 : vector<1x128xf32> to vector<1x128xf32>
    %38 = vector.broadcast %37 : vector<1x128xf32> to vector<8x128xf32>
    %39 = vector.shape_cast %33 : vector<1x128xf32> to vector<1x128xf32>
    %40 = vector.broadcast %39 : vector<1x128xf32> to vector<8x128xf32>
    %41 = arith.select %36, %38, %40 : vector<8x128xi1>, vector<8x128xf32>
    %c0_16 = arith.constant 0 : index
    %c0_17 = arith.constant 0 : index
    %42 = vector.load %arg7[%c0_16, %c0_17] : memref<8x128xf32, #tpu.memory_space<vmem>>, vector<8x128xf32>
    tpu.vector_store %arg7[%c0_16, %c0_17], %41 {strides = array<i32>} : memref<8x128xf32, #tpu.memory_space<vmem>>, vector<8x128xf32>,
    return
  }
  func.func @transform_0(%arg0: i32) -> (i32, i32) {
    %c0_i32 = arith.constant 0 : i32
    %c0_i32_0 = arith.constant 0 : i32
    return %arg0, %c0_i32 : i32, i32
  }
  func.func @transform_1(%arg0: i32) -> (i32, i32) {
    %c0_i32 = arith.constant 0 : i32
    %c0_i32_0 = arith.constant 0 : i32
    %c0_i32_1 = arith.constant 0 : i32
    return %c0_i32, %c0_i32_0 : i32, i32
  }
  func.func @transform_2(%arg0: i32) -> (i32, i32) {
    %c0_i32 = arith.constant 0 : i32
    %c0_i32_0 = arith.constant 0 : i32
    %c0_i32_1 = arith.constant 0 : i32
    return %c0_i32, %c0_i32_0 : i32, i32
  }
  func.func @transform_3(%arg0: i32) -> (i32, i32) {
    %c0_i32 = arith.constant 0 : i32
    %c0_i32_0 = arith.constant 0 : i32
    %c0_i32_1 = arith.constant 0 : i32
    return %c0_i32, %c0_i32_0 : i32, i32
  }
  func.func @transform_4(%arg0: i32) -> (i32, i32) {
    %c0_i32 = arith.constant 0 : i32
    %c0_i32_0 = arith.constant 0 : i32
    %c0_i32_1 = arith.constant 0 : i32
    return %c0_i32, %c0_i32_0 : i32, i32
  }
  func.func @transform_5(%arg0: i32) -> (i32, i32) {
    %c0_i32 = arith.constant 0 : i32
    %c0_i32_0 = arith.constant 0 : i32
    return %arg0, %c0_i32 : i32, i32
  }
  func.func @transform_6(%arg0: i32) -> (i32, i32) {
    %c0_i32 = arith.constant 0 : i32
    %c0_i32_0 = arith.constant 0 : i32
    return %arg0, %c0_i32 : i32, i32
  }
}

module attributes {stable_mosaic.version = 11 : i64} {
  func.func @_fused_matmul_kernel(%arg0: i32, %arg1: memref<128x32xf32, #tpu.memory_space<vmem>>, %arg2: memref<1x32xf32, #tpu.memory_space<vmem>>, %arg3: memref<1x32xf32, #tpu.memory_space<vmem>>, %arg4: memref<32x128xbf16, #tpu.memory_space<vmem>>, %arg5: memref<1x128xf32, #tpu.memory_space<vmem>>, %arg6: memref<128x128xf32, #tpu.memory_space<vmem>>, %arg7: memref<8x128xf32, #tpu.memory_space<vmem>>) attributes {dimension_semantics = [#tpu.dimension_semantics<parallel>], iteration_bounds = array<i64: 1>, scalar_prefetch = 0 : i64, scratch_operands = 0 : i64, tpu.core_type = #tpu.core_type<tc>, window_params = [{transform_indices = @transform_0, window_bounds = array<i64: 128, 32>}, {pipeline_mode = #tpu.pipeline_mode<synchronous>, transform_indices = @transform_1, window_bounds = array<i64: 1, 32>}, {pipeline_mode = #tpu.pipeline_mode<synchronous>, transform_indices = @transform_2, window_bounds = array<i64: 1, 32>}, {pipeline_mode = #tpu.pipeline_mode<synchronous>, transform_indices = @transform_3, window_bounds = array<i64: 32, 128>}, {pipeline_mode = #tpu.pipeline_mode<synchronous>, transform_indices = @transform_4, window_bounds = array<i64: 1, 128>}, {transform_indices = @transform_5, window_bounds = array<i64: 128, 128>}, {transform_indices = @transform_6, window_bounds = array<i64: 8, 128>}]} {
    %c0 = arith.constant 0 : index
    %c0_0 = arith.constant 0 : index
    %0 = vector.load %arg1[%c0, %c0_0] : memref<128x32xf32, #tpu.memory_space<vmem>>, vector<128x32xf32>
    %c0_1 = arith.constant 0 : index
    %c0_2 = arith.constant 0 : index
    %1 = vector.load %arg2[%c0_1, %c0_2] : memref<1x32xf32, #tpu.memory_space<vmem>>, vector<1x32xf32>
    %2 = vector.broadcast %1 : vector<1x32xf32> to vector<128x32xf32>
    %3 = arith.mulf %0, %2 : vector<128x32xf32>
    %c0_3 = arith.constant 0 : index
    %c0_4 = arith.constant 0 : index
    %4 = vector.load %arg3[%c0_3, %c0_4] : memref<1x32xf32, #tpu.memory_space<vmem>>, vector<1x32xf32>
    %5 = vector.broadcast %4 : vector<1x32xf32> to vector<128x32xf32>
    %6 = arith.addf %3, %5 : vector<128x32xf32>
    %cst = arith.constant 0.000000e+00 : f32
    %7 = vector.broadcast %cst : f32 to vector<128x32xf32>
    %8 = arith.cmpf oge, %6, %7 : vector<128x32xf32>
    %cst_5 = arith.constant 0.00999999977 : f32
    %9 = vector.broadcast %cst_5 : f32 to vector<128x32xf32>
    %10 = arith.mulf %9, %6 : vector<128x32xf32>
    %11 = arith.select %8, %6, %10 : vector<128x32xi1>, vector<128x32xf32>
    %12 = arith.truncf %11 : vector<128x32xf32> to vector<128x32xbf16>
    %c0_6 = arith.constant 0 : index
    %c0_7 = arith.constant 0 : index
    %13 = vector.load %arg4[%c0_6, %c0_7] : memref<32x128xbf16, #tpu.memory_space<vmem>>, vector<32x128xbf16>
    %cst_8 = arith.constant dense<0.000000e+00> : vector<128x128xf32>
    %14 = tpu.matmul %12, %13, %cst_8 {dimension_numbers = #tpu.dot_dimension_numbers<[1], [0], [0], [1], [0, 0, 1, 1], [], []>} : vector<128x32xbf16>, vector<32x128xbf16>, vector<128x128xf32> -> vector<128x128xf32>
    %c0_9 = arith.constant 0 : index
    %c0_10 = arith.constant 0 : index
    %15 = vector.load %arg5[%c0_9, %c0_10] : memref<1x128xf32, #tpu.memory_space<vmem>>, vector<1x128xf32>
    %16 = vector.broadcast %15 : vector<1x128xf32> to vector<128x128xf32>
    %17 = arith.addf %14, %16 : vector<128x128xf32>
    %c0_11 = arith.constant 0 : index
    %c0_12 = arith.constant 0 : index
    %18 = vector.load %arg6[%c0_11, %c0_12] : memref<128x128xf32, #tpu.memory_space<vmem>>, vector<128x128xf32>
    tpu.vector_store %arg6[%c0_11, %c0_12], %17 {strides = array<i32>} : memref<128x128xf32, #tpu.memory_space<vmem>>, vector<128x128xf32>,
    %c128_i32 = arith.constant 128 : i32
    %19 = arith.muli %arg0, %c128_i32 : i32
    %20 = tpu.iota {dimensions = array<i32: 0>} : vector<128x1xi32>
    %21 = vector.broadcast %19 : i32 to vector<128x1xi32>
    %22 = arith.addi %21, %20 : vector<128x1xi32>
    %c128_i32_13 = arith.constant 128 : i32
    %23 = vector.broadcast %c128_i32_13 : i32 to vector<128x1xi32>
    %24 = arith.cmpi slt, %22, %23 : vector<128x1xi32>
    %25 = arith.extui %24 : vector<128x1xi1> to vector<128x1xi32>
    %26 = arith.sitofp %25 : vector<128x1xi32> to vector<128x1xf32>
    %27 = vector.broadcast %26 : vector<128x1xf32> to vector<128x128xf32>
    %28 = arith.mulf %17, %27 : vector<128x128xf32>
    %cst_14 = arith.constant dense<0.000000e+00> : vector<128xf32>
    %29 = vector.multi_reduction <add>, %28, %cst_14 [0] : vector<128x128xf32> to vector<128xf32>
    %30 = vector.shape_cast %29 : vector<128xf32> to vector<1x128xf32>
    %31 = arith.mulf %28, %28 : vector<128x128xf32>
    %cst_15 = arith.constant dense<0.000000e+00> : vector<128xf32>
    %32 = vector.multi_reduction <add>, %31, %cst_15 [0] : vector<128x128xf32> to vector<128xf32>
    %33 = vector.shape_cast %32 : vector<128xf32> to vector<1x128xf32>
    %34 = tpu.iota {dimensions = array<i32: 0>} : vector<8x128xi32>
    %c4_i32 = arith.constant 4 : i32
    %35 = vector.broadcast %c4_i32 : i32 to vector<8x128xi32>
    %36 = arith.cmpi slt, %34, %35 : vector<8x128xi32>
    %37 = vector.shape_cast %30 : vector<1x128xf32> to vector<1x128xf32>
    %38 = vector.broadcast %37 : vector<1x128xf32> to vector<8x128xf32>
    %39 = vector.shape_cast %33 : vector<1x128xf32> to vector<1x128xf32>
    %40 = vector.broadcast %39 : vector<1x128xf32> to vector<8x128xf32>
    %41 = arith.select %36, %38, %40 : vector<8x128xi1>, vector<8x128xf32>
    %c0_16 = arith.constant 0 : index
    %c0_17 = arith.constant 0 : index
    %42 = vector.load %arg7[%c0_16, %c0_17] : memref<8x128xf32, #tpu.memory_space<vmem>>, vector<8x128xf32>
    tpu.vector_store %arg7[%c0_16, %c0_17], %41 {strides = array<i32>} : memref<8x128xf32, #tpu.memory_space<vmem>>, vector<8x128xf32>,
    return
  }
  func.func @transform_0(%arg0: i32) -> (i32, i32) {
    %c0_i32 = arith.constant 0 : i32
    %c0_i32_0 = arith.constant 0 : i32
    return %arg0, %c0_i32 : i32, i32
  }
  func.func @transform_1(%arg0: i32) -> (i32, i32) {
    %c0_i32 = arith.constant 0 : i32
    %c0_i32_0 = arith.constant 0 : i32
    %c0_i32_1 = arith.constant 0 : i32
    return %c0_i32, %c0_i32_0 : i32, i32
  }
  func.func @transform_2(%arg0: i32) -> (i32, i32) {
    %c0_i32 = arith.constant 0 : i32
    %c0_i32_0 = arith.constant 0 : i32
    %c0_i32_1 = arith.constant 0 : i32
    return %c0_i32, %c0_i32_0 : i32, i32
  }
  func.func @transform_3(%arg0: i32) -> (i32, i32) {
    %c0_i32 = arith.constant 0 : i32
    %c0_i32_0 = arith.constant 0 : i32
    %c0_i32_1 = arith.constant 0 : i32
    return %c0_i32, %c0_i32_0 : i32, i32
  }
  func.func @transform_4(%arg0: i32) -> (i32, i32) {
    %c0_i32 = arith.constant 0 : i32
    %c0_i32_0 = arith.constant 0 : i32
    %c0_i32_1 = arith.constant 0 : i32
    return %c0_i32, %c0_i32_0 : i32, i32
  }
  func.func @transform_5(%arg0: i32) -> (i32, i32) {
    %c0_i32 = arith.constant 0 : i32
    %c0_i32_0 = arith.constant 0 : i32
    return %arg0, %c0_i32 : i32, i32
  }
  func.func @transform_6(%arg0: i32) -> (i32, i32) {
    %c0_i32 = arith.constant 0 : i32
    %c0_i32_0 = arith.constant 0 : i32
    return %arg0, %c0_i32 : i32, i32
  }
}

module attributes {stable_mosaic.version = 11 : i64} {
  func.func @_fused_matmul_kernel(%arg0: i32, %arg1: memref<128x40xf32, #tpu.memory_space<vmem>>, %arg2: memref<1x40xf32, #tpu.memory_space<vmem>>, %arg3: memref<1x40xf32, #tpu.memory_space<vmem>>, %arg4: memref<40x128xbf16, #tpu.memory_space<vmem>>, %arg5: memref<1x128xf32, #tpu.memory_space<vmem>>, %arg6: memref<128x128xf32, #tpu.memory_space<vmem>>, %arg7: memref<8x128xf32, #tpu.memory_space<vmem>>) attributes {dimension_semantics = [#tpu.dimension_semantics<parallel>], iteration_bounds = array<i64: 1>, scalar_prefetch = 0 : i64, scratch_operands = 0 : i64, tpu.core_type = #tpu.core_type<tc>, window_params = [{transform_indices = @transform_0, window_bounds = array<i64: 128, 40>}, {pipeline_mode = #tpu.pipeline_mode<synchronous>, transform_indices = @transform_1, window_bounds = array<i64: 1, 40>}, {pipeline_mode = #tpu.pipeline_mode<synchronous>, transform_indices = @transform_2, window_bounds = array<i64: 1, 40>}, {pipeline_mode = #tpu.pipeline_mode<synchronous>, transform_indices = @transform_3, window_bounds = array<i64: 40, 128>}, {pipeline_mode = #tpu.pipeline_mode<synchronous>, transform_indices = @transform_4, window_bounds = array<i64: 1, 128>}, {transform_indices = @transform_5, window_bounds = array<i64: 128, 128>}, {transform_indices = @transform_6, window_bounds = array<i64: 8, 128>}]} {
    %c0 = arith.constant 0 : index
    %c0_0 = arith.constant 0 : index
    %0 = vector.load %arg1[%c0, %c0_0] : memref<128x40xf32, #tpu.memory_space<vmem>>, vector<128x40xf32>
    %c0_1 = arith.constant 0 : index
    %c0_2 = arith.constant 0 : index
    %1 = vector.load %arg2[%c0_1, %c0_2] : memref<1x40xf32, #tpu.memory_space<vmem>>, vector<1x40xf32>
    %2 = vector.broadcast %1 : vector<1x40xf32> to vector<128x40xf32>
    %3 = arith.mulf %0, %2 : vector<128x40xf32>
    %c0_3 = arith.constant 0 : index
    %c0_4 = arith.constant 0 : index
    %4 = vector.load %arg3[%c0_3, %c0_4] : memref<1x40xf32, #tpu.memory_space<vmem>>, vector<1x40xf32>
    %5 = vector.broadcast %4 : vector<1x40xf32> to vector<128x40xf32>
    %6 = arith.addf %3, %5 : vector<128x40xf32>
    %cst = arith.constant 0.000000e+00 : f32
    %7 = vector.broadcast %cst : f32 to vector<128x40xf32>
    %8 = arith.cmpf oge, %6, %7 : vector<128x40xf32>
    %cst_5 = arith.constant 0.00999999977 : f32
    %9 = vector.broadcast %cst_5 : f32 to vector<128x40xf32>
    %10 = arith.mulf %9, %6 : vector<128x40xf32>
    %11 = arith.select %8, %6, %10 : vector<128x40xi1>, vector<128x40xf32>
    %12 = arith.truncf %11 : vector<128x40xf32> to vector<128x40xbf16>
    %c0_6 = arith.constant 0 : index
    %c0_7 = arith.constant 0 : index
    %13 = vector.load %arg4[%c0_6, %c0_7] : memref<40x128xbf16, #tpu.memory_space<vmem>>, vector<40x128xbf16>
    %cst_8 = arith.constant dense<0.000000e+00> : vector<128x128xf32>
    %14 = tpu.matmul %12, %13, %cst_8 {dimension_numbers = #tpu.dot_dimension_numbers<[1], [0], [0], [1], [0, 0, 1, 1], [], []>} : vector<128x40xbf16>, vector<40x128xbf16>, vector<128x128xf32> -> vector<128x128xf32>
    %c0_9 = arith.constant 0 : index
    %c0_10 = arith.constant 0 : index
    %15 = vector.load %arg5[%c0_9, %c0_10] : memref<1x128xf32, #tpu.memory_space<vmem>>, vector<1x128xf32>
    %16 = vector.broadcast %15 : vector<1x128xf32> to vector<128x128xf32>
    %17 = arith.addf %14, %16 : vector<128x128xf32>
    %c0_11 = arith.constant 0 : index
    %c0_12 = arith.constant 0 : index
    %18 = vector.load %arg6[%c0_11, %c0_12] : memref<128x128xf32, #tpu.memory_space<vmem>>, vector<128x128xf32>
    tpu.vector_store %arg6[%c0_11, %c0_12], %17 {strides = array<i32>} : memref<128x128xf32, #tpu.memory_space<vmem>>, vector<128x128xf32>,
    %c128_i32 = arith.constant 128 : i32
    %19 = arith.muli %arg0, %c128_i32 : i32
    %20 = tpu.iota {dimensions = array<i32: 0>} : vector<128x1xi32>
    %21 = vector.broadcast %19 : i32 to vector<128x1xi32>
    %22 = arith.addi %21, %20 : vector<128x1xi32>
    %c128_i32_13 = arith.constant 128 : i32
    %23 = vector.broadcast %c128_i32_13 : i32 to vector<128x1xi32>
    %24 = arith.cmpi slt, %22, %23 : vector<128x1xi32>
    %25 = arith.extui %24 : vector<128x1xi1> to vector<128x1xi32>
    %26 = arith.sitofp %25 : vector<128x1xi32> to vector<128x1xf32>
    %27 = vector.broadcast %26 : vector<128x1xf32> to vector<128x128xf32>
    %28 = arith.mulf %17, %27 : vector<128x128xf32>
    %cst_14 = arith.constant dense<0.000000e+00> : vector<128xf32>
    %29 = vector.multi_reduction <add>, %28, %cst_14 [0] : vector<128x128xf32> to vector<128xf32>
    %30 = vector.shape_cast %29 : vector<128xf32> to vector<1x128xf32>
    %31 = arith.mulf %28, %28 : vector<128x128xf32>
    %cst_15 = arith.constant dense<0.000000e+00> : vector<128xf32>
    %32 = vector.multi_reduction <add>, %31, %cst_15 [0] : vector<128x128xf32> to vector<128xf32>
    %33 = vector.shape_cast %32 : vector<128xf32> to vector<1x128xf32>
    %34 = tpu.iota {dimensions = array<i32: 0>} : vector<8x128xi32>
    %c4_i32 = arith.constant 4 : i32
    %35 = vector.broadcast %c4_i32 : i32 to vector<8x128xi32>
    %36 = arith.cmpi slt, %34, %35 : vector<8x128xi32>
    %37 = vector.shape_cast %30 : vector<1x128xf32> to vector<1x128xf32>
    %38 = vector.broadcast %37 : vector<1x128xf32> to vector<8x128xf32>
    %39 = vector.shape_cast %33 : vector<1x128xf32> to vector<1x128xf32>
    %40 = vector.broadcast %39 : vector<1x128xf32> to vector<8x128xf32>
    %41 = arith.select %36, %38, %40 : vector<8x128xi1>, vector<8x128xf32>
    %c0_16 = arith.constant 0 : index
    %c0_17 = arith.constant 0 : index
    %42 = vector.load %arg7[%c0_16, %c0_17] : memref<8x128xf32, #tpu.memory_space<vmem>>, vector<8x128xf32>
    tpu.vector_store %arg7[%c0_16, %c0_17], %41 {strides = array<i32>} : memref<8x128xf32, #tpu.memory_space<vmem>>, vector<8x128xf32>,
    return
  }
  func.func @transform_0(%arg0: i32) -> (i32, i32) {
    %c0_i32 = arith.constant 0 : i32
    %c0_i32_0 = arith.constant 0 : i32
    return %arg0, %c0_i32 : i32, i32
  }
  func.func @transform_1(%arg0: i32) -> (i32, i32) {
    %c0_i32 = arith.constant 0 : i32
    %c0_i32_0 = arith.constant 0 : i32
    %c0_i32_1 = arith.constant 0 : i32
    return %c0_i32, %c0_i32_0 : i32, i32
  }
  func.func @transform_2(%arg0: i32) -> (i32, i32) {
    %c0_i32 = arith.constant 0 : i32
    %c0_i32_0 = arith.constant 0 : i32
    %c0_i32_1 = arith.constant 0 : i32
    return %c0_i32, %c0_i32_0 : i32, i32
  }
  func.func @transform_3(%arg0: i32) -> (i32, i32) {
    %c0_i32 = arith.constant 0 : i32
    %c0_i32_0 = arith.constant 0 : i32
    %c0_i32_1 = arith.constant 0 : i32
    return %c0_i32, %c0_i32_0 : i32, i32
  }
  func.func @transform_4(%arg0: i32) -> (i32, i32) {
    %c0_i32 = arith.constant 0 : i32
    %c0_i32_0 = arith.constant 0 : i32
    %c0_i32_1 = arith.constant 0 : i32
    return %c0_i32, %c0_i32_0 : i32, i32
  }
  func.func @transform_5(%arg0: i32) -> (i32, i32) {
    %c0_i32 = arith.constant 0 : i32
    %c0_i32_0 = arith.constant 0 : i32
    return %arg0, %c0_i32 : i32, i32
  }
  func.func @transform_6(%arg0: i32) -> (i32, i32) {
    %c0_i32 = arith.constant 0 : i32
    %c0_i32_0 = arith.constant 0 : i32
    return %arg0, %c0_i32 : i32, i32
  }
}

module attributes {stable_mosaic.version = 11 : i64} {
  func.func @_bn_relu_gap_kernel(%arg0: i32, %arg1: memref<1x64x48xf32, #tpu.memory_space<vmem>>, %arg2: memref<1x48xf32, #tpu.memory_space<vmem>>, %arg3: memref<1x48xf32, #tpu.memory_space<vmem>>, %arg4: memref<1x8x48xf32, #tpu.memory_space<vmem>>) attributes {dimension_semantics = [#tpu.dimension_semantics<parallel>], iteration_bounds = array<i64: 2>, scalar_prefetch = 0 : i64, scratch_operands = 0 : i64, tpu.core_type = #tpu.core_type<tc>, window_params = [{transform_indices = @transform_0, window_bounds = array<i64: 1, 64, 48>}, {pipeline_mode = #tpu.pipeline_mode<synchronous>, transform_indices = @transform_1, window_bounds = array<i64: 1, 48>}, {pipeline_mode = #tpu.pipeline_mode<synchronous>, transform_indices = @transform_2, window_bounds = array<i64: 1, 48>}, {transform_indices = @transform_3, window_bounds = array<i64: 1, 8, 48>}]} {
    %c0 = arith.constant 0 : index
    %c0_0 = arith.constant 0 : index
    %c0_1 = arith.constant 0 : index
    %0 = vector.load %arg1[%c0, %c0_0, %c0_1] : memref<1x64x48xf32, #tpu.memory_space<vmem>>, vector<1x64x48xf32>
    %1 = vector.shape_cast %0 : vector<1x64x48xf32> to vector<64x48xf32>
    %c0_2 = arith.constant 0 : index
    %c0_3 = arith.constant 0 : index
    %2 = vector.load %arg2[%c0_2, %c0_3] : memref<1x48xf32, #tpu.memory_space<vmem>>, vector<1x48xf32>
    %3 = vector.broadcast %2 : vector<1x48xf32> to vector<64x48xf32>
    %4 = arith.mulf %1, %3 : vector<64x48xf32>
    %c0_4 = arith.constant 0 : index
    %c0_5 = arith.constant 0 : index
    %5 = vector.load %arg3[%c0_4, %c0_5] : memref<1x48xf32, #tpu.memory_space<vmem>>, vector<1x48xf32>
    %6 = vector.broadcast %5 : vector<1x48xf32> to vector<64x48xf32>
    %7 = arith.addf %4, %6 : vector<64x48xf32>
    %cst = arith.constant 0.000000e+00 : f32
    %8 = vector.broadcast %cst : f32 to vector<64x48xf32>
    %9 = arith.maximumf %7, %8 : vector<64x48xf32>
    %cst_6 = arith.constant dense<0.000000e+00> : vector<48xf32>
    %10 = vector.multi_reduction <add>, %9, %cst_6 [0] : vector<64x48xf32> to vector<48xf32>
    %11 = vector.shape_cast %10 : vector<48xf32> to vector<1x48xf32>
    %cst_7 = arith.constant 6.400000e+01 : f32
    %12 = vector.broadcast %cst_7 : f32 to vector<1x48xf32>
    %13 = arith.divf %11, %12 : vector<1x48xf32>
    %14 = vector.shape_cast %13 : vector<1x48xf32> to vector<1x48xf32>
    %15 = vector.broadcast %14 : vector<1x48xf32> to vector<8x48xf32>
    %c0_8 = arith.constant 0 : index
    %c0_9 = arith.constant 0 : index
    %c0_10 = arith.constant 0 : index
    %16 = vector.load %arg4[%c0_8, %c0_9, %c0_10] : memref<1x8x48xf32, #tpu.memory_space<vmem>>, vector<1x8x48xf32>
    %17 = vector.shape_cast %16 : vector<1x8x48xf32> to vector<8x48xf32>
    %18 = vector.shape_cast %15 : vector<8x48xf32> to vector<1x8x48xf32>
    tpu.vector_store %arg4[%c0_8, %c0_9, %c0_10], %18 {strides = array<i32>} : memref<1x8x48xf32, #tpu.memory_space<vmem>>, vector<1x8x48xf32>,
    return
  }
  func.func @transform_0(%arg0: i32) -> (i32, i32, i32) {
    %c0_i32 = arith.constant 0 : i32
    %c0_i32_0 = arith.constant 0 : i32
    %c0_i32_1 = arith.constant 0 : i32
    return %arg0, %c0_i32, %c0_i32_0 : i32, i32, i32
  }
  func.func @transform_1(%arg0: i32) -> (i32, i32) {
    %c0_i32 = arith.constant 0 : i32
    %c0_i32_0 = arith.constant 0 : i32
    %c0_i32_1 = arith.constant 0 : i32
    return %c0_i32, %c0_i32_0 : i32, i32
  }
  func.func @transform_2(%arg0: i32) -> (i32, i32) {
    %c0_i32 = arith.constant 0 : i32
    %c0_i32_0 = arith.constant 0 : i32
    %c0_i32_1 = arith.constant 0 : i32
    return %c0_i32, %c0_i32_0 : i32, i32
  }
  func.func @transform_3(%arg0: i32) -> (i32, i32, i32) {
    %c0_i32 = arith.constant 0 : i32
    %c0_i32_0 = arith.constant 0 : i32
    %c0_i32_1 = arith.constant 0 : i32
    return %arg0, %c0_i32, %c0_i32_0 : i32, i32, i32
  }
}

module attributes {stable_mosaic.version = 11 : i64} {
  func.func @_fused_matmul_kernel(%arg0: i32, %arg1: memref<8x48xf32, #tpu.memory_space<vmem>>, %arg2: memref<1x48xf32, #tpu.memory_space<vmem>>, %arg3: memref<1x48xf32, #tpu.memory_space<vmem>>, %arg4: memref<48x128xbf16, #tpu.memory_space<vmem>>, %arg5: memref<1x128xf32, #tpu.memory_space<vmem>>, %arg6: memref<8x128xf32, #tpu.memory_space<vmem>>, %arg7: memref<8x128xf32, #tpu.memory_space<vmem>>) attributes {dimension_semantics = [#tpu.dimension_semantics<parallel>], iteration_bounds = array<i64: 1>, scalar_prefetch = 0 : i64, scratch_operands = 0 : i64, tpu.core_type = #tpu.core_type<tc>, window_params = [{transform_indices = @transform_0, window_bounds = array<i64: 8, 48>}, {pipeline_mode = #tpu.pipeline_mode<synchronous>, transform_indices = @transform_1, window_bounds = array<i64: 1, 48>}, {pipeline_mode = #tpu.pipeline_mode<synchronous>, transform_indices = @transform_2, window_bounds = array<i64: 1, 48>}, {pipeline_mode = #tpu.pipeline_mode<synchronous>, transform_indices = @transform_3, window_bounds = array<i64: 48, 128>}, {pipeline_mode = #tpu.pipeline_mode<synchronous>, transform_indices = @transform_4, window_bounds = array<i64: 1, 128>}, {transform_indices = @transform_5, window_bounds = array<i64: 8, 128>}, {transform_indices = @transform_6, window_bounds = array<i64: 8, 128>}]} {
    %c0 = arith.constant 0 : index
    %c0_0 = arith.constant 0 : index
    %0 = vector.load %arg1[%c0, %c0_0] : memref<8x48xf32, #tpu.memory_space<vmem>>, vector<8x48xf32>
    %c0_1 = arith.constant 0 : index
    %c0_2 = arith.constant 0 : index
    %1 = vector.load %arg2[%c0_1, %c0_2] : memref<1x48xf32, #tpu.memory_space<vmem>>, vector<1x48xf32>
    %2 = vector.broadcast %1 : vector<1x48xf32> to vector<8x48xf32>
    %3 = arith.mulf %0, %2 : vector<8x48xf32>
    %c0_3 = arith.constant 0 : index
    %c0_4 = arith.constant 0 : index
    %4 = vector.load %arg3[%c0_3, %c0_4] : memref<1x48xf32, #tpu.memory_space<vmem>>, vector<1x48xf32>
    %5 = vector.broadcast %4 : vector<1x48xf32> to vector<8x48xf32>
    %6 = arith.addf %3, %5 : vector<8x48xf32>
    %7 = arith.truncf %6 : vector<8x48xf32> to vector<8x48xbf16>
    %c0_5 = arith.constant 0 : index
    %c0_6 = arith.constant 0 : index
    %8 = vector.load %arg4[%c0_5, %c0_6] : memref<48x128xbf16, #tpu.memory_space<vmem>>, vector<48x128xbf16>
    %cst = arith.constant dense<0.000000e+00> : vector<8x128xf32>
    %9 = tpu.matmul %7, %8, %cst {dimension_numbers = #tpu.dot_dimension_numbers<[1], [0], [0], [1], [0, 0, 1, 1], [], []>} : vector<8x48xbf16>, vector<48x128xbf16>, vector<8x128xf32> -> vector<8x128xf32>
    %c0_7 = arith.constant 0 : index
    %c0_8 = arith.constant 0 : index
    %10 = vector.load %arg5[%c0_7, %c0_8] : memref<1x128xf32, #tpu.memory_space<vmem>>, vector<1x128xf32>
    %11 = vector.broadcast %10 : vector<1x128xf32> to vector<8x128xf32>
    %12 = arith.addf %9, %11 : vector<8x128xf32>
    %c0_9 = arith.constant 0 : index
    %c0_10 = arith.constant 0 : index
    %13 = vector.load %arg6[%c0_9, %c0_10] : memref<8x128xf32, #tpu.memory_space<vmem>>, vector<8x128xf32>
    tpu.vector_store %arg6[%c0_9, %c0_10], %12 {strides = array<i32>} : memref<8x128xf32, #tpu.memory_space<vmem>>, vector<8x128xf32>,
    %c8_i32 = arith.constant 8 : i32
    %14 = arith.muli %arg0, %c8_i32 : i32
    %15 = tpu.iota {dimensions = array<i32: 0>} : vector<8x1xi32>
    %16 = vector.broadcast %14 : i32 to vector<8x1xi32>
    %17 = arith.addi %16, %15 : vector<8x1xi32>
    %c2_i32 = arith.constant 2 : i32
    %18 = vector.broadcast %c2_i32 : i32 to vector<8x1xi32>
    %19 = arith.cmpi slt, %17, %18 : vector<8x1xi32>
    %20 = arith.extui %19 : vector<8x1xi1> to vector<8x1xi32>
    %21 = arith.sitofp %20 : vector<8x1xi32> to vector<8x1xf32>
    %22 = vector.broadcast %21 : vector<8x1xf32> to vector<8x128xf32>
    %23 = arith.mulf %12, %22 : vector<8x128xf32>
    %cst_11 = arith.constant dense<0.000000e+00> : vector<128xf32>
    %24 = vector.multi_reduction <add>, %23, %cst_11 [0] : vector<8x128xf32> to vector<128xf32>
    %25 = vector.shape_cast %24 : vector<128xf32> to vector<1x128xf32>
    %26 = arith.mulf %23, %23 : vector<8x128xf32>
    %cst_12 = arith.constant dense<0.000000e+00> : vector<128xf32>
    %27 = vector.multi_reduction <add>, %26, %cst_12 [0] : vector<8x128xf32> to vector<128xf32>
    %28 = vector.shape_cast %27 : vector<128xf32> to vector<1x128xf32>
    %29 = tpu.iota {dimensions = array<i32: 0>} : vector<8x128xi32>
    %c4_i32 = arith.constant 4 : i32
    %30 = vector.broadcast %c4_i32 : i32 to vector<8x128xi32>
    %31 = arith.cmpi slt, %29, %30 : vector<8x128xi32>
    %32 = vector.shape_cast %25 : vector<1x128xf32> to vector<1x128xf32>
    %33 = vector.broadcast %32 : vector<1x128xf32> to vector<8x128xf32>
    %34 = vector.shape_cast %28 : vector<1x128xf32> to vector<1x128xf32>
    %35 = vector.broadcast %34 : vector<1x128xf32> to vector<8x128xf32>
    %36 = arith.select %31, %33, %35 : vector<8x128xi1>, vector<8x128xf32>
    %c0_13 = arith.constant 0 : index
    %c0_14 = arith.constant 0 : index
    %37 = vector.load %arg7[%c0_13, %c0_14] : memref<8x128xf32, #tpu.memory_space<vmem>>, vector<8x128xf32>
    tpu.vector_store %arg7[%c0_13, %c0_14], %36 {strides = array<i32>} : memref<8x128xf32, #tpu.memory_space<vmem>>, vector<8x128xf32>,
    return
  }
  func.func @transform_0(%arg0: i32) -> (i32, i32) {
    %c0_i32 = arith.constant 0 : i32
    %c0_i32_0 = arith.constant 0 : i32
    return %arg0, %c0_i32 : i32, i32
  }
  func.func @transform_1(%arg0: i32) -> (i32, i32) {
    %c0_i32 = arith.constant 0 : i32
    %c0_i32_0 = arith.constant 0 : i32
    %c0_i32_1 = arith.constant 0 : i32
    return %c0_i32, %c0_i32_0 : i32, i32
  }
  func.func @transform_2(%arg0: i32) -> (i32, i32) {
    %c0_i32 = arith.constant 0 : i32
    %c0_i32_0 = arith.constant 0 : i32
    %c0_i32_1 = arith.constant 0 : i32
    return %c0_i32, %c0_i32_0 : i32, i32
  }
  func.func @transform_3(%arg0: i32) -> (i32, i32) {
    %c0_i32 = arith.constant 0 : i32
    %c0_i32_0 = arith.constant 0 : i32
    %c0_i32_1 = arith.constant 0 : i32
    return %c0_i32, %c0_i32_0 : i32, i32
  }
  func.func @transform_4(%arg0: i32) -> (i32, i32) {
    %c0_i32 = arith.constant 0 : i32
    %c0_i32_0 = arith.constant 0 : i32
    %c0_i32_1 = arith.constant 0 : i32
    return %c0_i32, %c0_i32_0 : i32, i32
  }
  func.func @transform_5(%arg0: i32) -> (i32, i32) {
    %c0_i32 = arith.constant 0 : i32
    %c0_i32_0 = arith.constant 0 : i32
    return %arg0, %c0_i32 : i32, i32
  }
  func.func @transform_6(%arg0: i32) -> (i32, i32) {
    %c0_i32 = arith.constant 0 : i32
    %c0_i32_0 = arith.constant 0 : i32
    return %arg0, %c0_i32 : i32, i32
  }
}

</mosaic_0001>

<bundles_post_ra>
// kernel: densenet_forward.14
= control target key start
LH: loop header
LB: loop body
LE: loop exit
PB: predicated region body
PF: predicated region fallthrough
CT: control target
= control target key end

     0   :  { %vm412_vm0 = vcmask 130048   ;;  %s1095_s0 = inlined_call_operand.vmem [shape: f32[512,16], index: 0, kind: input, shape index: {}]   ;;  %s1096_s1 = inlined_call_operand.vmem [shape: f32[1,16], index: 1, kind: input, shape index: {}]   ;;  %s1097_s2 = inlined_call_operand.vmem [shape: f32[1,16], index: 2, kind: input, shape index: {}]   ;;  %s1098_s3 = inlined_call_operand.vmem [shape: f32[512,16], index: 3, kind: output, shape index: {}]  }
   0x1   :  { %v14_v0 = vld [vmem:[%s1095_s0] sm:$0xff]  ;;  %v15_v4 = vld [vmem:[%s1095_s0 + $0x8] sm:$0xff]  ;;  %v16_v5 = vld [vmem:[%s1095_s0 + $0x10] sm:$0xff] }
   0x2   :  { %v509_v1 = vld [vmem:[%s1096_s1] ss:$0 sm:$0xff]  ;;  %v17_v6 = vld [vmem:[%s1095_s0 + $0x18] sm:$0xff]  ;;  %v19_v11 = vld [vmem:[%s1095_s0 + $0x28] sm:$0xff] }
   0x3   :  { %v514_v2 = vld [vmem:[%s1097_s2] ss:$0 sm:$0xff]  ;;  %v85_v3 = vmul.f32 %v509_v1, %v14_v0  ;;  %v86_v7 = vmul.f32 %v509_v1, %v15_v4  ;;  %v87_v8 = vmul.f32 %v509_v1, %v16_v5  ;;  %v88_v9 = vmul.f32 %v509_v1, %v17_v6  ;;  %v20_v12 = vld [vmem:[%s1095_s0 + $0x30] sm:$0xff]  ;;  %v21_v17 = vld [vmem:[%s1095_s0 + $0x38] sm:$0xff] }
   0x4   :  { %v18_v10 = vld [vmem:[%s1095_s0 + $0x20] sm:$0xff]  ;;  %v90_v15 = vmul.f32 %v509_v1, %v19_v11  ;;  %v91_v16 = vmul.f32 %v509_v1, %v20_v12  ;;  %v92_v21 = vmul.f32 %v509_v1, %v21_v17  ;;  %v23_v30 = vld [vmem:[%s1095_s0 + $0x48] sm:$0xff]  ;;  %v24_v31 = vld [vmem:[%s1095_s0 + $0x50] sm:$0xff] }
   0x5   :  { %v156_v13 = vadd.f32 %v514_v2, %v85_v3  ;;  %v89_v14 = vmul.f32 %v509_v1, %v18_v10  ;;  %v157_v18 = vadd.f32 %v514_v2, %v86_v7  ;;  %v158_v19 = vadd.f32 %v514_v2, %v87_v8  ;;  %v22_v25 = vld [vmem:[%s1095_s0 + $0x40] sm:$0xff]  ;;  %v25_v43 = vld [vmem:[%s1095_s0 + $0x58] sm:$0xff]  ;;  %v27_v45 = vld [vmem:[%s1095_s0 + $0x68] sm:$0xff] }
   0x6   :  { %v159_v20 = vadd.f32 %v514_v2, %v88_v9  ;;  %v161_v24 = vadd.f32 %v514_v2, %v90_v15  ;;  %v162_v37 = vadd.f32 %v514_v2, %v91_v16  ;;  %v163_v38 = vadd.f32 %v514_v2, %v92_v21  ;;  %v26_v44 = vld [vmem:[%s1095_s0 + $0x60] sm:$0xff]  ;;  %v28_v56 = vld [vmem:[%s1095_s0 + $0x70] sm:$0xff]  ;;  %v29_v4 = vld [vmem:[%s1095_s0 + $0x78] sm:$0xff] }
   0x7   :  { %vm220_vm1 = vcmp.ge.f32.partialorder %v156_v13, 0.0  ;;  %v284_v22 = vmul.f32 0.01, %v156_v13  ;;  %v160_v23 = vadd.f32 %v514_v2, %v89_v14  ;;  %vm221_vm2 = vcmp.ge.f32.partialorder %v157_v18, 0.0  ;;  %v30_v5 = vld [vmem:[%s1095_s0 + $0x80] sm:$0xff]  ;;  %v31_v9 = vld [vmem:[%s1095_s0 + $0x88] sm:$0xff] }
   0x8   :  { %v285_v26 = vmul.f32 0.01, %v157_v18  ;;  %vm222_vm3 = vcmp.ge.f32.partialorder %v158_v19, 0.0  ;;  %v286_v27 = vmul.f32 0.01, %v158_v19  ;;  %vm223_vm4 = vcmp.ge.f32.partialorder %v159_v20, 0.0 }
   0x9   :  { %v348_v28 = vsel %vm220_vm1, %v156_v13, %v284_v22  ;;  %v287_v29 = vmul.f32 0.01, %v159_v20  ;;  %vm224_vm5 = vcmp.ge.f32.partialorder %v160_v23, 0.0  ;;  %v288_v34 = vmul.f32 0.01, %v160_v23  ;;  %v32_v10 = vld [vmem:[%s1095_s0 + $0x90] sm:$0xff] }
   0xa   :  { %413 = vst.msk [vmem:[%s1098_s3] sm:$0xff] %vm412_vm0, %v348_v28  ;;  %v349_v32 = vsel %vm221_vm2, %v157_v18, %v285_v26  ;;  %v350_v33 = vsel %vm222_vm3, %v158_v19, %v286_v27  ;;  %vm225_vm6 = vcmp.ge.f32.partialorder %v161_v24, 0.0  ;;  %v289_v36 = vmul.f32 0.01, %v161_v24  ;;  %v33_v17 = vld [vmem:[%s1095_s0 + $0x98] sm:$0xff]  ;;  %v34_v18 = vld [vmem:[%s1095_s0 + $0xa0] sm:$0xff] }
   0xb   :  { %414 = vst.msk [vmem:[%s1098_s3 + $0x8] sm:$0xff] %vm412_vm0, %v349_v32  ;;  %415 = vst.msk [vmem:[%s1098_s3 + $0x10] sm:$0xff] %vm412_vm0, %v350_v33  ;;  %v351_v35 = vsel %vm223_vm4, %v159_v20, %v287_v29  ;;  %v352_v39 = vsel %vm224_vm5, %v160_v23, %v288_v34  ;;  %v93_v40 = vmul.f32 %v509_v1, %v22_v25  ;;  %vm226_vm7 = vcmp.ge.f32.partialorder %v162_v37, 0.0  ;;  %v35_v32 = vld [vmem:[%s1095_s0 + $0xa8] sm:$0xff]  ;;  %v36_v33 = vld [vmem:[%s1095_s0 + $0xb0] sm:$0xff] }
   0xc   :  { %416 = vst.msk [vmem:[%s1098_s3 + $0x18] sm:$0xff] %vm412_vm0, %v351_v35  ;;  %v94_v41 = vmul.f32 %v509_v1, %v23_v30  ;;  %v95_v42 = vmul.f32 %v509_v1, %v24_v31  ;;  %417 = vst.msk [vmem:[%s1098_s3 + $0x20] sm:$0xff] %vm412_vm0, %v352_v39  ;;  %v353_v46 = vsel %vm225_vm6, %v161_v24, %v289_v36  ;;  %v290_v47 = vmul.f32 0.01, %v162_v37 }
   0xd   :  { %vm227_vm8 = vcmp.ge.f32.partialorder %v163_v38, 0.0  ;;  %418 = vst.msk [vmem:[%s1098_s3 + $0x28] sm:$0xff] %vm412_vm0, %v353_v46  ;;  %v291_v48 = vmul.f32 0.01, %v163_v38  ;;  %v164_v49 = vadd.f32 %v514_v2, %v93_v40  ;;  %v96_v53 = vmul.f32 %v509_v1, %v25_v43  ;;  %v37_v40 = vld [vmem:[%s1095_s0 + $0xb8] sm:$0xff]  ;;  %v39_v46 = vld [vmem:[%s1095_s0 + $0xc8] sm:$0xff] }
   0xe   :  { %v165_v50 = vadd.f32 %v514_v2, %v94_v41  ;;  %v166_v51 = vadd.f32 %v514_v2, %v95_v42  ;;  %v354_v52 = vsel %vm226_vm7, %v162_v37, %v290_v47  ;;  %v97_v54 = vmul.f32 %v509_v1, %v26_v44  ;;  %v40_v47 = vld [vmem:[%s1095_s0 + $0xd0] sm:$0xff] }
   0xf   :  { %v98_v55 = vmul.f32 %v509_v1, %v27_v45  ;;  %419 = vst.msk [vmem:[%s1098_s3 + $0x30] sm:$0xff] %vm412_vm0, %v354_v52  ;;  %v355_v57 = vsel %vm227_vm8, %v163_v38, %v291_v48  ;;  %vm228_vm9 = vcmp.ge.f32.partialorder %v164_v49, 0.0  ;;  %v292_v58 = vmul.f32 0.01, %v164_v49  ;;  %v38_v45 = vld [vmem:[%s1095_s0 + $0xc0] sm:$0xff] }
  0x10   :  { %vm229_vm10 = vcmp.ge.f32.partialorder %v165_v50, 0.0  ;;  %420 = vst.msk [vmem:[%s1098_s3 + $0x38] sm:$0xff] %vm412_vm0, %v355_v57  ;;  %v293_v59 = vmul.f32 0.01, %v165_v50  ;;  %vm230_vm11 = vcmp.ge.f32.partialorder %v166_v51, 0.0  ;;  %v167_v61 = vadd.f32 %v514_v2, %v96_v53 }
  0x11   :  { %v294_v60 = vmul.f32 0.01, %v166_v51  ;;  %v356_v62 = vsel %vm228_vm9, %v164_v49, %v292_v58  ;;  %v168_v63 = vadd.f32 %v514_v2, %v97_v54  ;;  %v169_v0 = vadd.f32 %v514_v2, %v98_v55  ;;  %v41_v58 = vld [vmem:[%s1095_s0 + $0xd8] sm:$0xff] }
  0x12   :  { %v99_v3 = vmul.f32 %v509_v1, %v28_v56  ;;  %421 = vst.msk [vmem:[%s1098_s3 + $0x40] sm:$0xff] %vm412_vm0, %v356_v62  ;;  %v357_v6 = vsel %vm229_vm10, %v165_v50, %v293_v59  ;;  %vm231_vm12 = vcmp.ge.f32.partialorder %v167_v61, 0.0  ;;  %v295_v8 = vmul.f32 0.01, %v167_v61  ;;  %v42_v59 = vld [vmem:[%s1095_s0 + $0xe0] sm:$0xff] }
  0x13   :  { %v358_v7 = vsel %vm230_vm11, %v166_v51, %v294_v60  ;;  %422 = vst.msk [vmem:[%s1098_s3 + $0x48] sm:$0xff] %vm412_vm0, %v357_v6  ;;  %vm232_vm13 = vcmp.ge.f32.partialorder %v168_v63, 0.0  ;;  %v296_v11 = vmul.f32 0.01, %v168_v63  ;;  %vm233_vm14 = vcmp.ge.f32.partialorder %v169_v0, 0.0 }
  0x14   :  { %423 = vst.msk [vmem:[%s1098_s3 + $0x50] sm:$0xff] %vm412_vm0, %v358_v7  ;;  %v297_v12 = vmul.f32 0.01, %v169_v0  ;;  %v359_v13 = vsel %vm231_vm12, %v167_v61, %v295_v8  ;;  %v170_v14 = vadd.f32 %v514_v2, %v99_v3  ;;  %v100_v15 = vmul.f32 %v509_v1, %v29_v4 }
  0x15   :  { %v101_v16 = vmul.f32 %v509_v1, %v30_v5  ;;  %424 = vst.msk [vmem:[%s1098_s3 + $0x58] sm:$0xff] %vm412_vm0, %v359_v13  ;;  %v360_v19 = vsel %vm232_vm13, %v168_v63, %v296_v11  ;;  %v102_v21 = vmul.f32 %v509_v1, %v31_v9  ;;  %v103_v22 = vmul.f32 %v509_v1, %v32_v10  ;;  %v43_v10 = vld [vmem:[%s1095_s0 + $0xe8] sm:$0xff]  ;;  %v44_v11 = vld [vmem:[%s1095_s0 + $0xf0] sm:$0xff] }
  0x16   :  { %v361_v20 = vsel %vm233_vm14, %v169_v0, %v297_v12  ;;  %425 = vst.msk [vmem:[%s1098_s3 + $0x60] sm:$0xff] %vm412_vm0, %v360_v19  ;;  %vm234_vm15 = vcmp.ge.f32.partialorder %v170_v14, 0.0  ;;  %v298_v23 = vmul.f32 0.01, %v170_v14  ;;  %v171_v24 = vadd.f32 %v514_v2, %v100_v15 }
  0x17   :  { %426 = vst.msk [vmem:[%s1098_s3 + $0x68] sm:$0xff] %vm412_vm0, %v361_v20  ;;  %v172_v25 = vadd.f32 %v514_v2, %v101_v16  ;;  %v173_v26 = vadd.f32 %v514_v2, %v102_v21  ;;  %v174_v27 = vadd.f32 %v514_v2, %v103_v22  ;;  %v104_v28 = vmul.f32 %v509_v1, %v33_v17 }
  0x18   :  { %v105_v29 = vmul.f32 %v509_v1, %v34_v18  ;;  %v362_v30 = vsel %vm234_vm15, %v170_v14, %v298_v23  ;;  %vm235_vm1 = vcmp.ge.f32.partialorder %v171_v24, 0.0  ;;  %v299_v31 = vmul.f32 0.01, %v171_v24  ;;  %v45_v18 = vld [vmem:[%s1095_s0 + $0xf8] sm:$0xff]  ;;  %v46_v23 = vld [vmem:[%s1095_s0 + $0x100] sm:$0xff] }
  0x19   :  { %vm236_vm2 = vcmp.ge.f32.partialorder %v172_v25, 0.0  ;;  %427 = vst.msk [vmem:[%s1098_s3 + $0x70] sm:$0xff] %vm412_vm0, %v362_v30  ;;  %v300_v34 = vmul.f32 0.01, %v172_v25  ;;  %vm237_vm3 = vcmp.ge.f32.partialorder %v173_v26, 0.0  ;;  %vm238_vm4 = vcmp.ge.f32.partialorder %v174_v27, 0.0 }
  0x1a   :  { %v301_v35 = vmul.f32 0.01, %v173_v26  ;;  %v363_v36 = vsel %vm235_vm1, %v171_v24, %v299_v31  ;;  %v302_v37 = vmul.f32 0.01, %v174_v27  ;;  %v175_v38 = vadd.f32 %v514_v2, %v104_v28  ;;  %v47_v24 = vld [vmem:[%s1095_s0 + $0x108] sm:$0xff] }
  0x1b   :  { %v176_v39 = vadd.f32 %v514_v2, %v105_v29  ;;  %428 = vst.msk [vmem:[%s1098_s3 + $0x78] sm:$0xff] %vm412_vm0, %v363_v36  ;;  %v364_v41 = vsel %vm236_vm2, %v172_v25, %v300_v34  ;;  %v106_v43 = vmul.f32 %v509_v1, %v35_v32  ;;  %v107_v44 = vmul.f32 %v509_v1, %v36_v33  ;;  %v48_v25 = vld [vmem:[%s1095_s0 + $0x110] sm:$0xff]  ;;  %v49_v36 = vld [vmem:[%s1095_s0 + $0x118] sm:$0xff] }
  0x1c   :  { %v365_v42 = vsel %vm237_vm3, %v173_v26, %v301_v35  ;;  %429 = vst.msk [vmem:[%s1098_s3 + $0x80] sm:$0xff] %vm412_vm0, %v364_v41  ;;  %v366_v48 = vsel %vm238_vm4, %v174_v27, %v302_v37  ;;  %vm239_vm5 = vcmp.ge.f32.partialorder %v175_v38, 0.0  ;;  %v303_v49 = vmul.f32 0.01, %v175_v38  ;;  %v50_v37 = vld [vmem:[%s1095_s0 + $0x120] sm:$0xff] }
  0x1d   :  { %430 = vst.msk [vmem:[%s1098_s3 + $0x88] sm:$0xff] %vm412_vm0, %v365_v42  ;;  %vm240_vm6 = vcmp.ge.f32.partialorder %v176_v39, 0.0  ;;  %431 = vst.msk [vmem:[%s1098_s3 + $0x90] sm:$0xff] %vm412_vm0, %v366_v48  ;;  %v304_v50 = vmul.f32 0.01, %v176_v39  ;;  %v177_v51 = vadd.f32 %v514_v2, %v106_v43  ;;  %v178_v52 = vadd.f32 %v514_v2, %v107_v44 }
  0x1e   :  { %v108_v53 = vmul.f32 %v509_v1, %v37_v40  ;;  %v367_v54 = vsel %vm239_vm5, %v175_v38, %v303_v49  ;;  %v109_v55 = vmul.f32 %v509_v1, %v38_v45  ;;  %v110_v56 = vmul.f32 %v509_v1, %v39_v46 }
  0x1f   :  { %v111_v57 = vmul.f32 %v509_v1, %v40_v47  ;;  %432 = vst.msk [vmem:[%s1098_s3 + $0x98] sm:$0xff] %vm412_vm0, %v367_v54  ;;  %v368_v60 = vsel %vm240_vm6, %v176_v39, %v304_v50  ;;  %vm241_vm7 = vcmp.ge.f32.partialorder %v177_v51, 0.0  ;;  %v305_v61 = vmul.f32 0.01, %v177_v51  ;;  %v51_v50 = vld [vmem:[%s1095_s0 + $0x128] sm:$0xff] }
  0x20   :  { %vm242_vm8 = vcmp.ge.f32.partialorder %v178_v52, 0.0  ;;  %433 = vst.msk [vmem:[%s1098_s3 + $0xa0] sm:$0xff] %vm412_vm0, %v368_v60  ;;  %v306_v62 = vmul.f32 0.01, %v178_v52  ;;  %v179_v63 = vadd.f32 %v514_v2, %v108_v53  ;;  %v180_v0 = vadd.f32 %v514_v2, %v109_v55 }
  0x21   :  { %v181_v3 = vadd.f32 %v514_v2, %v110_v56  ;;  %v369_v4 = vsel %vm241_vm7, %v177_v51, %v305_v61  ;;  %v182_v5 = vadd.f32 %v514_v2, %v111_v57  ;;  %v112_v6 = vmul.f32 %v509_v1, %v41_v58  ;;  %v52_v51 = vld [vmem:[%s1095_s0 + $0x130] sm:$0xff]  ;;  %v53_v58 = vld [vmem:[%s1095_s0 + $0x138] sm:$0xff] }
  0x22   :  { %v113_v7 = vmul.f32 %v509_v1, %v42_v59  ;;  %434 = vst.msk [vmem:[%s1098_s3 + $0xa8] sm:$0xff] %vm412_vm0, %v369_v4  ;;  %v370_v8 = vsel %vm242_vm8, %v178_v52, %v306_v62  ;;  %vm243_vm9 = vcmp.ge.f32.partialorder %v179_v63, 0.0  ;;  %v307_v9 = vmul.f32 0.01, %v179_v63 }
  0x23   :  { %vm244_vm10 = vcmp.ge.f32.partialorder %v180_v0, 0.0  ;;  %435 = vst.msk [vmem:[%s1098_s3 + $0xb0] sm:$0xff] %vm412_vm0, %v370_v8  ;;  %v308_v12 = vmul.f32 0.01, %v180_v0  ;;  %vm245_vm11 = vcmp.ge.f32.partialorder %v181_v3, 0.0  ;;  %vm246_vm12 = vcmp.ge.f32.partialorder %v182_v5, 0.0 }
  0x24   :  { %v309_v13 = vmul.f32 0.01, %v181_v3  ;;  %v371_v14 = vsel %vm243_vm9, %v179_v63, %v307_v9  ;;  %v310_v15 = vmul.f32 0.01, %v182_v5  ;;  %v183_v16 = vadd.f32 %v514_v2, %v112_v6  ;;  %v54_v63 = vld [vmem:[%s1095_s0 + $0x140] sm:$0xff] }
  0x25   :  { %v184_v17 = vadd.f32 %v514_v2, %v113_v7  ;;  %436 = vst.msk [vmem:[%s1098_s3 + $0xb8] sm:$0xff] %vm412_vm0, %v371_v14  ;;  %v372_v19 = vsel %vm244_vm10, %v180_v0, %v308_v12  ;;  %v114_v21 = vmul.f32 %v509_v1, %v43_v10  ;;  %v115_v22 = vmul.f32 %v509_v1, %v44_v11  ;;  %v55_v0 = vld [vmem:[%s1095_s0 + $0x148] sm:$0xff]  ;;  %v57_v14 = vld [vmem:[%s1095_s0 + $0x158] sm:$0xff] }
  0x26   :  { %v373_v20 = vsel %vm245_vm11, %v181_v3, %v309_v13  ;;  %437 = vst.msk [vmem:[%s1098_s3 + $0xc0] sm:$0xff] %vm412_vm0, %v372_v19  ;;  %v374_v26 = vsel %vm246_vm12, %v182_v5, %v310_v15  ;;  %vm247_vm13 = vcmp.ge.f32.partialorder %v183_v16, 0.0  ;;  %v311_v27 = vmul.f32 0.01, %v183_v16  ;;  %v56_v3 = vld [vmem:[%s1095_s0 + $0x150] sm:$0xff]  ;;  %v58_v15 = vld [vmem:[%s1095_s0 + $0x160] sm:$0xff] }
  0x27   :  { %438 = vst.msk [vmem:[%s1098_s3 + $0xc8] sm:$0xff] %vm412_vm0, %v373_v20  ;;  %vm248_vm14 = vcmp.ge.f32.partialorder %v184_v17, 0.0  ;;  %439 = vst.msk [vmem:[%s1098_s3 + $0xd0] sm:$0xff] %vm412_vm0, %v374_v26  ;;  %v312_v28 = vmul.f32 0.01, %v184_v17  ;;  %v185_v29 = vadd.f32 %v514_v2, %v114_v21  ;;  %v186_v30 = vadd.f32 %v514_v2, %v115_v22 }
  0x28   :  { %v116_v31 = vmul.f32 %v509_v1, %v45_v18  ;;  %v375_v32 = vsel %vm247_vm13, %v183_v16, %v311_v27  ;;  %v117_v33 = vmul.f32 %v509_v1, %v46_v23  ;;  %v118_v34 = vmul.f32 %v509_v1, %v47_v24 }
  0x29   :  { %v119_v35 = vmul.f32 %v509_v1, %v48_v25  ;;  %440 = vst.msk [vmem:[%s1098_s3 + $0xd8] sm:$0xff] %vm412_vm0, %v375_v32  ;;  %v376_v38 = vsel %vm248_vm14, %v184_v17, %v312_v28  ;;  %vm249_vm15 = vcmp.ge.f32.partialorder %v185_v29, 0.0  ;;  %v313_v39 = vmul.f32 0.01, %v185_v29  ;;  %v59_v28 = vld [vmem:[%s1095_s0 + $0x168] sm:$0xff] }
  0x2a   :  { %vm250_vm1 = vcmp.ge.f32.partialorder %v186_v30, 0.0  ;;  %441 = vst.msk [vmem:[%s1098_s3 + $0xe0] sm:$0xff] %vm412_vm0, %v376_v38  ;;  %v314_v40 = vmul.f32 0.01, %v186_v30  ;;  %v187_v41 = vadd.f32 %v514_v2, %v116_v31  ;;  %v188_v42 = vadd.f32 %v514_v2, %v117_v33 }
  0x2b   :  { %v189_v43 = vadd.f32 %v514_v2, %v118_v34  ;;  %v377_v44 = vsel %vm249_vm15, %v185_v29, %v313_v39  ;;  %v190_v45 = vadd.f32 %v514_v2, %v119_v35  ;;  %v120_v46 = vmul.f32 %v509_v1, %v49_v36  ;;  %v60_v29 = vld [vmem:[%s1095_s0 + $0x170] sm:$0xff]  ;;  %v61_v36 = vld [vmem:[%s1095_s0 + $0x178] sm:$0xff] }
  0x2c   :  { %v121_v47 = vmul.f32 %v509_v1, %v50_v37  ;;  %442 = vst.msk [vmem:[%s1098_s3 + $0xe8] sm:$0xff] %vm412_vm0, %v377_v44  ;;  %v378_v48 = vsel %vm250_vm1, %v186_v30, %v314_v40  ;;  %vm251_vm2 = vcmp.ge.f32.partialorder %v187_v41, 0.0  ;;  %v315_v49 = vmul.f32 0.01, %v187_v41 }
  0x2d   :  { %vm252_vm3 = vcmp.ge.f32.partialorder %v188_v42, 0.0  ;;  %443 = vst.msk [vmem:[%s1098_s3 + $0xf0] sm:$0xff] %vm412_vm0, %v378_v48  ;;  %v316_v52 = vmul.f32 0.01, %v188_v42  ;;  %vm253_vm4 = vcmp.ge.f32.partialorder %v189_v43, 0.0  ;;  %vm254_vm5 = vcmp.ge.f32.partialorder %v190_v45, 0.0 }
  0x2e   :  { %v317_v53 = vmul.f32 0.01, %v189_v43  ;;  %v379_v54 = vsel %vm251_vm2, %v187_v41, %v315_v49  ;;  %v318_v55 = vmul.f32 0.01, %v190_v45  ;;  %v191_v56 = vadd.f32 %v514_v2, %v120_v46  ;;  %v62_v41 = vld [vmem:[%s1095_s0 + $0x180] sm:$0xff] }
  0x2f   :  { %v192_v57 = vadd.f32 %v514_v2, %v121_v47  ;;  %444 = vst.msk [vmem:[%s1098_s3 + $0xf8] sm:$0xff] %vm412_vm0, %v379_v54  ;;  %v380_v59 = vsel %vm252_vm3, %v188_v42, %v316_v52  ;;  %v122_v61 = vmul.f32 %v509_v1, %v51_v50  ;;  %v123_v62 = vmul.f32 %v509_v1, %v52_v51  ;;  %v63_v42 = vld [vmem:[%s1095_s0 + $0x188] sm:$0xff]  ;;  %v65_v54 = vld [vmem:[%s1095_s0 + $0x198] sm:$0xff] }
  0x30   :  { %v381_v60 = vsel %vm253_vm4, %v189_v43, %v317_v53  ;;  %445 = vst.msk [vmem:[%s1098_s3 + $0x100] sm:$0xff] %vm412_vm0, %v380_v59  ;;  %v382_v4 = vsel %vm254_vm5, %v190_v45, %v318_v55  ;;  %vm255_vm6 = vcmp.ge.f32.partialorder %v191_v56, 0.0  ;;  %v319_v5 = vmul.f32 0.01, %v191_v56  ;;  %v64_v43 = vld [vmem:[%s1095_s0 + $0x190] sm:$0xff]  ;;  %v66_v55 = vld [vmem:[%s1095_s0 + $0x1a0] sm:$0xff] }
  0x31   :  { %446 = vst.msk [vmem:[%s1098_s3 + $0x108] sm:$0xff] %vm412_vm0, %v381_v60  ;;  %vm256_vm7 = vcmp.ge.f32.partialorder %v192_v57, 0.0  ;;  %447 = vst.msk [vmem:[%s1098_s3 + $0x110] sm:$0xff] %vm412_vm0, %v382_v4  ;;  %v320_v6 = vmul.f32 0.01, %v192_v57  ;;  %v193_v7 = vadd.f32 %v514_v2, %v122_v61  ;;  %v194_v8 = vadd.f32 %v514_v2, %v123_v62 }
  0x32   :  { %v124_v9 = vmul.f32 %v509_v1, %v53_v58  ;;  %v383_v10 = vsel %vm255_vm6, %v191_v56, %v319_v5  ;;  %v125_v11 = vmul.f32 %v509_v1, %v54_v63  ;;  %v126_v12 = vmul.f32 %v509_v1, %v55_v0 }
  0x33   :  { %v127_v13 = vmul.f32 %v509_v1, %v56_v3  ;;  %448 = vst.msk [vmem:[%s1098_s3 + $0x118] sm:$0xff] %vm412_vm0, %v383_v10  ;;  %v384_v16 = vsel %vm256_vm7, %v192_v57, %v320_v6  ;;  %vm257_vm8 = vcmp.ge.f32.partialorder %v193_v7, 0.0  ;;  %v321_v17 = vmul.f32 0.01, %v193_v7  ;;  %v67_v6 = vld [vmem:[%s1095_s0 + $0x1a8] sm:$0xff] }
  0x34   :  { %vm258_vm9 = vcmp.ge.f32.partialorder %v194_v8, 0.0  ;;  %449 = vst.msk [vmem:[%s1098_s3 + $0x120] sm:$0xff] %vm412_vm0, %v384_v16  ;;  %v322_v18 = vmul.f32 0.01, %v194_v8  ;;  %v195_v19 = vadd.f32 %v514_v2, %v124_v9  ;;  %v196_v20 = vadd.f32 %v514_v2, %v125_v11 }
  0x35   :  { %v197_v21 = vadd.f32 %v514_v2, %v126_v12  ;;  %v385_v22 = vsel %vm257_vm8, %v193_v7, %v321_v17  ;;  %v198_v23 = vadd.f32 %v514_v2, %v127_v13  ;;  %v128_v24 = vmul.f32 %v509_v1, %v57_v14  ;;  %v68_v7 = vld [vmem:[%s1095_s0 + $0x1b0] sm:$0xff]  ;;  %v69_v14 = vld [vmem:[%s1095_s0 + $0x1b8] sm:$0xff] }
  0x36   :  { %v129_v25 = vmul.f32 %v509_v1, %v58_v15  ;;  %450 = vst.msk [vmem:[%s1098_s3 + $0x128] sm:$0xff] %vm412_vm0, %v385_v22  ;;  %v386_v26 = vsel %vm258_vm9, %v194_v8, %v322_v18  ;;  %vm259_vm10 = vcmp.ge.f32.partialorder %v195_v19, 0.0  ;;  %v323_v27 = vmul.f32 0.01, %v195_v19 }
  0x37   :  { %vm260_vm11 = vcmp.ge.f32.partialorder %v196_v20, 0.0  ;;  %451 = vst.msk [vmem:[%s1098_s3 + $0x130] sm:$0xff] %vm412_vm0, %v386_v26  ;;  %v324_v30 = vmul.f32 0.01, %v196_v20  ;;  %vm261_vm12 = vcmp.ge.f32.partialorder %v197_v21, 0.0  ;;  %vm262_vm13 = vcmp.ge.f32.partialorder %v198_v23, 0.0 }
  0x38   :  { %v325_v31 = vmul.f32 0.01, %v197_v21  ;;  %v387_v32 = vsel %vm259_vm10, %v195_v19, %v323_v27  ;;  %v326_v33 = vmul.f32 0.01, %v198_v23  ;;  %v199_v34 = vadd.f32 %v514_v2, %v128_v24  ;;  %v70_v19 = vld [vmem:[%s1095_s0 + $0x1c0] sm:$0xff] }
  0x39   :  { %v200_v35 = vadd.f32 %v514_v2, %v129_v25  ;;  %452 = vst.msk [vmem:[%s1098_s3 + $0x138] sm:$0xff] %vm412_vm0, %v387_v32  ;;  %v388_v37 = vsel %vm260_vm11, %v196_v20, %v324_v30  ;;  %v130_v39 = vmul.f32 %v509_v1, %v59_v28  ;;  %v131_v40 = vmul.f32 %v509_v1, %v60_v29  ;;  %v71_v20 = vld [vmem:[%s1095_s0 + $0x1c8] sm:$0xff]  ;;  %v73_v32 = vld [vmem:[%s1095_s0 + $0x1d8] sm:$0xff] }
  0x3a   :  { %v389_v38 = vsel %vm261_vm12, %v197_v21, %v325_v31  ;;  %453 = vst.msk [vmem:[%s1098_s3 + $0x140] sm:$0xff] %vm412_vm0, %v388_v37  ;;  %v390_v44 = vsel %vm262_vm13, %v198_v23, %v326_v33  ;;  %vm263_vm14 = vcmp.ge.f32.partialorder %v199_v34, 0.0  ;;  %v327_v45 = vmul.f32 0.01, %v199_v34  ;;  %v72_v21 = vld [vmem:[%s1095_s0 + $0x1d0] sm:$0xff]  ;;  %v74_v33 = vld [vmem:[%s1095_s0 + $0x1e0] sm:$0xff] }
  0x3b   :  { %454 = vst.msk [vmem:[%s1098_s3 + $0x148] sm:$0xff] %vm412_vm0, %v389_v38  ;;  %vm264_vm15 = vcmp.ge.f32.partialorder %v200_v35, 0.0  ;;  %455 = vst.msk [vmem:[%s1098_s3 + $0x150] sm:$0xff] %vm412_vm0, %v390_v44  ;;  %v328_v46 = vmul.f32 0.01, %v200_v35  ;;  %v201_v47 = vadd.f32 %v514_v2, %v130_v39  ;;  %v202_v48 = vadd.f32 %v514_v2, %v131_v40 }
  0x3c   :  { %v132_v49 = vmul.f32 %v509_v1, %v61_v36  ;;  %v391_v50 = vsel %vm263_vm14, %v199_v34, %v327_v45  ;;  %v133_v51 = vmul.f32 %v509_v1, %v62_v41  ;;  %v134_v52 = vmul.f32 %v509_v1, %v63_v42 }
  0x3d   :  { %v135_v53 = vmul.f32 %v509_v1, %v64_v43  ;;  %456 = vst.msk [vmem:[%s1098_s3 + $0x158] sm:$0xff] %vm412_vm0, %v391_v50  ;;  %v392_v56 = vsel %vm264_vm15, %v200_v35, %v328_v46  ;;  %vm265_vm1 = vcmp.ge.f32.partialorder %v201_v47, 0.0  ;;  %v329_v57 = vmul.f32 0.01, %v201_v47  ;;  %v75_v46 = vld [vmem:[%s1095_s0 + $0x1e8] sm:$0xff] }
  0x3e   :  { %vm266_vm2 = vcmp.ge.f32.partialorder %v202_v48, 0.0  ;;  %457 = vst.msk [vmem:[%s1098_s3 + $0x160] sm:$0xff] %vm412_vm0, %v392_v56  ;;  %v330_v58 = vmul.f32 0.01, %v202_v48  ;;  %v203_v59 = vadd.f32 %v514_v2, %v132_v49  ;;  %v204_v60 = vadd.f32 %v514_v2, %v133_v51 }
  0x3f   :  { %v205_v61 = vadd.f32 %v514_v2, %v134_v52  ;;  %v393_v62 = vsel %vm265_vm1, %v201_v47, %v329_v57  ;;  %v206_v63 = vadd.f32 %v514_v2, %v135_v53  ;;  %v136_v0 = vmul.f32 %v509_v1, %v65_v54  ;;  %v76_v47 = vld [vmem:[%s1095_s0 + $0x1f0] sm:$0xff]  ;;  %v77_v54 = vld [vmem:[%s1095_s0 + $0x1f8] sm:$0xff] }
  0x40   :  { %v137_v3 = vmul.f32 %v509_v1, %v66_v55  ;;  %458 = vst.msk [vmem:[%s1098_s3 + $0x168] sm:$0xff] %vm412_vm0, %v393_v62  ;;  %v394_v4 = vsel %vm266_vm2, %v202_v48, %v330_v58  ;;  %vm267_vm3 = vcmp.ge.f32.partialorder %v203_v59, 0.0  ;;  %v331_v5 = vmul.f32 0.01, %v203_v59 }
  0x41   :  { %vm268_vm4 = vcmp.ge.f32.partialorder %v204_v60, 0.0  ;;  %459 = vst.msk [vmem:[%s1098_s3 + $0x170] sm:$0xff] %vm412_vm0, %v394_v4  ;;  %v332_v8 = vmul.f32 0.01, %v204_v60  ;;  %vm269_vm5 = vcmp.ge.f32.partialorder %v205_v61, 0.0  ;;  %vm270_vm6 = vcmp.ge.f32.partialorder %v206_v63, 0.0 }
  0x42   :  { %v333_v9 = vmul.f32 0.01, %v205_v61  ;;  %v395_v10 = vsel %vm267_vm3, %v203_v59, %v331_v5  ;;  %v334_v11 = vmul.f32 0.01, %v206_v63  ;;  %v207_v12 = vadd.f32 %v514_v2, %v136_v0 }
  0x43   :  { %v208_v13 = vadd.f32 %v514_v2, %v137_v3  ;;  %460 = vst.msk [vmem:[%s1098_s3 + $0x178] sm:$0xff] %vm412_vm0, %v395_v10  ;;  %v396_v15 = vsel %vm268_vm4, %v204_v60, %v332_v8  ;;  %v138_v17 = vmul.f32 %v509_v1, %v67_v6  ;;  %v139_v18 = vmul.f32 %v509_v1, %v68_v7 }
  0x44   :  { %v397_v16 = vsel %vm269_vm5, %v205_v61, %v333_v9  ;;  %461 = vst.msk [vmem:[%s1098_s3 + $0x180] sm:$0xff] %vm412_vm0, %v396_v15  ;;  %v398_v22 = vsel %vm270_vm6, %v206_v63, %v334_v11  ;;  %vm271_vm7 = vcmp.ge.f32.partialorder %v207_v12, 0.0  ;;  %v335_v23 = vmul.f32 0.01, %v207_v12 }
  0x45   :  { %462 = vst.msk [vmem:[%s1098_s3 + $0x188] sm:$0xff] %vm412_vm0, %v397_v16  ;;  %vm272_vm8 = vcmp.ge.f32.partialorder %v208_v13, 0.0  ;;  %463 = vst.msk [vmem:[%s1098_s3 + $0x190] sm:$0xff] %vm412_vm0, %v398_v22  ;;  %v336_v24 = vmul.f32 0.01, %v208_v13  ;;  %v209_v25 = vadd.f32 %v514_v2, %v138_v17  ;;  %v210_v26 = vadd.f32 %v514_v2, %v139_v18 }
  0x46   :  { %v140_v27 = vmul.f32 %v509_v1, %v69_v14  ;;  %v399_v28 = vsel %vm271_vm7, %v207_v12, %v335_v23  ;;  %v141_v29 = vmul.f32 %v509_v1, %v70_v19  ;;  %v142_v30 = vmul.f32 %v509_v1, %v71_v20 }
  0x47   :  { %v143_v31 = vmul.f32 %v509_v1, %v72_v21  ;;  %464 = vst.msk [vmem:[%s1098_s3 + $0x198] sm:$0xff] %vm412_vm0, %v399_v28  ;;  %v400_v34 = vsel %vm272_vm8, %v208_v13, %v336_v24  ;;  %vm273_vm9 = vcmp.ge.f32.partialorder %v209_v25, 0.0  ;;  %v337_v35 = vmul.f32 0.01, %v209_v25 }
  0x48   :  { %vm274_vm10 = vcmp.ge.f32.partialorder %v210_v26, 0.0  ;;  %465 = vst.msk [vmem:[%s1098_s3 + $0x1a0] sm:$0xff] %vm412_vm0, %v400_v34  ;;  %v338_v36 = vmul.f32 0.01, %v210_v26  ;;  %v211_v37 = vadd.f32 %v514_v2, %v140_v27  ;;  %v212_v38 = vadd.f32 %v514_v2, %v141_v29 }
  0x49   :  { %v213_v39 = vadd.f32 %v514_v2, %v142_v30  ;;  %v401_v40 = vsel %vm273_vm9, %v209_v25, %v337_v35  ;;  %v214_v41 = vadd.f32 %v514_v2, %v143_v31  ;;  %v144_v42 = vmul.f32 %v509_v1, %v73_v32 }
  0x4a   :  { %v145_v43 = vmul.f32 %v509_v1, %v74_v33  ;;  %466 = vst.msk [vmem:[%s1098_s3 + $0x1a8] sm:$0xff] %vm412_vm0, %v401_v40  ;;  %v402_v44 = vsel %vm274_vm10, %v210_v26, %v338_v36  ;;  %vm275_vm11 = vcmp.ge.f32.partialorder %v211_v37, 0.0  ;;  %v339_v45 = vmul.f32 0.01, %v211_v37 }
  0x4b   :  { %vm276_vm12 = vcmp.ge.f32.partialorder %v212_v38, 0.0  ;;  %467 = vst.msk [vmem:[%s1098_s3 + $0x1b0] sm:$0xff] %vm412_vm0, %v402_v44  ;;  %v340_v48 = vmul.f32 0.01, %v212_v38  ;;  %vm277_vm13 = vcmp.ge.f32.partialorder %v213_v39, 0.0  ;;  %vm278_vm14 = vcmp.ge.f32.partialorder %v214_v41, 0.0 }
  0x4c   :  { %v341_v49 = vmul.f32 0.01, %v213_v39  ;;  %v403_v50 = vsel %vm275_vm11, %v211_v37, %v339_v45  ;;  %v342_v51 = vmul.f32 0.01, %v214_v41  ;;  %v215_v52 = vadd.f32 %v514_v2, %v144_v42 }
  0x4d   :  { %v216_v53 = vadd.f32 %v514_v2, %v145_v43  ;;  %468 = vst.msk [vmem:[%s1098_s3 + $0x1b8] sm:$0xff] %vm412_vm0, %v403_v50  ;;  %v404_v55 = vsel %vm276_vm12, %v212_v38, %v340_v48  ;;  %v146_v57 = vmul.f32 %v509_v1, %v75_v46  ;;  %v147_v58 = vmul.f32 %v509_v1, %v76_v47 }
  0x4e   :  { %v405_v56 = vsel %vm277_vm13, %v213_v39, %v341_v49  ;;  %469 = vst.msk [vmem:[%s1098_s3 + $0x1c0] sm:$0xff] %vm412_vm0, %v404_v55  ;;  %v406_v59 = vsel %vm278_vm14, %v214_v41, %v342_v51  ;;  %vm279_vm15 = vcmp.ge.f32.partialorder %v215_v52, 0.0  ;;  %v343_v60 = vmul.f32 0.01, %v215_v52 }
  0x4f   :  { %470 = vst.msk [vmem:[%s1098_s3 + $0x1c8] sm:$0xff] %vm412_vm0, %v405_v56  ;;  %vm280_vm1 = vcmp.ge.f32.partialorder %v216_v53, 0.0  ;;  %471 = vst.msk [vmem:[%s1098_s3 + $0x1d0] sm:$0xff] %vm412_vm0, %v406_v59  ;;  %v344_v61 = vmul.f32 0.01, %v216_v53  ;;  %v217_v62 = vadd.f32 %v514_v2, %v146_v57  ;;  %v218_v63 = vadd.f32 %v514_v2, %v147_v58 }
  0x50   :  { %v148_v0 = vmul.f32 %v509_v1, %v77_v54  ;;  %v407_v3 = vsel %vm279_vm15, %v215_v52, %v343_v60 }
  0x51   :  { %472 = vst.msk [vmem:[%s1098_s3 + $0x1d8] sm:$0xff] %vm412_vm0, %v407_v3  ;;  %v408_v4 = vsel %vm280_vm1, %v216_v53, %v344_v61  ;;  %vm281_vm2 = vcmp.ge.f32.partialorder %v217_v62, 0.0  ;;  %v345_v5 = vmul.f32 0.01, %v217_v62  ;;  %vm282_vm3 = vcmp.ge.f32.partialorder %v218_v63, 0.0 }
  0x52   :  { %473 = vst.msk [vmem:[%s1098_s3 + $0x1e0] sm:$0xff] %vm412_vm0, %v408_v4  ;;  %v346_v6 = vmul.f32 0.01, %v218_v63  ;;  %v219_v7 = vadd.f32 %v514_v2, %v148_v0 }
  0x53   :  { %v409_v8 = vsel %vm281_vm2, %v217_v62, %v345_v5 }
  0x54   :  { %474 = vst.msk [vmem:[%s1098_s3 + $0x1e8] sm:$0xff] %vm412_vm0, %v409_v8  ;;  %v410_v1 = vsel %vm282_vm3, %v218_v63, %v346_v6  ;;  %vm283_vm4 = vcmp.ge.f32.partialorder %v219_v7, 0.0  ;;  %v347_v9 = vmul.f32 0.01, %v219_v7 }
  0x55   :  { %475 = vst.msk [vmem:[%s1098_s3 + $0x1f0] sm:$0xff] %vm412_vm0, %v410_v1 }
  0x56   :  { %v411_v10 = vsel %vm283_vm4, %v219_v7, %v347_v9 }
  0x57   :  { %476 = vst.msk [vmem:[%s1098_s3 + $0x1f8] sm:$0xff] %vm412_vm0, %v411_v10 }

// kernel: densenet_forward.15
= control target key start
LH: loop header
LB: loop body
LE: loop exit
PB: predicated region body
PF: predicated region fallthrough
CT: control target
= control target key end

     0   :  { %s632_s15 = smov 0   ;;  %s787_s0 = inlined_call_operand.vmem [shape: f32[2,9,9,16], index: 0, kind: input, shape index: {}]   ;;  %s788_s1 = inlined_call_operand.vmem [shape: f32[2,9,9,16], index: 1, kind: input, shape index: {}]   ;;  %s789_s2 = inlined_call_operand.vmem [shape: f32[2,9,9,16], index: 2, kind: input, shape index: {}]   ;;  %s790_s3 = inlined_call_operand.vmem [shape: f32[2,9,9,16], index: 3, kind: input, shape index: {}]   ;;  %s791_s4 = inlined_call_operand.vmem [shape: f32[2,8,8,16], index: 4, kind: output, shape index: {}]  }
   0x1 LB: > { %s576_s16 = sadd.s32 4294967295, %s605_s15   ;;  %p580_p0 = scmp.ge.s32.totalorder %s605_s15, 1  ;;  %s605_s15 = sphi %s632_s15, %s14_s15  }
   0x2   : > { %p192_p1 = scmp.lt.s32.totalorder %s605_s15, 3 }
   0x4   : > { %p193_p2 = pnand %p580_p0, %p192_p1 }
   0x5   : > { %p233_p3 = scmp.lt.s32.totalorder (!%p193_p2), %s576_s16, 1  ;;  %vm325_vm0 = vcmask (!%p193_p2), 1046528   ;;  %vm476_vm1 = vcmask (!%p193_p2), 130048  }
   0x6   : > { %196 = sbr.rel (%p193_p2) target bundleno = 58 (0x3a), region = 36 }
   0xd   : > { %s793_s16 = smov (!%p233_p3, %s576_s16), 1 }
   0xe   : > { %s643_s17 = smul.u32 144, %s793_s16  ;;  %s589_s30 = sshll.u32 %s793_s16, 6 }
   0xf   : > { %s737_s7 = scalar_lea.vmem %s791_s4, %s589_s30 }
  0x10   : > { %s649_s20 = scalar_lea.vmem %s787_s0, %s643_s17  ;;  %s655_s23 = scalar_lea.vmem %s789_s2, %s643_s17 }
  0x11   : > { %v258_v0 = vld [vmem:[%s649_s20] sm:$0xff]  ;;  %v259_v1 = vld [vmem:[%s649_s20 + $0x8] sm:$0x1]  ;;  %v260_v2 = vld [vmem:[%s649_s20 + $0x10] sm:$0xff]  ;;  %s673_s26 = scalar_lea.vmem %s788_s1, %s643_s17  ;;  %s718_s29 = scalar_lea.vmem %s790_s3, %s643_s17 }
  0x12   : > { %v261_v3 = vld [vmem:[%s649_s20 + $0x18] sm:$0x1]  ;;  %v326_v4 = vrot.slane %v258_v0, 1  ;;  %v327_v5 = vrot.slane %v259_v1, 1  ;;  %v662_v6 = vld [vmem:[%s655_s23] sm:$0xff]  ;;  %v329_v8 = vrot.slane %v260_v2, 1 }
  0x13   : > { %v286_v7 = vld [vmem:[%s655_s23 + $0x8] sm:$0x1]  ;;  %v330_v9 = vrot.slane %v261_v3, 1  ;;  %v428_v11 = vrot.slane %v662_v6, 1  ;;  %v262_v13 = vld [vmem:[%s649_s20 + $0x20] sm:$0xff]  ;;  %v677_v17 = vld [vmem:[%s655_s23 + $0x10] sm:$0xff] }
  0x14   : > { %v328_v10 = vsel %vm325_vm0, %v326_v4, %v327_v5  ;;  %v429_v12 = vrot.slane %v286_v7, 1  ;;  %v263_v14 = vld [vmem:[%s649_s20 + $0x28] sm:$0x1]  ;;  %v288_v18 = vld [vmem:[%s655_s23 + $0x18] sm:$0x1]  ;;  %v332_v19 = vrot.slane %v262_v13, 1 }
  0x15   : > { %v331_v15 = vsel %vm325_vm0, %v329_v8, %v330_v9  ;;  %v358_v16 = vmax.f32 %v258_v0, %v328_v10  ;;  %v333_v20 = vrot.slane %v263_v14, 1  ;;  %v431_v23 = vrot.slane %v677_v17, 1  ;;  %v264_v25 = vld [vmem:[%s649_s20 + $0x30] sm:$0xff]  ;;  %v265_v26 = vld [vmem:[%s649_s20 + $0x38] sm:$0x1]  ;;  %v688_v29 = vld [vmem:[%s655_s23 + $0x20] sm:$0xff] }
  0x16   : > { %v359_v21 = vmax.f32 %v260_v2, %v331_v15  ;;  %v681_v22 = vsel %vm325_vm0, %v428_v11, %v429_v12  ;;  %v432_v24 = vrot.slane %v288_v18, 1  ;;  %v290_v30 = vld [vmem:[%s655_s23 + $0x28] sm:$0x1]  ;;  %v335_v31 = vrot.slane %v264_v25, 1  ;;  %v276_v33 = vld [vmem:[%s673_s26] sm:$0xff]  ;;  %v277_v40 = vld [vmem:[%s673_s26 + $0x10] sm:$0xff] }
  0x17   : > { %v366_v27 = vmax.f32 %v358_v16, %v260_v2  ;;  %v334_v28 = vsel %vm325_vm0, %v332_v19, %v333_v20  ;;  %v336_v32 = vrot.slane %v265_v26, 1  ;;  %v434_v37 = vrot.slane %v688_v29, 1  ;;  %v266_v38 = vld [vmem:[%s649_s20 + $0x40] sm:$0xff]  ;;  %v267_v39 = vld [vmem:[%s649_s20 + $0x48] sm:$0x1]  ;;  %v701_v44 = vld [vmem:[%s655_s23 + $0x30] sm:$0xff] }
  0x18   : > { %v360_v34 = vmax.f32 %v262_v13, %v334_v28  ;;  %v367_v35 = vmax.f32 %v359_v21, %v262_v13  ;;  %v693_v36 = vsel %vm325_vm0, %v431_v23, %v432_v24  ;;  %v435_v43 = vrot.slane %v290_v30, 1  ;;  %v292_v45 = vld [vmem:[%s655_s23 + $0x38] sm:$0x1]  ;;  %v268_v51 = vld [vmem:[%s649_s20 + $0x50] sm:$0xff]  ;;  %v278_v53 = vld [vmem:[%s673_s26 + $0x20] sm:$0xff] }
  0x19   : > { %v380_v41 = vmax.f32 %v366_v27, %v331_v15  ;;  %v337_v42 = vsel %vm325_vm0, %v335_v31, %v336_v32  ;;  %v338_v46 = vrot.slane %v266_v38, 1  ;;  %v339_v50 = vrot.slane %v267_v39, 1  ;;  %v269_v57 = vld [vmem:[%s649_s20 + $0x58] sm:$0x1]  ;;  %v293_v62 = vld [vmem:[%s655_s23 + $0x40] sm:$0xff]  ;;  %v279_v1 = vld [vmem:[%s673_s26 + $0x30] sm:$0xff] }
  0x1a   : > { %v381_v47 = vmax.f32 %v367_v35, %v334_v28  ;;  %v361_v48 = vmax.f32 %v264_v25, %v337_v42  ;;  %v368_v49 = vmax.f32 %v360_v34, %v264_v25  ;;  %v707_v54 = vsel %vm325_vm0, %v434_v37, %v435_v43  ;;  %v294_v63 = vld [vmem:[%s655_s23 + $0x48] sm:$0x1]  ;;  %v270_v14 = vld [vmem:[%s649_s20 + $0x60] sm:$0xff]  ;;  %v295_v28 = vld [vmem:[%s655_s23 + $0x50] sm:$0xff] }
  0x1b   : > { %v388_v52 = vmax.f32 %v380_v41, %v276_v33  ;;  %v437_v55 = vrot.slane %v701_v44, 1  ;;  %v438_v56 = vrot.slane %v292_v45, 1  ;;  %v340_v60 = vsel %vm325_vm0, %v338_v46, %v339_v50  ;;  %v301_v15 = vld [vmem:[%s718_s29] sm:$0xff]  ;;  %v271_v23 = vld [vmem:[%s649_s20 + $0x68] sm:$0x1]  ;;  %v272_v33 = vld [vmem:[%s649_s20 + $0x70] sm:$0xff] }
  0x1c   : > { %v389_v58 = vmax.f32 %v381_v47, %v277_v40  ;;  %v382_v59 = vmax.f32 %v368_v49, %v337_v42  ;;  %v369_v61 = vmax.f32 %v361_v48, %v266_v38  ;;  %v362_v2 = vmax.f32 %v266_v38, %v340_v60  ;;  %v280_v19 = vld [vmem:[%s673_s26 + $0x40] sm:$0xff]  ;;  %v273_v43 = vld [vmem:[%s649_s20 + $0x78] sm:$0x1]  ;;  %v304_v45 = vld [vmem:[%s718_s29 + $0x30] sm:$0xff] }
  0x1d   : > { %v396_v0 = vmax.f32 %v388_v52, %v277_v40  ;;  %v439_v3 = vsel %vm325_vm0, %v437_v55, %v438_v56  ;;  %v341_v4 = vrot.slane %v268_v51, 1  ;;  %v342_v9 = vrot.slane %v269_v57, 1  ;;  %v303_v35 = vld [vmem:[%s718_s29 + $0x20] sm:$0xff] }
  0x1e   : > { %v397_v5 = vmax.f32 %v389_v58, %v278_v53  ;;  %v390_v7 = vmax.f32 %v382_v59, %v278_v53  ;;  %v383_v8 = vmax.f32 %v369_v61, %v340_v60  ;;  %v370_v11 = vmax.f32 %v362_v2, %v268_v51  ;;  %v274_v53 = vld [vmem:[%s649_s20 + $0x80] sm:$0xff]  ;;  %v298_v61 = vld [vmem:[%s655_s23 + $0x68] sm:$0x1] }
  0x1f   : > { %v404_v10 = vmax.f32 %v396_v0, %v662_v6  ;;  %v440_v12 = vrot.slane %v293_v62, 1  ;;  %v441_v13 = vrot.slane %v294_v63, 1  ;;  %v343_v21 = vsel %vm325_vm0, %v341_v4, %v342_v9  ;;  %v302_v6 = vld [vmem:[%s718_s29 + $0x10] sm:$0xff]  ;;  %v305_v58 = vld [vmem:[%s718_s29 + $0x40] sm:$0xff] }
  0x20   : > { %v405_v16 = vmax.f32 %v397_v5, %v677_v17  ;;  %v398_v18 = vmax.f32 %v390_v7, %v279_v1  ;;  %v391_v20 = vmax.f32 %v383_v8, %v279_v1  ;;  %v363_v25 = vmax.f32 %v268_v51, %v343_v21  ;;  %v297_v60 = vld [vmem:[%s655_s23 + $0x60] sm:$0xff] }
  0x21   : > { %v460_v24 = vmax.f32 %v404_v10, %v681_v22  ;;  %v384_v26 = vmax.f32 %v370_v11, %v343_v21  ;;  %v442_v27 = vsel %vm325_vm0, %v440_v12, %v441_v13  ;;  %v296_v22 = vld [vmem:[%s655_s23 + $0x58] sm:$0x1]  ;;  %v344_v32 = vrot.slane %v270_v14, 1  ;;  %v282_v1 = vld [vmem:[%s673_s26 + $0x60] sm:$0xff] }
  0x22   : > { %v461_v17 = vmax.f32 %v405_v16, %v693_v36  ;;  %v406_v30 = vmax.f32 %v398_v18, %v688_v29  ;;  %v399_v31 = vmax.f32 %v391_v20, %v280_v19  ;;  %v345_v38 = vrot.slane %v271_v23, 1  ;;  %v281_v29 = vld [vmem:[%s673_s26 + $0x50] sm:$0xff]  ;;  %v300_v16 = vld [vmem:[%s655_s23 + $0x78] sm:$0x1] }
  0x23   : > { %v468_v34 = vmax.f32 %v460_v24, %v301_v15  ;;  %v392_v37 = vmax.f32 %v384_v26, %v280_v19  ;;  %v371_v39 = vmax.f32 %v363_v25, %v270_v14  ;;  %v443_v42 = vrot.slane %v295_v28, 1  ;;  %v299_v15 = vld [vmem:[%s655_s23 + $0x70] sm:$0xff]  ;;  %v284_v25 = vld [vmem:[%s673_s26 + $0x80] sm:$0xff] }
  0x24   : > { %v469_v40 = vmax.f32 %v461_v17, %v302_v6  ;;  %v462_v41 = vmax.f32 %v406_v30, %v707_v54  ;;  %v407_v36 = vmax.f32 %v399_v31, %v701_v44  ;;  %v346_v47 = vsel %vm325_vm0, %v344_v32, %v345_v38  ;;  %v275_v54 = vld [vmem:[%s649_s20 + $0x88] sm:$0x1]  ;;  %v306_v19 = vld [vmem:[%s718_s29 + $0x50] sm:$0xff]  ;;  %v307_v31 = vld [vmem:[%s718_s29 + $0x60] sm:$0xff] }
  0x25   : > { %477 = vst.msk [vmem:[%s737_s7] sm:$0xff] %vm476_vm1, %v468_v34  ;;  %v400_v46 = vmax.f32 %v392_v37, %v281_v29  ;;  %v444_v48 = vrot.slane %v296_v22, 1  ;;  %v347_v49 = vrot.slane %v272_v33, 1  ;;  %v364_v51 = vmax.f32 %v270_v14, %v346_v47  ;;  %v283_v20 = vld [vmem:[%s673_s26 + $0x70] sm:$0xff] }
  0x26   : > { %478 = vst.msk [vmem:[%s737_s7 + $0x8] sm:$0xff] %vm476_vm1, %v469_v40  ;;  %v470_v50 = vmax.f32 %v462_v41, %v303_v35  ;;  %v463_v44 = vmax.f32 %v407_v36, %v439_v3  ;;  %v385_v52 = vmax.f32 %v371_v39, %v346_v47  ;;  %v348_v56 = vrot.slane %v273_v43, 1  ;;  %v308_v37 = vld [vmem:[%s718_s29 + $0x70] sm:$0xff] }
  0x27   : > { %v408_v55 = vmax.f32 %v400_v46, %v293_v62  ;;  %v372_v63 = vmax.f32 %v364_v51, %v272_v33  ;;  %v376_v3 = vrot.slane %v274_v53, 1  ;;  %v377_v4 = vrot.slane %v275_v54, 1 }
  0x28   : > { %479 = vst.msk [vmem:[%s737_s7 + $0x10] sm:$0xff] %vm476_vm1, %v470_v50  ;;  %v471_v57 = vmax.f32 %v463_v44, %v304_v45  ;;  %v393_v59 = vmax.f32 %v385_v52, %v281_v29  ;;  %v349_v2 = vsel %vm325_vm0, %v347_v49, %v348_v56  ;;  %v445_v5 = vsel %vm325_vm0, %v443_v42, %v444_v48 }
  0x29   : > { %v464_v0 = vmax.f32 %v408_v55, %v442_v27  ;;  %v365_v7 = vmax.f32 %v272_v33, %v349_v2  ;;  %v386_v8 = vmax.f32 %v372_v63, %v349_v2  ;;  %v446_v10 = vrot.slane %v297_v60, 1 }
  0x2a   : > { %480 = vst.msk [vmem:[%s737_s7 + $0x18] sm:$0xff] %vm476_vm1, %v471_v57  ;;  %v401_v62 = vmax.f32 %v393_v59, %v282_v1  ;;  %v447_v11 = vrot.slane %v298_v61, 1  ;;  %v378_v12 = vsel %vm325_vm0, %v376_v3, %v377_v4  ;;  %v449_v26 = vrot.slane %v299_v15, 1 }
  0x2b   : > { %v472_v9 = vmax.f32 %v464_v0, %v305_v58  ;;  %v394_v14 = vmax.f32 %v386_v8, %v282_v1  ;;  %v373_v18 = vmax.f32 %v365_v7, %v274_v53  ;;  %v450_v27 = vrot.slane %v300_v16, 1 }
  0x2c   : > { %v409_v13 = vmax.f32 %v401_v62, %v295_v28  ;;  %v448_v6 = vsel %vm325_vm0, %v446_v10, %v447_v11 }
  0x2d   : > { %481 = vst.msk [vmem:[%s737_s7 + $0x20] sm:$0xff] %vm476_vm1, %v472_v9  ;;  %v402_v23 = vmax.f32 %v394_v14, %v283_v20  ;;  %v387_v24 = vmax.f32 %v373_v18, %v378_v12  ;;  %v451_v33 = vsel %vm325_vm0, %v449_v26, %v450_v27 }
  0x2e   : > { %v465_v21 = vmax.f32 %v409_v13, %v445_v5 }
  0x2f   : > { %v410_v17 = vmax.f32 %v402_v23, %v297_v60  ;;  %v395_v30 = vmax.f32 %v387_v24, %v283_v20 }
  0x30   : > { %v473_v28 = vmax.f32 %v465_v21, %v306_v19 }
  0x31   : > { %v466_v22 = vmax.f32 %v410_v17, %v448_v6  ;;  %v403_v32 = vmax.f32 %v395_v30, %v284_v25 }
  0x32   : > { %482 = vst.msk [vmem:[%s737_s7 + $0x28] sm:$0xff] %vm476_vm1, %v473_v28 }
  0x33   : > { %v474_v34 = vmax.f32 %v466_v22, %v307_v31  ;;  %v411_v35 = vmax.f32 %v403_v32, %v299_v15 }
  0x35   : > { %483 = vst.msk [vmem:[%s737_s7 + $0x30] sm:$0xff] %vm476_vm1, %v474_v34  ;;  %v467_v38 = vmax.f32 %v411_v35, %v451_v33 }
  0x37   : > { %v475_v39 = vmax.f32 %v467_v38, %v308_v37 }
  0x39   : > { %484 = vst.msk [vmem:[%s737_s7 + $0x38] sm:$0xff] %vm476_vm1, %v475_v39 }
  0x3a PF: > { %s14_s15 = sadd.s32 1, %s605_s15  }
  0x3b   : > { %p11_p4 = scmp.ge.s32.totalorder %s14_s15, 4  }
  0x3d   :  { %13 = sbr.rel (!%p11_p4) target bundleno = 1 (0x1), region = 75 }

// kernel: densenet_forward.13
= control target key start
LH: loop header
LB: loop body
LE: loop exit
PB: predicated region body
PF: predicated region fallthrough
CT: control target
= control target key end

     0   :  { %v1710_v0 = vmov 0   ;;  %v153_v2 = vlaneseq  ;;  %vm578_vm0 = vcmask 154624   ;;  %vm675_vm1 = vcmask 1040384   ;;  %s2944_s3 = inlined_call_operand.vmem [shape: bf16[147,128], index: 3, kind: input, shape index: {}]   ;;  %s2945_s0 = inlined_call_operand.vmem [shape: f32[512,147], index: 0, kind: input, shape index: {}]   ;;  %s2946_s1 = inlined_call_operand.vmem [shape: f32[1,147], index: 1, kind: input, shape index: {}]   ;;  %s2947_s2 = inlined_call_operand.vmem [shape: f32[1,147], index: 2, kind: input, shape index: {}]   ;;  %s2948_s4 = inlined_call_operand.vmem [shape: f32[1,128], index: 4, kind: input, shape index: {}]   ;;  %s2949_s5 = inlined_call_operand.vmem [shape: f32[512,128], index: 5, kind: output, shape index: {0}]   ;;  %s2950_s6 = inlined_call_operand.vmem [shape: f32[8,128], index: 6, kind: output, shape index: {1}]  }
   0x1   :  { %682 = vmatprep.subr.bf16.mxu0 %v1710_v0  ;;  %v1700_v1 = vld [vmem:[%s2944_s3] sm:$0xff]   ;;  %1678 = vmatprep.subr.bf16.mxu1 %v1710_v0  ;;  %v1701_v3 = vld [vmem:[%s2944_s3 + $0x8] sm:$0xff]   ;;  %v1702_v5 = vld [vmem:[%s2944_s3 + $0x10] sm:$0xff]   ;;  %vm676_vm2 = vcmask 1041408   ;;  %v1711_v25 = vmov 65535  }
   0x2   :  { %683 = vmatpush1.bf16.msra.mxu0 %v1700_v1  ;;  %1688 = vmatpush1.bf16.msra.mxu1 %v1700_v1  ;;  %v1756_v4 = vshrl.u32 %v153_v2, 7  ;;  %v1703_v7 = vld [vmem:[%s2944_s3 + $0x18] sm:$0xff]   ;;  %v24_v8 = vld [vmem:[%s2945_s0 + $0x8] sm:$0xff]  ;;  %v151_v10 = vld [vmem:[%s2946_s1] sm:$0x3]  ;;  %v677_v26 = vsel %vm675_vm1, 4294967295, %v1711_v25 }
   0x3   :  { %684 = vmatprep.subr.bf16.mxu0 %v1710_v0  ;;  %1679 = vmatprep.subr.bf16.mxu1 %v1710_v0  ;;  %v26_v9 = vld [vmem:[%s2945_s0 + $0x18] sm:$0xff]  ;;  %v291_v11 = vld [vmem:[%s2947_s2] sm:$0x3]  ;;  %v1705_v20 = vld [vmem:[%s2944_s3 + $0x28] sm:$0xff]   ;;  %v678_v32 = vsel %vm676_vm2, %v677_v26, 0 }
   0x4   :  { %v159_v6 = vsub.s32 1, %v1756_v4  ;;  %v1704_v16 = vld [vmem:[%s2944_s3 + $0x20] sm:$0xff]   ;;  %v155_v21 = vsub.s32 0, %v1756_v4  ;;  %v1706_v22 = vld [vmem:[%s2944_s3 + $0x30] sm:$0xff]   ;;  %v1707_v24 = vld [vmem:[%s2944_s3 + $0x38] sm:$0xff]   ;;  %vm1624_vm3 = vcmp.lt.s32.totalorder %v1756_v4, 4 }
   0x5   :  { %v23_v27 = vld [vmem:[%s2945_s0] sm:$0xff]  ;;  %v25_v28 = vld [vmem:[%s2945_s0 + $0x10] sm:$0xff]  ;;  %v28_v29 = vld [vmem:[%s2945_s0 + $0x28] sm:$0xff] }
   0x6   :  { %685 = vmatpush1.bf16.msra.mxu0 %v1701_v3  ;;  %1689 = vmatpush1.bf16.msra.mxu1 %v1701_v3  ;;  %v1781_v12 = vrot.slane %v151_v10, %v159_v6  ;;  %v1783_v13 = vrot.slane %v291_v11, %v159_v6  ;;  %v1806_v23 = vrot.slane %v151_v10, %v155_v21  ;;  %v30_v30 = vld [vmem:[%s2945_s0 + $0x38] sm:$0xff]  ;;  %v1709_v31 = vld [vmem:[%s2944_s3 + $0x48] ss:$0 sps:$4 sm:$0x33]   ;;  %v1708_v38 = vld [vmem:[%s2944_s3 + $0x40] sm:$0xff]  }
   0x7   :  { %686 = vmatprep.subr.bf16.mxu0 %v1710_v0  ;;  %1680 = vmatprep.subr.bf16.mxu1 %v1710_v0  ;;  %v1828_v33 = vrot.slane %v291_v11, %v155_v21  ;;  %v88_v36 = vld [vmem:[%s2945_s0 + $0x208] sm:$0xff]  ;;  %v90_v37 = vld [vmem:[%s2945_s0 + $0x218] sm:$0xff]  ;;  %v87_v41 = vld [vmem:[%s2945_s0 + $0x200] sm:$0xff]  ;;  %v680_v43 = vand.u32 %v1709_v31, %v678_v32 }
   0x8   :  { %v164_v14 = vmul.f32 %v1781_v12, %v24_v8  ;;  %v166_v15 = vmul.f32 %v1781_v12, %v26_v9  ;;  %v163_v34 = vmul.f32 %v1806_v23, %v23_v27  ;;  %v165_v35 = vmul.f32 %v1806_v23, %v25_v28  ;;  %v89_v42 = vld [vmem:[%s2945_s0 + $0x210] sm:$0xff]  ;;  %v27_v48 = vld [vmem:[%s2945_s0 + $0x20] sm:$0xff]  ;;  %v32_v54 = vld [vmem:[%s2945_s0 + $0x48] sm:$0xff] }
   0x9   :  { %v168_v39 = vmul.f32 %v1781_v12, %v28_v29  ;;  %v170_v40 = vmul.f32 %v1781_v12, %v30_v30  ;;  %v228_v44 = vmul.f32 %v1781_v12, %v88_v36  ;;  %v230_v45 = vmul.f32 %v1781_v12, %v90_v37  ;;  %v29_v49 = vld [vmem:[%s2945_s0 + $0x30] sm:$0xff]  ;;  %v92_v57 = vld [vmem:[%s2945_s0 + $0x228] sm:$0xff]  ;;  %v94_v58 = vld [vmem:[%s2945_s0 + $0x238] sm:$0xff] }
   0xa   :  { %687 = vmatpush1.bf16.msra.mxu0 %v1702_v5  ;;  %1690 = vmatpush1.bf16.msra.mxu1 %v1702_v5  ;;  %v304_v17 = vadd.f32 %v1783_v13, %v164_v14  ;;  %v306_v18 = vadd.f32 %v1783_v13, %v166_v15  ;;  %v303_v46 = vadd.f32 %v1828_v33, %v163_v34  ;;  %v34_v59 = vld [vmem:[%s2945_s0 + $0x58] sm:$0xff]  ;;  %v91_v2 = vld [vmem:[%s2945_s0 + $0x220] sm:$0xff]  ;;  %v93_v3 = vld [vmem:[%s2945_s0 + $0x230] sm:$0xff] }
   0xb   :  { %688 = vmatprep.subr.bf16.mxu0 %v1710_v0  ;;  %1681 = vmatprep.subr.bf16.mxu1 %v1710_v0  ;;  %v305_v47 = vadd.f32 %v1828_v33, %v165_v35  ;;  %v227_v50 = vmul.f32 %v1806_v23, %v87_v41  ;;  %v229_v51 = vmul.f32 %v1806_v23, %v89_v42  ;;  %v31_v25 = vld [vmem:[%s2945_s0 + $0x40] sm:$0xff]  ;;  %v33_v26 = vld [vmem:[%s2945_s0 + $0x50] sm:$0xff]  ;;  %v36_v29 = vld [vmem:[%s2945_s0 + $0x68] sm:$0xff] }
   0xc   :  { %v432_v19 = vpack.c.bf16 %v306_v18, %v304_v17  ;;  %v308_v52 = vadd.f32 %v1783_v13, %v168_v39  ;;  %v310_v53 = vadd.f32 %v1783_v13, %v170_v40  ;;  %v368_v55 = vadd.f32 %v1783_v13, %v228_v44  ;;  %v98_v18 = vld [vmem:[%s2945_s0 + $0x258] sm:$0xff]  ;;  %v95_v36 = vld [vmem:[%s2945_s0 + $0x240] sm:$0xff]  ;;  %v97_v37 = vld [vmem:[%s2945_s0 + $0x250] sm:$0xff] }
   0xd   :  { %v370_v56 = vadd.f32 %v1783_v13, %v230_v45  ;;  %v367_v60 = vadd.f32 %v1828_v33, %v227_v50  ;;  %v369_v61 = vadd.f32 %v1828_v33, %v229_v51  ;;  %v167_v62 = vmul.f32 %v1806_v23, %v27_v48  ;;  %v38_v30 = vld [vmem:[%s2945_s0 + $0x78] sm:$0xff]  ;;  %v100_v41 = vld [vmem:[%s2945_s0 + $0x268] sm:$0xff] }
   0xe   :  { %689 = vmatpush1.bf16.msra.mxu0 %v1703_v7  ;;  %1691 = vmatpush1.bf16.msra.mxu1 %v1703_v7  ;;  %v169_v63 = vmul.f32 %v1806_v23, %v29_v49  ;;  %v431_v5 = vpack.c.bf16 %v305_v47, %v303_v46  ;;  %v172_v6 = vmul.f32 %v1781_v12, %v32_v54  ;;  %v102_v42 = vld [vmem:[%s2945_s0 + $0x278] sm:$0xff] }
   0xf   :  { %690 = vmatprep.subr.bf16.mxu0 %v1710_v0  ;;  %1682 = vmatprep.subr.bf16.mxu1 %v1710_v0  ;;  %v464_v1 = vpack.c.bf16 %v370_v56, %v368_v55  ;;  %v232_v7 = vmul.f32 %v1781_v12, %v92_v57  ;;  %v234_v8 = vmul.f32 %v1781_v12, %v94_v58  ;;  %v35_v56 = vld [vmem:[%s2945_s0 + $0x60] sm:$0xff]  ;;  %v37_v57 = vld [vmem:[%s2945_s0 + $0x70] sm:$0xff]  ;;  %v40_v58 = vld [vmem:[%s2945_s0 + $0x88] sm:$0xff] }
  0x10   :  { %1646 = vmatprep.mubr.msk.bf16.mxu0 %vm578_vm0, %v432_v19  ;;  %v434_v9 = vpack.c.bf16 %v310_v53, %v308_v52  ;;  %v174_v10 = vmul.f32 %v1781_v12, %v34_v59  ;;  %v463_v11 = vpack.c.bf16 %v369_v61, %v367_v60  ;;  %v233_v17 = vmul.f32 %v1806_v23, %v93_v3  ;;  %v42_v59 = vld [vmem:[%s2945_s0 + $0x98] sm:$0xff] }
  0x11   :  { %1662 = vmatprep.mubr.msk.bf16.mxu1 %vm578_vm0, %v464_v1  ;;  %v372_v14 = vadd.f32 %v1783_v13, %v232_v7  ;;  %v374_v15 = vadd.f32 %v1783_v13, %v234_v8  ;;  %v307_v19 = vadd.f32 %v1828_v33, %v167_v62  ;;  %v238_v28 = vmul.f32 %v1781_v12, %v98_v18  ;;  %v99_v1 = vld [vmem:[%s2945_s0 + $0x260] sm:$0xff]  ;;  %v104_v7 = vld [vmem:[%s2945_s0 + $0x288] sm:$0xff]  ;;  %v106_v8 = vld [vmem:[%s2945_s0 + $0x298] sm:$0xff] }
  0x12   :  { %691 = vmatpush1.bf16.msra.mxu0 %v1704_v16  ;;  %1692 = vmatpush1.bf16.msra.mxu1 %v1704_v16  ;;  %v231_v16 = vmul.f32 %v1806_v23, %v91_v2  ;;  %v373_v32 = vadd.f32 %v1828_v33, %v233_v17  ;;  %v171_v39 = vmul.f32 %v1806_v23, %v31_v25  ;;  %v101_v2 = vld [vmem:[%s2945_s0 + $0x270] sm:$0xff] }
  0x13   :  { %692 = vmatprep.subr.bf16.mxu0 %v1710_v0  ;;  %1683 = vmatprep.subr.bf16.mxu1 %v1710_v0  ;;  %v466_v21 = vpack.c.bf16 %v374_v15, %v372_v14  ;;  %v378_v35 = vadd.f32 %v1783_v13, %v238_v28  ;;  %v173_v40 = vmul.f32 %v1806_v23, %v33_v26  ;;  %v41_v25 = vld [vmem:[%s2945_s0 + $0x90] sm:$0xff]  ;;  %v44_v26 = vld [vmem:[%s2945_s0 + $0xa8] sm:$0xff] }
  0x14   :  { %v371_v31 = vadd.f32 %v1828_v33, %v231_v16  ;;  %v176_v44 = vmul.f32 %v1781_v12, %v36_v29  ;;  %v178_v45 = vmul.f32 %v1781_v12, %v38_v30  ;;  %v235_v47 = vmul.f32 %v1806_v23, %v95_v36 }
  0x15   :  { %v237_v48 = vmul.f32 %v1806_v23, %v97_v37  ;;  %v240_v50 = vmul.f32 %v1781_v12, %v100_v41  ;;  %v242_v51 = vmul.f32 %v1781_v12, %v102_v42  ;;  %v311_v52 = vadd.f32 %v1828_v33, %v171_v39  ;;  %v110_v39 = vld [vmem:[%s2945_s0 + $0x2b8] sm:$0xff] }
  0x16   :  { %693 = vmatpush1.bf16.msra.mxu0 %v1705_v20  ;;  %1693 = vmatpush1.bf16.msra.mxu1 %v1705_v20  ;;  %v309_v20 = vadd.f32 %v1828_v33, %v169_v63  ;;  %v465_v46 = vpack.c.bf16 %v373_v32, %v371_v31  ;;  %v313_v53 = vadd.f32 %v1828_v33, %v173_v40  ;;  %v103_v32 = vld [vmem:[%s2945_s0 + $0x280] sm:$0xff] }
  0x17   :  { %694 = vmatprep.subr.bf16.mxu0 %v1710_v0  ;;  %1684 = vmatprep.subr.bf16.mxu1 %v1710_v0  ;;  %v316_v54 = vadd.f32 %v1783_v13, %v176_v44  ;;  %v318_v55 = vadd.f32 %v1783_v13, %v178_v45  ;;  %v375_v60 = vadd.f32 %v1828_v33, %v235_v47 }
  0x18   :  { %v377_v61 = vadd.f32 %v1828_v33, %v237_v48  ;;  %v380_v62 = vadd.f32 %v1783_v13, %v240_v50  ;;  %v382_v63 = vadd.f32 %v1783_v13, %v242_v51  ;;  %v435_v3 = vpack.c.bf16 %v313_v53, %v311_v52  ;;  %v43_v53 = vld [vmem:[%s2945_s0 + $0xa0] sm:$0xff] }
  0x19   :  { %v239_v15 = vmul.f32 %v1806_v23, %v99_v1  ;;  %v241_v16 = vmul.f32 %v1806_v23, %v101_v2  ;;  %v246_v18 = vmul.f32 %v1781_v12, %v106_v8  ;;  %v181_v37 = vmul.f32 %v1806_v23, %v41_v25 }
  0x1a   :  { %695 = vmatpush1.bf16.msra.mxu0 %v1706_v22  ;;  %1694 = vmatpush1.bf16.msra.mxu1 %v1706_v22  ;;  %v312_v22 = vadd.f32 %v1783_v13, %v172_v6  ;;  %v177_v6 = vmul.f32 %v1806_v23, %v37_v57  ;;  %v467_v14 = vpack.c.bf16 %v377_v61, %v375_v60  ;;  %v107_v61 = vld [vmem:[%s2945_s0 + $0x2a0] sm:$0xff] }
  0x1b   :  { %696 = vmatprep.subr.bf16.mxu0 %v1710_v0  ;;  %1685 = vmatprep.subr.bf16.mxu1 %v1710_v0  ;;  %v470_v17 = vpack.c.bf16 %v382_v63, %v380_v62  ;;  %v379_v28 = vadd.f32 %v1828_v33, %v239_v15  ;;  %v381_v29 = vadd.f32 %v1828_v33, %v241_v16  ;;  %v109_v62 = vld [vmem:[%s2945_s0 + $0x2b0] sm:$0xff] }
  0x1c   :  { %v386_v31 = vadd.f32 %v1783_v13, %v246_v18  ;;  %v184_v41 = vmul.f32 %v1781_v12, %v44_v26  ;;  %v243_v44 = vmul.f32 %v1806_v23, %v103_v32  ;;  %v250_v48 = vmul.f32 %v1781_v12, %v110_v39 }
  0x1d   :  { %v321_v50 = vadd.f32 %v1828_v33, %v181_v37  ;;  %v183_v1 = vmul.f32 %v1806_v23, %v43_v53  ;;  %v58_v53 = vld [vmem:[%s2945_s0 + $0x118] sm:$0xff] }
  0x1e   :  { %697 = vmatpush1.bf16.msra.mxu0 %v1707_v24  ;;  %1695 = vmatpush1.bf16.msra.mxu1 %v1707_v24  ;;  %v314_v24 = vadd.f32 %v1783_v13, %v174_v10  ;;  %v180_v10 = vmul.f32 %v1781_v12, %v40_v58  ;;  %v324_v51 = vadd.f32 %v1783_v13, %v184_v41 }
  0x1f   :  { %698 = vmatprep.subr.bf16.mxu0 %v1710_v0  ;;  %1686 = vmatprep.subr.bf16.mxu1 %v1710_v0  ;;  %v383_v57 = vadd.f32 %v1828_v33, %v243_v44  ;;  %v390_v60 = vadd.f32 %v1783_v13, %v250_v48 }
  0x22   :  { %699 = vmatpush1.bf16.msra.mxu0 %v1708_v38  ;;  %1696 = vmatpush1.bf16.msra.mxu1 %v1708_v38  ;;  %v433_v38 = vpack.c.bf16 %v309_v20, %v307_v19  ;;  %v317_v20 = vadd.f32 %v1828_v33, %v177_v6 }
  0x23   :  { %700 = vmatprep.subr.bf16.mxu0 %v1710_v0  ;;  %1687 = vmatprep.subr.bf16.mxu1 %v1710_v0  ;;  %v96_v0 = vld [vmem:[%s2945_s0 + $0x248] sm:$0xff] }
  0x24   :  { %v236_v27 = vmul.f32 %v1781_v12, %v96_v0  ;;  %v244_v0 = vmul.f32 %v1781_v12, %v104_v7 }
  0x26   :  { %701 = vmatpush1.bf16.msra.mxu0 %v680_v43  ;;  %1697 = vmatpush1.bf16.msra.mxu1 %v680_v43  ;;  %v376_v34 = vadd.f32 %v1783_v13, %v236_v27  ;;  %v436_v43 = vpack.c.bf16 %v314_v24, %v312_v22  ;;  %v39_v24 = vld [vmem:[%s2945_s0 + $0x80] sm:$0xff]  ;;  %v46_v27 = vld [vmem:[%s2945_s0 + $0xb8] sm:$0xff]  ;;  %v384_v30 = vadd.f32 %v1783_v13, %v244_v0 }
  0x27   :  { %v179_v36 = vmul.f32 %v1806_v23, %v39_v24  ;;  %v186_v42 = vmul.f32 %v1781_v12, %v46_v27  ;;  %v54_v24 = vld [vmem:[%s2945_s0 + $0xf8] sm:$0xff] }
  0x28   :  { %v468_v49 = vpack.c.bf16 %v378_v35, %v376_v34  ;;  %v105_v34 = vld [vmem:[%s2945_s0 + $0x290] sm:$0xff]  ;;  %v194_v39 = vmul.f32 %v1781_v12, %v54_v24 }
  0x29   :  { %715 = vmatmul.mubr.bf16.vlgmr.msra.gmra.mrb[0].mxu0 %v431_v5  ;;  %843 = vmatmul.mubr.bf16.vlgmr.msra.gmra.mrb[0].mxu1 %v463_v11  ;;  %v175_v5 = vmul.f32 %v1806_v23, %v35_v56  ;;  %v182_v11 = vmul.f32 %v1781_v12, %v42_v59  ;;  %v245_v45 = vmul.f32 %v1806_v23, %v105_v34  ;;  %v50_v56 = vld [vmem:[%s2945_s0 + $0xd8] sm:$0xff] }
  0x2a   :  { %1647 = vmatprep.mubr.msk.bf16.mxu0 %vm578_vm0, %v434_v9  ;;  %1663 = vmatprep.mubr.msk.bf16.mxu1 %vm578_vm0, %v466_v21  ;;  %v438_v9 = vpack.c.bf16 %v318_v55, %v316_v54  ;;  %v320_v21 = vadd.f32 %v1783_v13, %v180_v10  ;;  %v326_v52 = vadd.f32 %v1783_v13, %v186_v42  ;;  %v45_v54 = vld [vmem:[%s2945_s0 + $0xb0] sm:$0xff]  ;;  %v48_v55 = vld [vmem:[%s2945_s0 + $0xc8] sm:$0xff] }
  0x2b   :  { %v315_v19 = vadd.f32 %v1828_v33, %v175_v5  ;;  %v322_v22 = vadd.f32 %v1783_v13, %v182_v11  ;;  %v385_v58 = vadd.f32 %v1828_v33, %v245_v45  ;;  %v185_v2 = vmul.f32 %v1806_v23, %v45_v54  ;;  %v114_v5 = vld [vmem:[%s2945_s0 + $0x2d8] sm:$0xff] }
  0x2c   :  { %v442_v6 = vpack.c.bf16 %v326_v52, %v324_v51  ;;  %v188_v7 = vmul.f32 %v1781_v12, %v48_v55  ;;  %v190_v8 = vmul.f32 %v1781_v12, %v50_v56  ;;  %v247_v10 = vmul.f32 %v1806_v23, %v107_v61  ;;  %v53_v51 = vld [vmem:[%s2945_s0 + $0xf0] sm:$0xff]  ;;  %v56_v52 = vld [vmem:[%s2945_s0 + $0x108] sm:$0xff] }
  0x2d   :  { %v437_v35 = vpack.c.bf16 %v317_v20, %v315_v19  ;;  %v440_v40 = vpack.c.bf16 %v322_v22, %v320_v21  ;;  %v249_v11 = vmul.f32 %v1806_v23, %v109_v62  ;;  %v254_v16 = vmul.f32 %v1781_v12, %v114_v5  ;;  %v47_v20 = vld [vmem:[%s2945_s0 + $0xc0] sm:$0xff]  ;;  %v49_v21 = vld [vmem:[%s2945_s0 + $0xd0] sm:$0xff]  ;;  %v52_v22 = vld [vmem:[%s2945_s0 + $0xe8] sm:$0xff] }
  0x2e   :  { %v325_v0 = vadd.f32 %v1828_v33, %v185_v2  ;;  %v328_v18 = vadd.f32 %v1783_v13, %v188_v7  ;;  %v330_v19 = vadd.f32 %v1783_v13, %v190_v8  ;;  %v387_v25 = vadd.f32 %v1828_v33, %v247_v10 }
  0x2f   :  { %v389_v26 = vadd.f32 %v1828_v33, %v249_v11  ;;  %v187_v32 = vmul.f32 %v1806_v23, %v47_v20  ;;  %v189_v34 = vmul.f32 %v1806_v23, %v49_v21  ;;  %v193_v62 = vmul.f32 %v1806_v23, %v53_v51  ;;  %v62_v20 = vld [vmem:[%s2945_s0 + $0x138] sm:$0xff] }
  0x30   :  { %v444_v37 = vpack.c.bf16 %v330_v19, %v328_v18  ;;  %v198_v5 = vmul.f32 %v1781_v12, %v58_v53  ;;  %v57_v18 = vld [vmem:[%s2945_s0 + $0x110] sm:$0xff]  ;;  %v60_v19 = vld [vmem:[%s2945_s0 + $0x128] sm:$0xff] }
  0x31   :  { %723 = vmatmul.mubr.bf16.gmra.mrb[4].mxu0 %v433_v38  ;;  %851 = vmatmul.mubr.bf16.gmra.mrb[4].mxu1 %v465_v46  ;;  %v108_v38 = vld [vmem:[%s2945_s0 + $0x2a8] sm:$0xff]  ;;  %v472_v46 = vpack.c.bf16 %v386_v31, %v384_v30  ;;  %v113_v30 = vld [vmem:[%s2945_s0 + $0x2d0] sm:$0xff] }
  0x32   :  { %1648 = vmatprep.mubr.msk.bf16.mxu0 %vm578_vm0, %v436_v43  ;;  %1664 = vmatprep.mubr.msk.bf16.mxu1 %vm578_vm0, %v468_v49  ;;  %v469_v43 = vpack.c.bf16 %v381_v29, %v379_v28  ;;  %v248_v47 = vmul.f32 %v1781_v12, %v108_v38  ;;  %v319_v49 = vadd.f32 %v1828_v33, %v179_v36  ;;  %v111_v29 = vld [vmem:[%s2945_s0 + $0x2c0] sm:$0xff]  ;;  %v118_v36 = vld [vmem:[%s2945_s0 + $0x2f8] sm:$0xff] }
  0x33   :  { %v394_v28 = vadd.f32 %v1783_v13, %v254_v16  ;;  %v192_v38 = vmul.f32 %v1781_v12, %v52_v22  ;;  %v251_v41 = vmul.f32 %v1806_v23, %v111_v29  ;;  %v253_v42 = vmul.f32 %v1806_v23, %v113_v30 }
  0x34   :  { %v388_v59 = vadd.f32 %v1783_v13, %v248_v47  ;;  %v439_v63 = vpack.c.bf16 %v321_v50, %v319_v49  ;;  %v258_v45 = vmul.f32 %v1781_v12, %v118_v36  ;;  %v329_v47 = vadd.f32 %v1828_v33, %v189_v34  ;;  %v51_v50 = vld [vmem:[%s2945_s0 + $0xe0] sm:$0xff] }
  0x35   :  { %v332_v48 = vadd.f32 %v1783_v13, %v192_v38  ;;  %v334_v49 = vadd.f32 %v1783_v13, %v194_v39  ;;  %v391_v54 = vadd.f32 %v1828_v33, %v251_v41  ;;  %v393_v55 = vadd.f32 %v1828_v33, %v253_v42 }
  0x36   :  { %v191_v61 = vmul.f32 %v1806_v23, %v51_v50  ;;  %v197_v30 = vmul.f32 %v1806_v23, %v57_v18  ;;  %v202_v36 = vmul.f32 %v1781_v12, %v62_v20  ;;  %v66_v50 = vld [vmem:[%s2945_s0 + $0x158] sm:$0xff] }
  0x37   :  { %v446_v2 = vpack.c.bf16 %v334_v49, %v332_v48  ;;  %v61_v48 = vld [vmem:[%s2945_s0 + $0x130] sm:$0xff]  ;;  %v64_v49 = vld [vmem:[%s2945_s0 + $0x148] sm:$0xff] }
  0x39   :  { %731 = vmatmul.mubr.bf16.gmra.mrb[8].mxu0 %v435_v3  ;;  %859 = vmatmul.mubr.bf16.gmra.mrb[8].mxu1 %v467_v14  ;;  %v112_v3 = vld [vmem:[%s2945_s0 + $0x2c8] sm:$0xff]  ;;  %v474_v14 = vpack.c.bf16 %v390_v60, %v388_v59  ;;  %v117_v59 = vld [vmem:[%s2945_s0 + $0x2f0] sm:$0xff] }
  0x3a   :  { %1649 = vmatprep.mubr.msk.bf16.mxu0 %vm578_vm0, %v438_v9  ;;  %1665 = vmatprep.mubr.msk.bf16.mxu1 %vm578_vm0, %v470_v17  ;;  %v471_v9 = vpack.c.bf16 %v385_v58, %v383_v57  ;;  %v252_v15 = vmul.f32 %v1781_v12, %v112_v3  ;;  %v323_v17 = vadd.f32 %v1828_v33, %v183_v1  ;;  %v115_v58 = vld [vmem:[%s2945_s0 + $0x2e0] sm:$0xff]  ;;  %v122_v1 = vld [vmem:[%s2945_s0 + $0x318] sm:$0xff] }
  0x3b   :  { %v398_v57 = vadd.f32 %v1783_v13, %v258_v45  ;;  %v196_v3 = vmul.f32 %v1781_v12, %v56_v52  ;;  %v255_v7 = vmul.f32 %v1806_v23, %v115_v58  ;;  %v257_v8 = vmul.f32 %v1806_v23, %v117_v59 }
  0x3c   :  { %v392_v27 = vadd.f32 %v1783_v13, %v252_v15  ;;  %v441_v31 = vpack.c.bf16 %v325_v0, %v323_v17  ;;  %v262_v11 = vmul.f32 %v1781_v12, %v122_v1  ;;  %v333_v15 = vadd.f32 %v1828_v33, %v193_v62  ;;  %v55_v0 = vld [vmem:[%s2945_s0 + $0x100] sm:$0xff] }
  0x3d   :  { %v336_v16 = vadd.f32 %v1783_v13, %v196_v3  ;;  %v338_v17 = vadd.f32 %v1783_v13, %v198_v5  ;;  %v395_v21 = vadd.f32 %v1828_v33, %v255_v7  ;;  %v397_v22 = vadd.f32 %v1828_v33, %v257_v8 }
  0x3e   :  { %v195_v29 = vmul.f32 %v1806_v23, %v55_v0  ;;  %v201_v59 = vmul.f32 %v1806_v23, %v61_v48  ;;  %v206_v1 = vmul.f32 %v1781_v12, %v66_v50  ;;  %v70_v0 = vld [vmem:[%s2945_s0 + $0x178] sm:$0xff] }
  0x3f   :  { %v448_v34 = vpack.c.bf16 %v338_v17, %v336_v16  ;;  %v65_v16 = vld [vmem:[%s2945_s0 + $0x150] sm:$0xff]  ;;  %v68_v17 = vld [vmem:[%s2945_s0 + $0x168] sm:$0xff] }
  0x41   :  { %739 = vmatmul.mubr.bf16.gmra.mrb[12].mxu0 %v437_v35  ;;  %867 = vmatmul.mubr.bf16.gmra.mrb[12].mxu1 %v469_v43  ;;  %v116_v35 = vld [vmem:[%s2945_s0 + $0x2e8] sm:$0xff]  ;;  %v476_v43 = vpack.c.bf16 %v394_v28, %v392_v27  ;;  %v121_v27 = vld [vmem:[%s2945_s0 + $0x310] sm:$0xff] }
  0x42   :  { %1650 = vmatprep.mubr.msk.bf16.mxu0 %vm578_vm0, %v440_v40  ;;  %1666 = vmatprep.mubr.msk.bf16.mxu1 %vm578_vm0, %v472_v46  ;;  %v473_v40 = vpack.c.bf16 %v389_v26, %v387_v25  ;;  %v256_v44 = vmul.f32 %v1781_v12, %v116_v35  ;;  %v327_v46 = vadd.f32 %v1828_v33, %v187_v32  ;;  %v119_v26 = vld [vmem:[%s2945_s0 + $0x300] sm:$0xff]  ;;  %v126_v32 = vld [vmem:[%s2945_s0 + $0x338] sm:$0xff] }
  0x43   :  { %v402_v25 = vadd.f32 %v1783_v13, %v262_v11  ;;  %v200_v35 = vmul.f32 %v1781_v12, %v60_v19  ;;  %v259_v38 = vmul.f32 %v1806_v23, %v119_v26  ;;  %v261_v39 = vmul.f32 %v1806_v23, %v121_v27 }
  0x44   :  { %v396_v56 = vadd.f32 %v1783_v13, %v256_v44  ;;  %v443_v60 = vpack.c.bf16 %v329_v47, %v327_v46  ;;  %v266_v42 = vmul.f32 %v1781_v12, %v126_v32  ;;  %v337_v44 = vadd.f32 %v1828_v33, %v197_v30  ;;  %v59_v47 = vld [vmem:[%s2945_s0 + $0x120] sm:$0xff] }
  0x45   :  { %v340_v45 = vadd.f32 %v1783_v13, %v200_v35  ;;  %v342_v46 = vadd.f32 %v1783_v13, %v202_v36  ;;  %v399_v51 = vadd.f32 %v1828_v33, %v259_v38  ;;  %v401_v52 = vadd.f32 %v1828_v33, %v261_v39 }
  0x46   :  { %v199_v58 = vmul.f32 %v1806_v23, %v59_v47  ;;  %v205_v27 = vmul.f32 %v1806_v23, %v65_v16  ;;  %v210_v32 = vmul.f32 %v1781_v12, %v70_v0  ;;  %v74_v47 = vld [vmem:[%s2945_s0 + $0x198] sm:$0xff] }
  0x47   :  { %v450_v62 = vpack.c.bf16 %v342_v46, %v340_v45  ;;  %v69_v45 = vld [vmem:[%s2945_s0 + $0x170] sm:$0xff]  ;;  %v72_v46 = vld [vmem:[%s2945_s0 + $0x188] sm:$0xff] }
  0x49   :  { %747 = vmatmul.mubr.bf16.gmra.mrb[16].mxu0 %v439_v63  ;;  %875 = vmatmul.mubr.bf16.gmra.mrb[16].mxu1 %v471_v9  ;;  %v120_v63 = vld [vmem:[%s2945_s0 + $0x308] sm:$0xff]  ;;  %v478_v9 = vpack.c.bf16 %v398_v57, %v396_v56  ;;  %v125_v56 = vld [vmem:[%s2945_s0 + $0x330] sm:$0xff] }
  0x4a   :  { %1651 = vmatprep.mubr.msk.bf16.mxu0 %vm578_vm0, %v442_v6  ;;  %1667 = vmatprep.mubr.msk.bf16.mxu1 %vm578_vm0, %v474_v14  ;;  %v475_v6 = vpack.c.bf16 %v393_v55, %v391_v54  ;;  %v260_v10 = vmul.f32 %v1781_v12, %v120_v63  ;;  %v331_v14 = vadd.f32 %v1828_v33, %v191_v61  ;;  %v123_v55 = vld [vmem:[%s2945_s0 + $0x320] sm:$0xff]  ;;  %v130_v61 = vld [vmem:[%s2945_s0 + $0x358] sm:$0xff] }
  0x4b   :  { %v406_v54 = vadd.f32 %v1783_v13, %v266_v42  ;;  %v204_v63 = vmul.f32 %v1781_v12, %v64_v49  ;;  %v263_v3 = vmul.f32 %v1806_v23, %v123_v55  ;;  %v265_v5 = vmul.f32 %v1806_v23, %v125_v56 }
  0x4c   :  { %v400_v24 = vadd.f32 %v1783_v13, %v260_v10  ;;  %v445_v28 = vpack.c.bf16 %v333_v15, %v331_v14  ;;  %v270_v8 = vmul.f32 %v1781_v12, %v130_v61  ;;  %v341_v10 = vadd.f32 %v1828_v33, %v201_v59  ;;  %v63_v15 = vld [vmem:[%s2945_s0 + $0x140] sm:$0xff] }
  0x4d   :  { %v344_v11 = vadd.f32 %v1783_v13, %v204_v63  ;;  %v346_v14 = vadd.f32 %v1783_v13, %v206_v1  ;;  %v403_v18 = vadd.f32 %v1828_v33, %v263_v3  ;;  %v405_v19 = vadd.f32 %v1828_v33, %v265_v5 }
  0x4e   :  { %v203_v26 = vmul.f32 %v1806_v23, %v63_v15  ;;  %v209_v56 = vmul.f32 %v1806_v23, %v69_v45  ;;  %v214_v61 = vmul.f32 %v1781_v12, %v74_v47  ;;  %v78_v15 = vld [vmem:[%s2945_s0 + $0x1b8] sm:$0xff] }
  0x4f   :  { %v452_v30 = vpack.c.bf16 %v346_v14, %v344_v11  ;;  %v73_v11 = vld [vmem:[%s2945_s0 + $0x190] sm:$0xff]  ;;  %v76_v14 = vld [vmem:[%s2945_s0 + $0x1a8] sm:$0xff] }
  0x51   :  { %755 = vmatmul.mubr.bf16.gmra.mrb[20].mxu0 %v441_v31  ;;  %883 = vmatmul.mubr.bf16.gmra.mrb[20].mxu1 %v473_v40  ;;  %v124_v31 = vld [vmem:[%s2945_s0 + $0x328] sm:$0xff]  ;;  %v480_v40 = vpack.c.bf16 %v402_v25, %v400_v24  ;;  %v129_v24 = vld [vmem:[%s2945_s0 + $0x350] sm:$0xff] }
  0x52   :  { %1652 = vmatprep.mubr.msk.bf16.mxu0 %vm578_vm0, %v444_v37  ;;  %1668 = vmatprep.mubr.msk.bf16.mxu1 %vm578_vm0, %v476_v43  ;;  %v477_v37 = vpack.c.bf16 %v397_v22, %v395_v21  ;;  %v264_v41 = vmul.f32 %v1781_v12, %v124_v31  ;;  %v335_v43 = vadd.f32 %v1828_v33, %v195_v29  ;;  %v127_v22 = vld [vmem:[%s2945_s0 + $0x340] sm:$0xff]  ;;  %v134_v29 = vld [vmem:[%s2945_s0 + $0x378] sm:$0xff] }
  0x53   :  { %v410_v21 = vadd.f32 %v1783_v13, %v270_v8  ;;  %v208_v31 = vmul.f32 %v1781_v12, %v68_v17  ;;  %v267_v35 = vmul.f32 %v1806_v23, %v127_v22  ;;  %v269_v36 = vmul.f32 %v1806_v23, %v129_v24 }
  0x54   :  { %v404_v53 = vadd.f32 %v1783_v13, %v264_v41  ;;  %v447_v57 = vpack.c.bf16 %v337_v44, %v335_v43  ;;  %v274_v39 = vmul.f32 %v1781_v12, %v134_v29  ;;  %v345_v41 = vadd.f32 %v1828_v33, %v205_v27  ;;  %v67_v44 = vld [vmem:[%s2945_s0 + $0x160] sm:$0xff] }
  0x55   :  { %v348_v42 = vadd.f32 %v1783_v13, %v208_v31  ;;  %v350_v43 = vadd.f32 %v1783_v13, %v210_v32  ;;  %v407_v48 = vadd.f32 %v1828_v33, %v267_v35  ;;  %v409_v49 = vadd.f32 %v1828_v33, %v269_v36 }
  0x56   :  { %v207_v55 = vmul.f32 %v1806_v23, %v67_v44  ;;  %v213_v24 = vmul.f32 %v1806_v23, %v73_v11  ;;  %v218_v29 = vmul.f32 %v1781_v12, %v78_v15  ;;  %v82_v44 = vld [vmem:[%s2945_s0 + $0x1d8] sm:$0xff] }
  0x57   :  { %v454_v59 = vpack.c.bf16 %v350_v43, %v348_v42  ;;  %v77_v42 = vld [vmem:[%s2945_s0 + $0x1b0] sm:$0xff]  ;;  %v80_v43 = vld [vmem:[%s2945_s0 + $0x1c8] sm:$0xff] }
  0x59   :  { %763 = vmatmul.mubr.bf16.gmra.mrb[24].mxu0 %v443_v60  ;;  %891 = vmatmul.mubr.bf16.gmra.mrb[24].mxu1 %v475_v6  ;;  %v128_v60 = vld [vmem:[%s2945_s0 + $0x348] sm:$0xff]  ;;  %v482_v6 = vpack.c.bf16 %v406_v54, %v404_v53  ;;  %v133_v53 = vld [vmem:[%s2945_s0 + $0x370] sm:$0xff] }
  0x5a   :  { %1653 = vmatprep.mubr.msk.bf16.mxu0 %vm578_vm0, %v446_v2  ;;  %1669 = vmatprep.mubr.msk.bf16.mxu1 %vm578_vm0, %v478_v9  ;;  %v479_v2 = vpack.c.bf16 %v401_v52, %v399_v51  ;;  %v268_v7 = vmul.f32 %v1781_v12, %v128_v60  ;;  %v339_v9 = vadd.f32 %v1828_v33, %v199_v58  ;;  %v131_v52 = vld [vmem:[%s2945_s0 + $0x360] sm:$0xff]  ;;  %v138_v58 = vld [vmem:[%s2945_s0 + $0x398] sm:$0xff] }
  0x5b   :  { %v414_v51 = vadd.f32 %v1783_v13, %v274_v39  ;;  %v212_v60 = vmul.f32 %v1781_v12, %v72_v46  ;;  %v271_v63 = vmul.f32 %v1806_v23, %v131_v52  ;;  %v273_v1 = vmul.f32 %v1806_v23, %v133_v53 }
  0x5c   :  { %v408_v20 = vadd.f32 %v1783_v13, %v268_v7  ;;  %v449_v25 = vpack.c.bf16 %v341_v10, %v339_v9  ;;  %v278_v5 = vmul.f32 %v1781_v12, %v138_v58  ;;  %v349_v7 = vadd.f32 %v1828_v33, %v209_v56  ;;  %v71_v10 = vld [vmem:[%s2945_s0 + $0x180] sm:$0xff] }
  0x5d   :  { %v352_v8 = vadd.f32 %v1783_v13, %v212_v60  ;;  %v354_v9 = vadd.f32 %v1783_v13, %v214_v61  ;;  %v411_v16 = vadd.f32 %v1828_v33, %v271_v63  ;;  %v413_v17 = vadd.f32 %v1828_v33, %v273_v1 }
  0x5e   :  { %v211_v22 = vmul.f32 %v1806_v23, %v71_v10  ;;  %v217_v53 = vmul.f32 %v1806_v23, %v77_v42  ;;  %v222_v58 = vmul.f32 %v1781_v12, %v82_v44  ;;  %v86_v10 = vld [vmem:[%s2945_s0 + $0x1f8] sm:$0xff]  ;;  %v149_v44 = vld [vmem:[%s2945_s0 + $0x3f0] sm:$0xff] }
  0x5f   :  { %v456_v27 = vpack.c.bf16 %v354_v9, %v352_v8  ;;  %v81_v8 = vld [vmem:[%s2945_s0 + $0x1d0] sm:$0xff]  ;;  %v84_v9 = vld [vmem:[%s2945_s0 + $0x1e8] sm:$0xff] }
  0x61   :  { %771 = vmatmul.mubr.bf16.gmra.mrb[28].mxu0 %v445_v28  ;;  %899 = vmatmul.mubr.bf16.gmra.mrb[28].mxu1 %v477_v37  ;;  %v132_v28 = vld [vmem:[%s2945_s0 + $0x368] sm:$0xff]  ;;  %v484_v37 = vpack.c.bf16 %v410_v21, %v408_v20  ;;  %v137_v20 = vld [vmem:[%s2945_s0 + $0x390] sm:$0xff] }
  0x62   :  { %1654 = vmatprep.mubr.msk.bf16.mxu0 %vm578_vm0, %v448_v34  ;;  %1670 = vmatprep.mubr.msk.bf16.mxu1 %vm578_vm0, %v480_v40  ;;  %v481_v34 = vpack.c.bf16 %v405_v19, %v403_v18  ;;  %v272_v38 = vmul.f32 %v1781_v12, %v132_v28  ;;  %v343_v40 = vadd.f32 %v1828_v33, %v203_v26  ;;  %v135_v19 = vld [vmem:[%s2945_s0 + $0x380] sm:$0xff]  ;;  %v142_v26 = vld [vmem:[%s2945_s0 + $0x3b8] sm:$0xff] }
  0x63   :  { %v418_v18 = vadd.f32 %v1783_v13, %v278_v5  ;;  %v216_v28 = vmul.f32 %v1781_v12, %v76_v14  ;;  %v275_v31 = vmul.f32 %v1806_v23, %v135_v19  ;;  %v277_v32 = vmul.f32 %v1806_v23, %v137_v20 }
  0x64   :  { %v412_v50 = vadd.f32 %v1783_v13, %v272_v38  ;;  %v451_v54 = vpack.c.bf16 %v345_v41, %v343_v40  ;;  %v282_v36 = vmul.f32 %v1781_v12, %v142_v26  ;;  %v353_v38 = vadd.f32 %v1828_v33, %v213_v24  ;;  %v75_v41 = vld [vmem:[%s2945_s0 + $0x1a0] sm:$0xff] }
  0x65   :  { %v356_v39 = vadd.f32 %v1783_v13, %v216_v28  ;;  %v358_v40 = vadd.f32 %v1783_v13, %v218_v29  ;;  %v415_v45 = vadd.f32 %v1828_v33, %v275_v31  ;;  %v417_v46 = vadd.f32 %v1828_v33, %v277_v32 }
  0x66   :  { %v215_v52 = vmul.f32 %v1806_v23, %v75_v41  ;;  %v221_v20 = vmul.f32 %v1806_v23, %v81_v8  ;;  %v226_v26 = vmul.f32 %v1781_v12, %v86_v10 }
  0x67   :  { %v458_v56 = vpack.c.bf16 %v358_v40, %v356_v39  ;;  %v85_v39 = vld [vmem:[%s2945_s0 + $0x1f0] sm:$0xff] }
  0x69   :  { %779 = vmatmul.mubr.bf16.gmra.mrb[32].mxu0 %v447_v57  ;;  %907 = vmatmul.mubr.bf16.gmra.mrb[32].mxu1 %v479_v2  ;;  %v136_v57 = vld [vmem:[%s2945_s0 + $0x388] sm:$0xff]  ;;  %v486_v2 = vpack.c.bf16 %v414_v51, %v412_v50  ;;  %v141_v50 = vld [vmem:[%s2945_s0 + $0x3b0] sm:$0xff] }
  0x6a   :  { %1655 = vmatprep.mubr.msk.bf16.mxu0 %vm578_vm0, %v450_v62  ;;  %1671 = vmatprep.mubr.msk.bf16.mxu1 %vm578_vm0, %v482_v6  ;;  %v483_v62 = vpack.c.bf16 %v409_v49, %v407_v48  ;;  %v276_v3 = vmul.f32 %v1781_v12, %v136_v57  ;;  %v347_v6 = vadd.f32 %v1828_v33, %v207_v55  ;;  %v139_v49 = vld [vmem:[%s2945_s0 + $0x3a0] sm:$0xff]  ;;  %v146_v55 = vld [vmem:[%s2945_s0 + $0x3d8] sm:$0xff] }
  0x6b   :  { %v422_v48 = vadd.f32 %v1783_v13, %v282_v36  ;;  %v220_v57 = vmul.f32 %v1781_v12, %v80_v43  ;;  %v279_v60 = vmul.f32 %v1806_v23, %v139_v49  ;;  %v281_v61 = vmul.f32 %v1806_v23, %v141_v50  ;;  %v147_v43 = vld [vmem:[%s2945_s0 + $0x3e0] sm:$0xff] }
  0x6c   :  { %v416_v0 = vadd.f32 %v1783_v13, %v276_v3  ;;  %v453_v21 = vpack.c.bf16 %v349_v7, %v347_v6  ;;  %v286_v1 = vmul.f32 %v1781_v12, %v146_v55  ;;  %v357_v3 = vadd.f32 %v1828_v33, %v217_v53  ;;  %v79_v7 = vld [vmem:[%s2945_s0 + $0x1c0] sm:$0xff] }
  0x6d   :  { %v360_v5 = vadd.f32 %v1783_v13, %v220_v57  ;;  %v362_v6 = vadd.f32 %v1783_v13, %v222_v58  ;;  %v419_v11 = vadd.f32 %v1828_v33, %v279_v60  ;;  %v421_v14 = vadd.f32 %v1828_v33, %v281_v61 }
  0x6e   :  { %v219_v19 = vmul.f32 %v1806_v23, %v79_v7  ;;  %v287_v50 = vmul.f32 %v1806_v23, %v147_v43 }
  0x6f   :  { %v460_v24 = vpack.c.bf16 %v362_v6, %v360_v5 }
  0x71   :  { %787 = vmatmul.mubr.bf16.gmra.mrb[36].mxu0 %v449_v25  ;;  %915 = vmatmul.mubr.bf16.gmra.mrb[36].mxu1 %v481_v34  ;;  %v140_v25 = vld [vmem:[%s2945_s0 + $0x3a8] sm:$0xff]  ;;  %v488_v34 = vpack.c.bf16 %v418_v18, %v416_v0  ;;  %v145_v0 = vld [vmem:[%s2945_s0 + $0x3d0] sm:$0xff] }
  0x72   :  { %1656 = vmatprep.mubr.msk.bf16.mxu0 %vm578_vm0, %v452_v30  ;;  %1672 = vmatprep.mubr.msk.bf16.mxu1 %vm578_vm0, %v484_v37  ;;  %v485_v30 = vpack.c.bf16 %v413_v17, %v411_v16  ;;  %v280_v35 = vmul.f32 %v1781_v12, %v140_v25  ;;  %v351_v37 = vadd.f32 %v1828_v33, %v211_v22  ;;  %v143_v17 = vld [vmem:[%s2945_s0 + $0x3c0] sm:$0xff]  ;;  %v150_v22 = vld [vmem:[%s2945_s0 + $0x3f8] sm:$0xff] }
  0x73   :  { %v426_v16 = vadd.f32 %v1783_v13, %v286_v1  ;;  %v224_v25 = vmul.f32 %v1781_v12, %v84_v9  ;;  %v283_v28 = vmul.f32 %v1806_v23, %v143_v17  ;;  %v285_v29 = vmul.f32 %v1806_v23, %v145_v0 }
  0x74   :  { %v420_v47 = vadd.f32 %v1783_v13, %v280_v35  ;;  %v455_v51 = vpack.c.bf16 %v353_v38, %v351_v37  ;;  %v290_v32 = vmul.f32 %v1781_v12, %v150_v22  ;;  %v361_v35 = vadd.f32 %v1828_v33, %v221_v20  ;;  %v83_v38 = vld [vmem:[%s2945_s0 + $0x1e0] sm:$0xff] }
  0x75   :  { %v364_v36 = vadd.f32 %v1783_v13, %v224_v25  ;;  %v366_v37 = vadd.f32 %v1783_v13, %v226_v26  ;;  %v425_v40 = vadd.f32 %v1828_v33, %v285_v29 }
  0x76   :  { %v430_v42 = vadd.f32 %v1783_v13, %v290_v32 }
  0x79   :  { %795 = vmatmul.mubr.bf16.gmra.mrb[40].mxu0 %v451_v54  ;;  %923 = vmatmul.mubr.bf16.gmra.mrb[40].mxu1 %v483_v62  ;;  %v144_v54 = vld [vmem:[%s2945_s0 + $0x3c8] sm:$0xff]  ;;  %v490_v62 = vpack.c.bf16 %v422_v48, %v420_v47  ;;  %v225_v47 = vmul.f32 %v1806_v23, %v85_v39  ;;  %v462_v48 = vpack.c.bf16 %v366_v37, %v364_v36 }
  0x7a   :  { %1657 = vmatprep.mubr.msk.bf16.mxu0 %vm578_vm0, %v454_v59  ;;  %1673 = vmatprep.mubr.msk.bf16.mxu1 %vm578_vm0, %v486_v2  ;;  %v487_v59 = vpack.c.bf16 %v417_v46, %v415_v45  ;;  %v284_v63 = vmul.f32 %v1781_v12, %v144_v54  ;;  %v355_v2 = vadd.f32 %v1828_v33, %v215_v52 }
  0x7b   :  { %v223_v46 = vmul.f32 %v1806_v23, %v83_v38  ;;  %v365_v53 = vadd.f32 %v1828_v33, %v225_v47  ;;  %v427_v54 = vadd.f32 %v1828_v33, %v287_v50 }
  0x7c   :  { %v424_v15 = vadd.f32 %v1783_v13, %v284_v63  ;;  %v457_v18 = vpack.c.bf16 %v357_v3, %v355_v2 }
  0x7d   :  { %v363_v52 = vadd.f32 %v1828_v33, %v223_v46 }
  0x81   :  { %803 = vmatmul.mubr.bf16.gmra.mrb[44].mxu0 %v453_v21  ;;  %931 = vmatmul.mubr.bf16.gmra.mrb[44].mxu1 %v485_v30  ;;  %v148_v21 = vld [vmem:[%s2945_s0 + $0x3e8] sm:$0xff]  ;;  %v492_v30 = vpack.c.bf16 %v426_v16, %v424_v15 }
  0x82   :  { %1658 = vmatprep.mubr.msk.bf16.mxu0 %vm578_vm0, %v456_v27  ;;  %1674 = vmatprep.mubr.msk.bf16.mxu1 %vm578_vm0, %v488_v34  ;;  %v489_v27 = vpack.c.bf16 %v421_v14, %v419_v11  ;;  %v288_v31 = vmul.f32 %v1781_v12, %v148_v21  ;;  %v359_v34 = vadd.f32 %v1828_v33, %v219_v19 }
  0x83   :  { %v423_v12 = vadd.f32 %v1828_v33, %v283_v28 }
  0x84   :  { %v428_v41 = vadd.f32 %v1783_v13, %v288_v31  ;;  %v459_v45 = vpack.c.bf16 %v361_v35, %v359_v34 }
  0x85   :  { %v491_v49 = vpack.c.bf16 %v425_v40, %v423_v12 }
  0x86   :  { %v494_v13 = vpack.c.bf16 %v430_v42, %v428_v41 }
  0x89   :  { %811 = vmatmul.mubr.bf16.gmra.mrb[48].mxu0 %v455_v51  ;;  %939 = vmatmul.mubr.bf16.gmra.mrb[48].mxu1 %v487_v59  ;;  %v289_v51 = vmul.f32 %v1806_v23, %v149_v44  ;;  %v2490_v23 = vld [vmem:[%s2948_s4] ss:$0 sm:$0xff] }
  0x8a   :  { %1659 = vmatprep.mubr.msk.bf16.mxu0 %vm578_vm0, %v458_v56  ;;  %1675 = vmatprep.mubr.msk.bf16.mxu1 %vm578_vm0, %v490_v62  ;;  %v461_v56 = vpack.c.bf16 %v365_v53, %v363_v52 }
  0x8b   :  { %v429_v55 = vadd.f32 %v1828_v33, %v289_v51 }
  0x8d   :  { %v493_v57 = vpack.c.bf16 %v429_v55, %v427_v54 }
  0x91   :  { %819 = vmatmul.mubr.bf16.gmra.mrb[52].mxu0 %v457_v18  ;;  %947 = vmatmul.mubr.bf16.gmra.mrb[52].mxu1 %v489_v27 }
  0x92   :  { %1660 = vmatprep.mubr.msk.bf16.mxu0 %vm578_vm0, %v460_v24  ;;  %1676 = vmatprep.mubr.msk.bf16.mxu1 %vm578_vm0, %v492_v30 }
  0x99   :  { %827 = vmatmul.mubr.bf16.gmra.mrb[56].mxu0 %v459_v45  ;;  %955 = vmatmul.mubr.bf16.gmra.mrb[56].mxu1 %v491_v49 }
  0x9a   :  { %1661 = vmatprep.mubr.msk.bf16.mxu0 %vm578_vm0, %v462_v48  ;;  %1677 = vmatprep.mubr.msk.bf16.mxu1 %vm578_vm0, %v494_v13 }
  0xa1   :  { %835 = vmatmul.mubr.bf16.gmra.mrb[60].mxu0 %v461_v56  ;;  %963 = vmatmul.mubr.bf16.gmra.mrb[60].mxu1 %v493_v57 }
  0xfc   :  { %v716_v58 = vpop.f32.mrb[0].mxu0  ;;  %v844_v62 = vpop.f32.mrb[0].mxu1 }
  0xfd   :  { %v717_v59 = vadd.f32 %v2490_v23, %v716_v58  ;;  %v718_v60 = vpop.f32.mrb[1].mxu0  ;;  %v2498_v1 = vadd.f32 %v2490_v23, %v844_v62  ;;  %v846_v2 = vpop.f32.mrb[1].mxu1 }
  0xfe   :  { %v719_v61 = vpop.f32.mrb[2].mxu0  ;;  %v847_v3 = vpop.f32.mrb[2].mxu1 }
  0xff   :  { %971 = vst [vmem:[%s2949_s5] sm:$0xff] %v717_v59  ;;  %v720_v33 = vadd.f32 %v2490_v23, %v719_v61  ;;  %v721_v63 = vpop.f32.mrb[3].mxu0  ;;  %v1491_v5 = vmul.f32 %v717_v59, %v717_v59  ;;  %1003 = vst [vmem:[%s2949_s5 + $0x100] sm:$0xff] %v2498_v1  ;;  %v2508_v8 = vadd.f32 %v2490_v23, %v847_v3  ;;  %v849_v9 = vpop.f32.mrb[3].mxu1 }
 0x101   :  { %972 = vst [vmem:[%s2949_s5 + $0x8] sm:$0xff] %v720_v33  ;;  %v1422_v6 = vadd.f32 %v720_v33, %v717_v59  ;;  %v1492_v7 = vmul.f32 %v720_v33, %v720_v33  ;;  %1004 = vst [vmem:[%s2949_s5 + $0x108] sm:$0xff] %v2508_v8 }
 0x103   :  { %v1555_v10 = vadd.f32 %v1492_v7, %v1491_v5 }
 0x104   :  { %v724_v11 = vpop.f32.mrb[4].mxu0  ;;  %v852_v17 = vpop.f32.mrb[4].mxu1 }
 0x105   :  { %v725_v14 = vadd.f32 %v2490_v23, %v724_v11  ;;  %v726_v15 = vpop.f32.mrb[5].mxu0  ;;  %v2520_v21 = vadd.f32 %v2490_v23, %v852_v17  ;;  %v854_v22 = vpop.f32.mrb[5].mxu1 }
 0x106   :  { %v727_v16 = vpop.f32.mrb[6].mxu0  ;;  %v855_v24 = vpop.f32.mrb[6].mxu1 }
 0x107   :  { %973 = vst [vmem:[%s2949_s5 + $0x10] sm:$0xff] %v725_v14  ;;  %v1423_v0 = vadd.f32 %v1422_v6, %v725_v14  ;;  %v1493_v18 = vmul.f32 %v725_v14, %v725_v14  ;;  %v728_v19 = vadd.f32 %v2490_v23, %v727_v16  ;;  %v729_v20 = vpop.f32.mrb[7].mxu0  ;;  %1005 = vst [vmem:[%s2949_s5 + $0x110] sm:$0xff] %v2520_v21  ;;  %v857_v28 = vpop.f32.mrb[7].mxu1 }
 0x108   :  { %v2530_v29 = vadd.f32 %v2490_v23, %v855_v24 }
 0x109   :  { %v1556_v25 = vadd.f32 %v1555_v10, %v1493_v18  ;;  %974 = vst [vmem:[%s2949_s5 + $0x18] sm:$0xff] %v728_v19  ;;  %v1424_v26 = vadd.f32 %v1423_v0, %v728_v19  ;;  %v1494_v27 = vmul.f32 %v728_v19, %v728_v19 }
 0x10a   :  { %1006 = vst [vmem:[%s2949_s5 + $0x118] sm:$0xff] %v2530_v29 }
 0x10b   :  { %v1557_v30 = vadd.f32 %v1556_v25, %v1494_v27 }
 0x10c   :  { %v732_v31 = vpop.f32.mrb[8].mxu0  ;;  %v860_v36 = vpop.f32.mrb[8].mxu1 }
 0x10d   :  { %v733_v32 = vadd.f32 %v2490_v23, %v732_v31  ;;  %v734_v34 = vpop.f32.mrb[9].mxu0  ;;  %v2542_v40 = vadd.f32 %v2490_v23, %v860_v36  ;;  %v862_v41 = vpop.f32.mrb[9].mxu1 }
 0x10e   :  { %v735_v35 = vpop.f32.mrb[10].mxu0  ;;  %v863_v42 = vpop.f32.mrb[10].mxu1 }
 0x10f   :  { %975 = vst [vmem:[%s2949_s5 + $0x20] sm:$0xff] %v733_v32  ;;  %v1425_v37 = vadd.f32 %v1424_v26, %v733_v32  ;;  %v1495_v38 = vmul.f32 %v733_v32, %v733_v32  ;;  %v736_v39 = vadd.f32 %v2490_v23, %v735_v35  ;;  %v737_v12 = vpop.f32.mrb[11].mxu0  ;;  %1007 = vst [vmem:[%s2949_s5 + $0x120] sm:$0xff] %v2542_v40  ;;  %v865_v46 = vpop.f32.mrb[11].mxu1 }
 0x110   :  { %v2552_v47 = vadd.f32 %v2490_v23, %v863_v42 }
 0x111   :  { %v1558_v43 = vadd.f32 %v1557_v30, %v1495_v38  ;;  %976 = vst [vmem:[%s2949_s5 + $0x28] sm:$0xff] %v736_v39  ;;  %v1426_v44 = vadd.f32 %v1425_v37, %v736_v39  ;;  %v1496_v45 = vmul.f32 %v736_v39, %v736_v39 }
 0x112   :  { %1008 = vst [vmem:[%s2949_s5 + $0x128] sm:$0xff] %v2552_v47 }
 0x113   :  { %v1559_v48 = vadd.f32 %v1558_v43, %v1496_v45 }
 0x114   :  { %v740_v49 = vpop.f32.mrb[12].mxu0  ;;  %v868_v52 = vpop.f32.mrb[12].mxu1 }
 0x115   :  { %v741_v50 = vadd.f32 %v2490_v23, %v740_v49  ;;  %v742_v51 = vpop.f32.mrb[13].mxu0  ;;  %v2564_v57 = vadd.f32 %v2490_v23, %v868_v52  ;;  %v870_v58 = vpop.f32.mrb[13].mxu1 }
 0x116   :  { %v743_v13 = vpop.f32.mrb[14].mxu0  ;;  %v871_v59 = vpop.f32.mrb[14].mxu1 }
 0x117   :  { %977 = vst [vmem:[%s2949_s5 + $0x30] sm:$0xff] %v741_v50  ;;  %v1427_v53 = vadd.f32 %v1426_v44, %v741_v50  ;;  %v1497_v54 = vmul.f32 %v741_v50, %v741_v50  ;;  %v744_v55 = vadd.f32 %v2490_v23, %v743_v13  ;;  %v745_v56 = vpop.f32.mrb[15].mxu0  ;;  %1009 = vst [vmem:[%s2949_s5 + $0x130] sm:$0xff] %v2564_v57  ;;  %v873_v33 = vpop.f32.mrb[15].mxu1 }
 0x118   :  { %v2574_v63 = vadd.f32 %v2490_v23, %v871_v59 }
 0x119   :  { %v1560_v60 = vadd.f32 %v1559_v48, %v1497_v54  ;;  %978 = vst [vmem:[%s2949_s5 + $0x38] sm:$0xff] %v744_v55  ;;  %v1428_v61 = vadd.f32 %v1427_v53, %v744_v55  ;;  %v1498_v62 = vmul.f32 %v744_v55, %v744_v55 }
 0x11a   :  { %1010 = vst [vmem:[%s2949_s5 + $0x138] sm:$0xff] %v2574_v63 }
 0x11b   :  { %v1561_v2 = vadd.f32 %v1560_v60, %v1498_v62 }
 0x11c   :  { %v748_v3 = vpop.f32.mrb[16].mxu0  ;;  %v876_v9 = vpop.f32.mrb[16].mxu1 }
 0x11d   :  { %v749_v5 = vadd.f32 %v2490_v23, %v748_v3  ;;  %v750_v6 = vpop.f32.mrb[17].mxu0  ;;  %v2586_v16 = vadd.f32 %v2490_v23, %v876_v9  ;;  %v878_v17 = vpop.f32.mrb[17].mxu1 }
 0x11e   :  { %v751_v7 = vpop.f32.mrb[18].mxu0  ;;  %v879_v0 = vpop.f32.mrb[18].mxu1 }
 0x11f   :  { %979 = vst [vmem:[%s2949_s5 + $0x40] sm:$0xff] %v749_v5  ;;  %v1429_v10 = vadd.f32 %v1428_v61, %v749_v5  ;;  %v1499_v11 = vmul.f32 %v749_v5, %v749_v5  ;;  %v752_v14 = vadd.f32 %v2490_v23, %v751_v7  ;;  %v753_v15 = vpop.f32.mrb[19].mxu0  ;;  %1011 = vst [vmem:[%s2949_s5 + $0x140] sm:$0xff] %v2586_v16  ;;  %v881_v22 = vpop.f32.mrb[19].mxu1 }
 0x120   :  { %v2596_v24 = vadd.f32 %v2490_v23, %v879_v0 }
 0x121   :  { %v1562_v18 = vadd.f32 %v1561_v2, %v1499_v11  ;;  %980 = vst [vmem:[%s2949_s5 + $0x48] sm:$0xff] %v752_v14  ;;  %v1430_v19 = vadd.f32 %v1429_v10, %v752_v14  ;;  %v1500_v20 = vmul.f32 %v752_v14, %v752_v14 }
 0x122   :  { %1012 = vst [vmem:[%s2949_s5 + $0x148] sm:$0xff] %v2596_v24 }
 0x123   :  { %v1563_v25 = vadd.f32 %v1562_v18, %v1500_v20 }
 0x124   :  { %v756_v26 = vpop.f32.mrb[20].mxu0  ;;  %v884_v31 = vpop.f32.mrb[20].mxu1 }
 0x125   :  { %v757_v27 = vadd.f32 %v2490_v23, %v756_v26  ;;  %v758_v28 = vpop.f32.mrb[21].mxu0  ;;  %v2608_v37 = vadd.f32 %v2490_v23, %v884_v31  ;;  %v886_v38 = vpop.f32.mrb[21].mxu1 }
 0x126   :  { %v759_v30 = vpop.f32.mrb[22].mxu0  ;;  %v887_v39 = vpop.f32.mrb[22].mxu1 }
 0x127   :  { %981 = vst [vmem:[%s2949_s5 + $0x50] sm:$0xff] %v757_v27  ;;  %v1431_v32 = vadd.f32 %v1430_v19, %v757_v27  ;;  %v1501_v34 = vmul.f32 %v757_v27, %v757_v27  ;;  %v760_v35 = vadd.f32 %v2490_v23, %v759_v30  ;;  %v761_v36 = vpop.f32.mrb[23].mxu0  ;;  %1013 = vst [vmem:[%s2949_s5 + $0x150] sm:$0xff] %v2608_v37  ;;  %v889_v43 = vpop.f32.mrb[23].mxu1 }
 0x128   :  { %v2618_v44 = vadd.f32 %v2490_v23, %v887_v39 }
 0x129   :  { %v1564_v12 = vadd.f32 %v1563_v25, %v1501_v34  ;;  %982 = vst [vmem:[%s2949_s5 + $0x58] sm:$0xff] %v760_v35  ;;  %v1432_v41 = vadd.f32 %v1431_v32, %v760_v35  ;;  %v1502_v42 = vmul.f32 %v760_v35, %v760_v35 }
 0x12a   :  { %1014 = vst [vmem:[%s2949_s5 + $0x158] sm:$0xff] %v2618_v44 }
 0x12b   :  { %v1565_v45 = vadd.f32 %v1564_v12, %v1502_v42 }
 0x12c   :  { %v764_v46 = vpop.f32.mrb[24].mxu0  ;;  %v892_v51 = vpop.f32.mrb[24].mxu1 }
 0x12d   :  { %v765_v48 = vadd.f32 %v2490_v23, %v764_v46  ;;  %v766_v49 = vpop.f32.mrb[25].mxu0  ;;  %v2630_v55 = vadd.f32 %v2490_v23, %v892_v51  ;;  %v894_v56 = vpop.f32.mrb[25].mxu1 }
 0x12e   :  { %v767_v50 = vpop.f32.mrb[26].mxu0  ;;  %v895_v58 = vpop.f32.mrb[26].mxu1 }
 0x12f   :  { %983 = vst [vmem:[%s2949_s5 + $0x60] sm:$0xff] %v765_v48  ;;  %v1433_v13 = vadd.f32 %v1432_v41, %v765_v48  ;;  %v1503_v52 = vmul.f32 %v765_v48, %v765_v48  ;;  %v768_v53 = vadd.f32 %v2490_v23, %v767_v50  ;;  %v769_v54 = vpop.f32.mrb[27].mxu0  ;;  %1015 = vst [vmem:[%s2949_s5 + $0x160] sm:$0xff] %v2630_v55  ;;  %v897_v62 = vpop.f32.mrb[27].mxu1 }
 0x130   :  { %v2640_v33 = vadd.f32 %v2490_v23, %v895_v58 }
 0x131   :  { %v1566_v59 = vadd.f32 %v1565_v45, %v1503_v52  ;;  %984 = vst [vmem:[%s2949_s5 + $0x68] sm:$0xff] %v768_v53  ;;  %v1434_v60 = vadd.f32 %v1433_v13, %v768_v53  ;;  %v1504_v61 = vmul.f32 %v768_v53, %v768_v53 }
 0x132   :  { %1016 = vst [vmem:[%s2949_s5 + $0x168] sm:$0xff] %v2640_v33 }
 0x133   :  { %v1567_v2 = vadd.f32 %v1566_v59, %v1504_v61 }
 0x134   :  { %v772_v3 = vpop.f32.mrb[28].mxu0  ;;  %v900_v9 = vpop.f32.mrb[28].mxu1 }
 0x135   :  { %v773_v5 = vadd.f32 %v2490_v23, %v772_v3  ;;  %v774_v6 = vpop.f32.mrb[29].mxu0  ;;  %v2652_v17 = vadd.f32 %v2490_v23, %v900_v9  ;;  %v902_v0 = vpop.f32.mrb[29].mxu1 }
 0x136   :  { %v775_v7 = vpop.f32.mrb[30].mxu0  ;;  %v903_v18 = vpop.f32.mrb[30].mxu1 }
 0x137   :  { %985 = vst [vmem:[%s2949_s5 + $0x70] sm:$0xff] %v773_v5  ;;  %v1435_v10 = vadd.f32 %v1434_v60, %v773_v5  ;;  %v1505_v11 = vmul.f32 %v773_v5, %v773_v5  ;;  %v776_v14 = vadd.f32 %v2490_v23, %v775_v7  ;;  %v777_v15 = vpop.f32.mrb[31].mxu0  ;;  %1017 = vst [vmem:[%s2949_s5 + $0x170] sm:$0xff] %v2652_v17  ;;  %v905_v25 = vpop.f32.mrb[31].mxu1 }
 0x138   :  { %v2662_v26 = vadd.f32 %v2490_v23, %v903_v18 }
 0x139   :  { %v1568_v19 = vadd.f32 %v1567_v2, %v1505_v11  ;;  %986 = vst [vmem:[%s2949_s5 + $0x78] sm:$0xff] %v776_v14  ;;  %v1436_v20 = vadd.f32 %v1435_v10, %v776_v14  ;;  %v1506_v22 = vmul.f32 %v776_v14, %v776_v14 }
 0x13a   :  { %1018 = vst [vmem:[%s2949_s5 + $0x178] sm:$0xff] %v2662_v26 }
 0x13b   :  { %v1569_v27 = vadd.f32 %v1568_v19, %v1506_v22 }
 0x13c   :  { %v780_v28 = vpop.f32.mrb[32].mxu0  ;;  %v908_v34 = vpop.f32.mrb[32].mxu1 }
 0x13d   :  { %v781_v30 = vadd.f32 %v2490_v23, %v780_v28  ;;  %v782_v31 = vpop.f32.mrb[33].mxu0  ;;  %v2674_v12 = vadd.f32 %v2490_v23, %v908_v34  ;;  %v910_v41 = vpop.f32.mrb[33].mxu1 }
 0x13e   :  { %v783_v32 = vpop.f32.mrb[34].mxu0  ;;  %v911_v42 = vpop.f32.mrb[34].mxu1 }
 0x13f   :  { %987 = vst [vmem:[%s2949_s5 + $0x80] sm:$0xff] %v781_v30  ;;  %v1437_v35 = vadd.f32 %v1436_v20, %v781_v30  ;;  %v1507_v36 = vmul.f32 %v781_v30, %v781_v30  ;;  %v784_v38 = vadd.f32 %v2490_v23, %v783_v32  ;;  %v785_v39 = vpop.f32.mrb[35].mxu0  ;;  %1019 = vst [vmem:[%s2949_s5 + $0x180] sm:$0xff] %v2674_v12  ;;  %v913_v48 = vpop.f32.mrb[35].mxu1 }
 0x140   :  { %v2684_v49 = vadd.f32 %v2490_v23, %v911_v42 }
 0x141   :  { %v1570_v43 = vadd.f32 %v1569_v27, %v1507_v36  ;;  %988 = vst [vmem:[%s2949_s5 + $0x88] sm:$0xff] %v784_v38  ;;  %v1438_v45 = vadd.f32 %v1437_v35, %v784_v38  ;;  %v1508_v46 = vmul.f32 %v784_v38, %v784_v38 }
 0x142   :  { %1020 = vst [vmem:[%s2949_s5 + $0x188] sm:$0xff] %v2684_v49 }
 0x143   :  { %v1571_v50 = vadd.f32 %v1570_v43, %v1508_v46 }
 0x144   :  { %v788_v51 = vpop.f32.mrb[36].mxu0  ;;  %v916_v54 = vpop.f32.mrb[36].mxu1 }
 0x145   :  { %v789_v13 = vadd.f32 %v2490_v23, %v788_v51  ;;  %v790_v52 = vpop.f32.mrb[37].mxu0  ;;  %v2696_v61 = vadd.f32 %v2490_v23, %v916_v54  ;;  %v918_v62 = vpop.f32.mrb[37].mxu1 }
 0x146   :  { %v791_v53 = vpop.f32.mrb[38].mxu0  ;;  %v919_v2 = vpop.f32.mrb[38].mxu1 }
 0x147   :  { %989 = vst [vmem:[%s2949_s5 + $0x90] sm:$0xff] %v789_v13  ;;  %v1439_v56 = vadd.f32 %v1438_v45, %v789_v13  ;;  %v1509_v58 = vmul.f32 %v789_v13, %v789_v13  ;;  %v792_v59 = vadd.f32 %v2490_v23, %v791_v53  ;;  %v793_v60 = vpop.f32.mrb[39].mxu0  ;;  %1021 = vst [vmem:[%s2949_s5 + $0x190] sm:$0xff] %v2696_v61  ;;  %v921_v7 = vpop.f32.mrb[39].mxu1 }
 0x148   :  { %v2706_v9 = vadd.f32 %v2490_v23, %v919_v2 }
 0x149   :  { %v1572_v3 = vadd.f32 %v1571_v50, %v1509_v58  ;;  %990 = vst [vmem:[%s2949_s5 + $0x98] sm:$0xff] %v792_v59  ;;  %v1440_v5 = vadd.f32 %v1439_v56, %v792_v59  ;;  %v1510_v6 = vmul.f32 %v792_v59, %v792_v59 }
 0x14a   :  { %1022 = vst [vmem:[%s2949_s5 + $0x198] sm:$0xff] %v2706_v9 }
 0x14b   :  { %v1573_v10 = vadd.f32 %v1572_v3, %v1510_v6 }
 0x14c   :  { %v796_v11 = vpop.f32.mrb[40].mxu0  ;;  %v924_v18 = vpop.f32.mrb[40].mxu1 }
 0x14d   :  { %v797_v14 = vadd.f32 %v2490_v23, %v796_v11  ;;  %v798_v15 = vpop.f32.mrb[41].mxu0  ;;  %v2718_v27 = vadd.f32 %v2490_v23, %v924_v18  ;;  %v926_v28 = vpop.f32.mrb[41].mxu1 }
 0x14e   :  { %v799_v0 = vpop.f32.mrb[42].mxu0  ;;  %v927_v30 = vpop.f32.mrb[42].mxu1 }
 0x14f   :  { %991 = vst [vmem:[%s2949_s5 + $0xa0] sm:$0xff] %v797_v14  ;;  %v1441_v19 = vadd.f32 %v1440_v5, %v797_v14  ;;  %v1511_v20 = vmul.f32 %v797_v14, %v797_v14  ;;  %v800_v22 = vadd.f32 %v2490_v23, %v799_v0  ;;  %v801_v25 = vpop.f32.mrb[43].mxu0  ;;  %1023 = vst [vmem:[%s2949_s5 + $0x1a0] sm:$0xff] %v2718_v27  ;;  %v929_v35 = vpop.f32.mrb[43].mxu1 }
 0x150   :  { %v2728_v36 = vadd.f32 %v2490_v23, %v927_v30 }
 0x151   :  { %v1574_v31 = vadd.f32 %v1573_v10, %v1511_v20  ;;  %992 = vst [vmem:[%s2949_s5 + $0xa8] sm:$0xff] %v800_v22  ;;  %v1442_v32 = vadd.f32 %v1441_v19, %v800_v22  ;;  %v1512_v34 = vmul.f32 %v800_v22, %v800_v22 }
 0x152   :  { %1024 = vst [vmem:[%s2949_s5 + $0x1a8] sm:$0xff] %v2728_v36 }
 0x153   :  { %v1575_v38 = vadd.f32 %v1574_v31, %v1512_v34 }
 0x154   :  { %v804_v39 = vpop.f32.mrb[44].mxu0  ;;  %v932_v45 = vpop.f32.mrb[44].mxu1 }
 0x155   :  { %v805_v41 = vadd.f32 %v2490_v23, %v804_v39  ;;  %v806_v42 = vpop.f32.mrb[45].mxu0  ;;  %v2740_v13 = vadd.f32 %v2490_v23, %v932_v45  ;;  %v934_v52 = vpop.f32.mrb[45].mxu1 }
 0x156   :  { %v807_v43 = vpop.f32.mrb[46].mxu0  ;;  %v935_v53 = vpop.f32.mrb[46].mxu1 }
 0x157   :  { %993 = vst [vmem:[%s2949_s5 + $0xb0] sm:$0xff] %v805_v41  ;;  %v1443_v46 = vadd.f32 %v1442_v32, %v805_v41  ;;  %v1513_v48 = vmul.f32 %v805_v41, %v805_v41  ;;  %v808_v50 = vadd.f32 %v2490_v23, %v807_v43  ;;  %v809_v51 = vpop.f32.mrb[47].mxu0  ;;  %1025 = vst [vmem:[%s2949_s5 + $0x1b0] sm:$0xff] %v2740_v13  ;;  %v937_v59 = vpop.f32.mrb[47].mxu1 }
 0x158   :  { %v2750_v60 = vadd.f32 %v2490_v23, %v935_v53 }
 0x159   :  { %v1576_v54 = vadd.f32 %v1575_v38, %v1513_v48  ;;  %994 = vst [vmem:[%s2949_s5 + $0xb8] sm:$0xff] %v808_v50  ;;  %v1444_v56 = vadd.f32 %v1443_v46, %v808_v50  ;;  %v1514_v58 = vmul.f32 %v808_v50, %v808_v50 }
 0x15a   :  { %1026 = vst [vmem:[%s2949_s5 + $0x1b8] sm:$0xff] %v2750_v60 }
 0x15b   :  { %v1577_v62 = vadd.f32 %v1576_v54, %v1514_v58 }
 0x15c   :  { %v812_v2 = vpop.f32.mrb[48].mxu0  ;;  %v940_v7 = vpop.f32.mrb[48].mxu1 }
 0x15d   :  { %v813_v3 = vadd.f32 %v2490_v23, %v812_v2  ;;  %v814_v5 = vpop.f32.mrb[49].mxu0  ;;  %v2762_v0 = vadd.f32 %v2490_v23, %v940_v7  ;;  %v942_v18 = vpop.f32.mrb[49].mxu1 }
 0x15e   :  { %v815_v6 = vpop.f32.mrb[50].mxu0  ;;  %v943_v19 = vpop.f32.mrb[50].mxu1 }
 0x15f   :  { %995 = vst [vmem:[%s2949_s5 + $0xc0] sm:$0xff] %v813_v3  ;;  %v1445_v10 = vadd.f32 %v1444_v56, %v813_v3  ;;  %v1515_v11 = vmul.f32 %v813_v3, %v813_v3  ;;  %v816_v14 = vadd.f32 %v2490_v23, %v815_v6  ;;  %v817_v15 = vpop.f32.mrb[51].mxu0  ;;  %1027 = vst [vmem:[%s2949_s5 + $0x1c0] sm:$0xff] %v2762_v0  ;;  %v945_v28 = vpop.f32.mrb[51].mxu1 }
 0x160   :  { %v2772_v30 = vadd.f32 %v2490_v23, %v943_v19 }
 0x161   :  { %v1578_v20 = vadd.f32 %v1577_v62, %v1515_v11  ;;  %996 = vst [vmem:[%s2949_s5 + $0xc8] sm:$0xff] %v816_v14  ;;  %v1446_v22 = vadd.f32 %v1445_v10, %v816_v14  ;;  %v1516_v25 = vmul.f32 %v816_v14, %v816_v14 }
 0x162   :  { %1028 = vst [vmem:[%s2949_s5 + $0x1c8] sm:$0xff] %v2772_v30 }
 0x163   :  { %v1579_v31 = vadd.f32 %v1578_v20, %v1516_v25 }
 0x164   :  { %v820_v32 = vpop.f32.mrb[52].mxu0  ;;  %v948_v39 = vpop.f32.mrb[52].mxu1 }
 0x165   :  { %v821_v34 = vadd.f32 %v2490_v23, %v820_v32  ;;  %v822_v35 = vpop.f32.mrb[53].mxu0  ;;  %v2784_v46 = vadd.f32 %v2490_v23, %v948_v39  ;;  %v950_v48 = vpop.f32.mrb[53].mxu1 }
 0x166   :  { %v823_v38 = vpop.f32.mrb[54].mxu0  ;;  %v951_v50 = vpop.f32.mrb[54].mxu1 }
 0x167   :  { %997 = vst [vmem:[%s2949_s5 + $0xd0] sm:$0xff] %v821_v34  ;;  %v1447_v41 = vadd.f32 %v1446_v22, %v821_v34  ;;  %v1517_v42 = vmul.f32 %v821_v34, %v821_v34  ;;  %v824_v43 = vadd.f32 %v2490_v23, %v823_v38  ;;  %v825_v45 = vpop.f32.mrb[55].mxu0  ;;  %1029 = vst [vmem:[%s2949_s5 + $0x1d0] sm:$0xff] %v2784_v46  ;;  %v953_v54 = vpop.f32.mrb[55].mxu1 }
 0x168   :  { %v2794_v56 = vadd.f32 %v2490_v23, %v951_v50 }
 0x169   :  { %v1580_v51 = vadd.f32 %v1579_v31, %v1517_v42  ;;  %998 = vst [vmem:[%s2949_s5 + $0xd8] sm:$0xff] %v824_v43  ;;  %v1448_v52 = vadd.f32 %v1447_v41, %v824_v43  ;;  %v1518_v53 = vmul.f32 %v824_v43, %v824_v43 }
 0x16a   :  { %1030 = vst [vmem:[%s2949_s5 + $0x1d8] sm:$0xff] %v2794_v56 }
 0x16b   :  { %v1581_v58 = vadd.f32 %v1580_v51, %v1518_v53 }
 0x16c   :  { %v828_v59 = vpop.f32.mrb[56].mxu0  ;;  %v956_v5 = vpop.f32.mrb[56].mxu1 }
 0x16d   :  { %v829_v62 = vadd.f32 %v2490_v23, %v828_v59  ;;  %v830_v2 = vpop.f32.mrb[57].mxu0  ;;  %v2806_v14 = vadd.f32 %v2490_v23, %v956_v5  ;;  %v958_v15 = vpop.f32.mrb[57].mxu1  ;;  %v1524_v5 = vmul.f32 %v2508_v8, %v2508_v8 }
 0x16e   :  { %v831_v3 = vpop.f32.mrb[58].mxu0  ;;  %v959_v18 = vpop.f32.mrb[58].mxu1 }
 0x16f   :  { %999 = vst [vmem:[%s2949_s5 + $0xe0] sm:$0xff] %v829_v62  ;;  %v1449_v6 = vadd.f32 %v1448_v52, %v829_v62  ;;  %v1519_v7 = vmul.f32 %v829_v62, %v829_v62  ;;  %v832_v10 = vadd.f32 %v2490_v23, %v831_v3  ;;  %v833_v11 = vpop.f32.mrb[59].mxu0  ;;  %1031 = vst [vmem:[%s2949_s5 + $0x1e0] sm:$0xff] %v2806_v14  ;;  %v961_v25 = vpop.f32.mrb[59].mxu1 }
 0x170   :  { %v2816_v28 = vadd.f32 %v2490_v23, %v959_v18  ;;  %v1523_v62 = vmul.f32 %v2498_v1, %v2498_v1 }
 0x171   :  { %v1582_v19 = vadd.f32 %v1581_v58, %v1519_v7  ;;  %1000 = vst [vmem:[%s2949_s5 + $0xe8] sm:$0xff] %v832_v10  ;;  %v1450_v20 = vadd.f32 %v1449_v6, %v832_v10  ;;  %v1520_v22 = vmul.f32 %v832_v10, %v832_v10 }
 0x172   :  { %1032 = vst [vmem:[%s2949_s5 + $0x1e8] sm:$0xff] %v2816_v28 }
 0x173   :  { %v1583_v31 = vadd.f32 %v1582_v19, %v1520_v22  ;;  %v1527_v19 = vmul.f32 %v2542_v40, %v2542_v40 }
 0x174   :  { %v836_v32 = vpop.f32.mrb[60].mxu0  ;;  %v964_v39 = vpop.f32.mrb[60].mxu1 }
 0x175   :  { %v837_v34 = vadd.f32 %v2490_v23, %v836_v32  ;;  %v838_v35 = vpop.f32.mrb[61].mxu0  ;;  %v2828_v48 = vadd.f32 %v2490_v23, %v964_v39  ;;  %v966_v50 = vpop.f32.mrb[61].mxu1 }
 0x176   :  { %v839_v38 = vpop.f32.mrb[62].mxu0  ;;  %v967_v51 = vpop.f32.mrb[62].mxu1 }
 0x177   :  { %1001 = vst [vmem:[%s2949_s5 + $0xf0] sm:$0xff] %v837_v34  ;;  %v1451_v41 = vadd.f32 %v1450_v20, %v837_v34  ;;  %v1521_v42 = vmul.f32 %v837_v34, %v837_v34  ;;  %v840_v43 = vadd.f32 %v2490_v23, %v839_v38  ;;  %v841_v45 = vpop.f32.mrb[63].mxu0  ;;  %1033 = vst [vmem:[%s2949_s5 + $0x1f0] sm:$0xff] %v2828_v48  ;;  %v969_v58 = vpop.f32.mrb[63].mxu1 }
 0x178   :  { %v2838_v59 = vadd.f32 %v2490_v23, %v967_v51  ;;  %v1525_v23 = vmul.f32 %v2520_v21, %v2520_v21 }
 0x179   :  { %v1584_v52 = vadd.f32 %v1583_v31, %v1521_v42  ;;  %1002 = vst [vmem:[%s2949_s5 + $0xf8] sm:$0xff] %v840_v43  ;;  %v1452_v53 = vadd.f32 %v1451_v41, %v840_v43  ;;  %v1522_v54 = vmul.f32 %v840_v43, %v840_v43 }
 0x17a   :  { %1034 = vst [vmem:[%s2949_s5 + $0x1f8] sm:$0xff] %v2838_v59 }
 0x17b   :  { %v1453_v2 = vadd.f32 %v1452_v53, %v2498_v1  ;;  %v1585_v3 = vadd.f32 %v1584_v52, %v1522_v54  ;;  %v1526_v1 = vmul.f32 %v2530_v29, %v2530_v29 }
 0x17d   :  { %v1454_v6 = vadd.f32 %v1453_v2, %v2508_v8  ;;  %v1586_v7 = vadd.f32 %v1585_v3, %v1523_v62  ;;  %v1528_v8 = vmul.f32 %v2552_v47, %v2552_v47 }
 0x17f   :  { %v1455_v10 = vadd.f32 %v1454_v6, %v2520_v21  ;;  %v1587_v11 = vadd.f32 %v1586_v7, %v1524_v5  ;;  %v1529_v21 = vmul.f32 %v2564_v57, %v2564_v57  ;;  %v1539_v7 = vmul.f32 %v2674_v12, %v2674_v12 }
 0x181   :  { %v1456_v15 = vadd.f32 %v1455_v10, %v2530_v29  ;;  %v1588_v18 = vadd.f32 %v1587_v11, %v1525_v23  ;;  %v1530_v29 = vmul.f32 %v2574_v63, %v2574_v63  ;;  %v1540_v11 = vmul.f32 %v2684_v49, %v2684_v49 }
 0x183   :  { %v1457_v20 = vadd.f32 %v1456_v15, %v2542_v40  ;;  %v1589_v22 = vadd.f32 %v1588_v18, %v1526_v1  ;;  %v1531_v40 = vmul.f32 %v2586_v16, %v2586_v16  ;;  %v1541_v15 = vmul.f32 %v2696_v61, %v2696_v61 }
 0x185   :  { %v1458_v25 = vadd.f32 %v1457_v20, %v2552_v47  ;;  %v1590_v31 = vadd.f32 %v1589_v22, %v1527_v19  ;;  %v1532_v47 = vmul.f32 %v2596_v24, %v2596_v24  ;;  %v1542_v19 = vmul.f32 %v2706_v9, %v2706_v9 }
 0x186   :  { %v1543_v22 = vmul.f32 %v2718_v27, %v2718_v27 }
 0x187   :  { %v1459_v32 = vadd.f32 %v1458_v25, %v2564_v57  ;;  %v1591_v34 = vadd.f32 %v1590_v31, %v1528_v8  ;;  %v1533_v57 = vmul.f32 %v2608_v37, %v2608_v37  ;;  %v1544_v25 = vmul.f32 %v2728_v36, %v2728_v36 }
 0x189   :  { %v1460_v35 = vadd.f32 %v1459_v32, %v2574_v63  ;;  %v1592_v38 = vadd.f32 %v1591_v34, %v1529_v21  ;;  %v1534_v63 = vmul.f32 %v2618_v44, %v2618_v44  ;;  %v1545_v21 = vmul.f32 %v2740_v13, %v2740_v13 }
 0x18a   :  { %v1546_v34 = vmul.f32 %v2750_v60, %v2750_v60 }
 0x18b   :  { %v1593_v39 = vadd.f32 %v1592_v38, %v1530_v29  ;;  %v1461_v41 = vadd.f32 %v1460_v35, %v2586_v16  ;;  %v1535_v16 = vmul.f32 %v2630_v55, %v2630_v55  ;;  %v1547_v35 = vmul.f32 %v2762_v0, %v2762_v0 }
 0x18d   :  { %v1462_v42 = vadd.f32 %v1461_v41, %v2596_v24  ;;  %v1594_v43 = vadd.f32 %v1593_v39, %v1531_v40  ;;  %v1536_v24 = vmul.f32 %v2640_v33, %v2640_v33  ;;  %v1548_v40 = vmul.f32 %v2772_v30, %v2772_v30 }
 0x18e   :  { %v1549_v41 = vmul.f32 %v2784_v46, %v2784_v46 }
 0x18f   :  { %v1463_v45 = vadd.f32 %v1462_v42, %v2608_v37  ;;  %v1595_v50 = vadd.f32 %v1594_v43, %v1532_v47  ;;  %v1537_v37 = vmul.f32 %v2652_v17, %v2652_v17  ;;  %v1550_v42 = vmul.f32 %v2794_v56, %v2794_v56 }
 0x191   :  { %v1464_v51 = vadd.f32 %v1463_v45, %v2618_v44  ;;  %v1596_v52 = vadd.f32 %v1595_v50, %v1533_v57  ;;  %v1538_v44 = vmul.f32 %v2662_v26, %v2662_v26  ;;  %v1551_v57 = vmul.f32 %v2806_v14, %v2806_v14 }
 0x192   :  { %v1552_v50 = vmul.f32 %v2816_v28, %v2816_v28 }
 0x193   :  { %v1465_v53 = vadd.f32 %v1464_v51, %v2630_v55  ;;  %v1597_v54 = vadd.f32 %v1596_v52, %v1534_v63 }
 0x195   :  { %v1466_v58 = vadd.f32 %v1465_v53, %v2640_v33  ;;  %v1598_v62 = vadd.f32 %v1597_v54, %v1535_v16  ;;  %v1554_v16 = vmul.f32 %v2838_v59, %v2838_v59 }
 0x197   :  { %v1467_v2 = vadd.f32 %v1466_v58, %v2652_v17  ;;  %v1599_v3 = vadd.f32 %v1598_v62, %v1536_v24 }
 0x199   :  { %v1468_v5 = vadd.f32 %v1467_v2, %v2662_v26  ;;  %v1600_v6 = vadd.f32 %v1599_v3, %v1537_v37 }
 0x19b   :  { %v1469_v55 = vadd.f32 %v1468_v5, %v2674_v12  ;;  %v1601_v23 = vadd.f32 %v1600_v6, %v1538_v44 }
 0x19d   :  { %v1602_v33 = vadd.f32 %v1601_v23, %v1539_v7  ;;  %v1470_v10 = vadd.f32 %v1469_v55, %v2684_v49 }
 0x19f   :  { %v1603_v17 = vadd.f32 %v1602_v33, %v1540_v11  ;;  %v1471_v1 = vadd.f32 %v1470_v10, %v2696_v61 }
 0x1a1   :  { %v1604_v26 = vadd.f32 %v1603_v17, %v1541_v15  ;;  %v1472_v18 = vadd.f32 %v1471_v1, %v2706_v9 }
 0x1a3   :  { %v1605_v12 = vadd.f32 %v1604_v26, %v1542_v19  ;;  %v1473_v20 = vadd.f32 %v1472_v18, %v2718_v27 }
 0x1a5   :  { %v1606_v8 = vadd.f32 %v1605_v12, %v1543_v22  ;;  %v1474_v49 = vadd.f32 %v1473_v20, %v2728_v36 }
 0x1a7   :  { %v1607_v31 = vadd.f32 %v1606_v8, %v1544_v25  ;;  %v1475_v61 = vadd.f32 %v1474_v49, %v2740_v13 }
 0x1a9   :  { %v1608_v32 = vadd.f32 %v1607_v31, %v1545_v21  ;;  %v1476_v9 = vadd.f32 %v1475_v61, %v2750_v60 }
 0x1ab   :  { %v1609_v29 = vadd.f32 %v1608_v32, %v1546_v34  ;;  %v1477_v27 = vadd.f32 %v1476_v9, %v2762_v0 }
 0x1ad   :  { %v1610_v38 = vadd.f32 %v1609_v29, %v1547_v35  ;;  %v1478_v36 = vadd.f32 %v1477_v27, %v2772_v30 }
 0x1af   :  { %v1611_v39 = vadd.f32 %v1610_v38, %v1548_v40  ;;  %v1479_v13 = vadd.f32 %v1478_v36, %v2784_v46  ;;  %v1553_v46 = vmul.f32 %v2828_v48, %v2828_v48 }
 0x1b1   :  { %v1612_v47 = vadd.f32 %v1611_v39, %v1549_v41  ;;  %v1480_v60 = vadd.f32 %v1479_v13, %v2794_v56 }
 0x1b3   :  { %v1613_v43 = vadd.f32 %v1612_v47, %v1550_v42  ;;  %v1481_v0 = vadd.f32 %v1480_v60, %v2806_v14 }
 0x1b5   :  { %v1614_v45 = vadd.f32 %v1613_v43, %v1551_v57  ;;  %v1482_v30 = vadd.f32 %v1481_v0, %v2816_v28 }
 0x1b7   :  { %v1615_v63 = vadd.f32 %v1614_v45, %v1552_v50  ;;  %v1483_v51 = vadd.f32 %v1482_v30, %v2828_v48 }
 0x1b9   :  { %v1616_v52 = vadd.f32 %v1615_v63, %v1553_v46  ;;  %v1484_v56 = vadd.f32 %v1483_v51, %v2838_v59 }
 0x1bb   :  { %v1485_v53 = vrot.slane %v1484_v56, 4  ;;  %v1617_v14 = vadd.f32 %v1616_v52, %v1554_v16 }
 0x1bd   :  { %v1486_v54 = vadd.f32 %v1485_v53, %v1484_v56  ;;  %v1618_v24 = vrot.slane %v1617_v14, 4 }
 0x1bf   :  { %v1487_v58 = vrot.slane %v1486_v54, 2  ;;  %v1619_v62 = vadd.f32 %v1618_v24, %v1617_v14 }
 0x1c1   :  { %v1488_v37 = vadd.f32 %v1487_v58, %v1486_v54  ;;  %v1620_v28 = vrot.slane %v1619_v62, 2 }
 0x1c3   :  { %v1489_v2 = vrot.slane %v1488_v37, 1  ;;  %v1621_v3 = vadd.f32 %v1620_v28, %v1619_v62 }
 0x1c5   :  { %v1622_v44 = vrot.slane %v1621_v3, 1  ;;  %v1490_v48 = vadd.f32 %v1489_v2, %v1488_v37 }
 0x1c7   :  { %v1623_v5 = vadd.f32 %v1622_v44, %v1621_v3 }
 0x1c9   :  { %v1625_v6 = vsel %vm1624_vm3, %v1490_v48, %v1623_v5 }
 0x1ca   :  { %1626 = vst [vmem:[%s2950_s6] sm:$0xff] %v1625_v6 }

// kernel: densenet_forward.16
= control target key start
LH: loop header
LB: loop body
LE: loop exit
PB: predicated region body
PF: predicated region fallthrough
CT: control target
= control target key end

     0   :  { %vm156_vm0 = vcmask 130048   ;;  %s712_s3 = inlined_call_operand.vmem [shape: bf16[16,128], index: 3, kind: input, shape index: {}]   ;;  %s713_s0 = inlined_call_operand.vmem [shape: f32[128,16], index: 0, kind: input, shape index: {}]   ;;  %s714_s1 = inlined_call_operand.vmem [shape: f32[1,16], index: 1, kind: input, shape index: {}]   ;;  %s715_s2 = inlined_call_operand.vmem [shape: f32[1,16], index: 2, kind: input, shape index: {}]   ;;  %s716_s4 = inlined_call_operand.vmem [shape: f32[1,128], index: 4, kind: input, shape index: {}]   ;;  %s717_s5 = inlined_call_operand.vmem [shape: f32[128,128], index: 5, kind: output, shape index: {0}]   ;;  %s718_s6 = inlined_call_operand.vmem [shape: f32[8,128], index: 6, kind: output, shape index: {1}]  }
   0x1   :  { %v503_v0 = vld [vmem:[%s712_s3] sm:$0xff]   ;;  %v24_v2 = vld [vmem:[%s713_s0 + $0x8] sm:$0xff]  ;;  %v25_v7 = vld [vmem:[%s713_s0 + $0x10] sm:$0xff] }
   0x2   :  { %v23_v1 = vld [vmem:[%s713_s0] sm:$0xff]  ;;  %483 = vmatprep.subr.bf16.mxu0 %v503_v0  ;;  %v26_v8 = vld [vmem:[%s713_s0 + $0x18] sm:$0xff]  ;;  %501 = vmatprep.subr.bf16.mxu1 %v503_v0  ;;  %v28_v12 = vld [vmem:[%s713_s0 + $0x28] sm:$0xff] }
   0x3   :  { %v551_v3 = vld [vmem:[%s714_s1] ss:$0 sm:$0xff]  ;;  %484 = vmatpush3.bf16.msra.mxu0 %v503_v0  ;;  %v29_v13 = vld [vmem:[%s713_s0 + $0x30] sm:$0xff]  ;;  %502 = vmatpush3.bf16.msra.mxu1 %v503_v0  ;;  %v30_v18 = vld [vmem:[%s713_s0 + $0x38] sm:$0xff] }
   0x4   :  { %v46_v4 = vmul.f32 %v551_v3, %v23_v1  ;;  %v47_v5 = vmul.f32 %v551_v3, %v24_v2  ;;  %v558_v6 = vld [vmem:[%s715_s2] ss:$0 sm:$0xff]  ;;  %v48_v9 = vmul.f32 %v551_v3, %v25_v7  ;;  %v49_v10 = vmul.f32 %v551_v3, %v26_v8  ;;  %v32_v36 = vld [vmem:[%s713_s0 + $0x48] sm:$0xff]  ;;  %v33_v37 = vld [vmem:[%s713_s0 + $0x50] sm:$0xff] }
   0x5   :  { %v27_v11 = vld [vmem:[%s713_s0 + $0x20] sm:$0xff]  ;;  %v51_v17 = vmul.f32 %v551_v3, %v28_v12  ;;  %v52_v21 = vmul.f32 %v551_v3, %v29_v13  ;;  %v53_v22 = vmul.f32 %v551_v3, %v30_v18  ;;  %v34_v43 = vld [vmem:[%s713_s0 + $0x58] sm:$0xff]  ;;  %v55_v46 = vmul.f32 %v551_v3, %v32_v36  ;;  %v36_v49 = vld [vmem:[%s713_s0 + $0x68] sm:$0xff] }
   0x6   :  { %v69_v14 = vadd.f32 %v558_v6, %v46_v4  ;;  %v70_v15 = vadd.f32 %v558_v6, %v47_v5  ;;  %v50_v16 = vmul.f32 %v551_v3, %v27_v11  ;;  %v71_v19 = vadd.f32 %v558_v6, %v48_v9  ;;  %v31_v35 = vld [vmem:[%s713_s0 + $0x40] sm:$0xff]  ;;  %v37_v61 = vld [vmem:[%s713_s0 + $0x70] sm:$0xff]  ;;  %v38_v8 = vld [vmem:[%s713_s0 + $0x78] sm:$0xff] }
   0x7   :  { %v72_v20 = vadd.f32 %v558_v6, %v49_v10  ;;  %v74_v30 = vadd.f32 %v558_v6, %v51_v17  ;;  %v75_v34 = vadd.f32 %v558_v6, %v52_v21  ;;  %v76_v41 = vadd.f32 %v558_v6, %v53_v22  ;;  %v35_v48 = vld [vmem:[%s713_s0 + $0x60] sm:$0xff] }
   0x8   :  { %vm85_vm1 = vcmp.ge.f32.partialorder %v69_v14, 0.0  ;;  %vm86_vm2 = vcmp.ge.f32.partialorder %v70_v15, 0.0  ;;  %v101_v23 = vmul.f32 0.01, %v69_v14  ;;  %v102_v24 = vmul.f32 0.01, %v70_v15 }
   0x9   :  { %vm87_vm3 = vcmp.ge.f32.partialorder %v71_v19, 0.0  ;;  %vm88_vm4 = vcmp.ge.f32.partialorder %v72_v20, 0.0  ;;  %v103_v25 = vmul.f32 0.01, %v71_v19  ;;  %v104_v26 = vmul.f32 0.01, %v72_v20 }
   0xa   :  { %v117_v27 = vsel %vm85_vm1, %v69_v14, %v101_v23  ;;  %v118_v28 = vsel %vm86_vm2, %v70_v15, %v102_v24  ;;  %v73_v29 = vadd.f32 %v558_v6, %v50_v16  ;;  %vm90_vm6 = vcmp.ge.f32.partialorder %v74_v30, 0.0 }
   0xb   :  { %v133_v31 = vpack.c.bf16 %v118_v28, %v117_v27  ;;  %v119_v32 = vsel %vm87_vm3, %v71_v19, %v103_v25  ;;  %v120_v33 = vsel %vm88_vm4, %v72_v20, %v104_v26  ;;  %v106_v40 = vmul.f32 0.01, %v74_v30  ;;  %v643_v28 = vld [vmem:[%s716_s4] ss:$0 sm:$0xff] }
   0xc   :  { %v134_v38 = vpack.c.bf16 %v120_v33, %v119_v32  ;;  %vm89_vm5 = vcmp.ge.f32.partialorder %v73_v29, 0.0  ;;  %v105_v39 = vmul.f32 0.01, %v73_v29  ;;  %vm91_vm7 = vcmp.ge.f32.partialorder %v75_v34, 0.0 }
   0xd   :  { %485 = vmatprep.mubr.msk.bf16.mxu0 %vm156_vm0, %v133_v31  ;;  %v107_v42 = vmul.f32 0.01, %v75_v34  ;;  %v54_v45 = vmul.f32 %v551_v3, %v31_v35  ;;  %v56_v47 = vmul.f32 %v551_v3, %v33_v37  ;;  %v122_v50 = vsel %vm90_vm6, %v74_v30, %v106_v40 }
   0xe   :  { %486 = vmatmul.mubr.msk.bf16.vlgmr.msra.gmra.mrb[0].mxu0 %vm156_vm0, %v134_v38  ;;  %v121_v44 = vsel %vm89_vm5, %v73_v29, %v105_v39  ;;  %vm92_vm8 = vcmp.ge.f32.partialorder %v76_v41, 0.0  ;;  %v108_v51 = vmul.f32 0.01, %v76_v41  ;;  %v78_v55 = vadd.f32 %v558_v6, %v55_v46 }
   0xf   :  { %v123_v52 = vsel %vm91_vm7, %v75_v34, %v107_v42  ;;  %v135_v53 = vpack.c.bf16 %v122_v50, %v121_v44  ;;  %v77_v54 = vadd.f32 %v558_v6, %v54_v45  ;;  %v57_v56 = vmul.f32 %v551_v3, %v34_v43 }
  0x10   :  { %v124_v57 = vsel %vm92_vm8, %v76_v41, %v108_v51  ;;  %v79_v58 = vadd.f32 %v558_v6, %v56_v47  ;;  %v58_v59 = vmul.f32 %v551_v3, %v35_v48  ;;  %v59_v60 = vmul.f32 %v551_v3, %v36_v49 }
  0x11   :  { %489 = vmatprep.mubr.msk.bf16.mxu0 %vm156_vm0, %v135_v53  ;;  %v136_v62 = vpack.c.bf16 %v124_v57, %v123_v52  ;;  %vm93_vm9 = vcmp.ge.f32.partialorder %v77_v54, 0.0  ;;  %vm94_vm10 = vcmp.ge.f32.partialorder %v78_v55, 0.0  ;;  %v109_v63 = vmul.f32 0.01, %v77_v54 }
  0x12   :  { %v110_v0 = vmul.f32 0.01, %v78_v55  ;;  %v80_v1 = vadd.f32 %v558_v6, %v57_v56  ;;  %vm95_vm11 = vcmp.ge.f32.partialorder %v79_v58, 0.0  ;;  %v111_v2 = vmul.f32 0.01, %v79_v58 }
  0x13   :  { %v125_v4 = vsel %vm93_vm9, %v77_v54, %v109_v63  ;;  %v81_v5 = vadd.f32 %v558_v6, %v58_v59  ;;  %v82_v7 = vadd.f32 %v558_v6, %v59_v60  ;;  %v60_v9 = vmul.f32 %v551_v3, %v37_v61 }
  0x14   :  { %v126_v10 = vsel %vm94_vm10, %v78_v55, %v110_v0  ;;  %vm96_vm12 = vcmp.ge.f32.partialorder %v80_v1, 0.0  ;;  %v112_v11 = vmul.f32 0.01, %v80_v1  ;;  %v127_v12 = vsel %vm95_vm11, %v79_v58, %v111_v2 }
  0x15   :  { %v137_v13 = vpack.c.bf16 %v126_v10, %v125_v4  ;;  %vm97_vm13 = vcmp.ge.f32.partialorder %v81_v5, 0.0  ;;  %vm98_vm14 = vcmp.ge.f32.partialorder %v82_v7, 0.0  ;;  %v113_v14 = vmul.f32 0.01, %v81_v5 }
  0x16   :  { %490 = vmatmul.mubr.msk.bf16.gmra.mrb[4].mxu0 %vm156_vm0, %v136_v62  ;;  %v128_v15 = vsel %vm96_vm12, %v80_v1, %v112_v11  ;;  %v114_v16 = vmul.f32 0.01, %v82_v7  ;;  %v61_v17 = vmul.f32 %v551_v3, %v38_v8  ;;  %v83_v18 = vadd.f32 %v558_v6, %v60_v9 }
  0x17   :  { %493 = vmatprep.mubr.msk.bf16.mxu1 %vm156_vm0, %v137_v13  ;;  %v138_v19 = vpack.c.bf16 %v128_v15, %v127_v12  ;;  %v129_v20 = vsel %vm97_vm13, %v81_v5, %v113_v14 }
  0x18   :  { %v130_v21 = vsel %vm98_vm14, %v82_v7, %v114_v16  ;;  %v84_v22 = vadd.f32 %v558_v6, %v61_v17  ;;  %vm99_vm15 = vcmp.ge.f32.partialorder %v83_v18, 0.0  ;;  %v115_v23 = vmul.f32 0.01, %v83_v18 }
  0x19   :  { %494 = vmatmul.mubr.msk.bf16.vlgmr.msra.gmra.mrb[0].mxu1 %vm156_vm0, %v138_v19  ;;  %v139_v24 = vpack.c.bf16 %v130_v21, %v129_v20 }
  0x1a   :  { %vm100_vm1 = vcmp.ge.f32.partialorder %v84_v22, 0.0  ;;  %v116_v25 = vmul.f32 0.01, %v84_v22  ;;  %v131_v26 = vsel %vm99_vm15, %v83_v18, %v115_v23 }
  0x1b   :  { %497 = vmatprep.mubr.msk.bf16.mxu1 %vm156_vm0, %v139_v24 }
  0x1c   :  { %v132_v3 = vsel %vm100_vm1, %v84_v22, %v116_v25 }
  0x1d   :  { %v140_v27 = vpack.c.bf16 %v132_v3, %v131_v26 }
  0x21   :  { %498 = vmatmul.mubr.msk.bf16.gmra.mrb[4].mxu1 %vm156_vm0, %v140_v27 }
  0xe1   :  { %v487_v6 = vpop.f32.mrb[0].mxu0 }
  0xe2   :  { %v224_v29 = vadd.f32 %v487_v6, %v643_v28  ;;  %v215_v30 = vpop.f32.mrb[1].mxu0 }
  0xe3   :  { %v216_v31 = vadd.f32 %v643_v28, %v215_v30  ;;  %v488_v32 = vpop.f32.mrb[2].mxu0 }
  0xe4   :  { %280 = vst [vmem:[%s717_s5 + $0x10] sm:$0xff] %v224_v29  ;;  %v227_v33 = vadd.f32 %v488_v32, %v643_v28  ;;  %v218_v34 = vpop.f32.mrb[3].mxu0  ;;  %v416_v39 = vmul.f32 %v224_v29, %v224_v29 }
  0xe5   :  { %278 = vst [vmem:[%s717_s5] sm:$0xff] %v216_v31  ;;  %v219_v35 = vadd.f32 %v643_v28, %v218_v34  ;;  %v414_v36 = vmul.f32 %v216_v31, %v216_v31 }
  0xe6   :  { %281 = vst [vmem:[%s717_s5 + $0x18] sm:$0xff] %v227_v33  ;;  %v417_v45 = vmul.f32 %v227_v33, %v227_v33 }
  0xe7   :  { %279 = vst [vmem:[%s717_s5 + $0x8] sm:$0xff] %v219_v35  ;;  %v393_v37 = vadd.f32 %v219_v35, %v216_v31  ;;  %v415_v38 = vmul.f32 %v219_v35, %v219_v35 }
  0xe9   :  { %v394_v40 = vadd.f32 %v393_v37, %v224_v29  ;;  %v430_v41 = vadd.f32 %v415_v38, %v414_v36  ;;  %v491_v42 = vpop.f32.mrb[4].mxu0 }
  0xea   :  { %v240_v43 = vadd.f32 %v491_v42, %v643_v28  ;;  %v231_v44 = vpop.f32.mrb[5].mxu0 }
  0xeb   :  { %v431_v46 = vadd.f32 %v430_v41, %v416_v39  ;;  %v232_v47 = vadd.f32 %v643_v28, %v231_v44  ;;  %v395_v48 = vadd.f32 %v394_v40, %v227_v33  ;;  %v492_v49 = vpop.f32.mrb[6].mxu0 }
  0xec   :  { %284 = vst [vmem:[%s717_s5 + $0x30] sm:$0xff] %v240_v43  ;;  %v243_v50 = vadd.f32 %v492_v49, %v643_v28  ;;  %v234_v51 = vpop.f32.mrb[7].mxu0  ;;  %v495_v56 = vpop.f32.mrb[0].mxu1  ;;  %v420_v2 = vmul.f32 %v240_v43, %v240_v43 }
  0xed   :  { %282 = vst [vmem:[%s717_s5 + $0x20] sm:$0xff] %v232_v47  ;;  %v396_v52 = vadd.f32 %v395_v48, %v232_v47  ;;  %v418_v53 = vmul.f32 %v232_v47, %v232_v47  ;;  %v432_v54 = vadd.f32 %v431_v46, %v417_v45  ;;  %v235_v55 = vadd.f32 %v643_v28, %v234_v51  ;;  %v247_v58 = vpop.f32.mrb[1].mxu1 }
  0xee   :  { %285 = vst [vmem:[%s717_s5 + $0x38] sm:$0xff] %v243_v50  ;;  %v256_v57 = vadd.f32 %v495_v56, %v643_v28  ;;  %v248_v62 = vadd.f32 %v643_v28, %v247_v58  ;;  %v496_v63 = vpop.f32.mrb[2].mxu1  ;;  %v421_v8 = vmul.f32 %v243_v50, %v243_v50  ;;  %v295_v45 = vlaneseq }
  0xef   :  { %v433_v59 = vadd.f32 %v432_v54, %v418_v53  ;;  %283 = vst [vmem:[%s717_s5 + $0x28] sm:$0xff] %v235_v55  ;;  %v397_v60 = vadd.f32 %v396_v52, %v235_v55  ;;  %v419_v61 = vmul.f32 %v235_v55, %v235_v55  ;;  %v259_v0 = vadd.f32 %v496_v63, %v643_v28  ;;  %v250_v1 = vpop.f32.mrb[3].mxu1 }
  0xf0   :  { %288 = vst [vmem:[%s717_s5 + $0x50] sm:$0xff] %v256_v57  ;;  %286 = vst [vmem:[%s717_s5 + $0x40] sm:$0xff] %v248_v62  ;;  %v251_v7 = vadd.f32 %v643_v28, %v250_v1  ;;  %v422_v11 = vmul.f32 %v248_v62, %v248_v62  ;;  %v424_v24 = vmul.f32 %v256_v57, %v256_v57 }
  0xf1   :  { %v398_v4 = vadd.f32 %v397_v60, %v240_v43  ;;  %v434_v5 = vadd.f32 %v433_v59, %v419_v61  ;;  %289 = vst [vmem:[%s717_s5 + $0x58] sm:$0xff] %v259_v0  ;;  %v425_v27 = vmul.f32 %v259_v0, %v259_v0 }
  0xf2   :  { %287 = vst [vmem:[%s717_s5 + $0x48] sm:$0xff] %v251_v7  ;;  %v423_v19 = vmul.f32 %v251_v7, %v251_v7 }
  0xf3   :  { %v435_v9 = vadd.f32 %v434_v5, %v420_v2  ;;  %v399_v10 = vadd.f32 %v398_v4, %v243_v50  ;;  %v296_v50 = vshrl.u32 %v295_v45, 7 }
  0xf4   :  { %v499_v14 = vpop.f32.mrb[4].mxu1 }
  0xf5   :  { %v400_v12 = vadd.f32 %v399_v10, %v248_v62  ;;  %v436_v13 = vadd.f32 %v435_v9, %v421_v8  ;;  %v272_v15 = vadd.f32 %v499_v14, %v643_v28  ;;  %v263_v16 = vpop.f32.mrb[5].mxu1  ;;  %vm451_vm0 = vcmp.lt.s32.totalorder %v296_v50, 4 }
  0xf6   :  { %v264_v20 = vadd.f32 %v643_v28, %v263_v16  ;;  %v500_v21 = vpop.f32.mrb[6].mxu1 }
  0xf7   :  { %v437_v17 = vadd.f32 %v436_v13, %v422_v11  ;;  %v401_v18 = vadd.f32 %v400_v12, %v251_v7  ;;  %292 = vst [vmem:[%s717_s5 + $0x70] sm:$0xff] %v272_v15  ;;  %v275_v22 = vadd.f32 %v500_v21, %v643_v28  ;;  %v266_v23 = vpop.f32.mrb[7].mxu1  ;;  %v428_v36 = vmul.f32 %v272_v15, %v272_v15 }
  0xf8   :  { %290 = vst [vmem:[%s717_s5 + $0x60] sm:$0xff] %v264_v20  ;;  %v267_v3 = vadd.f32 %v643_v28, %v266_v23  ;;  %v426_v30 = vmul.f32 %v264_v20, %v264_v20 }
  0xf9   :  { %v402_v25 = vadd.f32 %v401_v18, %v256_v57  ;;  %v438_v26 = vadd.f32 %v437_v17, %v423_v19  ;;  %293 = vst [vmem:[%s717_s5 + $0x78] sm:$0xff] %v275_v22  ;;  %v429_v38 = vmul.f32 %v275_v22, %v275_v22 }
  0xfa   :  { %291 = vst [vmem:[%s717_s5 + $0x68] sm:$0xff] %v267_v3  ;;  %v427_v35 = vmul.f32 %v267_v3, %v267_v3 }
  0xfb   :  { %v439_v6 = vadd.f32 %v438_v26, %v424_v24  ;;  %v403_v29 = vadd.f32 %v402_v25, %v259_v0 }
  0xfd   :  { %v404_v31 = vadd.f32 %v403_v29, %v264_v20  ;;  %v440_v32 = vadd.f32 %v439_v6, %v425_v27 }
  0xff   :  { %v441_v33 = vadd.f32 %v440_v32, %v426_v30  ;;  %v405_v34 = vadd.f32 %v404_v31, %v267_v3 }
 0x101   :  { %v406_v37 = vadd.f32 %v405_v34, %v272_v15  ;;  %v442_v28 = vadd.f32 %v441_v33, %v427_v35 }
 0x103   :  { %v407_v39 = vadd.f32 %v406_v37, %v275_v22  ;;  %v443_v40 = vadd.f32 %v442_v28, %v428_v36 }
 0x105   :  { %v408_v41 = vrot.slane %v407_v39, 4  ;;  %v444_v42 = vadd.f32 %v443_v40, %v429_v38 }
 0x107   :  { %v409_v43 = vadd.f32 %v408_v41, %v407_v39  ;;  %v445_v44 = vrot.slane %v444_v42, 4 }
 0x109   :  { %v410_v46 = vrot.slane %v409_v43, 2  ;;  %v446_v47 = vadd.f32 %v445_v44, %v444_v42 }
 0x10b   :  { %v411_v48 = vadd.f32 %v410_v46, %v409_v43  ;;  %v447_v49 = vrot.slane %v446_v47, 2 }
 0x10d   :  { %v412_v51 = vrot.slane %v411_v48, 1  ;;  %v448_v52 = vadd.f32 %v447_v49, %v446_v47 }
 0x10f   :  { %v449_v53 = vrot.slane %v448_v52, 1  ;;  %v413_v54 = vadd.f32 %v412_v51, %v411_v48 }
 0x111   :  { %v450_v55 = vadd.f32 %v449_v53, %v448_v52 }
 0x113   :  { %v452_v56 = vsel %vm451_vm0, %v413_v54, %v450_v55 }
 0x114   :  { %453 = vst [vmem:[%s718_s6] sm:$0xff] %v452_v56 }

// kernel: densenet_forward.18
= control target key start
LH: loop header
LB: loop body
LE: loop exit
PB: predicated region body
PF: predicated region fallthrough
CT: control target
= control target key end

     0   :  { %vm185_vm0 = vcmask 1043456   ;;  %vm160_vm1 = vcmask 195584   ;;  %s735_s3 = inlined_call_operand.vmem [shape: bf16[24,128], index: 3, kind: input, shape index: {}]   ;;  %s736_s0 = inlined_call_operand.vmem [shape: f32[128,24], index: 0, kind: input, shape index: {}]   ;;  %s737_s1 = inlined_call_operand.vmem [shape: f32[1,24], index: 1, kind: input, shape index: {}]   ;;  %s738_s2 = inlined_call_operand.vmem [shape: f32[1,24], index: 2, kind: input, shape index: {}]   ;;  %s739_s4 = inlined_call_operand.vmem [shape: f32[1,128], index: 4, kind: input, shape index: {}]   ;;  %s740_s5 = inlined_call_operand.vmem [shape: f32[128,128], index: 5, kind: output, shape index: {0}]   ;;  %s741_s6 = inlined_call_operand.vmem [shape: f32[8,128], index: 6, kind: output, shape index: {1}]  }
   0x1   :  { %v519_v0 = vld [vmem:[%s735_s3] sm:$0xff]   ;;  %v520_v1 = vld [vmem:[%s735_s3 + $0x8] ss:$0 sps:$4 sm:$0xff]   ;;  %v25_v8 = vld [vmem:[%s736_s0 + $0x10] sm:$0xff] }
   0x2   :  { %v23_v2 = vld [vmem:[%s736_s0] sm:$0xff]  ;;  %493 = vmatprep.subr.bf16.mxu0 %v519_v0  ;;  %v24_v3 = vld [vmem:[%s736_s0 + $0x8] sm:$0xff]  ;;  %513 = vmatprep.subr.bf16.mxu1 %v519_v0  ;;  %v26_v9 = vld [vmem:[%s736_s0 + $0x18] sm:$0xff]  ;;  %v187_v11 = vsel %vm185_vm0, %v520_v1, 0 }
   0x3   :  { %v571_v4 = vld [vmem:[%s737_s1] ss:$0 sm:$0xff]  ;;  %494 = vmatpush3.bf16.msra.mxu0 %v519_v0  ;;  %515 = vmatpush3.bf16.msra.mxu1 %v519_v0  ;;  %v28_v14 = vld [vmem:[%s736_s0 + $0x28] sm:$0xff]  ;;  %v29_v16 = vld [vmem:[%s736_s0 + $0x30] sm:$0xff] }
   0x4   :  { %v576_v5 = vld [vmem:[%s738_s2] ss:$0 sm:$0xff]  ;;  %v46_v6 = vmul.f32 %v571_v4, %v23_v2  ;;  %v47_v7 = vmul.f32 %v571_v4, %v24_v3  ;;  %517 = vmatprep.subr.msk.bf16.mxu0 %vm185_vm0, %v520_v1  ;;  %v48_v12 = vmul.f32 %v571_v4, %v25_v8  ;;  %v49_v13 = vmul.f32 %v571_v4, %v26_v9  ;;  %v30_v17 = vld [vmem:[%s736_s0 + $0x38] sm:$0xff]  ;;  %v32_v34 = vld [vmem:[%s736_s0 + $0x48] sm:$0xff] }
   0x5   :  { %v27_v10 = vld [vmem:[%s736_s0 + $0x20] sm:$0xff]  ;;  %518 = vmatprep.subr.msk.bf16.mxu1 %vm185_vm0, %v520_v1  ;;  %v51_v20 = vmul.f32 %v571_v4, %v28_v14  ;;  %v52_v21 = vmul.f32 %v571_v4, %v29_v16  ;;  %v53_v25 = vmul.f32 %v571_v4, %v30_v17  ;;  %v33_v39 = vld [vmem:[%s736_s0 + $0x50] sm:$0xff]  ;;  %v55_v46 = vmul.f32 %v571_v4, %v32_v34  ;;  %v34_v47 = vld [vmem:[%s736_s0 + $0x58] sm:$0xff] }
   0x6   :  { %v50_v15 = vmul.f32 %v571_v4, %v27_v10  ;;  %v69_v18 = vadd.f32 %v576_v5, %v46_v6  ;;  %v70_v19 = vadd.f32 %v576_v5, %v47_v7  ;;  %v71_v22 = vadd.f32 %v576_v5, %v48_v12  ;;  %v31_v33 = vld [vmem:[%s736_s0 + $0x40] sm:$0xff]  ;;  %v36_v59 = vld [vmem:[%s736_s0 + $0x68] sm:$0xff]  ;;  %v37_v2 = vld [vmem:[%s736_s0 + $0x70] sm:$0xff] }
   0x7   :  { %v72_v23 = vadd.f32 %v576_v5, %v49_v13  ;;  %496 = vmatpush3.bf16.msra.mxu0 %v187_v11  ;;  %516 = vmatpush3.bf16.msra.mxu1 %v187_v11  ;;  %v74_v32 = vadd.f32 %v576_v5, %v51_v20  ;;  %v75_v42 = vadd.f32 %v576_v5, %v52_v21  ;;  %v35_v51 = vld [vmem:[%s736_s0 + $0x60] sm:$0xff]  ;;  %v38_v8 = vld [vmem:[%s736_s0 + $0x78] sm:$0xff] }
   0x8   :  { %v73_v24 = vadd.f32 %v576_v5, %v50_v15  ;;  %vm85_vm2 = vcmp.ge.f32.partialorder %v69_v18, 0.0  ;;  %vm86_vm3 = vcmp.ge.f32.partialorder %v70_v19, 0.0  ;;  %v101_v26 = vmul.f32 0.01, %v69_v18 }
   0x9   :  { %v102_v27 = vmul.f32 0.01, %v70_v19  ;;  %vm87_vm4 = vcmp.ge.f32.partialorder %v71_v22, 0.0  ;;  %vm88_vm5 = vcmp.ge.f32.partialorder %v72_v23, 0.0  ;;  %v103_v28 = vmul.f32 0.01, %v71_v22 }
   0xa   :  { %v104_v29 = vmul.f32 0.01, %v72_v23  ;;  %v117_v30 = vsel %vm85_vm2, %v69_v18, %v101_v26  ;;  %vm89_vm6 = vcmp.ge.f32.partialorder %v73_v24, 0.0  ;;  %v105_v38 = vmul.f32 0.01, %v73_v24 }
   0xb   :  { %v118_v31 = vsel %vm86_vm3, %v70_v19, %v102_v27  ;;  %v119_v36 = vsel %vm87_vm4, %v71_v22, %v103_v28  ;;  %vm90_vm7 = vcmp.ge.f32.partialorder %v74_v32, 0.0  ;;  %v106_v41 = vmul.f32 0.01, %v74_v32 }
   0xc   :  { %v133_v35 = vpack.c.bf16 %v118_v31, %v117_v30  ;;  %v120_v37 = vsel %vm88_vm5, %v72_v23, %v104_v29  ;;  %v121_v43 = vsel %vm89_vm6, %v73_v24, %v105_v38  ;;  %v76_v44 = vadd.f32 %v576_v5, %v53_v25  ;;  %v666_v30 = vld [vmem:[%s739_s4] ss:$0 sm:$0xff] }
   0xd   :  { %v134_v40 = vpack.c.bf16 %v120_v37, %v119_v36  ;;  %v54_v45 = vmul.f32 %v571_v4, %v31_v33  ;;  %v122_v48 = vsel %vm90_vm7, %v74_v32, %v106_v41  ;;  %vm91_vm8 = vcmp.ge.f32.partialorder %v75_v42, 0.0 }
   0xe   :  { %497 = vmatprep.mubr.msk.bf16.mxu0 %vm160_vm1, %v133_v35  ;;  %v107_v49 = vmul.f32 0.01, %v75_v42  ;;  %v56_v50 = vmul.f32 %v571_v4, %v33_v39  ;;  %v135_v52 = vpack.c.bf16 %v122_v48, %v121_v43  ;;  %vm92_vm9 = vcmp.ge.f32.partialorder %v76_v44, 0.0 }
   0xf   :  { %498 = vmatmul.mubr.msk.bf16.vlgmr.msra.gmra.mrb[0].mxu0 %vm160_vm1, %v134_v40  ;;  %v108_v53 = vmul.f32 0.01, %v76_v44  ;;  %v77_v54 = vadd.f32 %v576_v5, %v54_v45  ;;  %v78_v56 = vadd.f32 %v576_v5, %v55_v46  ;;  %v57_v57 = vmul.f32 %v571_v4, %v34_v47 }
  0x10   :  { %v123_v55 = vsel %vm91_vm8, %v75_v42, %v107_v49  ;;  %v79_v58 = vadd.f32 %v576_v5, %v56_v50  ;;  %501 = vmatprep.mubr.msk.bf16.mxu0 %vm160_vm1, %v135_v52  ;;  %v58_v62 = vmul.f32 %v571_v4, %v35_v51  ;;  %v59_v7 = vmul.f32 %v571_v4, %v36_v59 }
  0x11   :  { %v124_v60 = vsel %vm92_vm9, %v76_v44, %v108_v53  ;;  %vm93_vm10 = vcmp.ge.f32.partialorder %v77_v54, 0.0  ;;  %v109_v61 = vmul.f32 0.01, %v77_v54  ;;  %vm94_vm11 = vcmp.ge.f32.partialorder %v78_v56, 0.0 }
  0x12   :  { %v136_v63 = vpack.c.bf16 %v124_v60, %v123_v55  ;;  %v110_v0 = vmul.f32 0.01, %v78_v56  ;;  %v80_v1 = vadd.f32 %v576_v5, %v57_v57  ;;  %vm95_vm12 = vcmp.ge.f32.partialorder %v79_v58, 0.0 }
  0x13   :  { %v125_v3 = vsel %vm93_vm10, %v77_v54, %v109_v61  ;;  %v111_v6 = vmul.f32 0.01, %v79_v58  ;;  %v81_v11 = vadd.f32 %v576_v5, %v58_v62  ;;  %v82_v14 = vadd.f32 %v576_v5, %v59_v7 }
  0x14   :  { %v126_v9 = vsel %vm94_vm11, %v78_v56, %v110_v0  ;;  %vm96_vm13 = vcmp.ge.f32.partialorder %v80_v1, 0.0  ;;  %v112_v10 = vmul.f32 0.01, %v80_v1  ;;  %v60_v15 = vmul.f32 %v571_v4, %v37_v2 }
  0x15   :  { %v137_v12 = vpack.c.bf16 %v126_v9, %v125_v3  ;;  %v127_v13 = vsel %vm95_vm12, %v79_v58, %v111_v6  ;;  %vm97_vm14 = vcmp.ge.f32.partialorder %v81_v11, 0.0  ;;  %v113_v17 = vmul.f32 0.01, %v81_v11 }
  0x16   :  { %v128_v16 = vsel %vm96_vm13, %v80_v1, %v112_v10  ;;  %v61_v18 = vmul.f32 %v571_v4, %v38_v8  ;;  %vm98_vm15 = vcmp.ge.f32.partialorder %v82_v14, 0.0  ;;  %v114_v20 = vmul.f32 0.01, %v82_v14 }
  0x17   :  { %502 = vmatmul.mubr.msk.bf16.gmra.mrb[4].mxu0 %vm160_vm1, %v136_v63  ;;  %505 = vmatprep.mubr.msk.bf16.mxu1 %vm160_vm1, %v137_v12  ;;  %v138_v19 = vpack.c.bf16 %v128_v16, %v127_v13  ;;  %v83_v21 = vadd.f32 %v576_v5, %v60_v15  ;;  %v129_v22 = vsel %vm97_vm14, %v81_v11, %v113_v17 }
  0x18   :  { %v84_v23 = vadd.f32 %v576_v5, %v61_v18  ;;  %v130_v24 = vsel %vm98_vm15, %v82_v14, %v114_v20 }
  0x19   :  { %506 = vmatmul.mubr.msk.bf16.vlgmr.msra.gmra.mrb[0].mxu1 %vm160_vm1, %v138_v19  ;;  %vm99_vm0 = vcmp.ge.f32.partialorder %v83_v21, 0.0  ;;  %v115_v25 = vmul.f32 0.01, %v83_v21  ;;  %v139_v26 = vpack.c.bf16 %v130_v24, %v129_v22 }
  0x1a   :  { %vm100_vm2 = vcmp.ge.f32.partialorder %v84_v23, 0.0  ;;  %v116_v27 = vmul.f32 0.01, %v84_v23 }
  0x1b   :  { %v131_v28 = vsel %vm99_vm0, %v83_v21, %v115_v25  ;;  %509 = vmatprep.mubr.msk.bf16.mxu1 %vm160_vm1, %v139_v26 }
  0x1c   :  { %v132_v4 = vsel %vm100_vm2, %v84_v23, %v116_v27 }
  0x1d   :  { %v140_v29 = vpack.c.bf16 %v132_v4, %v131_v28 }
  0x21   :  { %510 = vmatmul.mubr.msk.bf16.gmra.mrb[4].mxu1 %vm160_vm1, %v140_v29 }
  0xe2   :  { %v499_v5 = vpop.f32.mrb[0].mxu0 }
  0xe3   :  { %v232_v31 = vadd.f32 %v499_v5, %v666_v30  ;;  %v223_v32 = vpop.f32.mrb[1].mxu0 }
  0xe4   :  { %v224_v33 = vadd.f32 %v666_v30, %v223_v32  ;;  %v500_v34 = vpop.f32.mrb[2].mxu0 }
  0xe5   :  { %288 = vst [vmem:[%s740_s5 + $0x10] sm:$0xff] %v232_v31  ;;  %v235_v35 = vadd.f32 %v500_v34, %v666_v30  ;;  %v226_v36 = vpop.f32.mrb[3].mxu0  ;;  %v424_v41 = vmul.f32 %v232_v31, %v232_v31 }
  0xe6   :  { %286 = vst [vmem:[%s740_s5] sm:$0xff] %v224_v33  ;;  %v227_v37 = vadd.f32 %v666_v30, %v226_v36  ;;  %v422_v38 = vmul.f32 %v224_v33, %v224_v33 }
  0xe7   :  { %289 = vst [vmem:[%s740_s5 + $0x18] sm:$0xff] %v235_v35  ;;  %v425_v47 = vmul.f32 %v235_v35, %v235_v35 }
  0xe8   :  { %287 = vst [vmem:[%s740_s5 + $0x8] sm:$0xff] %v227_v37  ;;  %v401_v39 = vadd.f32 %v227_v37, %v224_v33  ;;  %v423_v40 = vmul.f32 %v227_v37, %v227_v37 }
  0xea   :  { %v402_v42 = vadd.f32 %v401_v39, %v232_v31  ;;  %v438_v43 = vadd.f32 %v423_v40, %v422_v38  ;;  %v503_v44 = vpop.f32.mrb[4].mxu0 }
  0xeb   :  { %v248_v45 = vadd.f32 %v503_v44, %v666_v30  ;;  %v239_v46 = vpop.f32.mrb[5].mxu0 }
  0xec   :  { %v439_v48 = vadd.f32 %v438_v43, %v424_v41  ;;  %v240_v49 = vadd.f32 %v666_v30, %v239_v46  ;;  %v403_v50 = vadd.f32 %v402_v42, %v235_v35  ;;  %v504_v51 = vpop.f32.mrb[6].mxu0  ;;  %v507_v54 = vpop.f32.mrb[0].mxu1 }
  0xed   :  { %292 = vst [vmem:[%s740_s5 + $0x30] sm:$0xff] %v248_v45  ;;  %v251_v52 = vadd.f32 %v504_v51, %v666_v30  ;;  %v242_v53 = vpop.f32.mrb[7].mxu0  ;;  %v255_v59 = vpop.f32.mrb[1].mxu1  ;;  %v264_v60 = vadd.f32 %v507_v54, %v666_v30  ;;  %v428_v7 = vmul.f32 %v248_v45, %v248_v45 }
  0xee   :  { %290 = vst [vmem:[%s740_s5 + $0x20] sm:$0xff] %v240_v49  ;;  %v404_v55 = vadd.f32 %v403_v50, %v240_v49  ;;  %v426_v56 = vmul.f32 %v240_v49, %v240_v49  ;;  %v440_v57 = vadd.f32 %v439_v48, %v425_v47  ;;  %v243_v58 = vadd.f32 %v666_v30, %v242_v53  ;;  %v508_v62 = vpop.f32.mrb[2].mxu1 }
  0xef   :  { %293 = vst [vmem:[%s740_s5 + $0x38] sm:$0xff] %v251_v52  ;;  %v256_v61 = vadd.f32 %v666_v30, %v255_v59  ;;  %v267_v2 = vadd.f32 %v508_v62, %v666_v30  ;;  %v258_v3 = vpop.f32.mrb[3].mxu1  ;;  %296 = vst [vmem:[%s740_s5 + $0x50] sm:$0xff] %v264_v60  ;;  %v429_v10 = vmul.f32 %v251_v52, %v251_v52  ;;  %v303_v47 = vlaneseq }
  0xf0   :  { %v441_v63 = vadd.f32 %v440_v57, %v426_v56  ;;  %291 = vst [vmem:[%s740_s5 + $0x28] sm:$0xff] %v243_v58  ;;  %v405_v0 = vadd.f32 %v404_v55, %v243_v58  ;;  %v427_v1 = vmul.f32 %v243_v58, %v243_v58  ;;  %v259_v6 = vadd.f32 %v666_v30, %v258_v3 }
  0xf1   :  { %294 = vst [vmem:[%s740_s5 + $0x40] sm:$0xff] %v256_v61  ;;  %297 = vst [vmem:[%s740_s5 + $0x58] sm:$0xff] %v267_v2  ;;  %v430_v13 = vmul.f32 %v256_v61, %v256_v61  ;;  %v432_v27 = vmul.f32 %v264_v60, %v264_v60  ;;  %v433_v29 = vmul.f32 %v267_v2, %v267_v2 }
  0xf2   :  { %v406_v8 = vadd.f32 %v405_v0, %v248_v45  ;;  %v442_v9 = vadd.f32 %v441_v63, %v427_v1  ;;  %295 = vst [vmem:[%s740_s5 + $0x48] sm:$0xff] %v259_v6  ;;  %v431_v23 = vmul.f32 %v259_v6, %v259_v6 }
  0xf4   :  { %v443_v11 = vadd.f32 %v442_v9, %v428_v7  ;;  %v407_v12 = vadd.f32 %v406_v8, %v251_v52  ;;  %v511_v14 = vpop.f32.mrb[4].mxu1  ;;  %v304_v52 = vshrl.u32 %v303_v47, 7 }
  0xf5   :  { %v280_v17 = vadd.f32 %v511_v14, %v666_v30  ;;  %v271_v18 = vpop.f32.mrb[5].mxu1 }
  0xf6   :  { %v408_v15 = vadd.f32 %v407_v12, %v256_v61  ;;  %v444_v16 = vadd.f32 %v443_v11, %v429_v10  ;;  %v272_v19 = vadd.f32 %v666_v30, %v271_v18  ;;  %v512_v20 = vpop.f32.mrb[6].mxu1  ;;  %vm459_vm1 = vcmp.lt.s32.totalorder %v304_v52, 4 }
  0xf7   :  { %300 = vst [vmem:[%s740_s5 + $0x70] sm:$0xff] %v280_v17  ;;  %v283_v24 = vadd.f32 %v512_v20, %v666_v30  ;;  %v274_v25 = vpop.f32.mrb[7].mxu1  ;;  %v436_v37 = vmul.f32 %v280_v17, %v280_v17 }
  0xf8   :  { %v445_v21 = vadd.f32 %v444_v16, %v430_v13  ;;  %v409_v22 = vadd.f32 %v408_v15, %v259_v6  ;;  %298 = vst [vmem:[%s740_s5 + $0x60] sm:$0xff] %v272_v19  ;;  %v275_v26 = vadd.f32 %v666_v30, %v274_v25  ;;  %v434_v32 = vmul.f32 %v272_v19, %v272_v19 }
  0xf9   :  { %301 = vst [vmem:[%s740_s5 + $0x78] sm:$0xff] %v283_v24  ;;  %v437_v40 = vmul.f32 %v283_v24, %v283_v24 }
  0xfa   :  { %v410_v28 = vadd.f32 %v409_v22, %v264_v60  ;;  %v446_v4 = vadd.f32 %v445_v21, %v431_v23  ;;  %299 = vst [vmem:[%s740_s5 + $0x68] sm:$0xff] %v275_v26  ;;  %v435_v30 = vmul.f32 %v275_v26, %v275_v26 }
  0xfc   :  { %v447_v5 = vadd.f32 %v446_v4, %v432_v27  ;;  %v411_v31 = vadd.f32 %v410_v28, %v267_v2 }
  0xfe   :  { %v412_v33 = vadd.f32 %v411_v31, %v272_v19  ;;  %v448_v34 = vadd.f32 %v447_v5, %v433_v29 }
 0x100   :  { %v449_v35 = vadd.f32 %v448_v34, %v434_v32  ;;  %v413_v36 = vadd.f32 %v412_v33, %v275_v26 }
 0x102   :  { %v414_v38 = vadd.f32 %v413_v36, %v280_v17  ;;  %v450_v39 = vadd.f32 %v449_v35, %v435_v30 }
 0x104   :  { %v415_v41 = vadd.f32 %v414_v38, %v283_v24  ;;  %v451_v42 = vadd.f32 %v450_v39, %v436_v37 }
 0x106   :  { %v416_v43 = vrot.slane %v415_v41, 4  ;;  %v452_v44 = vadd.f32 %v451_v42, %v437_v40 }
 0x108   :  { %v417_v45 = vadd.f32 %v416_v43, %v415_v41  ;;  %v453_v46 = vrot.slane %v452_v44, 4 }
 0x10a   :  { %v418_v48 = vrot.slane %v417_v45, 2  ;;  %v454_v49 = vadd.f32 %v453_v46, %v452_v44 }
 0x10c   :  { %v419_v50 = vadd.f32 %v418_v48, %v417_v45  ;;  %v455_v51 = vrot.slane %v454_v49, 2 }
 0x10e   :  { %v420_v53 = vrot.slane %v419_v50, 1  ;;  %v456_v54 = vadd.f32 %v455_v51, %v454_v49 }
 0x110   :  { %v457_v55 = vrot.slane %v456_v54, 1  ;;  %v421_v56 = vadd.f32 %v420_v53, %v419_v50 }
 0x112   :  { %v458_v57 = vadd.f32 %v457_v55, %v456_v54 }
 0x114   :  { %v460_v58 = vsel %vm459_vm1, %v421_v56, %v458_v57 }
 0x115   :  { %461 = vst [vmem:[%s741_s6] sm:$0xff] %v460_v58 }

// kernel: densenet_forward.17
= control target key start
LH: loop header
LB: loop body
LE: loop exit
PB: predicated region body
PF: predicated region fallthrough
CT: control target
= control target key end

     0   :  { %s2469_s18 = smov 0   ;;  %s2976_s0 = inlined_call_operand.vmem [shape: f32[2,110,16], index: 0, kind: input, shape index: {}]   ;;  %s2977_s1 = inlined_call_operand.vmem [shape: f32[110,1], index: 1, kind: input, shape index: {}]   ;;  %s2978_s2 = inlined_call_operand.vmem [shape: f32[1,16], index: 2, kind: input, shape index: {}]   ;;  %s2979_s3 = inlined_call_operand.vmem [shape: f32[1,16], index: 3, kind: input, shape index: {}]   ;;  %s2980_s4 = inlined_call_operand.vmem [shape: bf16[9,16,128], index: 4, kind: input, shape index: {}]   ;;  %s2981_s5 = inlined_call_operand.vmem [shape: f32[2,80,128], index: 5, kind: output, shape index: {}]  }
   0x1 LB: > { %s1845_s19 = sadd.s32 4294967295, %s2434_s18   ;;  %p1849_p0 = scmp.ge.s32.totalorder %s2434_s18, 1  ;;  %s2434_s18 = sphi %s2469_s18, %s15_s18  }
   0x2   : > { %p187_p1 = scmp.lt.s32.totalorder %s2434_s18, 3 }
   0x4   : > { %p188_p2 = pnand %p1849_p0, %p187_p1 }
   0x5   : > { %v327_v0 = vld [vmem:[%s2977_s1 + $0x18] sm:$0xff] (!%p188_p2)  ;;  %v325_v1 = vld [vmem:[%s2977_s1 + $0x8] sm:$0xff] (!%p188_p2)  ;;  %v2436_v2 = vmov (!%p188_p2), 0   ;;  %v328_v3 = vld [vmem:[%s2977_s1 + $0x20] sm:$0xff] (!%p188_p2)  ;;  %v2437_v16 = vmov (!%p188_p2), 0.0   ;;  %vm2438_vm0 = vmmov (!%p188_p2), 0  }
   0x6   : > { %191 = sbr.rel (%p188_p2) target bundleno = 553 (0x229), region = 40  ;;  %2395 = vset.pattern.permute.xlu1 (!%p188_p2), %v2436_v2  ;;  %2394 = vset.pattern.permute.xlu0 (!%p188_p2), %v2436_v2  ;;  %v326_v4 = vld [vmem:[%s2977_s1 + $0x10] sm:$0xff] (!%p188_p2)  ;;  %v329_v5 = vld [vmem:[%s2977_s1 + $0x28] sm:$0xff] (!%p188_p2)  ;;  %v324_v6 = vld [vmem:[%s2977_s1] sm:$0xff] (!%p188_p2)  ;;  %p215_p3 = scmp.lt.s32.totalorder (!%p188_p2), %s1845_s19, 1  ;;  %vm478_vm5 = vcmask (!%p188_p2), 125952  }
   0x7   : > { %355 = vperm.xlu1 (!%p188_p2), %2395, %v327_v0   ;;  %345 = vperm.xlu0 (!%p188_p2), %2394, %v325_v1   ;;  %v331_v7 = vld [vmem:[%s2977_s1 + $0x38] sm:$0xff] (!%p188_p2)  ;;  %v330_v8 = vld [vmem:[%s2977_s1 + $0x30] sm:$0xff] (!%p188_p2)  ;;  %v333_v9 = vld [vmem:[%s2977_s1 + $0x48] sm:$0xff] (!%p188_p2)  ;;  %vm1054_vm14 = vsmask.f32 (!%p188_p2), 6400  ;;  %vm589_vm15 = vcmask (!%p188_p2), 130048  }
   0x8   : > { %v332_v10 = vld [vmem:[%s2977_s1 + $0x40] sm:$0xff] (!%p188_p2)  ;;  %v335_v11 = vld [vmem:[%s2977_s1 + $0x58] sm:$0xff] (!%p188_p2)  ;;  %v334_v12 = vld [vmem:[%s2977_s1 + $0x50] sm:$0xff] (!%p188_p2)  ;;  %2119 = vmatprep.subr.bf16.mxu0 (!%p188_p2), %v2437_v16  ;;  %2031 = vmatprep.subr.bf16.mxu1 (!%p188_p2), %v2437_v16 }
   0x9   : > { %v2516_v13 = vld [vmem:[%s2980_s4 + $0x20] sm:$0xff] (!%p188_p2)   ;;  %v337_v14 = vld [vmem:[%s2977_s1 + $0x68] sm:$0x3f] (!%p188_p2)  ;;  %2121 = vmatprep.mubr.msk.bf16.mxu0 (!%p188_p2), %vm2438_vm0, %v2437_v16  ;;  %2033 = vmatprep.mubr.msk.bf16.mxu1 (!%p188_p2), %vm2438_vm0, %v2437_v16 }
   0xa   : > { %v336_v15 = vld [vmem:[%s2977_s1 + $0x60] sm:$0xff] (!%p188_p2)  ;;  %2120 = vmatpush3.bf16.msra.mxu0 (!%p188_p2), %v2516_v13  ;;  %v2400_v17 = vld [vmem:[%s2980_s4 + $0x8] sm:$0xff] (!%p188_p2)  }
   0xb   : > { %360 = vperm.xlu1 (!%p188_p2), %2395, %v328_v3   ;;  %350 = vperm.xlu0 (!%p188_p2), %2394, %v326_v4   ;;  %v2552_v19 = vld [vmem:[%s2978_s2] ss:$0 sm:$0xff] (!%p188_p2) }
   0xc   : > { %2141 = vmatprep.subr.bf16.mxu0 (!%p188_p2), %v2437_v16  ;;  %2032 = vmatpush3.bf16.msra.mxu1 (!%p188_p2), %v2400_v17  ;;  %v2561_v24 = vld [vmem:[%s2979_s3] ss:$0 sm:$0xff] (!%p188_p2) }
   0xd   : > { %2053 = vmatprep.subr.bf16.mxu1 %v2437_v16  ;;  %s2983_s19 = smov (!%p215_p3, %s1845_s19), 1 }
   0xe   : > { %s2381_s29 = smul.u32 112, %s2983_s19 }
   0xf   : > { %365 = vperm.xlu1 %2395, %v329_v5   ;;  %340 = vperm.xlu0 %2394, %v324_v6   ;;  %s2382_s28 = smul.u32 80, %s2983_s19 }
  0x10   : > { %s2546_s7 = scalar_lea.vmem %s2976_s0, %s2381_s29 }
  0x11   : > { %v229_v18 = vld [vmem:[%s2546_s7 + $0x18] sm:$0xff]  ;;  %v227_v20 = vld [vmem:[%s2546_s7 + $0x8] sm:$0xff]  ;;  %v230_v21 = vld [vmem:[%s2546_s7 + $0x20] sm:$0xff]  ;;  %s2961_s6 = scalar_lea.vmem %s2981_s5, %s2382_s28 }
  0x12   : > { %v250_v22 = vmul.f32 %v2552_v19, %v229_v18  ;;  %v248_v23 = vmul.f32 %v2552_v19, %v227_v20  ;;  %v228_v25 = vld [vmem:[%s2546_s7 + $0x10] sm:$0xff]  ;;  %v251_v26 = vmul.f32 %v2552_v19, %v230_v21  ;;  %v231_v27 = vld [vmem:[%s2546_s7 + $0x28] sm:$0xff]  ;;  %v226_v31 = vld [vmem:[%s2546_s7] sm:$0xff] }
  0x13   : > { %375 = vperm.xlu1 %2395, %v331_v7   ;;  %370 = vperm.xlu0 %2394, %v330_v8   ;;  %v249_v30 = vmul.f32 %v2552_v19, %v228_v25  ;;  %v252_v33 = vmul.f32 %v2552_v19, %v231_v27  ;;  %v247_v34 = vmul.f32 %v2552_v19, %v226_v31  ;;  %v233_v38 = vld [vmem:[%s2546_s7 + $0x38] sm:$0xff]  ;;  %v232_v39 = vld [vmem:[%s2546_s7 + $0x30] sm:$0xff]  ;;  %v235_v48 = vld [vmem:[%s2546_s7 + $0x48] sm:$0xff] }
  0x14   : > { %v271_v28 = vadd.f32 %v2561_v24, %v250_v22  ;;  %v269_v29 = vadd.f32 %v2561_v24, %v248_v23  ;;  %v272_v32 = vadd.f32 %v2561_v24, %v251_v26  ;;  %v254_v43 = vmul.f32 %v2552_v19, %v233_v38  ;;  %v234_v49 = vld [vmem:[%s2546_s7 + $0x40] sm:$0xff]  ;;  %v237_v58 = vld [vmem:[%s2546_s7 + $0x58] sm:$0xff]  ;;  %v236_v59 = vld [vmem:[%s2546_s7 + $0x50] sm:$0xff] }
  0x15   : > { %v270_v37 = vadd.f32 %v2561_v24, %v249_v30  ;;  %v273_v41 = vadd.f32 %v2561_v24, %v252_v33  ;;  %v268_v42 = vadd.f32 %v2561_v24, %v247_v34  ;;  %v253_v47 = vmul.f32 %v2552_v19, %v232_v39  ;;  %v238_v18 = vld [vmem:[%s2546_s7 + $0x60] sm:$0xff] }
  0x16   : > { %v299_v35 = vmul.f32 0.01, %v271_v28  ;;  %v297_v36 = vmul.f32 0.01, %v269_v29  ;;  %vm285_vm1 = vcmp.ge.f32.partialorder %v271_v28, 0.0  ;;  %vm283_vm2 = vcmp.ge.f32.partialorder %v269_v29, 0.0 }
  0x17   : > { %385 = vperm.xlu1 %2395, %v333_v9   ;;  %380 = vperm.xlu0 %2394, %v332_v10   ;;  %v300_v40 = vmul.f32 0.01, %v272_v32  ;;  %vm286_vm3 = vcmp.ge.f32.partialorder %v272_v32, 0.0  ;;  %v298_v46 = vmul.f32 0.01, %v270_v37  ;;  %vm284_vm4 = vcmp.ge.f32.partialorder %v270_v37, 0.0 }
  0x18   : > { %v313_v44 = vsel %vm285_vm1, %v271_v28, %v299_v35  ;;  %v311_v45 = vsel %vm283_vm2, %v269_v29, %v297_v36  ;;  %vm287_vm6 = vcmp.ge.f32.partialorder %v273_v41, 0.0  ;;  %v301_v53 = vmul.f32 0.01, %v273_v41 }
  0x19   : > { %v314_v52 = vsel %vm286_vm3, %v272_v32, %v300_v40  ;;  %v275_v56 = vadd.f32 %v2561_v24, %v254_v43  ;;  %v256_v57 = vmul.f32 %v2552_v19, %v235_v48  ;;  %v312_v60 = vsel %vm284_vm4, %v270_v37, %v298_v46 }
  0x1a   : > { %v296_v61 = vmul.f32 0.01, %v268_v42  ;;  %v274_v62 = vadd.f32 %v2561_v24, %v253_v47  ;;  %v255_v63 = vmul.f32 %v2552_v19, %v234_v49  ;;  %vm282_vm7 = vcmp.ge.f32.partialorder %v268_v42, 0.0 }
  0x1b   : > { %395 = vperm.xlu1 %2395, %v335_v11   ;;  %390 = vperm.xlu0 %2394, %v334_v12   ;;  %v315_v4 = vsel %vm287_vm6, %v273_v41, %v301_v53  ;;  %v258_v5 = vmul.f32 %v2552_v19, %v237_v58  ;;  %v257_v6 = vmul.f32 %v2552_v19, %v236_v59  ;;  %v303_v9 = vmul.f32 0.01, %v275_v56 }
  0x1c   : > { %v277_v10 = vadd.f32 %v2561_v24, %v256_v57  ;;  %v310_v11 = vsel %vm282_vm7, %v268_v42, %v296_v61  ;;  %vm289_vm8 = vcmp.ge.f32.partialorder %v275_v56, 0.0  ;;  %v302_v12 = vmul.f32 0.01, %v274_v62 }
  0x1d   : > { %vm288_vm9 = vcmp.ge.f32.partialorder %v274_v62, 0.0  ;;  %v279_v22 = vadd.f32 %v2561_v24, %v258_v5  ;;  %v278_v23 = vadd.f32 %v2561_v24, %v257_v6  ;;  %v317_v27 = vsel %vm289_vm8, %v275_v56, %v303_v9 }
  0x1e   : > { %vm291_vm10 = vcmp.ge.f32.partialorder %v277_v10, 0.0  ;;  %v316_v28 = vsel %vm288_vm9, %v274_v62, %v302_v12  ;;  %v305_v29 = vmul.f32 0.01, %v277_v10  ;;  %v259_v31 = vmul.f32 %v2552_v19, %v238_v18 }
  0x1f   : > { %405 = vperm.xlu1 %2395, %v337_v14   ;;  %400 = vperm.xlu0 %2394, %v336_v15   ;;  %v276_v14 = vadd.f32 %v2561_v24, %v255_v63  ;;  %v307_v36 = vmul.f32 0.01, %v279_v22  ;;  %v306_v37 = vmul.f32 0.01, %v278_v23  ;;  %vm293_vm12 = vcmp.ge.f32.partialorder %v279_v22, 0.0 }
  0x20   : > { %vm292_vm13 = vcmp.ge.f32.partialorder %v278_v23, 0.0  ;;  %v319_v40 = vsel %vm291_vm10, %v277_v10, %v305_v29  ;;  %v280_v19 = vadd.f32 %v2561_v24, %v259_v31  ;;  %vm538_vm2 = vsmask.f32 7424 }
  0x21   : > { %v304_v30 = vmul.f32 0.01, %v276_v14  ;;  %vm290_vm11 = vcmp.ge.f32.partialorder %v276_v14, 0.0  ;;  %v321_v47 = vsel %vm293_vm12, %v279_v22, %v307_v36  ;;  %v320_v48 = vsel %vm292_vm13, %v278_v23, %v306_v37 }
  0x22   : > { %vm294_vm1 = vcmp.ge.f32.partialorder %v280_v19, 0.0  ;;  %v308_v53 = vmul.f32 0.01, %v280_v19  ;;  %vm774_vm3 = vcmask 1046528   ;;  %vm1219_vm4 = vcmask 1045504  }
  0x23   : > { %v318_v41 = vsel %vm290_vm11, %v276_v14, %v304_v30  ;;  %v2399_v14 = vld [vmem:[%s2980_s4 + $0x28] sm:$0xff]   ;;  %vm1499_vm6 = vsmask.f32 5376 }
  0x86   : > { %v356_v50 = vpop.permute.xlu1 %355  ;;  %v346_v51 = vpop.permute.xlu0 %345 }
  0x87   : > { %v411_v54 = vmul.f32 %v356_v50, %v313_v44  ;;  %v409_v55 = vmul.f32 %v346_v51, %v311_v45 }
  0x89   : > { %v1966_v0 = vpack.c.bf16 %v411_v54, %v411_v54  ;;  %v1964_v1 = vpack.c.bf16 %v409_v55, %v409_v55 }
  0x8a   : > { %v361_v2 = vpop.permute.xlu1 %360  ;;  %v351_v3 = vpop.permute.xlu0 %350 }
  0x8b   : > { %482 = vst.msk [vmem:[#allocation2 + $0xc] sm:$0xf] %vm478_vm5, %v1966_v0  ;;  %480 = vst.msk [vmem:[#allocation2 + $0x4] sm:$0xf] %vm478_vm5, %v1964_v1  ;;  %v412_v7 = vmul.f32 %v361_v2, %v314_v52  ;;  %v410_v8 = vmul.f32 %v351_v3, %v312_v60 }
  0x8d   : > { %v1967_v15 = vpack.c.bf16 %v412_v7, %v412_v7  ;;  %v1965_v17 = vpack.c.bf16 %v410_v8, %v410_v8  ;;  %v322_v7 = vsel %vm294_vm1, %v280_v19, %v308_v53 }
  0x8e   : > { %v366_v20 = vpop.permute.xlu1 %365  ;;  %v341_v21 = vpop.permute.xlu0 %340 }
  0x8f   : > { %483 = vst.msk [vmem:[#allocation2 + $0x10] sm:$0xf] %vm478_vm5, %v1967_v15  ;;  %481 = vst.msk [vmem:[#allocation2 + $0x8] sm:$0xf] %vm478_vm5, %v1965_v17  ;;  %v413_v25 = vmul.f32 %v366_v20, %v315_v4  ;;  %v408_v26 = vmul.f32 %v341_v21, %v310_v11 }
  0x91   : > { %v1968_v32 = vpack.c.bf16 %v413_v25, %v413_v25  ;;  %v1963_v33 = vpack.c.bf16 %v408_v26, %v408_v26 }
  0x92   : > { %v376_v34 = vpop.permute.xlu1 %375  ;;  %v371_v35 = vpop.permute.xlu0 %370  ;;  %v890_v44 = vld [vmem:[#allocation2 + $0x4] sm:$0xe] }
  0x93   : > { %484 = vst.msk [vmem:[#allocation2 + $0x14] sm:$0xf] %vm478_vm5, %v1968_v32  ;;  %479 = vst.msk [vmem:[#allocation2] sm:$0xf] %vm478_vm5, %v1963_v33  ;;  %v415_v38 = vmul.f32 %v376_v34, %v317_v27  ;;  %v414_v39 = vmul.f32 %v371_v35, %v316_v28  ;;  %v495_v2 = vld [vmem:[#allocation2 + $0x4] sm:$0xf] }
  0x94   : > { %v2403_v32 = vld [vmem:[%s2980_s4] sm:$0xff]  }
  0x95   : > { %v1970_v42 = vpack.c.bf16 %v415_v38, %v415_v38  ;;  %v1969_v43 = vpack.c.bf16 %v414_v39, %v414_v39 }
  0x96   : > { %v386_v45 = vpop.permute.xlu1 %385  ;;  %v381_v46 = vpop.permute.xlu0 %380  ;;  %v2605_v49 = vld [vmem:[#allocation2 + $0x8] sm:$0xf]  ;;  %v2607_v50 = vld [vmem:[#allocation2 + $0xc] sm:$0xff]  }
  0x97   : > { %486 = vst.msk [vmem:[#allocation2 + $0x1c] sm:$0xf] %vm478_vm5, %v1970_v42  ;;  %485 = vst.msk [vmem:[#allocation2 + $0x18] sm:$0xf] %vm478_vm5, %v1969_v43  ;;  %v417_v51 = vmul.f32 %v386_v45, %v319_v40  ;;  %v416_v52 = vmul.f32 %v381_v46, %v318_v41  ;;  %v2612_v24 = vcombine.low %v890_v44, %v2605_v49  ;;  %v1064_v54 = vshrl.u32 %v2607_v50, 16  ;;  %v2618_v60 = vld [vmem:[#allocation2 + $0x8] sm:$0xff]  }
  0x98   : > { %v1067_v55 = vshll.u32 %v2607_v50, 16  ;;  %v547_v15 = vshll.u32 %v2618_v60, 16  ;;  %v551_v43 = vshrl.u32 %v2618_v60, 16 }
  0x99   : > { %v1972_v56 = vpack.c.bf16 %v417_v51, %v417_v51  ;;  %v1971_v57 = vpack.c.bf16 %v416_v52, %v416_v52  ;;  %v1056_v58 = vshrl.u32 %v2612_v24, 16  ;;  %v1059_v59 = vshll.u32 %v2612_v24, 16 }
  0x9a   : > { %v396_v61 = vpop.permute.xlu1 %395  ;;  %v391_v62 = vpop.permute.xlu0 %390  ;;  %v1066_v63 = vrot.slane %v1064_v54, 1  ;;  %v1069_v0 = vrot.slane %v1067_v55, 2  ;;  %v494_v1 = vld [vmem:[#allocation2] sm:$0xf]  ;;  %v2632_v22 = vld [vmem:[#allocation2 + $0x10] sm:$0xff]   ;;  %v549_v31 = vrot.slane %v547_v15, 1 }
  0x9b   : > { %488 = vst.msk [vmem:[#allocation2 + $0x24] sm:$0xf] %vm478_vm5, %v1972_v56  ;;  %487 = vst.msk [vmem:[#allocation2 + $0x20] sm:$0xf] %vm478_vm5, %v1971_v57  ;;  %v419_v3 = vmul.f32 %v396_v61, %v321_v47  ;;  %v418_v4 = vmul.f32 %v391_v62, %v320_v48  ;;  %v1058_v5 = vrot.slane %v1056_v58, 1  ;;  %v1061_v6 = vrot.slane %v1059_v59, 2 }
  0x9c   : > { %v1070_v8 = vor.u32 %v1069_v0, %v1066_v63  ;;  %v2623_v9 = vcombine.low %v494_v1, %v495_v2  ;;  %v555_v36 = vshll.u32 %v2632_v22, 16  ;;  %v767_v38 = vld [vmem:[#allocation2] sm:$0xe]  ;;  %v553_v51 = vor.u32 %v551_v43, %v549_v31  ;;  %v1212_v58 = vld [vmem:[#allocation2 + $0x4] sm:$0xc] }
  0x9d   : > { %v1974_v10 = vpack.c.bf16 %v419_v3, %v419_v3  ;;  %v1973_v11 = vpack.c.bf16 %v418_v4, %v418_v4  ;;  %v1062_v12 = vor.u32 %v1061_v6, %v1058_v5  ;;  %v1890_v46 = vcombine.low %v767_v38, %v495_v2 }
  0x9e   : > { %v406_v17 = vpop.permute.xlu1 %405  ;;  %v401_v18 = vpop.permute.xlu0 %400  ;;  %v542_v20 = vshll.u32 %v2623_v9, 16  ;;  %v2630_v21 = vld [vmem:[#allocation2 + $0x14] sm:$0xff]   ;;  %v540_v26 = vshrl.u32 %v2623_v9, 16  ;;  %v557_v47 = vrot.slane %v555_v36, 1  ;;  %v776_v56 = vrot.slane %v2618_v60, 1 }
  0x9f   : > { %490 = vst.msk [vmem:[#allocation2 + $0x2c] sm:$0xf] %vm478_vm5, %v1974_v10  ;;  %489 = vst.msk [vmem:[#allocation2 + $0x28] sm:$0xf] %vm478_vm5, %v1973_v11  ;;  %v420_v23 = vmul.f32 %v401_v18, %v322_v7  ;;  %v1071_v25 = vsel %vm1054_vm14, %v1062_v12, %v1070_v8  ;;  %v1073_v28 = vshrl.u32 %v2630_v21, 16  ;;  %v1076_v29 = vshll.u32 %v2630_v21, 16 }
  0xa0   : > { %2122 = vmatmul.mubr.msk.bf16.vlgmr.msra.gmra.mrb[0].mxu0 %vm589_vm15, %v1071_v25  ;;  %v544_v27 = vrot.slane %v542_v20, 1  ;;  %v2661_v48 = vld [vmem:[#allocation2 + $0x18] sm:$0xff]   ;;  %v775_v53 = vrot.slane %v1890_v46, 1  ;;  %v558_v54 = vsel %vm538_vm2, %v553_v51, %v557_v47  ;;  %v778_v57 = vrot.slane %v2632_v22, 1  ;;  %v1657_v7 = vld [vmem:[#allocation2 + $0x8] sm:$0x8] }
  0xa1   : > { %v1975_v30 = vpack.c.bf16 %v420_v23, %v420_v23  ;;  %2142 = vmatpush3.bf16.msra.mxu0 %v2399_v14  ;;  %2125 = vmatprep.mubr.msk.bf16.mxu0 %vm2438_vm0, %v2437_v16  ;;  %v1075_v34 = vrot.slane %v1073_v28, 1  ;;  %v1078_v35 = vrot.slane %v1076_v29, 2  ;;  %v563_v55 = vshll.u32 %v2661_v48, 16  ;;  %v2409_v11 = vld [vmem:[%s2980_s4 + $0x30] sm:$0xff]   ;;  %v2700_v12 = vld [vmem:[#allocation2 + $0xc] sm:$0xf] }
  0xa2   : > { %v545_v33 = vor.u32 %v544_v27, %v540_v26  ;;  %v2647_v37 = vld [vmem:[#allocation2 + $0x1c] sm:$0xff]   ;;  %2163 = vmatprep.subr.bf16.mxu0 %v2437_v16  ;;  %v2675_v59 = vsel %vm774_vm3, %v775_v53, %v776_v56  ;;  %v1922_v62 = vcombine.low %v1212_v58, %v2605_v49  ;;  %v2685_v0 = vsel %vm774_vm3, %v776_v56, %v778_v57  ;;  %v2706_v14 = vld [vmem:[#allocation2 + $0x10] sm:$0xff]  }
  0xa3   : > { %491 = vst.msk [vmem:[#allocation2 + $0x30] sm:$0xf] %vm478_vm5, %v1975_v30  ;;  %v1079_v40 = vor.u32 %v1078_v35, %v1075_v34  ;;  %v1082_v41 = vshrl.u32 %v2647_v37, 16  ;;  %v1085_v19 = vshll.u32 %v2647_v37, 16  ;;  %v2680_v63 = vld [vmem:[#allocation2 + $0x20] sm:$0xff]   ;;  %v559_v1 = vshrl.u32 %v2632_v22, 16 }
  0xa4   : > { %v550_v39 = vsel %vm538_vm2, %v545_v33, %v549_v31  ;;  %v565_v2 = vrot.slane %v563_v55, 1  ;;  %v933_v4 = vrot.slane %v2607_v50, 1  ;;  %v1220_v5 = vrot.slane %v1922_v62, 2  ;;  %v2708_v15 = vld [vmem:[#allocation2 + $0x18] sm:$0xff]   ;;  %v2717_v26 = vld [vmem:[#allocation2 + $0x20] sm:$0xff]  }
  0xa5   : > { %2034 = vmatmul.mubr.msk.bf16.vlgmr.msra.gmra.mrb[0].mxu1 %vm589_vm15, %v550_v39  ;;  %v1080_v42 = vsel %vm1054_vm14, %v1070_v8, %v1079_v40  ;;  %v1084_v44 = vrot.slane %v1082_v41, 1  ;;  %v1087_v45 = vrot.slane %v1085_v19, 2  ;;  %v561_v3 = vor.u32 %v559_v1, %v557_v47 }
  0xa6   : > { %2054 = vmatpush3.bf16.msra.mxu1 %v2403_v32  ;;  %2037 = vmatprep.mubr.msk.bf16.mxu1 %vm2438_vm0, %v2437_v16  ;;  %v1221_v49 = vrot.slane %v2607_v50, 2  ;;  %v571_v6 = vshll.u32 %v2680_v63, 16  ;;  %v932_v10 = vrot.slane %v2612_v24, 1  ;;  %v2704_v50 = vld [vmem:[#allocation2 + $0x24] sm:$0xff]   ;;  %v935_v24 = vrot.slane %v2630_v21, 1 }
  0xa7   : > { %2075 = vmatprep.subr.bf16.mxu1 %v2437_v16  ;;  %v2665_v52 = vor.u32 %v1087_v45, %v1084_v44  ;;  %v566_v8 = vsel %vm538_vm2, %v561_v3, %v565_v2  ;;  %v1954_v18 = vcombine.low %v1657_v7, %v2700_v12  ;;  %v567_v23 = vshrl.u32 %v2661_v48, 16  ;;  %v2427_v27 = vld [vmem:[#allocation2 + $0x2c] ss:$0 sps:$4 sm:$0x11]  }
  0xa8   : > { %2126 = vmatmul.mubr.msk.bf16.gmra.mrb[4].mxu0 %vm589_vm15, %v1080_v42  ;;  %v2711_v17 = vsel %vm774_vm3, %v932_v10, %v933_v4  ;;  %v1222_v20 = vsel %vm1219_vm4, %v1220_v5, %v1221_v49  ;;  %v573_v25 = vrot.slane %v571_v6, 1  ;;  %v2720_v28 = vld [vmem:[#allocation2 + $0x28] ss:$0 sps:$4 sm:$0x11]   ;;  %v2723_v29 = vsel %vm774_vm3, %v933_v4, %v935_v24 }
  0xa9   : > { %2129 = vmatprep.mubr.msk.bf16.mxu0 %vm2438_vm0, %v2437_v16  ;;  %v1089_v61 = vsel %vm1054_vm14, %v1079_v40, %v2665_v52  ;;  %v937_v30 = vrot.slane %v2647_v37, 1  ;;  %v569_v31 = vor.u32 %v567_v23, %v565_v2  ;;  %v1223_v32 = vrot.slane %v2630_v21, 2  ;;  %v2414_v33 = vld [vmem:[#allocation2 + $0x2c] ss:$0 sps:$4 sm:$0x33]  }
  0xaa   : > { %vm1664_vm5 = vcmask 1044480   ;;  %v2730_v34 = vld [vmem:[#allocation2 + $0x28] sm:$0xff]   ;;  %v1665_v36 = vrot.slane %v1954_v18, 3  ;;  %v1666_v38 = vrot.slane %v2706_v14, 3  ;;  %v939_v39 = vrot.slane %v2704_v50, 1 }
  0xab   : > { %v2733_v35 = vsel %vm774_vm3, %v935_v24, %v937_v30  ;;  %v574_v40 = vsel %vm538_vm2, %v569_v31, %v573_v25  ;;  %v1668_v41 = vrot.slane %v2708_v15, 3  ;;  %v941_v19 = vrot.slane %v2427_v27, 1 }
  0xac   : > { %v1670_v21 = vrot.slane %v2717_v26, 3  ;;  %v579_v42 = vshll.u32 %v2720_v28, 16  ;;  %v2742_v43 = vsel %vm1664_vm5, %v1665_v36, %v1666_v38  ;;  %v2745_v44 = vsel %vm774_vm3, %v937_v30, %v939_v39 }
  0xad   : > { %2038 = vmatmul.mubr.msk.bf16.gmra.mrb[4].mxu1 %vm589_vm15, %v558_v54  ;;  %v1091_v45 = vshrl.u32 %v2704_v50, 16  ;;  %v2750_v46 = vsel %vm1664_vm5, %v1666_v38, %v1668_v41  ;;  %v2753_v47 = vsel %vm774_vm3, %v939_v39, %v941_v19  ;;  %v1094_v53 = vshll.u32 %v2704_v50, 16  ;;  %v2421_v38 = vld [vmem:[%s2980_s4 + $0x18] sm:$0xff]  }
  0xae   : > { %2041 = vmatprep.mubr.msk.bf16.mxu1 %vm2438_vm0, %v2437_v16  ;;  %v2756_v51 = vsel %vm1664_vm5, %v1668_v41, %v1670_v21  ;;  %v1672_v55 = vrot.slane %v2730_v34, 3  ;;  %v1100_v56 = vshrl.u32 %v2414_v33, 16  ;;  %v1224_v58 = vsel %vm1219_vm4, %v1221_v49, %v1223_v32  ;;  %v2423_v41 = vld [vmem:[#allocation2 + $0x30] ss:$0 sps:$4 sm:$0x33]  }
  0xaf   : > { %v1093_v54 = vrot.slane %v1091_v45, 1  ;;  %v1103_v62 = vshll.u32 %v2414_v33, 16  ;;  %v575_v1 = vshrl.u32 %v2680_v63, 16  ;;  %v581_v2 = vrot.slane %v579_v42, 1 }
  0xb0   : > { %2130 = vmatmul.mubr.msk.bf16.gmra.mrb[8].mxu0 %vm589_vm15, %v1089_v61  ;;  %v1096_v61 = vrot.slane %v1094_v53, 2  ;;  %v2768_v3 = vsel %vm1664_vm5, %v1670_v21, %v1672_v55  ;;  %v1102_v4 = vrot.slane %v1100_v56, 1  ;;  %v1225_v49 = vrot.slane %v2647_v37, 2  ;;  %v2412_v37 = vld [vmem:[%s2980_s4 + $0x10] sm:$0xff]  }
  0xb1   : > { %2143 = vmatprep.mubr.msk.bf16.mxu0 %vm2438_vm0, %v2437_v16  ;;  %v1105_v6 = vrot.slane %v1103_v62, 2  ;;  %v577_v7 = vor.u32 %v575_v1, %v573_v25  ;;  %v1229_v23 = vrot.slane %v2414_v33, 2  ;;  %v1378_v27 = vrot.slane %v2706_v14, 2 }
  0xb2   : > { %v1097_v5 = vor.u32 %v1096_v61, %v1093_v54  ;;  %v1226_v18 = vsel %vm1219_vm4, %v1223_v32, %v1225_v49  ;;  %v1382_v33 = vrot.slane %v2717_v26, 2  ;;  %v1384_v39 = vrot.slane %v2730_v34, 2 }
  0xb3   : > { %v1106_v10 = vor.u32 %v1105_v6, %v1102_v4  ;;  %v1386_v19 = vrot.slane %v2423_v41, 2  ;;  %v1509_v21 = vshrl.u32 %v2706_v14, 16  ;;  %v1512_v42 = vshll.u32 %v2706_v14, 16 }
  0xb4   : > { %v1521_v1 = vshll.u32 %v2708_v15, 16 }
  0xb5   : > { %2042 = vmatmul.mubr.msk.bf16.gmra.mrb[8].mxu1 %vm589_vm15, %v566_v8  ;;  %v2775_v8 = vsel %vm1054_vm14, %v2665_v52, %v1097_v5  ;;  %v2780_v24 = vsel %vm1054_vm14, %v1097_v5, %v1106_v10  ;;  %v1227_v52 = vrot.slane %v2704_v50, 2  ;;  %v1387_v53 = vsel %vm1219_vm4, %v1384_v39, %v1386_v19 }
  0xb6   : > { %2045 = vmatprep.mubr.msk.bf16.mxu1 %vm2438_vm0, %v2437_v16  ;;  %v1511_v54 = vrot.slane %v1509_v21, 2  ;;  %v1514_v56 = vrot.slane %v1512_v42, 3 }
  0xb7   : > { %v1230_v50 = vsel %vm1219_vm4, %v1227_v52, %v1229_v23 }
  0xb8   : > { %2144 = vmatmul.mubr.msk.bf16.vlgmr.msra.gmra.mrb[0].mxu0 %vm589_vm15, %v1222_v20  ;;  %v1228_v20 = vsel %vm1219_vm4, %v1225_v49, %v1227_v52  ;;  %v1515_v62 = vor.u32 %v1514_v56, %v1511_v54  ;;  %v1530_v49 = vshll.u32 %v2717_v26, 16 }
  0xb9   : > { %2164 = vmatpush3.bf16.msra.mxu0 %v2409_v11  ;;  %2147 = vmatprep.mubr.msk.bf16.mxu0 %vm2438_vm0, %v2437_v16  ;;  %v582_v11 = vsel %vm538_vm2, %v577_v7, %v581_v2  ;;  %v1523_v7 = vrot.slane %v1521_v1, 3 }
  0xba   : > { %2185 = vmatprep.subr.bf16.mxu0 %v2437_v16 }
  0xbd   : > { %2046 = vmatmul.mubr.msk.bf16.gmra.mrb[12].mxu1 %vm589_vm15, %v574_v40  ;;  %v1385_v40 = vsel %vm1219_vm4, %v1382_v33, %v1384_v39 }
  0xbe   : > { %2049 = vmatprep.mubr.msk.bf16.mxu1 %vm2438_vm0, %v2437_v16 }
  0xc0   : > { %2148 = vmatmul.mubr.msk.bf16.gmra.mrb[4].mxu0 %vm589_vm15, %v1224_v58  ;;  %v780_v58 = vrot.slane %v2661_v48, 1 }
  0xc1   : > { %2151 = vmatprep.mubr.msk.bf16.mxu0 %vm2438_vm0, %v2437_v16 }
  0xc2   : > { %v781_v2 = vsel %vm774_vm3, %v778_v57, %v780_v58 }
  0xc5   : > { %2050 = vmatmul.mubr.msk.bf16.gmra.mrb[16].mxu1 %vm589_vm15, %v582_v11 }
  0xc6   : > { %2055 = vmatprep.mubr.msk.bf16.mxu1 %vm2438_vm0, %v2437_v16 }
  0xc8   : > { %2152 = vmatmul.mubr.msk.bf16.gmra.mrb[8].mxu0 %vm589_vm15, %v1226_v18 }
  0xc9   : > { %2155 = vmatprep.mubr.msk.bf16.mxu0 %vm2438_vm0, %v2437_v16 }
  0xcd   : > { %2056 = vmatmul.mubr.msk.bf16.vlgmr.msra.gmra.mrb[0].mxu1 %vm589_vm15, %v2623_v9  ;;  %v1335_v9 = vld [vmem:[#allocation2 + $0x8] sm:$0xc] }
  0xce   : > { %2076 = vmatpush3.bf16.msra.mxu1 %v2412_v37  ;;  %2059 = vmatprep.mubr.msk.bf16.mxu1 %vm2438_vm0, %v2437_v16  ;;  %v1931_v25 = vcombine.low %v1335_v9, %v2700_v12  ;;  %v1380_v12 = vrot.slane %v2708_v15, 2  ;;  %v784_v37 = vrot.slane %v2720_v28, 1  ;;  %v2425_v28 = vld [vmem:[#allocation2 + $0x30] ss:$0 sps:$4 sm:$0x77]  }
  0xcf   : > { %2097 = vmatprep.subr.bf16.mxu1 %v2437_v16 }
  0xd0   : > { %2156 = vmatmul.mubr.msk.bf16.gmra.mrb[12].mxu0 %vm589_vm15, %v1228_v20  ;;  %v1377_v30 = vrot.slane %v1931_v25, 2  ;;  %v1381_v32 = vsel %vm1219_vm4, %v1378_v27, %v1380_v12  ;;  %v1383_v36 = vsel %vm1219_vm4, %v1380_v12, %v1382_v33  ;;  %v1504_v45 = vshll.u32 %v1931_v25, 16 }
  0xd1   : > { %2159 = vmatprep.mubr.msk.bf16.mxu0 %vm2438_vm0, %v2437_v16  ;;  %v1539_v20 = vshll.u32 %v2730_v34, 16 }
  0xd2   : > { %v1379_v31 = vsel %vm1219_vm4, %v1377_v30, %v1378_v27  ;;  %v1506_v61 = vrot.slane %v1504_v45, 3  ;;  %v1545_v30 = vshrl.u32 %v2425_v28, 16 }
  0xd4   : > { %v1547_v12 = vrot.slane %v1545_v30, 2 }
  0xd5   : > { %2060 = vmatmul.mubr.msk.bf16.gmra.mrb[4].mxu1 %vm589_vm15, %v2618_v60  ;;  %v2417_v60 = vld [vmem:[%s2980_s4 + $0x38] sm:$0xff]  }
  0xd6   : > { %2063 = vmatprep.mubr.msk.bf16.mxu1 %vm2438_vm0, %v2437_v16 }
  0xd8   : > { %2160 = vmatmul.mubr.msk.bf16.gmra.mrb[16].mxu0 %vm589_vm15, %v1230_v50 }
  0xd9   : > { %2165 = vmatprep.mubr.msk.bf16.mxu0 %vm2438_vm0, %v2437_v16 }
  0xdd   : > { %2064 = vmatmul.mubr.msk.bf16.gmra.mrb[8].mxu1 %vm589_vm15, %v2632_v22  ;;  %v782_v22 = vrot.slane %v2680_v63, 1 }
  0xde   : > { %2067 = vmatprep.mubr.msk.bf16.mxu1 %vm2438_vm0, %v2437_v16 }
  0xdf   : > { %v783_v10 = vsel %vm774_vm3, %v780_v58, %v782_v22  ;;  %v785_v23 = vsel %vm774_vm3, %v782_v22, %v784_v37 }
  0xe0   : > { %2166 = vmatmul.mubr.msk.bf16.vlgmr.msra.gmra.mrb[0].mxu0 %vm589_vm15, %v1379_v31 }
  0xe1   : > { %2186 = vmatpush3.bf16.msra.mxu0 %v2417_v60  ;;  %2169 = vmatprep.mubr.msk.bf16.mxu0 %vm2438_vm0, %v2437_v16  ;;  %v1548_v60 = vshll.u32 %v2425_v28, 16 }
  0xe2   : > { %2207 = vmatprep.subr.bf16.mxu0 %v2437_v16 }
  0xe5   : > { %2068 = vmatmul.mubr.msk.bf16.gmra.mrb[12].mxu1 %vm589_vm15, %v2661_v48  ;;  %v2424_v48 = vld [vmem:[%s2980_s4 + $0x40] sm:$0xff]  }
  0xe6   : > { %2071 = vmatprep.mubr.msk.bf16.mxu1 %vm2438_vm0, %v2437_v16 }
  0xe8   : > { %2170 = vmatmul.mubr.msk.bf16.gmra.mrb[4].mxu0 %vm589_vm15, %v1381_v32  ;;  %v1550_v32 = vrot.slane %v1548_v60, 3 }
  0xe9   : > { %2173 = vmatprep.mubr.msk.bf16.mxu0 %vm2438_vm0, %v2437_v16 }
  0xea   : > { %v1551_v33 = vor.u32 %v1550_v32, %v1547_v12 }
  0xed   : > { %2072 = vmatmul.mubr.msk.bf16.gmra.mrb[16].mxu1 %vm589_vm15, %v2680_v63  ;;  %v1532_v63 = vrot.slane %v1530_v49, 3 }
  0xee   : > { %2077 = vmatprep.mubr.msk.bf16.mxu1 %vm2438_vm0, %v2437_v16 }
  0xf0   : > { %2174 = vmatmul.mubr.msk.bf16.gmra.mrb[8].mxu0 %vm589_vm15, %v1383_v36 }
  0xf1   : > { %2177 = vmatprep.mubr.msk.bf16.mxu0 %vm2438_vm0, %v2437_v16 }
  0xf5   : > { %2078 = vmatmul.mubr.msk.bf16.vlgmr.msra.gmra.mrb[0].mxu1 %vm589_vm15, %v2675_v59  ;;  %v1501_v59 = vshrl.u32 %v1931_v25, 16  ;;  %v1541_v25 = vrot.slane %v1539_v20, 3 }
  0xf6   : > { %2098 = vmatpush3.bf16.msra.mxu1 %v2421_v38  ;;  %2081 = vmatprep.mubr.msk.bf16.mxu1 %vm2438_vm0, %v2437_v16 }
  0xf7   : > { %2229 = vmatprep.subr.bf16.mxu1 %v2437_v16  ;;  %v1503_v14 = vrot.slane %v1501_v59, 2 }
  0xf8   : > { %2178 = vmatmul.mubr.msk.bf16.gmra.mrb[12].mxu0 %vm589_vm15, %v1385_v40 }
  0xf9   : > { %2181 = vmatprep.mubr.msk.bf16.mxu0 %vm2438_vm0, %v2437_v16  ;;  %v1507_v4 = vor.u32 %v1506_v61, %v1503_v14 }
  0xfb   : > { %v1516_v5 = vsel %vm1499_vm6, %v1507_v4, %v1515_v62 }
  0xfd   : > { %2082 = vmatmul.mubr.msk.bf16.gmra.mrb[4].mxu1 %vm589_vm15, %v2685_v0  ;;  %v1518_v0 = vshrl.u32 %v2708_v15, 16  ;;  %v1527_v15 = vshrl.u32 %v2717_v26, 16  ;;  %v1536_v26 = vshrl.u32 %v2730_v34, 16 }
  0xfe   : > { %2085 = vmatprep.mubr.msk.bf16.mxu1 %vm2438_vm0, %v2437_v16 }
  0xff   : > { %v1520_v6 = vrot.slane %v1518_v0, 2  ;;  %v1529_v18 = vrot.slane %v1527_v15, 2  ;;  %v1538_v50 = vrot.slane %v1536_v26, 2 }
 0x100   : > { %2182 = vmatmul.mubr.msk.bf16.gmra.mrb[16].mxu0 %vm589_vm15, %v1387_v53 }
 0x101   : > { %2187 = vmatprep.mubr.msk.bf16.mxu0 %vm2438_vm0, %v2437_v16  ;;  %v1524_v57 = vor.u32 %v1523_v7, %v1520_v6  ;;  %v1533_v52 = vor.u32 %v1532_v63, %v1529_v18  ;;  %v1542_v27 = vor.u32 %v1541_v25, %v1538_v50 }
 0x103   : > { %v1525_v11 = vsel %vm1499_vm6, %v1515_v62, %v1524_v57  ;;  %v1534_v9 = vsel %vm1499_vm6, %v1524_v57, %v1533_v52  ;;  %v1543_v31 = vsel %vm1499_vm6, %v1533_v52, %v1542_v27 }
 0x105   : > { %2086 = vmatmul.mubr.msk.bf16.gmra.mrb[8].mxu1 %vm589_vm15, %v781_v2 }
 0x106   : > { %2089 = vmatprep.mubr.msk.bf16.mxu1 %vm2438_vm0, %v2437_v16 }
 0x108   : > { %2188 = vmatmul.mubr.msk.bf16.vlgmr.msra.gmra.mrb[0].mxu0 %vm589_vm15, %v1516_v5 }
 0x109   : > { %2208 = vmatpush3.bf16.msra.mxu0 %v2424_v48  ;;  %2191 = vmatprep.mubr.msk.bf16.mxu0 %vm2438_vm0, %v2437_v16 }
 0x10d   : > { %2090 = vmatmul.mubr.msk.bf16.gmra.mrb[12].mxu1 %vm589_vm15, %v783_v10 }
 0x10e   : > { %2093 = vmatprep.mubr.msk.bf16.mxu1 %vm2438_vm0, %v2437_v16 }
 0x110   : > { %2192 = vmatmul.mubr.msk.bf16.gmra.mrb[4].mxu0 %vm589_vm15, %v1525_v11 }
 0x111   : > { %2195 = vmatprep.mubr.msk.bf16.mxu0 %vm2438_vm0, %v2437_v16 }
 0x115   : > { %2094 = vmatmul.mubr.msk.bf16.gmra.mrb[16].mxu1 %vm589_vm15, %v785_v23 }
 0x116   : > { %2099 = vmatprep.mubr.msk.bf16.mxu1 %vm2438_vm0, %v2437_v16 }
 0x118   : > { %2196 = vmatmul.mubr.msk.bf16.gmra.mrb[8].mxu0 %vm589_vm15, %v1534_v9 }
 0x119   : > { %2199 = vmatprep.mubr.msk.bf16.mxu0 %vm2438_vm0, %v2437_v16 }
 0x11d   : > { %2100 = vmatmul.mubr.msk.bf16.vlgmr.msra.gmra.mrb[0].mxu1 %vm589_vm15, %v2711_v17  ;;  %v1674_v17 = vrot.slane %v2425_v28, 3 }
 0x11e   : > { %2230 = vmatpush3.bf16.msra.mxu1 %v2516_v13  ;;  %2103 = vmatprep.mubr.msk.bf16.mxu1 %vm2438_vm0, %v2437_v16  ;;  %v1552_v13 = vsel %vm1499_vm6, %v1542_v27, %v1551_v33 }
 0x120   : > { %2200 = vmatmul.mubr.msk.bf16.gmra.mrb[12].mxu0 %vm589_vm15, %v1543_v31 }
 0x121   : > { %2203 = vmatprep.mubr.msk.bf16.mxu0 %vm2438_vm0, %v2437_v16 }
 0x125   : > { %2104 = vmatmul.mubr.msk.bf16.gmra.mrb[4].mxu1 %vm589_vm15, %v2723_v29  ;;  %v1675_v29 = vsel %vm1664_vm5, %v1672_v55, %v1674_v17 }
 0x126   : > { %2107 = vmatprep.mubr.msk.bf16.mxu1 %vm2438_vm0, %v2437_v16 }
 0x128   : > { %2204 = vmatmul.mubr.msk.bf16.gmra.mrb[16].mxu0 %vm589_vm15, %v1552_v13 }
 0x129   : > { %2209 = vmatprep.mubr.msk.bf16.mxu0 %vm2438_vm0, %v2437_v16 }
 0x12d   : > { %2108 = vmatmul.mubr.msk.bf16.gmra.mrb[8].mxu1 %vm589_vm15, %v2733_v35 }
 0x12e   : > { %2111 = vmatprep.mubr.msk.bf16.mxu1 %vm2438_vm0, %v2437_v16 }
 0x130   : > { %2210 = vmatmul.mubr.msk.bf16.vlgmr.msra.gmra.mrb[0].mxu0 %vm589_vm15, %v2742_v43 }
 0x131   : > { %2213 = vmatprep.mubr.msk.bf16.mxu0 %vm2438_vm0, %v2437_v16 }
 0x135   : > { %2112 = vmatmul.mubr.msk.bf16.gmra.mrb[12].mxu1 %vm589_vm15, %v2745_v44 }
 0x136   : > { %2115 = vmatprep.mubr.msk.bf16.mxu1 %vm2438_vm0, %v2437_v16 }
 0x138   : > { %2214 = vmatmul.mubr.msk.bf16.gmra.mrb[4].mxu0 %vm589_vm15, %v2750_v46 }
 0x139   : > { %2217 = vmatprep.mubr.msk.bf16.mxu0 %vm2438_vm0, %v2437_v16 }
 0x13d   : > { %2116 = vmatmul.mubr.msk.bf16.gmra.mrb[16].mxu1 %vm589_vm15, %v2753_v47 }
 0x13e   : > { %2133 = vmatprep.mubr.msk.bf16.mxu1 %vm2438_vm0, %v2437_v16 }
 0x140   : > { %2218 = vmatmul.mubr.msk.bf16.gmra.mrb[8].mxu0 %vm589_vm15, %v2756_v51 }
 0x141   : > { %2221 = vmatprep.mubr.msk.bf16.mxu0 %vm2438_vm0, %v2437_v16 }
 0x145   : > { %2134 = vmatmul.mubr.msk.bf16.vlgmr.msra.gmra.mrb[12].mxu1 %vm589_vm15, %v2775_v8 }
 0x146   : > { %2137 = vmatprep.mubr.msk.bf16.mxu1 %vm2438_vm0, %v2437_v16 }
 0x148   : > { %2222 = vmatmul.mubr.msk.bf16.gmra.mrb[12].mxu0 %vm589_vm15, %v2768_v3 }
 0x149   : > { %2225 = vmatprep.mubr.msk.bf16.mxu0 %vm2438_vm0, %v2437_v16 }
 0x14d   : > { %2138 = vmatmul.mubr.msk.bf16.gmra.mrb[16].mxu1 %vm589_vm15, %v2780_v24 }
 0x150   : > { %2226 = vmatmul.mubr.msk.bf16.gmra.mrb[16].mxu0 %vm589_vm15, %v1675_v29 }
 0x1f0   : > { %v998_v35 = vpop.f32.mrb[0].mxu1 }
 0x1f1   : > { %v2101_v43 = vpop.f32.mrb[1].mxu1 }
 0x1f2   : > { %v1001_v44 = vpop.f32.mrb[2].mxu1 }
 0x1f3   : > { %v2102_v46 = vpop.f32.mrb[3].mxu1 }
 0x1f8   : > { %v1006_v47 = vpop.f32.mrb[4].mxu1 }
 0x1f9   : > { %v2105_v51 = vpop.f32.mrb[5].mxu1 }
 0x1fa   : > { %v1009_v3 = vpop.f32.mrb[6].mxu1 }
 0x1fb   : > { %v2106_v8 = vpop.f32.mrb[7].mxu1 }
 0x200   : > { %v1014_v16 = vpop.f32.mrb[8].mxu1 }
 0x201   : > { %v2109_v36 = vpop.f32.mrb[9].mxu1 }
 0x202   : > { %v1017_v38 = vpop.f32.mrb[10].mxu1 }
 0x203   : > { %v2110_v39 = vpop.f32.mrb[11].mxu1  ;;  %v1731_v34 = vpop.f32.mrb[0].mxu0 }
 0x204   : > { %v2231_v55 = vadd.f32 %v1731_v34, %v998_v35  ;;  %v2211_v24 = vpop.f32.mrb[1].mxu0 }
 0x205   : > { %v1734_v40 = vpop.f32.mrb[2].mxu0 }
 0x206   : > { %1780 = vst [vmem:[%s2961_s6] sm:$0xff] %v2231_v55  ;;  %v2232_v41 = vadd.f32 %v1734_v40, %v1001_v44  ;;  %v2212_v19 = vpop.f32.mrb[3].mxu0 }
 0x208   : > { %1781 = vst [vmem:[%s2961_s6 + $0x8] sm:$0xff] %v2232_v41 }
 0x20b   : > { %v1739_v21 = vpop.f32.mrb[4].mxu0 }
 0x20c   : > { %v2233_v42 = vadd.f32 %v1739_v21, %v1006_v47  ;;  %v2215_v59 = vpop.f32.mrb[5].mxu0 }
 0x20d   : > { %v1742_v45 = vpop.f32.mrb[6].mxu0 }
 0x20e   : > { %1782 = vst [vmem:[%s2961_s6 + $0x10] sm:$0xff] %v2233_v42  ;;  %v2234_v53 = vadd.f32 %v1742_v45, %v1009_v3  ;;  %v2216_v54 = vpop.f32.mrb[7].mxu0 }
 0x210   : > { %1783 = vst [vmem:[%s2961_s6 + $0x18] sm:$0xff] %v2234_v53 }
 0x213   : > { %v1747_v56 = vpop.f32.mrb[8].mxu0 }
 0x214   : > { %v2235_v58 = vadd.f32 %v1747_v56, %v1014_v16  ;;  %v2219_v14 = vpop.f32.mrb[9].mxu0 }
 0x215   : > { %v1750_v61 = vpop.f32.mrb[10].mxu0 }
 0x216   : > { %1784 = vst [vmem:[%s2961_s6 + $0x20] sm:$0xff] %v2235_v58  ;;  %v2236_v62 = vadd.f32 %v1750_v61, %v1017_v38  ;;  %v2220_v0 = vpop.f32.mrb[11].mxu0 }
 0x218   : > { %1785 = vst [vmem:[%s2961_s6 + $0x28] sm:$0xff] %v2236_v62  ;;  %v1187_v1 = vpop.f32.mrb[12].mxu1 }
 0x219   : > { %v2135_v2 = vpop.f32.mrb[13].mxu1 }
 0x21a   : > { %v1190_v4 = vpop.f32.mrb[14].mxu1 }
 0x21b   : > { %v2136_v48 = vpop.f32.mrb[15].mxu1  ;;  %v1755_v5 = vpop.f32.mrb[12].mxu0 }
 0x21c   : > { %v2237_v6 = vadd.f32 %v1755_v5, %v1187_v1  ;;  %v2223_v7 = vpop.f32.mrb[13].mxu0 }
 0x21d   : > { %v1758_v22 = vpop.f32.mrb[14].mxu0 }
 0x21e   : > { %1786 = vst [vmem:[%s2961_s6 + $0x30] sm:$0xff] %v2237_v6  ;;  %v2238_v57 = vadd.f32 %v1758_v22, %v1190_v4  ;;  %v2224_v15 = vpop.f32.mrb[15].mxu0 }
 0x220   : > { %1787 = vst [vmem:[%s2961_s6 + $0x38] sm:$0xff] %v2238_v57  ;;  %v1195_v49 = vpop.f32.mrb[16].mxu1 }
 0x221   : > { %v2139_v10 = vpop.f32.mrb[17].mxu1 }
 0x222   : > { %v1198_v11 = vpop.f32.mrb[18].mxu1 }
 0x223   : > { %v2140_v18 = vpop.f32.mrb[19].mxu1  ;;  %v1763_v63 = vpop.f32.mrb[16].mxu0 }
 0x224   : > { %v2239_v37 = vadd.f32 %v1763_v63, %v1195_v49  ;;  %v2227_v52 = vpop.f32.mrb[17].mxu0 }
 0x225   : > { %v1766_v26 = vpop.f32.mrb[18].mxu0 }
 0x226   : > { %1788 = vst [vmem:[%s2961_s6 + $0x40] sm:$0xff] %v2239_v37  ;;  %v2240_v20 = vadd.f32 %v1766_v26, %v1198_v11  ;;  %v2228_v23 = vpop.f32.mrb[19].mxu0 }
 0x228   : > { %1789 = vst [vmem:[%s2961_s6 + $0x48] sm:$0xff] %v2240_v20 }
 0x229 PF: > { %s15_s18 = sadd.s32 1, %s2434_s18  }
 0x22a   : > { %p12_p4 = scmp.ge.s32.totalorder %s15_s18, 4  }
 0x22c   :  { %14 = sbr.rel (!%p12_p4) target bundleno = 1 (0x1), region = 78 }

// kernel: densenet_forward.20
= control target key start
LH: loop header
LB: loop body
LE: loop exit
PB: predicated region body
PF: predicated region fallthrough
CT: control target
= control target key end

     0   :  { %vm164_vm0 = vcmask 261120   ;;  %s730_s3 = inlined_call_operand.vmem [shape: bf16[32,128], index: 3, kind: input, shape index: {}]   ;;  %s731_s0 = inlined_call_operand.vmem [shape: f32[128,32], index: 0, kind: input, shape index: {}]   ;;  %s732_s1 = inlined_call_operand.vmem [shape: f32[1,32], index: 1, kind: input, shape index: {}]   ;;  %s733_s2 = inlined_call_operand.vmem [shape: f32[1,32], index: 2, kind: input, shape index: {}]   ;;  %s734_s4 = inlined_call_operand.vmem [shape: f32[1,128], index: 4, kind: input, shape index: {}]   ;;  %s735_s5 = inlined_call_operand.vmem [shape: f32[128,128], index: 5, kind: output, shape index: {0}]   ;;  %s736_s6 = inlined_call_operand.vmem [shape: f32[8,128], index: 6, kind: output, shape index: {1}]  }
   0x1   :  { %v517_v0 = vld [vmem:[%s730_s3] sm:$0xff]   ;;  %v518_v1 = vld [vmem:[%s730_s3 + $0x8] sm:$0xff]   ;;  %v25_v8 = vld [vmem:[%s731_s0 + $0x10] sm:$0xff] }
   0x2   :  { %493 = vmatprep.subr.bf16.mxu0 %v517_v0  ;;  %v23_v2 = vld [vmem:[%s731_s0] sm:$0xff]  ;;  %v24_v3 = vld [vmem:[%s731_s0 + $0x8] sm:$0xff]  ;;  %513 = vmatprep.subr.bf16.mxu1 %v517_v0  ;;  %v26_v9 = vld [vmem:[%s731_s0 + $0x18] sm:$0xff] }
   0x3   :  { %v569_v4 = vld [vmem:[%s732_s1] ss:$0 sm:$0xff]  ;;  %494 = vmatpush3.bf16.msra.mxu0 %v517_v0  ;;  %515 = vmatpush3.bf16.msra.mxu1 %v517_v0  ;;  %v28_v13 = vld [vmem:[%s731_s0 + $0x28] sm:$0xff]  ;;  %v29_v14 = vld [vmem:[%s731_s0 + $0x30] sm:$0xff] }
   0x4   :  { %v46_v5 = vmul.f32 %v569_v4, %v23_v2  ;;  %v47_v6 = vmul.f32 %v569_v4, %v24_v3  ;;  %v576_v7 = vld [vmem:[%s733_s2] ss:$0 sm:$0xff]  ;;  %495 = vmatprep.subr.bf16.mxu0 %v518_v1  ;;  %v48_v10 = vmul.f32 %v569_v4, %v25_v8  ;;  %v49_v11 = vmul.f32 %v569_v4, %v26_v9  ;;  %v30_v19 = vld [vmem:[%s731_s0 + $0x38] sm:$0xff]  ;;  %v32_v37 = vld [vmem:[%s731_s0 + $0x48] sm:$0xff] }
   0x5   :  { %v27_v12 = vld [vmem:[%s731_s0 + $0x20] sm:$0xff]  ;;  %514 = vmatprep.subr.bf16.mxu1 %v518_v1  ;;  %v51_v18 = vmul.f32 %v569_v4, %v28_v13  ;;  %v52_v22 = vmul.f32 %v569_v4, %v29_v14  ;;  %v53_v23 = vmul.f32 %v569_v4, %v30_v19  ;;  %v33_v38 = vld [vmem:[%s731_s0 + $0x50] sm:$0xff]  ;;  %v34_v44 = vld [vmem:[%s731_s0 + $0x58] sm:$0xff]  ;;  %v55_v47 = vmul.f32 %v569_v4, %v32_v37 }
   0x6   :  { %v69_v15 = vadd.f32 %v576_v7, %v46_v5  ;;  %v70_v16 = vadd.f32 %v576_v7, %v47_v6  ;;  %v50_v17 = vmul.f32 %v569_v4, %v27_v12  ;;  %v71_v20 = vadd.f32 %v576_v7, %v48_v10  ;;  %v31_v36 = vld [vmem:[%s731_s0 + $0x40] sm:$0xff]  ;;  %v36_v50 = vld [vmem:[%s731_s0 + $0x68] sm:$0xff]  ;;  %v37_v62 = vld [vmem:[%s731_s0 + $0x70] sm:$0xff] }
   0x7   :  { %v72_v21 = vadd.f32 %v576_v7, %v49_v11  ;;  %496 = vmatpush3.bf16.msra.mxu0 %v518_v1  ;;  %516 = vmatpush3.bf16.msra.mxu1 %v518_v1  ;;  %v74_v31 = vadd.f32 %v576_v7, %v51_v18  ;;  %v75_v35 = vadd.f32 %v576_v7, %v52_v22  ;;  %v35_v49 = vld [vmem:[%s731_s0 + $0x60] sm:$0xff]  ;;  %v38_v9 = vld [vmem:[%s731_s0 + $0x78] sm:$0xff] }
   0x8   :  { %vm85_vm1 = vcmp.ge.f32.partialorder %v69_v15, 0.0  ;;  %vm86_vm2 = vcmp.ge.f32.partialorder %v70_v16, 0.0  ;;  %v101_v24 = vmul.f32 0.01, %v69_v15  ;;  %v102_v25 = vmul.f32 0.01, %v70_v16 }
   0x9   :  { %vm87_vm3 = vcmp.ge.f32.partialorder %v71_v20, 0.0  ;;  %vm88_vm4 = vcmp.ge.f32.partialorder %v72_v21, 0.0  ;;  %v103_v26 = vmul.f32 0.01, %v71_v20  ;;  %v104_v27 = vmul.f32 0.01, %v72_v21 }
   0xa   :  { %v117_v28 = vsel %vm85_vm1, %v69_v15, %v101_v24  ;;  %v118_v29 = vsel %vm86_vm2, %v70_v16, %v102_v25  ;;  %v73_v30 = vadd.f32 %v576_v7, %v50_v17  ;;  %vm90_vm6 = vcmp.ge.f32.partialorder %v74_v31, 0.0 }
   0xb   :  { %v133_v32 = vpack.c.bf16 %v118_v29, %v117_v28  ;;  %v119_v33 = vsel %vm87_vm3, %v71_v20, %v103_v26  ;;  %v120_v34 = vsel %vm88_vm4, %v72_v21, %v104_v27  ;;  %v106_v41 = vmul.f32 0.01, %v74_v31  ;;  %v661_v29 = vld [vmem:[%s734_s4] ss:$0 sm:$0xff] }
   0xc   :  { %v134_v39 = vpack.c.bf16 %v120_v34, %v119_v33  ;;  %vm89_vm5 = vcmp.ge.f32.partialorder %v73_v30, 0.0  ;;  %v105_v40 = vmul.f32 0.01, %v73_v30  ;;  %v76_v42 = vadd.f32 %v576_v7, %v53_v23 }
   0xd   :  { %497 = vmatprep.mubr.msk.bf16.mxu0 %vm164_vm0, %v133_v32  ;;  %vm91_vm7 = vcmp.ge.f32.partialorder %v75_v35, 0.0  ;;  %v107_v43 = vmul.f32 0.01, %v75_v35  ;;  %v54_v46 = vmul.f32 %v569_v4, %v31_v36  ;;  %v56_v48 = vmul.f32 %v569_v4, %v33_v38 }
   0xe   :  { %498 = vmatmul.mubr.msk.bf16.vlgmr.msra.gmra.mrb[0].mxu0 %vm164_vm0, %v134_v39  ;;  %v121_v45 = vsel %vm89_vm5, %v73_v30, %v105_v40  ;;  %v122_v51 = vsel %vm90_vm6, %v74_v31, %v106_v41  ;;  %vm92_vm8 = vcmp.ge.f32.partialorder %v76_v42, 0.0  ;;  %v108_v52 = vmul.f32 0.01, %v76_v42 }
   0xf   :  { %v123_v53 = vsel %vm91_vm7, %v75_v35, %v107_v43  ;;  %v135_v54 = vpack.c.bf16 %v122_v51, %v121_v45  ;;  %v77_v55 = vadd.f32 %v576_v7, %v54_v46  ;;  %v78_v56 = vadd.f32 %v576_v7, %v55_v47 }
  0x10   :  { %v57_v57 = vmul.f32 %v569_v4, %v34_v44  ;;  %v124_v58 = vsel %vm92_vm8, %v76_v42, %v108_v52  ;;  %v79_v59 = vadd.f32 %v576_v7, %v56_v48  ;;  %v58_v60 = vmul.f32 %v569_v4, %v35_v49 }
  0x11   :  { %v59_v61 = vmul.f32 %v569_v4, %v36_v50  ;;  %501 = vmatprep.mubr.msk.bf16.mxu0 %vm164_vm0, %v135_v54  ;;  %v136_v63 = vpack.c.bf16 %v124_v58, %v123_v53  ;;  %vm93_vm9 = vcmp.ge.f32.partialorder %v77_v55, 0.0  ;;  %vm94_vm10 = vcmp.ge.f32.partialorder %v78_v56, 0.0 }
  0x12   :  { %v109_v0 = vmul.f32 0.01, %v77_v55  ;;  %v110_v1 = vmul.f32 0.01, %v78_v56  ;;  %v80_v2 = vadd.f32 %v576_v7, %v57_v57  ;;  %vm95_vm11 = vcmp.ge.f32.partialorder %v79_v59, 0.0 }
  0x13   :  { %v111_v3 = vmul.f32 0.01, %v79_v59  ;;  %v81_v6 = vadd.f32 %v576_v7, %v58_v60  ;;  %v82_v8 = vadd.f32 %v576_v7, %v59_v61  ;;  %v60_v10 = vmul.f32 %v569_v4, %v37_v62 }
  0x14   :  { %v125_v5 = vsel %vm93_vm9, %v77_v55, %v109_v0  ;;  %v126_v11 = vsel %vm94_vm10, %v78_v56, %v110_v1  ;;  %vm96_vm12 = vcmp.ge.f32.partialorder %v80_v2, 0.0  ;;  %v112_v12 = vmul.f32 0.01, %v80_v2 }
  0x15   :  { %v127_v13 = vsel %vm95_vm11, %v79_v59, %v111_v3  ;;  %v137_v14 = vpack.c.bf16 %v126_v11, %v125_v5  ;;  %vm97_vm13 = vcmp.ge.f32.partialorder %v81_v6, 0.0  ;;  %vm98_vm14 = vcmp.ge.f32.partialorder %v82_v8, 0.0 }
  0x16   :  { %502 = vmatmul.mubr.msk.bf16.gmra.mrb[4].mxu0 %vm164_vm0, %v136_v63  ;;  %v113_v15 = vmul.f32 0.01, %v81_v6  ;;  %v128_v16 = vsel %vm96_vm12, %v80_v2, %v112_v12  ;;  %v114_v17 = vmul.f32 0.01, %v82_v8  ;;  %v61_v18 = vmul.f32 %v569_v4, %v38_v9 }
  0x17   :  { %v83_v19 = vadd.f32 %v576_v7, %v60_v10  ;;  %505 = vmatprep.mubr.msk.bf16.mxu1 %vm164_vm0, %v137_v14  ;;  %v138_v20 = vpack.c.bf16 %v128_v16, %v127_v13 }
  0x18   :  { %v129_v21 = vsel %vm97_vm13, %v81_v6, %v113_v15  ;;  %v130_v22 = vsel %vm98_vm14, %v82_v8, %v114_v17  ;;  %v84_v23 = vadd.f32 %v576_v7, %v61_v18 }
  0x19   :  { %vm99_vm15 = vcmp.ge.f32.partialorder %v83_v19, 0.0  ;;  %v115_v24 = vmul.f32 0.01, %v83_v19  ;;  %506 = vmatmul.mubr.msk.bf16.vlgmr.msra.gmra.mrb[0].mxu1 %vm164_vm0, %v138_v20  ;;  %v139_v25 = vpack.c.bf16 %v130_v22, %v129_v21 }
  0x1a   :  { %vm100_vm1 = vcmp.ge.f32.partialorder %v84_v23, 0.0  ;;  %v116_v26 = vmul.f32 0.01, %v84_v23 }
  0x1b   :  { %v131_v27 = vsel %vm99_vm15, %v83_v19, %v115_v24  ;;  %509 = vmatprep.mubr.msk.bf16.mxu1 %vm164_vm0, %v139_v25 }
  0x1c   :  { %v132_v4 = vsel %vm100_vm1, %v84_v23, %v116_v26 }
  0x1d   :  { %v140_v28 = vpack.c.bf16 %v132_v4, %v131_v27 }
  0x21   :  { %510 = vmatmul.mubr.msk.bf16.gmra.mrb[4].mxu1 %vm164_vm0, %v140_v28 }
  0xe1   :  { %v499_v7 = vpop.f32.mrb[0].mxu0 }
  0xe2   :  { %v232_v30 = vadd.f32 %v499_v7, %v661_v29  ;;  %v223_v31 = vpop.f32.mrb[1].mxu0 }
  0xe3   :  { %v224_v32 = vadd.f32 %v661_v29, %v223_v31  ;;  %v500_v33 = vpop.f32.mrb[2].mxu0 }
  0xe4   :  { %288 = vst [vmem:[%s735_s5 + $0x10] sm:$0xff] %v232_v30  ;;  %v235_v34 = vadd.f32 %v500_v33, %v661_v29  ;;  %v226_v35 = vpop.f32.mrb[3].mxu0  ;;  %v424_v40 = vmul.f32 %v232_v30, %v232_v30 }
  0xe5   :  { %286 = vst [vmem:[%s735_s5] sm:$0xff] %v224_v32  ;;  %v227_v36 = vadd.f32 %v661_v29, %v226_v35  ;;  %v422_v37 = vmul.f32 %v224_v32, %v224_v32 }
  0xe6   :  { %289 = vst [vmem:[%s735_s5 + $0x18] sm:$0xff] %v235_v34  ;;  %v425_v46 = vmul.f32 %v235_v34, %v235_v34 }
  0xe7   :  { %287 = vst [vmem:[%s735_s5 + $0x8] sm:$0xff] %v227_v36  ;;  %v401_v38 = vadd.f32 %v227_v36, %v224_v32  ;;  %v423_v39 = vmul.f32 %v227_v36, %v227_v36 }
  0xe9   :  { %v402_v41 = vadd.f32 %v401_v38, %v232_v30  ;;  %v438_v42 = vadd.f32 %v423_v39, %v422_v37  ;;  %v503_v43 = vpop.f32.mrb[4].mxu0 }
  0xea   :  { %v248_v44 = vadd.f32 %v503_v43, %v661_v29  ;;  %v239_v45 = vpop.f32.mrb[5].mxu0 }
  0xeb   :  { %v439_v47 = vadd.f32 %v438_v42, %v424_v40  ;;  %v240_v48 = vadd.f32 %v661_v29, %v239_v45  ;;  %v403_v49 = vadd.f32 %v402_v41, %v235_v34  ;;  %v504_v50 = vpop.f32.mrb[6].mxu0 }
  0xec   :  { %292 = vst [vmem:[%s735_s5 + $0x30] sm:$0xff] %v248_v44  ;;  %v251_v51 = vadd.f32 %v504_v50, %v661_v29  ;;  %v242_v52 = vpop.f32.mrb[7].mxu0  ;;  %v507_v57 = vpop.f32.mrb[0].mxu1  ;;  %v428_v3 = vmul.f32 %v248_v44, %v248_v44 }
  0xed   :  { %290 = vst [vmem:[%s735_s5 + $0x20] sm:$0xff] %v240_v48  ;;  %v404_v53 = vadd.f32 %v403_v49, %v240_v48  ;;  %v426_v54 = vmul.f32 %v240_v48, %v240_v48  ;;  %v440_v55 = vadd.f32 %v439_v47, %v425_v46  ;;  %v243_v56 = vadd.f32 %v661_v29, %v242_v52  ;;  %v255_v59 = vpop.f32.mrb[1].mxu1 }
  0xee   :  { %293 = vst [vmem:[%s735_s5 + $0x38] sm:$0xff] %v251_v51  ;;  %v264_v58 = vadd.f32 %v507_v57, %v661_v29  ;;  %v256_v63 = vadd.f32 %v661_v29, %v255_v59  ;;  %v508_v0 = vpop.f32.mrb[2].mxu1  ;;  %v429_v9 = vmul.f32 %v251_v51, %v251_v51  ;;  %v303_v46 = vlaneseq }
  0xef   :  { %v441_v60 = vadd.f32 %v440_v55, %v426_v54  ;;  %291 = vst [vmem:[%s735_s5 + $0x28] sm:$0xff] %v243_v56  ;;  %v405_v61 = vadd.f32 %v404_v53, %v243_v56  ;;  %v427_v62 = vmul.f32 %v243_v56, %v243_v56  ;;  %v267_v1 = vadd.f32 %v508_v0, %v661_v29  ;;  %v258_v2 = vpop.f32.mrb[3].mxu1 }
  0xf0   :  { %296 = vst [vmem:[%s735_s5 + $0x50] sm:$0xff] %v264_v58  ;;  %294 = vst [vmem:[%s735_s5 + $0x40] sm:$0xff] %v256_v63  ;;  %v259_v8 = vadd.f32 %v661_v29, %v258_v2  ;;  %v430_v12 = vmul.f32 %v256_v63, %v256_v63  ;;  %v432_v25 = vmul.f32 %v264_v58, %v264_v58 }
  0xf1   :  { %v406_v5 = vadd.f32 %v405_v61, %v248_v44  ;;  %v442_v6 = vadd.f32 %v441_v60, %v427_v62  ;;  %297 = vst [vmem:[%s735_s5 + $0x58] sm:$0xff] %v267_v1  ;;  %v433_v28 = vmul.f32 %v267_v1, %v267_v1 }
  0xf2   :  { %295 = vst [vmem:[%s735_s5 + $0x48] sm:$0xff] %v259_v8  ;;  %v431_v20 = vmul.f32 %v259_v8, %v259_v8 }
  0xf3   :  { %v443_v10 = vadd.f32 %v442_v6, %v428_v3  ;;  %v407_v11 = vadd.f32 %v406_v5, %v251_v51  ;;  %v304_v51 = vshrl.u32 %v303_v46, 7 }
  0xf4   :  { %v511_v15 = vpop.f32.mrb[4].mxu1 }
  0xf5   :  { %v408_v13 = vadd.f32 %v407_v11, %v256_v63  ;;  %v444_v14 = vadd.f32 %v443_v10, %v429_v9  ;;  %v280_v16 = vadd.f32 %v511_v15, %v661_v29  ;;  %v271_v17 = vpop.f32.mrb[5].mxu1  ;;  %vm459_vm0 = vcmp.lt.s32.totalorder %v304_v51, 4 }
  0xf6   :  { %v272_v21 = vadd.f32 %v661_v29, %v271_v17  ;;  %v512_v22 = vpop.f32.mrb[6].mxu1 }
  0xf7   :  { %v445_v18 = vadd.f32 %v444_v14, %v430_v12  ;;  %v409_v19 = vadd.f32 %v408_v13, %v259_v8  ;;  %300 = vst [vmem:[%s735_s5 + $0x70] sm:$0xff] %v280_v16  ;;  %v283_v23 = vadd.f32 %v512_v22, %v661_v29  ;;  %v274_v24 = vpop.f32.mrb[7].mxu1  ;;  %v436_v37 = vmul.f32 %v280_v16, %v280_v16 }
  0xf8   :  { %298 = vst [vmem:[%s735_s5 + $0x60] sm:$0xff] %v272_v21  ;;  %v275_v4 = vadd.f32 %v661_v29, %v274_v24  ;;  %v434_v31 = vmul.f32 %v272_v21, %v272_v21 }
  0xf9   :  { %v410_v26 = vadd.f32 %v409_v19, %v264_v58  ;;  %v446_v27 = vadd.f32 %v445_v18, %v431_v20  ;;  %301 = vst [vmem:[%s735_s5 + $0x78] sm:$0xff] %v283_v23  ;;  %v437_v39 = vmul.f32 %v283_v23, %v283_v23 }
  0xfa   :  { %299 = vst [vmem:[%s735_s5 + $0x68] sm:$0xff] %v275_v4  ;;  %v435_v36 = vmul.f32 %v275_v4, %v275_v4 }
  0xfb   :  { %v447_v7 = vadd.f32 %v446_v27, %v432_v25  ;;  %v411_v30 = vadd.f32 %v410_v26, %v267_v1 }
  0xfd   :  { %v412_v32 = vadd.f32 %v411_v30, %v272_v21  ;;  %v448_v33 = vadd.f32 %v447_v7, %v433_v28 }
  0xff   :  { %v449_v34 = vadd.f32 %v448_v33, %v434_v31  ;;  %v413_v35 = vadd.f32 %v412_v32, %v275_v4 }
 0x101   :  { %v414_v38 = vadd.f32 %v413_v35, %v280_v16  ;;  %v450_v29 = vadd.f32 %v449_v34, %v435_v36 }
 0x103   :  { %v415_v40 = vadd.f32 %v414_v38, %v283_v23  ;;  %v451_v41 = vadd.f32 %v450_v29, %v436_v37 }
 0x105   :  { %v416_v42 = vrot.slane %v415_v40, 4  ;;  %v452_v43 = vadd.f32 %v451_v41, %v437_v39 }
 0x107   :  { %v417_v44 = vadd.f32 %v416_v42, %v415_v40  ;;  %v453_v45 = vrot.slane %v452_v43, 4 }
 0x109   :  { %v418_v47 = vrot.slane %v417_v44, 2  ;;  %v454_v48 = vadd.f32 %v453_v45, %v452_v43 }
 0x10b   :  { %v419_v49 = vadd.f32 %v418_v47, %v417_v44  ;;  %v455_v50 = vrot.slane %v454_v48, 2 }
 0x10d   :  { %v420_v52 = vrot.slane %v419_v49, 1  ;;  %v456_v53 = vadd.f32 %v455_v50, %v454_v48 }
 0x10f   :  { %v457_v54 = vrot.slane %v456_v53, 1  ;;  %v421_v55 = vadd.f32 %v420_v52, %v419_v49 }
 0x111   :  { %v458_v56 = vadd.f32 %v457_v54, %v456_v53 }
 0x113   :  { %v460_v57 = vsel %vm459_vm0, %v421_v55, %v458_v56 }
 0x114   :  { %461 = vst [vmem:[%s736_s6] sm:$0xff] %v460_v57 }

// kernel: densenet_forward.22
= control target key start
LH: loop header
LB: loop body
LE: loop exit
PB: predicated region body
PF: predicated region fallthrough
CT: control target
= control target key end

     0   :  { %vm193_vm0 = vcmask 1043456   ;;  %vm168_vm1 = vcmask 326656   ;;  %s754_s3 = inlined_call_operand.vmem [shape: bf16[40,128], index: 3, kind: input, shape index: {}]   ;;  %s755_s0 = inlined_call_operand.vmem [shape: f32[128,40], index: 0, kind: input, shape index: {}]   ;;  %s756_s1 = inlined_call_operand.vmem [shape: f32[1,40], index: 1, kind: input, shape index: {}]   ;;  %s757_s2 = inlined_call_operand.vmem [shape: f32[1,40], index: 2, kind: input, shape index: {}]   ;;  %s758_s4 = inlined_call_operand.vmem [shape: f32[1,128], index: 4, kind: input, shape index: {}]   ;;  %s759_s5 = inlined_call_operand.vmem [shape: f32[128,128], index: 5, kind: output, shape index: {0}]   ;;  %s760_s6 = inlined_call_operand.vmem [shape: f32[8,128], index: 6, kind: output, shape index: {1}]  }
   0x1   :  { %v533_v0 = vld [vmem:[%s754_s3] sm:$0xff]   ;;  %v534_v1 = vld [vmem:[%s754_s3 + $0x8] sm:$0xff]   ;;  %v535_v2 = vld [vmem:[%s754_s3 + $0x10] ss:$0 sps:$4 sm:$0xff]  }
   0x2   :  { %503 = vmatprep.subr.bf16.mxu0 %v533_v0  ;;  %v23_v3 = vld [vmem:[%s755_s0] sm:$0xff]  ;;  %525 = vmatprep.subr.bf16.mxu1 %v533_v0  ;;  %v24_v4 = vld [vmem:[%s755_s0 + $0x8] sm:$0xff]  ;;  %v25_v9 = vld [vmem:[%s755_s0 + $0x10] sm:$0xff]  ;;  %v195_v21 = vsel %vm193_vm0, %v535_v2, 0 }
   0x3   :  { %504 = vmatpush3.bf16.msra.mxu0 %v533_v0  ;;  %v589_v5 = vld [vmem:[%s756_s1] ss:$0 sm:$0xff]  ;;  %528 = vmatpush3.bf16.msra.mxu1 %v533_v0  ;;  %v26_v10 = vld [vmem:[%s755_s0 + $0x18] sm:$0xff]  ;;  %v28_v14 = vld [vmem:[%s755_s0 + $0x28] sm:$0xff] }
   0x4   :  { %v594_v6 = vld [vmem:[%s757_s2] ss:$0 sm:$0xff]  ;;  %505 = vmatprep.subr.bf16.mxu0 %v534_v1  ;;  %v46_v7 = vmul.f32 %v589_v5, %v23_v3  ;;  %v47_v8 = vmul.f32 %v589_v5, %v24_v4  ;;  %526 = vmatprep.subr.bf16.mxu1 %v534_v1  ;;  %v48_v12 = vmul.f32 %v589_v5, %v25_v9  ;;  %v29_v16 = vld [vmem:[%s755_s0 + $0x30] sm:$0xff]  ;;  %v30_v25 = vld [vmem:[%s755_s0 + $0x38] sm:$0xff] }
   0x5   :  { %v27_v11 = vld [vmem:[%s755_s0 + $0x20] sm:$0xff]  ;;  %v49_v13 = vmul.f32 %v589_v5, %v26_v10  ;;  %v51_v19 = vmul.f32 %v589_v5, %v28_v14  ;;  %v52_v20 = vmul.f32 %v589_v5, %v29_v16  ;;  %v32_v34 = vld [vmem:[%s755_s0 + $0x48] sm:$0xff]  ;;  %v33_v39 = vld [vmem:[%s755_s0 + $0x50] sm:$0xff]  ;;  %v53_v43 = vmul.f32 %v589_v5, %v30_v25 }
   0x6   :  { %v50_v15 = vmul.f32 %v589_v5, %v27_v11  ;;  %v69_v17 = vadd.f32 %v594_v6, %v46_v7  ;;  %v70_v18 = vadd.f32 %v594_v6, %v47_v8  ;;  %v71_v22 = vadd.f32 %v594_v6, %v48_v12  ;;  %v31_v33 = vld [vmem:[%s755_s0 + $0x40] sm:$0xff]  ;;  %v34_v40 = vld [vmem:[%s755_s0 + $0x58] sm:$0xff]  ;;  %v36_v62 = vld [vmem:[%s755_s0 + $0x68] sm:$0xff] }
   0x7   :  { %506 = vmatpush3.bf16.msra.mxu0 %v534_v1  ;;  %v72_v23 = vadd.f32 %v594_v6, %v49_v13  ;;  %529 = vmatpush3.bf16.msra.mxu1 %v534_v1  ;;  %v74_v32 = vadd.f32 %v594_v6, %v51_v19  ;;  %v75_v45 = vadd.f32 %v594_v6, %v52_v20  ;;  %v35_v61 = vld [vmem:[%s755_s0 + $0x60] sm:$0xff]  ;;  %v37_v1 = vld [vmem:[%s755_s0 + $0x70] sm:$0xff] }
   0x8   :  { %v73_v24 = vadd.f32 %v594_v6, %v50_v15  ;;  %531 = vmatprep.subr.msk.bf16.mxu0 %vm193_vm0, %v535_v2  ;;  %vm85_vm2 = vcmp.ge.f32.partialorder %v69_v17, 0.0  ;;  %vm86_vm3 = vcmp.ge.f32.partialorder %v70_v18, 0.0  ;;  %v101_v26 = vmul.f32 0.01, %v69_v17  ;;  %532 = vmatprep.subr.msk.bf16.mxu1 %vm193_vm0, %v535_v2  ;;  %v38_v2 = vld [vmem:[%s755_s0 + $0x78] sm:$0xff] }
   0x9   :  { %v102_v27 = vmul.f32 0.01, %v70_v18  ;;  %vm87_vm4 = vcmp.ge.f32.partialorder %v71_v22, 0.0  ;;  %vm88_vm5 = vcmp.ge.f32.partialorder %v72_v23, 0.0  ;;  %v103_v28 = vmul.f32 0.01, %v71_v22 }
   0xa   :  { %v104_v29 = vmul.f32 0.01, %v72_v23  ;;  %v117_v30 = vsel %vm85_vm2, %v69_v17, %v101_v26  ;;  %vm89_vm6 = vcmp.ge.f32.partialorder %v73_v24, 0.0  ;;  %v105_v38 = vmul.f32 0.01, %v73_v24 }
   0xb   :  { %v118_v31 = vsel %vm86_vm3, %v70_v18, %v102_v27  ;;  %508 = vmatpush3.bf16.msra.mxu0 %v195_v21  ;;  %v119_v36 = vsel %vm87_vm4, %v71_v22, %v103_v28  ;;  %530 = vmatpush3.bf16.msra.mxu1 %v195_v21  ;;  %vm90_vm7 = vcmp.ge.f32.partialorder %v74_v32, 0.0  ;;  %v106_v42 = vmul.f32 0.01, %v74_v32 }
   0xc   :  { %v133_v35 = vpack.c.bf16 %v118_v31, %v117_v30  ;;  %v120_v37 = vsel %vm88_vm5, %v72_v23, %v104_v29  ;;  %v121_v44 = vsel %vm89_vm6, %v73_v24, %v105_v38  ;;  %v54_v46 = vmul.f32 %v589_v5, %v31_v33 }
   0xd   :  { %v134_v41 = vpack.c.bf16 %v120_v37, %v119_v36  ;;  %v55_v47 = vmul.f32 %v589_v5, %v32_v34  ;;  %v122_v48 = vsel %vm90_vm7, %v74_v32, %v106_v42  ;;  %v76_v49 = vadd.f32 %v594_v6, %v53_v43 }
   0xe   :  { %509 = vmatprep.mubr.msk.bf16.mxu0 %vm168_vm1, %v133_v35  ;;  %v56_v50 = vmul.f32 %v589_v5, %v33_v39  ;;  %v57_v51 = vmul.f32 %v589_v5, %v34_v40  ;;  %v135_v52 = vpack.c.bf16 %v122_v48, %v121_v44  ;;  %vm91_vm8 = vcmp.ge.f32.partialorder %v75_v45, 0.0 }
   0xf   :  { %510 = vmatmul.mubr.msk.bf16.vlgmr.msra.gmra.mrb[0].mxu0 %vm168_vm1, %v134_v41  ;;  %v107_v53 = vmul.f32 0.01, %v75_v45  ;;  %v77_v54 = vadd.f32 %v594_v6, %v54_v46  ;;  %vm92_vm9 = vcmp.ge.f32.partialorder %v76_v49, 0.0  ;;  %v108_v55 = vmul.f32 0.01, %v76_v49 }
  0x10   :  { %v78_v56 = vadd.f32 %v594_v6, %v55_v47  ;;  %v79_v57 = vadd.f32 %v594_v6, %v56_v50  ;;  %513 = vmatprep.mubr.msk.bf16.mxu0 %vm168_vm1, %v135_v52  ;;  %v80_v60 = vadd.f32 %v594_v6, %v57_v51  ;;  %v58_v10 = vmul.f32 %v589_v5, %v35_v61 }
  0x11   :  { %v123_v58 = vsel %vm91_vm8, %v75_v45, %v107_v53  ;;  %vm93_vm10 = vcmp.ge.f32.partialorder %v77_v54, 0.0  ;;  %v109_v59 = vmul.f32 0.01, %v77_v54  ;;  %v124_v63 = vsel %vm92_vm9, %v76_v49, %v108_v55 }
  0x12   :  { %vm94_vm11 = vcmp.ge.f32.partialorder %v78_v56, 0.0  ;;  %v110_v0 = vmul.f32 0.01, %v78_v56  ;;  %vm95_vm12 = vcmp.ge.f32.partialorder %v79_v57, 0.0  ;;  %v136_v3 = vpack.c.bf16 %v124_v63, %v123_v58 }
  0x13   :  { %v125_v4 = vsel %vm93_vm10, %v77_v54, %v109_v59  ;;  %vm96_vm13 = vcmp.ge.f32.partialorder %v80_v60, 0.0  ;;  %v111_v7 = vmul.f32 0.01, %v79_v57  ;;  %v112_v9 = vmul.f32 0.01, %v80_v60 }
  0x14   :  { %v126_v8 = vsel %vm94_vm11, %v78_v56, %v110_v0  ;;  %v59_v11 = vmul.f32 %v589_v5, %v36_v62  ;;  %v60_v14 = vmul.f32 %v589_v5, %v37_v1  ;;  %v61_v15 = vmul.f32 %v589_v5, %v38_v2 }
  0x15   :  { %v137_v12 = vpack.c.bf16 %v126_v8, %v125_v4  ;;  %v127_v13 = vsel %vm95_vm12, %v79_v57, %v111_v7  ;;  %v128_v16 = vsel %vm96_vm13, %v80_v60, %v112_v9  ;;  %v81_v17 = vadd.f32 %v594_v6, %v58_v10 }
  0x16   :  { %v82_v18 = vadd.f32 %v594_v6, %v59_v11  ;;  %v138_v19 = vpack.c.bf16 %v128_v16, %v127_v13  ;;  %v83_v20 = vadd.f32 %v594_v6, %v60_v14  ;;  %v84_v21 = vadd.f32 %v594_v6, %v61_v15  ;;  %v685_v6 = vld [vmem:[%s758_s4] ss:$0 sm:$0xff] }
  0x17   :  { %514 = vmatmul.mubr.msk.bf16.gmra.mrb[4].mxu0 %vm168_vm1, %v136_v3  ;;  %517 = vmatprep.mubr.msk.bf16.mxu1 %vm168_vm1, %v137_v12  ;;  %vm97_vm14 = vcmp.ge.f32.partialorder %v81_v17, 0.0  ;;  %v113_v22 = vmul.f32 0.01, %v81_v17 }
  0x18   :  { %vm98_vm15 = vcmp.ge.f32.partialorder %v82_v18, 0.0  ;;  %v114_v23 = vmul.f32 0.01, %v82_v18  ;;  %518 = vmatmul.mubr.msk.bf16.vlgmr.msra.gmra.mrb[0].mxu1 %vm168_vm1, %v138_v19  ;;  %vm99_vm0 = vcmp.ge.f32.partialorder %v83_v20, 0.0  ;;  %vm100_vm2 = vcmp.ge.f32.partialorder %v84_v21, 0.0 }
  0x19   :  { %v115_v5 = vmul.f32 0.01, %v83_v20  ;;  %v116_v24 = vmul.f32 0.01, %v84_v21  ;;  %v129_v25 = vsel %vm97_vm14, %v81_v17, %v113_v22 }
  0x1a   :  { %v130_v26 = vsel %vm98_vm15, %v82_v18, %v114_v23 }
  0x1b   :  { %v139_v27 = vpack.c.bf16 %v130_v26, %v129_v25  ;;  %v131_v28 = vsel %vm99_vm0, %v83_v20, %v115_v5  ;;  %v132_v29 = vsel %vm100_vm2, %v84_v21, %v116_v24 }
  0x1c   :  { %v140_v30 = vpack.c.bf16 %v132_v29, %v131_v28 }
  0x1d   :  { %521 = vmatprep.mubr.msk.bf16.mxu1 %vm168_vm1, %v139_v27 }
  0x20   :  { %522 = vmatmul.mubr.msk.bf16.gmra.mrb[4].mxu1 %vm168_vm1, %v140_v30 }
  0xe2   :  { %v511_v31 = vpop.f32.mrb[0].mxu0 }
  0xe3   :  { %v240_v32 = vadd.f32 %v511_v31, %v685_v6  ;;  %v231_v33 = vpop.f32.mrb[1].mxu0 }
  0xe4   :  { %v232_v34 = vadd.f32 %v685_v6, %v231_v33  ;;  %v512_v35 = vpop.f32.mrb[2].mxu0 }
  0xe5   :  { %296 = vst [vmem:[%s759_s5 + $0x10] sm:$0xff] %v240_v32  ;;  %v243_v36 = vadd.f32 %v512_v35, %v685_v6  ;;  %v234_v37 = vpop.f32.mrb[3].mxu0  ;;  %v432_v42 = vmul.f32 %v240_v32, %v240_v32 }
  0xe6   :  { %294 = vst [vmem:[%s759_s5] sm:$0xff] %v232_v34  ;;  %v235_v38 = vadd.f32 %v685_v6, %v234_v37  ;;  %v430_v39 = vmul.f32 %v232_v34, %v232_v34 }
  0xe7   :  { %297 = vst [vmem:[%s759_s5 + $0x18] sm:$0xff] %v243_v36  ;;  %v433_v48 = vmul.f32 %v243_v36, %v243_v36 }
  0xe8   :  { %295 = vst [vmem:[%s759_s5 + $0x8] sm:$0xff] %v235_v38  ;;  %v409_v40 = vadd.f32 %v235_v38, %v232_v34  ;;  %v431_v41 = vmul.f32 %v235_v38, %v235_v38 }
  0xea   :  { %v410_v43 = vadd.f32 %v409_v40, %v240_v32  ;;  %v446_v44 = vadd.f32 %v431_v41, %v430_v39  ;;  %v515_v45 = vpop.f32.mrb[4].mxu0 }
  0xeb   :  { %v256_v46 = vadd.f32 %v515_v45, %v685_v6  ;;  %v247_v47 = vpop.f32.mrb[5].mxu0  ;;  %v519_v55 = vpop.f32.mrb[0].mxu1 }
  0xec   :  { %v447_v49 = vadd.f32 %v446_v44, %v432_v42  ;;  %v248_v50 = vadd.f32 %v685_v6, %v247_v47  ;;  %v411_v51 = vadd.f32 %v410_v43, %v243_v36  ;;  %v516_v52 = vpop.f32.mrb[6].mxu0  ;;  %v263_v60 = vpop.f32.mrb[1].mxu1  ;;  %v272_v61 = vadd.f32 %v519_v55, %v685_v6 }
  0xed   :  { %300 = vst [vmem:[%s759_s5 + $0x30] sm:$0xff] %v256_v46  ;;  %v259_v53 = vadd.f32 %v516_v52, %v685_v6  ;;  %v250_v54 = vpop.f32.mrb[7].mxu0  ;;  %v264_v62 = vadd.f32 %v685_v6, %v263_v60  ;;  %v520_v63 = vpop.f32.mrb[2].mxu1  ;;  %v436_v8 = vmul.f32 %v256_v46, %v256_v46 }
  0xee   :  { %298 = vst [vmem:[%s759_s5 + $0x20] sm:$0xff] %v248_v50  ;;  %v412_v56 = vadd.f32 %v411_v51, %v248_v50  ;;  %v434_v57 = vmul.f32 %v248_v50, %v248_v50  ;;  %v448_v58 = vadd.f32 %v447_v49, %v433_v48  ;;  %v251_v59 = vadd.f32 %v685_v6, %v250_v54  ;;  %v266_v4 = vpop.f32.mrb[3].mxu1 }
  0xef   :  { %301 = vst [vmem:[%s759_s5 + $0x38] sm:$0xff] %v259_v53  ;;  %v275_v3 = vadd.f32 %v520_v63, %v685_v6  ;;  %304 = vst [vmem:[%s759_s5 + $0x50] sm:$0xff] %v272_v61  ;;  %v267_v7 = vadd.f32 %v685_v6, %v266_v4  ;;  %v437_v11 = vmul.f32 %v259_v53, %v259_v53  ;;  %v311_v48 = vlaneseq }
  0xf0   :  { %v449_v0 = vadd.f32 %v448_v58, %v434_v57  ;;  %299 = vst [vmem:[%s759_s5 + $0x28] sm:$0xff] %v251_v59  ;;  %v413_v1 = vadd.f32 %v412_v56, %v251_v59  ;;  %v435_v2 = vmul.f32 %v251_v59, %v251_v59  ;;  %302 = vst [vmem:[%s759_s5 + $0x40] sm:$0xff] %v264_v62 }
  0xf1   :  { %305 = vst [vmem:[%s759_s5 + $0x58] sm:$0xff] %v275_v3  ;;  %303 = vst [vmem:[%s759_s5 + $0x48] sm:$0xff] %v267_v7  ;;  %v438_v14 = vmul.f32 %v264_v62, %v264_v62  ;;  %v439_v5 = vmul.f32 %v267_v7, %v267_v7  ;;  %v440_v27 = vmul.f32 %v272_v61, %v272_v61 }
  0xf2   :  { %v414_v9 = vadd.f32 %v413_v1, %v256_v46  ;;  %v450_v10 = vadd.f32 %v449_v0, %v435_v2  ;;  %v441_v30 = vmul.f32 %v275_v3, %v275_v3 }
  0xf3   :  { %v523_v15 = vpop.f32.mrb[4].mxu1 }
  0xf4   :  { %v451_v12 = vadd.f32 %v450_v10, %v436_v8  ;;  %v415_v13 = vadd.f32 %v414_v9, %v259_v53  ;;  %v288_v18 = vadd.f32 %v523_v15, %v685_v6  ;;  %v279_v19 = vpop.f32.mrb[5].mxu1  ;;  %v312_v53 = vshrl.u32 %v311_v48, 7 }
  0xf5   :  { %v280_v20 = vadd.f32 %v685_v6, %v279_v19  ;;  %v524_v21 = vpop.f32.mrb[6].mxu1 }
  0xf6   :  { %v416_v16 = vadd.f32 %v415_v13, %v264_v62  ;;  %v452_v17 = vadd.f32 %v451_v12, %v437_v11  ;;  %308 = vst [vmem:[%s759_s5 + $0x70] sm:$0xff] %v288_v18  ;;  %v291_v24 = vadd.f32 %v524_v21, %v685_v6  ;;  %v282_v25 = vpop.f32.mrb[7].mxu1  ;;  %v444_v38 = vmul.f32 %v288_v18, %v288_v18 }
  0xf7   :  { %306 = vst [vmem:[%s759_s5 + $0x60] sm:$0xff] %v280_v20  ;;  %v283_v26 = vadd.f32 %v685_v6, %v282_v25  ;;  %v442_v33 = vmul.f32 %v280_v20, %v280_v20  ;;  %vm467_vm1 = vcmp.lt.s32.totalorder %v312_v53, 4 }
  0xf8   :  { %v453_v22 = vadd.f32 %v452_v17, %v438_v14  ;;  %v417_v23 = vadd.f32 %v416_v16, %v267_v7  ;;  %309 = vst [vmem:[%s759_s5 + $0x78] sm:$0xff] %v291_v24  ;;  %v445_v41 = vmul.f32 %v291_v24, %v291_v24 }
  0xf9   :  { %307 = vst [vmem:[%s759_s5 + $0x68] sm:$0xff] %v283_v26  ;;  %v443_v6 = vmul.f32 %v283_v26, %v283_v26 }
  0xfa   :  { %v418_v28 = vadd.f32 %v417_v23, %v272_v61  ;;  %v454_v29 = vadd.f32 %v453_v22, %v439_v5 }
  0xfc   :  { %v455_v31 = vadd.f32 %v454_v29, %v440_v27  ;;  %v419_v32 = vadd.f32 %v418_v28, %v275_v3 }
  0xfe   :  { %v420_v34 = vadd.f32 %v419_v32, %v280_v20  ;;  %v456_v35 = vadd.f32 %v455_v31, %v441_v30 }
 0x100   :  { %v457_v36 = vadd.f32 %v456_v35, %v442_v33  ;;  %v421_v37 = vadd.f32 %v420_v34, %v283_v26 }
 0x102   :  { %v422_v39 = vadd.f32 %v421_v37, %v288_v18  ;;  %v458_v40 = vadd.f32 %v457_v36, %v443_v6 }
 0x104   :  { %v423_v42 = vadd.f32 %v422_v39, %v291_v24  ;;  %v459_v43 = vadd.f32 %v458_v40, %v444_v38 }
 0x106   :  { %v424_v44 = vrot.slane %v423_v42, 4  ;;  %v460_v45 = vadd.f32 %v459_v43, %v445_v41 }
 0x108   :  { %v425_v46 = vadd.f32 %v424_v44, %v423_v42  ;;  %v461_v47 = vrot.slane %v460_v45, 4 }
 0x10a   :  { %v426_v49 = vrot.slane %v425_v46, 2  ;;  %v462_v50 = vadd.f32 %v461_v47, %v460_v45 }
 0x10c   :  { %v427_v51 = vadd.f32 %v426_v49, %v425_v46  ;;  %v463_v52 = vrot.slane %v462_v50, 2 }
 0x10e   :  { %v428_v54 = vrot.slane %v427_v51, 1  ;;  %v464_v55 = vadd.f32 %v463_v52, %v462_v50 }
 0x110   :  { %v465_v56 = vrot.slane %v464_v55, 1  ;;  %v429_v57 = vadd.f32 %v428_v54, %v427_v51 }
 0x112   :  { %v466_v58 = vadd.f32 %v465_v56, %v464_v55 }
 0x114   :  { %v468_v59 = vsel %vm467_vm1, %v429_v57, %v466_v58 }
 0x115   :  { %469 = vst [vmem:[%s760_s6] sm:$0xff] %v468_v59 }

// kernel: densenet_forward.24
= control target key start
LH: loop header
LB: loop body
LE: loop exit
PB: predicated region body
PF: predicated region fallthrough
CT: control target
= control target key end

     0   :  { %s342_s12 = smov 0   ;;  %s378_s0 = inlined_call_operand.vmem [shape: f32[2,64,48], index: 0, kind: input, shape index: {}]   ;;  %s379_s1 = inlined_call_operand.vmem [shape: f32[1,48], index: 1, kind: input, shape index: {}]   ;;  %s380_s2 = inlined_call_operand.vmem [shape: f32[1,48], index: 2, kind: input, shape index: {}]   ;;  %s381_s3 = inlined_call_operand.vmem [shape: f32[2,8,48], index: 3, kind: output, shape index: {}]  }
   0x1 LB: > { %s293_s13 = sadd.s32 4294967295, %s320_s12   ;;  %p297_p0 = scmp.ge.s32.totalorder %s320_s12, 1  ;;  %s320_s12 = sphi %s342_s12, %s13_s12  }
   0x2   : > { %p137_p1 = scmp.lt.s32.totalorder %s320_s12, 3 }
   0x4   : > { %p138_p2 = pnand %p297_p0, %p137_p1 }
   0x5   : > { %p160_p3 = scmp.lt.s32.totalorder (!%p138_p2), %s293_s13, 1  ;;  %v301_v0 = vld [vmem:[%s379_s1] ss:$0 sm:$0xff] (!%p138_p2)  ;;  %vm215_vm0 = vcmask (!%p138_p2), 392192  }
   0x6   : > { %141 = sbr.rel (%p138_p2) target bundleno = 53 (0x35), region = 32  ;;  %v302_v1 = vld [vmem:[%s380_s2] ss:$0 sm:$0xff] (!%p138_p2) }
   0xd   : > { %s383_s13 = smov (!%p160_p3, %s293_s13), 1 }
   0xe   : > { %s305_s14 = sshll.u32 %s383_s13, 6  ;;  %s300_s22 = sshll.u32 %s383_s13, 3 }
   0xf   : > { %s164_s19 = scalar_lea.vmem %s378_s0, %s305_s14  ;;  %s168_s25 = scalar_lea.vmem %s381_s3, %s300_s22 }
  0x10   : > { %v169_v2 = vld [vmem:[%s164_s19] sm:$0xff]  ;;  %v170_v3 = vld [vmem:[%s164_s19 + $0x8] sm:$0xff]  ;;  %v171_v4 = vld [vmem:[%s164_s19 + $0x10] sm:$0xff] }
  0x11   : > { %v172_v5 = vld [vmem:[%s164_s19 + $0x18] sm:$0xff]  ;;  %v173_v6 = vld [vmem:[%s164_s19 + $0x20] sm:$0xff]  ;;  %v174_v7 = vld [vmem:[%s164_s19 + $0x28] sm:$0xff]  ;;  %v184_v8 = vmul.f32 %v301_v0, %v169_v2  ;;  %v185_v9 = vmul.f32 %v301_v0, %v170_v3  ;;  %v186_v10 = vmul.f32 %v301_v0, %v171_v4 }
  0x12   : > { %v175_v11 = vld [vmem:[%s164_s19 + $0x30] sm:$0xff]  ;;  %v176_v12 = vld [vmem:[%s164_s19 + $0x38] sm:$0xff]  ;;  %v187_v13 = vmul.f32 %v301_v0, %v172_v5  ;;  %v188_v14 = vmul.f32 %v301_v0, %v173_v6  ;;  %v189_v15 = vmul.f32 %v301_v0, %v174_v7 }
  0x13   : > { %v190_v16 = vmul.f32 %v301_v0, %v175_v11  ;;  %v199_v17 = vadd.f32 %v302_v1, %v184_v8  ;;  %v200_v18 = vadd.f32 %v302_v1, %v185_v9  ;;  %v201_v19 = vadd.f32 %v302_v1, %v186_v10 }
  0x14   : > { %v202_v20 = vadd.f32 %v302_v1, %v187_v13  ;;  %v203_v21 = vadd.f32 %v302_v1, %v188_v14  ;;  %v191_v22 = vmul.f32 %v301_v0, %v176_v12  ;;  %v204_v23 = vadd.f32 %v302_v1, %v189_v15 }
  0x15   : > { %v207_v24 = vmax.f32 %v199_v17, 0.0  ;;  %v208_v25 = vmax.f32 %v200_v18, 0.0  ;;  %v209_v26 = vmax.f32 %v201_v19, 0.0  ;;  %v205_v28 = vadd.f32 %v302_v1, %v190_v16 }
  0x16   : > { %v210_v27 = vmax.f32 %v202_v20, 0.0  ;;  %v211_v29 = vmax.f32 %v203_v21, 0.0  ;;  %v206_v34 = vadd.f32 %v302_v1, %v191_v22  ;;  %v212_v35 = vmax.f32 %v204_v23, 0.0 }
  0x17   : > { %v216_v30 = vsel %vm215_vm0, %v207_v24, 0.0  ;;  %v217_v31 = vsel %vm215_vm0, %v208_v25, 0.0  ;;  %v219_v33 = vsel %vm215_vm0, %v209_v26, 0.0  ;;  %v213_v38 = vmax.f32 %v205_v28, 0.0 }
  0x18   : > { %v218_v32 = vadd.f32 %v217_v31, %v216_v30  ;;  %v221_v36 = vsel %vm215_vm0, %v210_v27, 0.0  ;;  %v223_v39 = vsel %vm215_vm0, %v211_v29, 0.0  ;;  %v214_v41 = vmax.f32 %v206_v34, 0.0 }
  0x19   : > { %v225_v42 = vsel %vm215_vm0, %v212_v35, 0.0  ;;  %v227_v44 = vsel %vm215_vm0, %v213_v38, 0.0 }
  0x1a   : > { %v220_v37 = vadd.f32 %v219_v33, %v218_v32  ;;  %v229_v46 = vsel %vm215_vm0, %v214_v41, 0.0 }
  0x1c   : > { %v222_v40 = vadd.f32 %v221_v36, %v220_v37 }
  0x1e   : > { %v224_v43 = vadd.f32 %v223_v39, %v222_v40 }
  0x20   : > { %v226_v45 = vadd.f32 %v225_v42, %v224_v43 }
  0x22   : > { %v228_v47 = vadd.f32 %v227_v44, %v226_v45 }
  0x24   : > { %v230_v48 = vadd.f32 %v229_v46, %v228_v47 }
  0x26   : > { %v231_v49 = vrot.slane %v230_v48, 4 }
  0x28   : > { %v232_v50 = vadd.f32 %v231_v49, %v230_v48 }
  0x2a   : > { %v233_v51 = vrot.slane %v232_v50, 2 }
  0x2c   : > { %v234_v52 = vadd.f32 %v233_v51, %v232_v50 }
  0x2e   : > { %v235_v53 = vrot.slane %v234_v52, 1 }
  0x30   : > { %v236_v54 = vadd.f32 %v235_v53, %v234_v52 }
  0x32   : > { %v238_v55 = vmul.f32 0.015625, %v236_v54 }
  0x34   : > { %239 = vst.msk [vmem:[%s168_s25] sm:$0xff] %vm215_vm0, %v238_v55 }
  0x35 PF: > { %s13_s12 = sadd.s32 1, %s320_s12  }
  0x36   : > { %p10_p4 = scmp.ge.s32.totalorder %s13_s12, 4  }
  0x38   :  { %12 = sbr.rel (!%p10_p4) target bundleno = 1 (0x1), region = 62 }

// kernel: densenet_forward.25
= control target key start
LH: loop header
LB: loop body
LE: loop exit
PB: predicated region body
PF: predicated region fallthrough
CT: control target
= control target key end

     0   :  { %v213_v1 = vmov 0.0   ;;  %vm214_vm0 = vmmov 0   ;;  %s287_s0 = inlined_call_operand.vmem [shape: f32[8,48], index: 0, kind: input, shape index: {}]   ;;  %s288_s1 = inlined_call_operand.vmem [shape: f32[1,48], index: 1, kind: input, shape index: {}]   ;;  %s289_s2 = inlined_call_operand.vmem [shape: f32[1,48], index: 2, kind: input, shape index: {}]   ;;  %s290_s3 = inlined_call_operand.vmem [shape: bf16[48,128], index: 3, kind: input, shape index: {}]   ;;  %s291_s4 = inlined_call_operand.vmem [shape: f32[1,128], index: 4, kind: input, shape index: {}]   ;;  %s292_s5 = inlined_call_operand.vmem [shape: f32[8,128], index: 5, kind: output, shape index: {0}]   ;;  %s293_s6 = inlined_call_operand.hbm [shape: f32[8,128], index: 6, kind: output, shape index: {1}]  }
   0x1   :  { %v186_v0 = vld [vmem:[%s290_s3] sm:$0xff]   ;;  %173 = vmatprep.subr.bf16.mxu0 %v213_v1  ;;  %v187_v2 = vld [vmem:[%s290_s3 + $0x8] sm:$0xff]   ;;  %179 = vmatprep.mubr.msk.bf16.mxu0 %vm214_vm0, %v213_v1 }
   0x2   :  { %174 = vmatpush3.bf16.msra.mxu0 %v186_v0  ;;  %v24_v3 = vld [vmem:[%s287_s0] sm:$0xff] }
   0x3   :  { %175 = vmatprep.subr.bf16.mxu0 %v213_v1  ;;  %v161_v4 = vld [vmem:[%s288_s1] ss:$0 sm:$0xff] }
   0x4   :  { %v162_v5 = vld [vmem:[%s289_s2] ss:$0 sm:$0xff]  ;;  %v32_v6 = vmul.f32 %v161_v4, %v24_v3 }
   0x5   :  { %12 = vsyncpa [#allocation3], 0  ;;  %v188_v7 = vld [vmem:[%s290_s3 + $0x10] sm:$0xff]   ;;  %vm73_vm1 = vcmask 392192   ;;  %v119_v10 = vlaneseq  ;;  %v163_v12 = vld [vmem:[%s291_s4] ss:$0 sm:$0xff] }
   0x6   :  { %176 = vmatpush3.bf16.msra.mxu0 %v187_v2  ;;  %v40_v8 = vadd.f32 %v162_v5, %v32_v6  ;;  %s215_s4 = smov [#allocation2]  }
   0x7   :  { %177 = vmatprep.subr.bf16.mxu0 %v213_v1  ;;  %v120_v11 = vshrl.u32 %v119_v10, 7  ;;  %s151_s9 = sshll.u32 %s215_s4, 4  ;;  %s152_s9 = int_to_ptr.vmem [resolvable:$true] %s151_s9 }
   0x8   :  { %v41_v9 = vpack.c.bf16 %v40_v8, %v40_v8  ;;  %p194_p1 = scmp.lt.s32.totalorder %s152_s9, %s152_s9 }
   0x9   :  { %vm123_vm2 = vcmp.lt.s32.totalorder %v120_v11, 2  ;;  %vm140_vm3 = vcmp.lt.s32.totalorder %v120_v11, 4 }
   0xa   :  { %178 = vmatpush3.bf16.msra.mxu0 %v188_v7  ;;  %v168_v14 = vsel %vm123_vm2, 1.0, %v213_v1 }
   0xd   :  { %180 = vmatmul.mubr.msk.bf16.vlgmr.msra.gmra.mrb[0].mxu0 %vm73_vm1, %v41_v9 }
  0xe0   :  { %v111_v13 = vpop.f32.mrb[0].mxu0 }
  0xe1   :  { %v112_v15 = vadd.f32 %v163_v12, %v111_v13  ;;  %v181_v16 = vpop.f32.mrb[1].mxu0 }
  0xe2   :  { %v114_v17 = vpop.f32.mrb[2].mxu0 }
  0xe3   :  { %117 = vst [vmem:[%s292_s5] sm:$0xff] %v112_v15  ;;  %v126_v18 = vmul.f32 %v168_v14, %v112_v15  ;;  %v182_v19 = vpop.f32.mrb[3].mxu0  ;;  %s189_s5 = scalar_lea.vmem %s152_s9, 128 }
  0xe4   :  { %p190_p0 = scmp.ne.s32.totalorder %s152_s9, %s189_s5  ;;  %p195_p2 = scmp.lt.s32.totalorder %s189_s5, %s189_s5 }
  0xe5   :  { %v127_v20 = vrot.slane %v126_v18, 4  ;;  %v133_v21 = vmul.f32 %v126_v18, %v126_v18 }
  0xe6   :  { %p196_p3 = por %p195_p2, %p194_p1 }
  0xe7   :  { %v128_v22 = vadd.f32 %v127_v20, %v126_v18  ;;  %v134_v23 = vrot.slane %v133_v21, 4 }
  0xe8   :  { %p197_p4 = pnand %p196_p3, %p190_p0 }
  0xe9   :  { %v129_v24 = vrot.slane %v128_v22, 2  ;;  %v135_v25 = vadd.f32 %v134_v23, %v133_v21 }
  0xeb   :  { %v130_v26 = vadd.f32 %v129_v24, %v128_v22  ;;  %v136_v27 = vrot.slane %v135_v25, 2 }
  0xed   :  { %v131_v28 = vrot.slane %v130_v26, 1  ;;  %v137_v29 = vadd.f32 %v136_v27, %v135_v25 }
  0xef   :  { %v138_v30 = vrot.slane %v137_v29, 1  ;;  %v132_v31 = vadd.f32 %v131_v28, %v130_v26 }
  0xf1   :  { %v139_v32 = vadd.f32 %v138_v30, %v137_v29 }
  0xf3   :  { %v141_v33 = vsel %vm140_vm3, %v132_v31, %v139_v32 }
  0xf4   :  { %142 = vst [vmem:[#allocation2] sm:$0xff] %v141_v33 }
  0xf5   :  { %200 = shalt.err (!%p197_p4)
}
  0xf6   :  { %s201_s12 = scalar_lea.hbm %s293_s6, 128 }
  0xf7   :  { %p202_p5 = scmp.ne.s32.totalorder %s293_s6, %s201_s12  ;;  %p205_p6 = scmp.lt.u32.totalorder %s201_s12, %s293_s6 }
  0xf9   :  { %p207_p7 = pnand %p205_p6, %p202_p5 }
  0xfb   :  { %210 = shalt.err (!%p207_p7)
}
  0xfc   :  { %154 = dma.vmem_to_hbm [thread:$0]  %s152_s9, 128, %s293_s6, [#allocation3]  }
  0xfd   :  { %211 = dma.done.wait [#allocation3], 128  }
  0xfe   :  { %212 = vsyncadd [#allocation3], 4294967168 }
  0xff   :  { %160 = vsyncpa [#allocation3], 1 }

</bundles_post_ra>
